<compile_context>
chip_gen: v5e
topology: v5e:2x2
jax: 0.10.0
libtpu: 0.0.40
codegen_flags: <defaults>
</compile_context>

<pallas_src>
import functools

import jax
import jax.numpy as jnp
import numpy as np
from jax import lax
from jax.experimental import pallas as pl
from jax.experimental.pallas import tpu as pltpu

_LANES = 128
_SUBLANES = 8
_ROW_BLOCK = 1024                     # (1024, 128) f32 tile = 512 KiB per input block
_TV_BLOCK_BYTES = 1 << 20             # ~1 MiB of image rows per TV grid step
_VMEM_LIMIT = 32 * 1024 * 1024


# ----------------------------------------------------------------------------
# Kernel 1: tiled sum of squared differences (drives both MSE losses)
# ----------------------------------------------------------------------------
def _sumsq_kernel(a_ref, b_ref, o_ref, *, total_rows, total_blocks):
    p = pl.program_id(0)              # parallel split (uses both TCs on v7x)
    i = pl.program_id(1)              # sequential reduction axis
    n_inner = pl.num_programs(1)
    row_blk, lanes = a_ref.shape

    @pl.when(i == 0)
    def _init():
        o_ref[...] = jnp.zeros_like(o_ref)

    d = a_ref[...].astype(jnp.float32) - b_ref[...].astype(jnp.float32)
    sq = d * d

    # Mask (a) garbage rows of the (possibly partial) final block and
    # (b) duplicate steps produced by clamping the block index in the
    # index_map when total_blocks does not split evenly across the cores.
    linear = p * n_inner + i
    blk = jnp.minimum(linear, total_blocks - 1)      # must match the index_map
    row_ids = blk * row_blk + lax.broadcasted_iota(jnp.int32, (row_blk, 1), 0)
    valid = (row_ids < total_rows) & (linear < total_blocks)
    sq = jnp.where(valid, sq, 0.0)

    # Fold the (row_blk, 128) tile into the (8, 128) accumulator with pure
    # element-wise vreg adds -- no cross-lane reduction in the hot loop.
    o_ref[...] += jnp.sum(
        sq.reshape(row_blk // _SUBLANES, _SUBLANES, lanes), axis=0)


def _as_rows128(x):
    """View (or, for ragged sizes, zero-pad) x as a (rows, 128) array.

    rows is always a multiple of 8.  When x.size is a multiple of 8*128 the
    reshape is a free bitcast (no extra HBM pass, native dtype preserved).
    Zero padding is applied identically to both operands of the squared
    difference, so padded elements contribute exactly 0.
    """
    flat = jnp.ravel(x)
    n = flat.shape[0]
    chunk = _SUBLANES * _LANES
    if n % chunk != 0:
        padded = ((n + chunk - 1) // chunk) * chunk
        flat = jnp.pad(flat, (0, padded - n))
        n = padded
    return flat.reshape(n // _LANES, _LANES)


def sumsq_diff(a, b):
    """sum((a - b)**2) over all elements, computed in one Pallas kernel."""
    a2 = _as_rows128(a)
    b2 = _as_rows128(b)
    rows = a2.shape[0]                               # multiple of 8
    row_blk = min(_ROW_BLOCK, rows)
    total_blocks = pl.cdiv(rows, row_blk)
    num_splits = 2 if total_blocks >= 2 else 1       # dual-TensorCore on v7x
    inner = pl.cdiv(total_blocks, num_splits)
    last = total_blocks - 1

    def in_map(p, i):
        # Clamp so the DMA never starts past the end of the array; the kernel
        # masks out the (rare) duplicate step this creates.
        return (jnp.minimum(p * inner + i, last), 0)

    kernel = functools.partial(
        _sumsq_kernel, total_rows=rows, total_blocks=total_blocks)

    partials = pl.pallas_call(
        kernel,
        out_shape=jax.ShapeDtypeStruct((num_splits, _SUBLANES, _LANES),
                                       jnp.float32),
        grid_spec=pltpu.PrefetchScalarGridSpec(
            num_scalar_prefetch=0,
            grid=(num_splits, inner),
            in_specs=[
                pl.BlockSpec((row_blk, _LANES), in_map),
                pl.BlockSpec((row_blk, _LANES), in_map),
            ],
            out_specs=pl.BlockSpec((None, _SUBLANES, _LANES),
                                   lambda p, i: (p, 0, 0)),
        ),
        compiler_params=pltpu.CompilerParams(
            dimension_semantics=("parallel", "arbitrary"),
            vmem_limit_bytes=_VMEM_LIMIT,
        ),
    )(a2, b2)
    # Single cross-lane reduce; XLA fuses it with the loss-weight arithmetic.
    return jnp.sum(partials)


# ----------------------------------------------------------------------------
# Kernel 2: total variation of the NCHW image, gridded over blocks of rows
# ----------------------------------------------------------------------------
def _tv_kernel(x_ref, o_ref, prev_ref, *, height, h_blk):
    i = pl.program_id(0)
    nc, hb, w = x_ref.shape
    r2 = nc * hb

    @pl.when(i == 0)
    def _init():
        o_ref[...] = jnp.zeros_like(o_ref)

    x3 = x_ref[...].astype(jnp.float32)              # (nc, hb, w)
    x2 = x3.reshape(r2, w)

    # Per flattened row: within-block row index and global image row index.
    local = lax.broadcasted_iota(jnp.int32, (nc, hb, 1), 1).reshape(r2, 1)
    gid = i * h_blk + local

    # ---- width-direction adjacent diffs via a lane roll (XLU) -------------
    # The validity mask comes from the *rolled* lane iota, so each adjacent
    # pair is counted exactly once and the wrap-around pair is excluded,
    # independent of the roll convention.
    lane = lax.broadcasted_iota(jnp.int32, (1, w), 1)
    lane_r = pltpu.roll(lane, shift=w - 1, axis=1)
    x2w = pltpu.roll(x2, shift=w - 1, axis=1)
    w_pair = (lane_r - lane == 1) | (lane - lane_r == 1)
    dw = jnp.where(w_pair & (gid < height), jnp.abs(x2 - x2w), 0.0)

    # ---- height-direction adjacent diffs inside the block (sublane roll) --
    flat = lax.broadcasted_iota(jnp.int32, (r2, 1), 0)
    flat_r = pltpu.roll(flat, shift=r2 - 1, axis=0)
    local_r = pltpu.roll(local, shift=r2 - 1, axis=0)
    gid_r = i * h_blk + local_r
    x2h = pltpu.roll(x2, shift=r2 - 1, axis=0)
    h_pair = (((flat_r - flat == 1) | (flat - flat_r == 1))
              & ((local_r - local == 1) | (local - local_r == 1)))
    dh = jnp.where(h_pair & (gid < height) & (gid_r < height),
                   jnp.abs(x2 - x2h), 0.0)

    o_ref[...] += dw + dh

    # ---- row pair straddling two consecutive H blocks (VMEM carry) --------
    @pl.when(i > 0)
    def _seam():
        first = x3[:, 0:1, :]                        # first row of this block
        o_ref[0:nc, :] += jnp.abs(first - prev_ref[...]).reshape(nc, w)

    # Carry the last row of this block to the next grid step.
    prev_ref[...] = x3[:, hb - 1:hb, :]


def total_variation(img, h_block=None):
    """sum|dW| + sum|dH| of an NCHW image, computed in a Pallas kernel."""
    n, c, h, w = img.shape
    nc = n * c
    x3 = img.reshape(nc, h, w)                       # free reshape
    if h_block is None:
        row_bytes = max(1, nc * w) * 4
        blk = max(8, (_TV_BLOCK_BYTES // row_bytes) // 8 * 8)
        h_block = h if blk >= h else blk
    else:
        h_block = h if h_block >= h else max(8, (h_block // 8) * 8)
    num_blocks = pl.cdiv(h, h_block)

    kernel = functools.partial(_tv_kernel, height=h, h_blk=h_block)
    partials = pl.pallas_call(
        kernel,
        out_shape=jax.ShapeDtypeStruct((nc * h_block, w), jnp.float32),
        grid_spec=pltpu.PrefetchScalarGridSpec(
            num_scalar_prefetch=0,
            grid=(num_blocks,),
            in_specs=[pl.BlockSpec((nc, h_block, w), lambda i: (0, i, 0))],
            out_specs=pl.BlockSpec((nc * h_block, w), lambda i: (0, 0)),
            scratch_shapes=[pltpu.VMEM((nc, 1, w), jnp.float32)],
        ),
        compiler_params=pltpu.CompilerParams(
            dimension_semantics=("arbitrary",),
            vmem_limit_bytes=_VMEM_LIMIT,
        ),
    )(x3)
    return jnp.sum(partials)


# ----------------------------------------------------------------------------
# NSTLoss forward (mirrors the PyTorch module semantics)
# ----------------------------------------------------------------------------
def nst_loss(target_feature_maps, target_gram_matrices,
             img_feature_maps, img_gram_matrices, img,
             *, content_weight, style_weight, variance_weight):
    # content loss: mean-reduced MSE per feature map, averaged over maps.
    # Feature maps are large, so each gets its own well-tiled reduction.
    content_loss = jnp.float32(0.0)
    for tfe, cfe in zip(target_feature_maps, img_feature_maps):
        content_loss = content_loss + sumsq_diff(tfe, cfe) / jnp.float32(tfe.size)
    content_loss = content_loss * (content_weight / len(target_feature_maps))

    # style loss: sum-reduced MSE on gram[0] per layer, averaged over layers.
    # Gram matrices are tiny, so all layers are fused into a single kernel
    # launch by concatenating the flattened matrices (exact: unweighted sum).
    tg = jnp.concatenate([jnp.ravel(g[0]) for g in target_gram_matrices])
    cg = jnp.concatenate([jnp.ravel(g[0]) for g in img_gram_matrices])
    style_loss = sumsq_diff(tg, cg) * (style_weight / len(target_gram_matrices))

    # total variation loss
    variance_loss = variance_weight * total_variation(img)

    return content_loss, style_loss, variance_loss


# ----------------------------------------------------------------------------
# Pure-JAX reference for verification
# ----------------------------------------------------------------------------
def nst_loss_ref(tf_maps, tg_grams, if_maps, ig_grams, img,
                 *, content_weight, style_weight, variance_weight):
    c = sum(jnp.mean((a - b) ** 2) for a, b in zip(tf_maps, if_maps))
    c = c * (content_weight / len(tf_maps))
    s = sum(jnp.sum((a[0] - b[0]) ** 2) for a, b in zip(tg_grams, ig_grams))
    s = s * (style_weight / len(tg_grams))
    v = variance_weight * (
        jnp.sum(jnp.abs(img[:, :, :, :-1] - img[:, :, :, 1:]))
        + jnp.sum(jnp.abs(img[:, :, :-1, :] - img[:, :, 1:, :])))
    return c, s, v


if __name__ == "__main__":
    key = jax.random.PRNGKey(0)
    ks = jax.random.split(key, 13)

    # Three "layers".  The first two are tiny (exercise the zero-pad path and
    # single-block grids); the third is larger so the multi-block tiling, the
    # 2-way core split, the partial edge block and the clamped duplicate step
    # are all exercised (144*64*64 = 589824 elems -> 4608 rows -> 5 blocks).
    tf_maps = [
        jax.random.normal(ks[0], (1, 4, 16, 16), jnp.float32),
        jax.random.normal(ks[1], (1, 8, 8, 8), jnp.float32),
        jax.random.normal(ks[2], (1, 144, 64, 64), jnp.float32),
    ]
    if_maps = [
        jax.random.normal(ks[3], (1, 4, 16, 16), jnp.float32),
        jax.random.normal(ks[4], (1, 8, 8, 8), jnp.float32),
        jax.random.normal(ks[5], (1, 144, 64, 64), jnp.float32),
    ]
    tg_grams = [
        jax.random.normal(ks[6], (1, 4, 4), jnp.float32),
        jax.random.normal(ks[7], (1, 8, 8), jnp.float32),
        jax.random.normal(ks[8], (1, 16, 16), jnp.float32),
    ]
    ig_grams = [
        jax.random.normal(ks[9], (1, 4, 4), jnp.float32),
        jax.random.normal(ks[10], (1, 8, 8), jnp.float32),
        jax.random.normal(ks[11], (1, 16, 16), jnp.float32),
    ]
    # H = 60 is deliberately not a multiple of the TV row block used below.
    img = jax.random.normal(ks[12], (1, 3, 60, 64), jnp.float32)

    weights = dict(content_weight=1.0, style_weight=1e3, variance_weight=1e-2)

    loss_fn = jax.jit(functools.partial(nst_loss, **weights))
    c, s, v = loss_fn(tf_maps, tg_grams, if_maps, ig_grams, img)
    jax.block_until_ready((c, s, v))

    cr, sr, vr = nst_loss_ref(tf_maps, tg_grams, if_maps, ig_grams, img, **weights)
    np.testing.assert_allclose(np.asarray(c), np.asarray(cr), rtol=5e-5, atol=1e-4)
    np.testing.assert_allclose(np.asarray(s), np.asarray(sr), rtol=5e-5, atol=1e-2)
    np.testing.assert_allclose(np.asarray(v), np.asarray(vr), rtol=5e-5, atol=1e-2)

    # Also exercise the gridded total-variation path explicitly (multiple H
    # blocks, VMEM carry across block seams, partial final block).
    tv = jax.jit(functools.partial(total_variation, h_block=8))(img)
    jax.block_until_ready(tv)
    tv_ref = (jnp.sum(jnp.abs(img[:, :, :, :-1] - img[:, :, :, 1:]))
              + jnp.sum(jnp.abs(img[:, :, :-1, :] - img[:, :, 1:, :])))
    np.testing.assert_allclose(np.asarray(tv), np.asarray(tv_ref),
                               rtol=5e-5, atol=1e-2)

    print("KERNEL_OK")
</pallas_src>

<mosaic_0001>
module attributes {stable_mosaic.version = 11 : i64} {
  func.func @_sumsq_kernel(%arg0: i32, %arg1: i32, %arg2: memref<1024x128xf32, #tpu.memory_space<vmem>>, %arg3: memref<1024x128xf32, #tpu.memory_space<vmem>>, %arg4: memref<1x8x128xf32, #tpu.memory_space<vmem>>) attributes {dimension_semantics = [#tpu.dimension_semantics<parallel>, #tpu.dimension_semantics<arbitrary>], iteration_bounds = array<i64: 2, 3>, scalar_prefetch = 0 : i64, scratch_operands = 0 : i64, tpu.core_type = #tpu.core_type<tc>, window_params = [{transform_indices = @transform_0, window_bounds = array<i64: 1024, 128>}, {transform_indices = @transform_1, window_bounds = array<i64: 1024, 128>}, {transform_indices = @transform_2, window_bounds = array<i64: 1, 8, 128>}]} {
    %c0_i32 = arith.constant 0 : i32
    %0 = arith.cmpi eq, %arg1, %c0_i32 : i32
    %1 = arith.extui %0 : i1 to i32
    %c0_i32_0 = arith.constant 0 : i32
    %2 = arith.cmpi ne, %1, %c0_i32_0 : i32
    scf.if %2 {
      %cst_11 = arith.constant 0.000000e+00 : f32
      %31 = vector.broadcast %cst_11 : f32 to vector<8x128xf32>
      %c0_12 = arith.constant 0 : index
      %c0_13 = arith.constant 0 : index
      %c0_14 = arith.constant 0 : index
      %32 = vector.load %arg4[%c0_12, %c0_13, %c0_14] : memref<1x8x128xf32, #tpu.memory_space<vmem>>, vector<1x8x128xf32>
      %33 = vector.shape_cast %32 : vector<1x8x128xf32> to vector<8x128xf32>
      %34 = vector.shape_cast %31 : vector<8x128xf32> to vector<1x8x128xf32>
      tpu.vector_store %arg4[%c0_12, %c0_13, %c0_14], %34 {strides = array<i32>} : memref<1x8x128xf32, #tpu.memory_space<vmem>>, vector<1x8x128xf32>,
    } else {
    }
    %c0 = arith.constant 0 : index
    %c0_1 = arith.constant 0 : index
    %3 = vector.load %arg2[%c0, %c0_1] : memref<1024x128xf32, #tpu.memory_space<vmem>>, vector<1024x128xf32>
    %c0_2 = arith.constant 0 : index
    %c0_3 = arith.constant 0 : index
    %4 = vector.load %arg3[%c0_2, %c0_3] : memref<1024x128xf32, #tpu.memory_space<vmem>>, vector<1024x128xf32>
    %5 = arith.subf %3, %4 : vector<1024x128xf32>
    %6 = arith.mulf %5, %5 : vector<1024x128xf32>
    %c3_i32 = arith.constant 3 : i32
    %7 = arith.muli %arg0, %c3_i32 : i32
    %8 = arith.addi %7, %arg1 : i32
    %c4_i32 = arith.constant 4 : i32
    %9 = arith.minsi %8, %c4_i32 : i32
    %c1024_i32 = arith.constant 1024 : i32
    %10 = arith.muli %9, %c1024_i32 : i32
    %11 = tpu.iota {dimensions = array<i32: 0>} : vector<1024x1xi32>
    %12 = vector.broadcast %10 : i32 to vector<1024x1xi32>
    %13 = arith.addi %12, %11 : vector<1024x1xi32>
    %c4608_i32 = arith.constant 4608 : i32
    %14 = vector.broadcast %c4608_i32 : i32 to vector<1024x1xi32>
    %15 = arith.cmpi slt, %13, %14 : vector<1024x1xi32>
    %c5_i32 = arith.constant 5 : i32
    %16 = arith.cmpi slt, %8, %c5_i32 : i32
    %17 = vector.broadcast %16 : i1 to vector<1024x1xi1>
    %18 = arith.andi %15, %17 : vector<1024x1xi1>
    %cst = arith.constant 0.000000e+00 : f32
    %19 = vector.shape_cast %18 : vector<1024x1xi1> to vector<1024x1xi1>
    %20 = vector.broadcast %19 : vector<1024x1xi1> to vector<1024x128xi1>
    %21 = vector.broadcast %cst : f32 to vector<1024x128xf32>
    %22 = arith.select %20, %6, %21 : vector<1024x128xi1>, vector<1024x128xf32>
    %c0_4 = arith.constant 0 : index
    %c0_5 = arith.constant 0 : index
    %c0_6 = arith.constant 0 : index
    %23 = vector.load %arg4[%c0_4, %c0_5, %c0_6] : memref<1x8x128xf32, #tpu.memory_space<vmem>>, vector<1x8x128xf32>
    %24 = vector.shape_cast %23 : vector<1x8x128xf32> to vector<8x128xf32>
    %25 = vector.shape_cast %22 : vector<1024x128xf32> to vector<128x8x128xf32>
    %cst_7 = arith.constant dense<0.000000e+00> : vector<8x128xf32>
    %26 = vector.multi_reduction <add>, %25, %cst_7 [0] : vector<128x8x128xf32> to vector<8x128xf32>
    %27 = arith.addf %24, %26 : vector<8x128xf32>
    %c0_8 = arith.constant 0 : index
    %c0_9 = arith.constant 0 : index
    %c0_10 = arith.constant 0 : index
    %28 = vector.load %arg4[%c0_8, %c0_9, %c0_10] : memref<1x8x128xf32, #tpu.memory_space<vmem>>, vector<1x8x128xf32>
    %29 = vector.shape_cast %28 : vector<1x8x128xf32> to vector<8x128xf32>
    %30 = vector.shape_cast %27 : vector<8x128xf32> to vector<1x8x128xf32>
    tpu.vector_store %arg4[%c0_8, %c0_9, %c0_10], %30 {strides = array<i32>} : memref<1x8x128xf32, #tpu.memory_space<vmem>>, vector<1x8x128xf32>,
    return
  }
  func.func @transform_0(%arg0: i32, %arg1: i32) -> (i32, i32) {
    %c3_i32 = arith.constant 3 : i32
    %0 = arith.muli %arg0, %c3_i32 : i32
    %1 = arith.addi %0, %arg1 : i32
    %c4_i32 = arith.constant 4 : i32
    %2 = arith.minsi %1, %c4_i32 : i32
    %c0_i32 = arith.constant 0 : i32
    %c0_i32_0 = arith.constant 0 : i32
    return %2, %c0_i32 : i32, i32
  }
  func.func @transform_1(%arg0: i32, %arg1: i32) -> (i32, i32) {
    %c3_i32 = arith.constant 3 : i32
    %0 = arith.muli %arg0, %c3_i32 : i32
    %1 = arith.addi %0, %arg1 : i32
    %c4_i32 = arith.constant 4 : i32
    %2 = arith.minsi %1, %c4_i32 : i32
    %c0_i32 = arith.constant 0 : i32
    %c0_i32_0 = arith.constant 0 : i32
    return %2, %c0_i32 : i32, i32
  }
  func.func @transform_2(%arg0: i32, %arg1: i32) -> (i32, i32, i32) {
    %c0_i32 = arith.constant 0 : i32
    %c0_i32_0 = arith.constant 0 : i32
    %c0_i32_1 = arith.constant 0 : i32
    return %arg0, %c0_i32, %c0_i32_0 : i32, i32, i32
  }
}

module attributes {stable_mosaic.version = 11 : i64} {
  func.func @_sumsq_kernel(%arg0: i32, %arg1: i32, %arg2: memref<8x128xf32, #tpu.memory_space<vmem>>, %arg3: memref<8x128xf32, #tpu.memory_space<vmem>>, %arg4: memref<1x8x128xf32, #tpu.memory_space<vmem>>) attributes {dimension_semantics = [#tpu.dimension_semantics<parallel>, #tpu.dimension_semantics<arbitrary>], iteration_bounds = array<i64: 1, 1>, scalar_prefetch = 0 : i64, scratch_operands = 0 : i64, tpu.core_type = #tpu.core_type<tc>, window_params = [{transform_indices = @transform_0, window_bounds = array<i64: 8, 128>}, {transform_indices = @transform_1, window_bounds = array<i64: 8, 128>}, {transform_indices = @transform_2, window_bounds = array<i64: 1, 8, 128>}]} {
    %c0_i32 = arith.constant 0 : i32
    %0 = arith.cmpi eq, %arg1, %c0_i32 : i32
    %1 = arith.extui %0 : i1 to i32
    %c0_i32_0 = arith.constant 0 : i32
    %2 = arith.cmpi ne, %1, %c0_i32_0 : i32
    scf.if %2 {
      %cst_14 = arith.constant 0.000000e+00 : f32
      %31 = vector.broadcast %cst_14 : f32 to vector<8x128xf32>
      %c0_15 = arith.constant 0 : index
      %c0_16 = arith.constant 0 : index
      %c0_17 = arith.constant 0 : index
      %32 = vector.load %arg4[%c0_15, %c0_16, %c0_17] : memref<1x8x128xf32, #tpu.memory_space<vmem>>, vector<1x8x128xf32>
      %33 = vector.shape_cast %32 : vector<1x8x128xf32> to vector<8x128xf32>
      %34 = vector.shape_cast %31 : vector<8x128xf32> to vector<1x8x128xf32>
      tpu.vector_store %arg4[%c0_15, %c0_16, %c0_17], %34 {strides = array<i32>} : memref<1x8x128xf32, #tpu.memory_space<vmem>>, vector<1x8x128xf32>,
    } else {
    }
    %c0 = arith.constant 0 : index
    %c0_1 = arith.constant 0 : index
    %3 = vector.load %arg2[%c0, %c0_1] : memref<8x128xf32, #tpu.memory_space<vmem>>, vector<8x128xf32>
    %c0_2 = arith.constant 0 : index
    %c0_3 = arith.constant 0 : index
    %4 = vector.load %arg3[%c0_2, %c0_3] : memref<8x128xf32, #tpu.memory_space<vmem>>, vector<8x128xf32>
    %5 = arith.subf %3, %4 : vector<8x128xf32>
    %6 = arith.mulf %5, %5 : vector<8x128xf32>
    %c1_i32 = arith.constant 1 : i32
    %7 = arith.muli %arg0, %c1_i32 : i32
    %8 = arith.addi %7, %arg1 : i32
    %c0_i32_4 = arith.constant 0 : i32
    %9 = arith.minsi %8, %c0_i32_4 : i32
    %c8_i32 = arith.constant 8 : i32
    %10 = arith.muli %9, %c8_i32 : i32
    %11 = tpu.iota {dimensions = array<i32: 0>} : vector<8x1xi32>
    %12 = vector.broadcast %10 : i32 to vector<8x1xi32>
    %13 = arith.addi %12, %11 : vector<8x1xi32>
    %c8_i32_5 = arith.constant 8 : i32
    %14 = vector.broadcast %c8_i32_5 : i32 to vector<8x1xi32>
    %15 = arith.cmpi slt, %13, %14 : vector<8x1xi32>
    %c1_i32_6 = arith.constant 1 : i32
    %16 = arith.cmpi slt, %8, %c1_i32_6 : i32
    %17 = vector.broadcast %16 : i1 to vector<8x1xi1>
    %18 = arith.andi %15, %17 : vector<8x1xi1>
    %cst = arith.constant 0.000000e+00 : f32
    %19 = vector.shape_cast %18 : vector<8x1xi1> to vector<8x1xi1>
    %20 = vector.broadcast %19 : vector<8x1xi1> to vector<8x128xi1>
    %21 = vector.broadcast %cst : f32 to vector<8x128xf32>
    %22 = arith.select %20, %6, %21 : vector<8x128xi1>, vector<8x128xf32>
    %c0_7 = arith.constant 0 : index
    %c0_8 = arith.constant 0 : index
    %c0_9 = arith.constant 0 : index
    %23 = vector.load %arg4[%c0_7, %c0_8, %c0_9] : memref<1x8x128xf32, #tpu.memory_space<vmem>>, vector<1x8x128xf32>
    %24 = vector.shape_cast %23 : vector<1x8x128xf32> to vector<8x128xf32>
    %25 = vector.shape_cast %22 : vector<8x128xf32> to vector<1x8x128xf32>
    %cst_10 = arith.constant dense<0.000000e+00> : vector<8x128xf32>
    %26 = vector.multi_reduction <add>, %25, %cst_10 [0] : vector<1x8x128xf32> to vector<8x128xf32>
    %27 = arith.addf %24, %26 : vector<8x128xf32>
    %c0_11 = arith.constant 0 : index
    %c0_12 = arith.constant 0 : index
    %c0_13 = arith.constant 0 : index
    %28 = vector.load %arg4[%c0_11, %c0_12, %c0_13] : memref<1x8x128xf32, #tpu.memory_space<vmem>>, vector<1x8x128xf32>
    %29 = vector.shape_cast %28 : vector<1x8x128xf32> to vector<8x128xf32>
    %30 = vector.shape_cast %27 : vector<8x128xf32> to vector<1x8x128xf32>
    tpu.vector_store %arg4[%c0_11, %c0_12, %c0_13], %30 {strides = array<i32>} : memref<1x8x128xf32, #tpu.memory_space<vmem>>, vector<1x8x128xf32>,
    return
  }
  func.func @transform_0(%arg0: i32, %arg1: i32) -> (i32, i32) {
    %c1_i32 = arith.constant 1 : i32
    %0 = arith.muli %arg0, %c1_i32 : i32
    %1 = arith.addi %0, %arg1 : i32
    %c0_i32 = arith.constant 0 : i32
    %2 = arith.minsi %1, %c0_i32 : i32
    %c0_i32_0 = arith.constant 0 : i32
    %c0_i32_1 = arith.constant 0 : i32
    return %2, %c0_i32_0 : i32, i32
  }
  func.func @transform_1(%arg0: i32, %arg1: i32) -> (i32, i32) {
    %c1_i32 = arith.constant 1 : i32
    %0 = arith.muli %arg0, %c1_i32 : i32
    %1 = arith.addi %0, %arg1 : i32
    %c0_i32 = arith.constant 0 : i32
    %2 = arith.minsi %1, %c0_i32 : i32
    %c0_i32_0 = arith.constant 0 : i32
    %c0_i32_1 = arith.constant 0 : i32
    return %2, %c0_i32_0 : i32, i32
  }
  func.func @transform_2(%arg0: i32, %arg1: i32) -> (i32, i32, i32) {
    %c0_i32 = arith.constant 0 : i32
    %c0_i32_0 = arith.constant 0 : i32
    %c0_i32_1 = arith.constant 0 : i32
    return %arg0, %c0_i32, %c0_i32_0 : i32, i32, i32
  }
}

module attributes {stable_mosaic.version = 11 : i64} {
  func.func @_tv_kernel(%arg0: i32, %arg1: memref<3x60x64xf32, #tpu.memory_space<vmem>>, %arg2: memref<180x64xf32, #tpu.memory_space<vmem>>, %arg3: memref<3x1x64xf32, #tpu.memory_space<vmem>>) attributes {dimension_semantics = [#tpu.dimension_semantics<arbitrary>], iteration_bounds = array<i64: 1>, scalar_prefetch = 0 : i64, scratch_operands = 1 : i64, tpu.core_type = #tpu.core_type<tc>, window_params = [{transform_indices = @transform_0, window_bounds = array<i64: 3, 60, 64>}, {pipeline_mode = #tpu.pipeline_mode<synchronous>, transform_indices = @transform_1, window_bounds = array<i64: 180, 64>}]} {
    %c0_i32 = arith.constant 0 : i32
    %0 = arith.cmpi eq, %arg0, %c0_i32 : i32
    %1 = arith.extui %0 : i1 to i32
    %c0_i32_0 = arith.constant 0 : i32
    %2 = arith.cmpi ne, %1, %c0_i32_0 : i32
    scf.if %2 {
      %cst_25 = arith.constant 0.000000e+00 : f32
      %72 = vector.broadcast %cst_25 : f32 to vector<180x64xf32>
      %c0_26 = arith.constant 0 : index
      %c0_27 = arith.constant 0 : index
      %73 = vector.load %arg2[%c0_26, %c0_27] : memref<180x64xf32, #tpu.memory_space<vmem>>, vector<180x64xf32>
      tpu.vector_store %arg2[%c0_26, %c0_27], %72 {strides = array<i32>} : memref<180x64xf32, #tpu.memory_space<vmem>>, vector<180x64xf32>,
    } else {
    }
    %c0 = arith.constant 0 : index
    %c0_1 = arith.constant 0 : index
    %c0_2 = arith.constant 0 : index
    %3 = vector.load %arg1[%c0, %c0_1, %c0_2] : memref<3x60x64xf32, #tpu.memory_space<vmem>>, vector<3x60x64xf32>
    %4 = vector.shape_cast %3 : vector<3x60x64xf32> to vector<180x64xf32>
    %5 = tpu.iota {dimensions = array<i32: 1>} : vector<3x60x1xi32>
    %6 = vector.shape_cast %5 : vector<3x60x1xi32> to vector<180x1xi32>
    %c60_i32 = arith.constant 60 : i32
    %7 = arith.muli %arg0, %c60_i32 : i32
    %8 = vector.broadcast %7 : i32 to vector<180x1xi32>
    %9 = arith.addi %8, %6 : vector<180x1xi32>
    %10 = tpu.iota {dimensions = array<i32: 1>} : vector<1x64xi32>
    %c63_i32 = arith.constant 63 : i32
    %11 = tpu.dynamic_rotate %10 by %c63_i32 dim 1 : vector<1x64xi32>, i32 -> vector<1x64xi32>
    %c63_i32_3 = arith.constant 63 : i32
    %12 = tpu.dynamic_rotate %4 by %c63_i32_3 dim 1 : vector<180x64xf32>, i32 -> vector<180x64xf32>
    %13 = arith.subi %11, %10 : vector<1x64xi32>
    %c1_i32 = arith.constant 1 : i32
    %14 = vector.broadcast %c1_i32 : i32 to vector<1x64xi32>
    %15 = arith.cmpi eq, %13, %14 : vector<1x64xi32>
    %16 = arith.subi %10, %11 : vector<1x64xi32>
    %c1_i32_4 = arith.constant 1 : i32
    %17 = vector.broadcast %c1_i32_4 : i32 to vector<1x64xi32>
    %18 = arith.cmpi eq, %16, %17 : vector<1x64xi32>
    %19 = arith.ori %15, %18 : vector<1x64xi1>
    %c60_i32_5 = arith.constant 60 : i32
    %20 = vector.broadcast %c60_i32_5 : i32 to vector<180x1xi32>
    %21 = arith.cmpi slt, %9, %20 : vector<180x1xi32>
    %22 = vector.broadcast %19 : vector<1x64xi1> to vector<180x64xi1>
    %23 = vector.broadcast %21 : vector<180x1xi1> to vector<180x64xi1>
    %24 = arith.andi %22, %23 : vector<180x64xi1>
    %25 = arith.subf %4, %12 : vector<180x64xf32>
    %26 = math.absf %25 : vector<180x64xf32>
    %cst = arith.constant 0.000000e+00 : f32
    %27 = vector.broadcast %cst : f32 to vector<180x64xf32>
    %28 = arith.select %24, %26, %27 : vector<180x64xi1>, vector<180x64xf32>
    %29 = tpu.iota {dimensions = array<i32: 0>} : vector<180x1xi32>
    %c179_i32 = arith.constant 179 : i32
    %30 = tpu.dynamic_rotate %29 by %c179_i32 dim 0 : vector<180x1xi32>, i32 -> vector<180x1xi32>
    %c179_i32_6 = arith.constant 179 : i32
    %31 = tpu.dynamic_rotate %6 by %c179_i32_6 dim 0 : vector<180x1xi32>, i32 -> vector<180x1xi32>
    %c60_i32_7 = arith.constant 60 : i32
    %32 = arith.muli %arg0, %c60_i32_7 : i32
    %33 = vector.broadcast %32 : i32 to vector<180x1xi32>
    %34 = arith.addi %33, %31 : vector<180x1xi32>
    %c179_i32_8 = arith.constant 179 : i32
    %35 = tpu.dynamic_rotate %4 by %c179_i32_8 dim 0 : vector<180x64xf32>, i32 -> vector<180x64xf32>
    %36 = arith.subi %30, %29 : vector<180x1xi32>
    %c1_i32_9 = arith.constant 1 : i32
    %37 = vector.broadcast %c1_i32_9 : i32 to vector<180x1xi32>
    %38 = arith.cmpi eq, %36, %37 : vector<180x1xi32>
    %39 = arith.subi %29, %30 : vector<180x1xi32>
    %c1_i32_10 = arith.constant 1 : i32
    %40 = vector.broadcast %c1_i32_10 : i32 to vector<180x1xi32>
    %41 = arith.cmpi eq, %39, %40 : vector<180x1xi32>
    %42 = arith.ori %38, %41 : vector<180x1xi1>
    %43 = arith.subi %31, %6 : vector<180x1xi32>
    %c1_i32_11 = arith.constant 1 : i32
    %44 = vector.broadcast %c1_i32_11 : i32 to vector<180x1xi32>
    %45 = arith.cmpi eq, %43, %44 : vector<180x1xi32>
    %46 = arith.subi %6, %31 : vector<180x1xi32>
    %c1_i32_12 = arith.constant 1 : i32
    %47 = vector.broadcast %c1_i32_12 : i32 to vector<180x1xi32>
    %48 = arith.cmpi eq, %46, %47 : vector<180x1xi32>
    %49 = arith.ori %45, %48 : vector<180x1xi1>
    %50 = arith.andi %42, %49 : vector<180x1xi1>
    %c60_i32_13 = arith.constant 60 : i32
    %51 = vector.broadcast %c60_i32_13 : i32 to vector<180x1xi32>
    %52 = arith.cmpi slt, %9, %51 : vector<180x1xi32>
    %53 = arith.andi %50, %52 : vector<180x1xi1>
    %c60_i32_14 = arith.constant 60 : i32
    %54 = vector.broadcast %c60_i32_14 : i32 to vector<180x1xi32>
    %55 = arith.cmpi slt, %34, %54 : vector<180x1xi32>
    %56 = arith.andi %53, %55 : vector<180x1xi1>
    %57 = arith.subf %4, %35 : vector<180x64xf32>
    %58 = math.absf %57 : vector<180x64xf32>
    %cst_15 = arith.constant 0.000000e+00 : f32
    %59 = vector.shape_cast %56 : vector<180x1xi1> to vector<180x1xi1>
    %60 = vector.broadcast %59 : vector<180x1xi1> to vector<180x64xi1>
    %61 = vector.broadcast %cst_15 : f32 to vector<180x64xf32>
    %62 = arith.select %60, %58, %61 : vector<180x64xi1>, vector<180x64xf32>
    %c0_16 = arith.constant 0 : index
    %c0_17 = arith.constant 0 : index
    %63 = vector.load %arg2[%c0_16, %c0_17] : memref<180x64xf32, #tpu.memory_space<vmem>>, vector<180x64xf32>
    %64 = arith.addf %28, %62 : vector<180x64xf32>
    %65 = arith.addf %63, %64 : vector<180x64xf32>
    %c0_18 = arith.constant 0 : index
    %c0_19 = arith.constant 0 : index
    %66 = vector.load %arg2[%c0_18, %c0_19] : memref<180x64xf32, #tpu.memory_space<vmem>>, vector<180x64xf32>
    tpu.vector_store %arg2[%c0_18, %c0_19], %65 {strides = array<i32>} : memref<180x64xf32, #tpu.memory_space<vmem>>, vector<180x64xf32>,
    %c0_i32_20 = arith.constant 0 : i32
    %67 = arith.cmpi sgt, %arg0, %c0_i32_20 : i32
    %68 = arith.extui %67 : i1 to i32
    %c0_i32_21 = arith.constant 0 : i32
    %69 = arith.cmpi ne, %68, %c0_i32_21 : i32
    scf.if %69 {
      %72 = vector.extract_strided_slice %3 {offsets = [0, 0, 0], sizes = [3, 1, 64], strides = [1, 1, 1]} : vector<3x60x64xf32> to vector<3x1x64xf32>
      %c0_25 = arith.constant 0 : index
      %c0_26 = arith.constant 0 : index
      %73 = vector.load %arg2[%c0_25, %c0_26] : memref<180x64xf32, #tpu.memory_space<vmem>>, vector<3x64xf32>
      %c0_27 = arith.constant 0 : index
      %c0_28 = arith.constant 0 : index
      %c0_29 = arith.constant 0 : index
      %74 = vector.load %arg3[%c0_27, %c0_28, %c0_29] : memref<3x1x64xf32, #tpu.memory_space<vmem>>, vector<3x1x64xf32>
      %75 = arith.subf %72, %74 : vector<3x1x64xf32>
      %76 = math.absf %75 : vector<3x1x64xf32>
      %77 = vector.shape_cast %76 : vector<3x1x64xf32> to vector<3x64xf32>
      %78 = arith.addf %73, %77 : vector<3x64xf32>
      %c0_30 = arith.constant 0 : index
      %c0_31 = arith.constant 0 : index
      %79 = vector.load %arg2[%c0_30, %c0_31] : memref<180x64xf32, #tpu.memory_space<vmem>>, vector<3x64xf32>
      tpu.vector_store %arg2[%c0_30, %c0_31], %78 {strides = array<i32>} : memref<180x64xf32, #tpu.memory_space<vmem>>, vector<3x64xf32>,
    } else {
    }
    %70 = vector.extract_strided_slice %3 {offsets = [0, 59, 0], sizes = [3, 1, 64], strides = [1, 1, 1]} : vector<3x60x64xf32> to vector<3x1x64xf32>
    %c0_22 = arith.constant 0 : index
    %c0_23 = arith.constant 0 : index
    %c0_24 = arith.constant 0 : index
    %71 = vector.load %arg3[%c0_22, %c0_23, %c0_24] : memref<3x1x64xf32, #tpu.memory_space<vmem>>, vector<3x1x64xf32>
    tpu.vector_store %arg3[%c0_22, %c0_23, %c0_24], %70 {strides = array<i32>} : memref<3x1x64xf32, #tpu.memory_space<vmem>>, vector<3x1x64xf32>,
    return
  }
  func.func @transform_0(%arg0: i32) -> (i32, i32, i32) {
    %c0_i32 = arith.constant 0 : i32
    %c0_i32_0 = arith.constant 0 : i32
    %c0_i32_1 = arith.constant 0 : i32
    return %c0_i32, %arg0, %c0_i32_0 : i32, i32, i32
  }
  func.func @transform_1(%arg0: i32) -> (i32, i32) {
    %c0_i32 = arith.constant 0 : i32
    %c0_i32_0 = arith.constant 0 : i32
    %c0_i32_1 = arith.constant 0 : i32
    return %c0_i32, %c0_i32_0 : i32, i32
  }
}

</mosaic_0001>

<bundles_post_ra>
// kernel: nst_loss.7
= control target key start
LH: loop header
LB: loop body
LE: loop exit
PB: predicated region body
PF: predicated region fallthrough
CT: control target
= control target key end

     0   :  { %s2015_s9 = smov 0   ;;  %s2017_s10 = smov 0   ;;  %s3610_s0 = inlined_call_operand.vmem [shape: f32[4608,128], index: 0, kind: input, shape index: {}]   ;;  %s3611_s1 = inlined_call_operand.vmem [shape: f32[4608,128], index: 1, kind: input, shape index: {}]   ;;  %s3612_s2 = inlined_call_operand.vmem [shape: f32[2,8,128], index: 2, kind: output, shape index: {}]  }
   0x1   :  { %s2019_s11 = smov 0   ;;  %s2021_s12 = smov 0  }
   0x2   :  { %s2023_s13 = smov 0  }
   0x3 LB: > { %s21_s14 = sadd.s32 1, %s1989_s11  ;;  %s24_s15 = sadd.s32 1, %s1993_s12  ;;  %s1997_s13 = sphi %s2023_s13, %s12_s13   ;;  %s1993_s12 = sphi %s2021_s12, %s3864_s12   ;;  %s1989_s11 = sphi %s2019_s11, %s3863_s11   ;;  %s1985_s10 = sphi %s2017_s10, %s3862_s10   ;;  %s1981_s9 = sphi %s2015_s9, %s3861_s9  }
   0x4   : > { %p22_p0 = scmp.ge.s32.totalorder %s21_s14, 3  ;;  %p1908_p1 = scmp.ge.s32.totalorder %s1997_s13, 1 }
   0x5   : > { %p184_p2 = scmp.lt.s32.totalorder %s1997_s13, 7 }
   0x6   : > { %s3866_s14 = smov (%p22_p0, %s21_s14), 0  ;;  %s3868_s15 = smov (!%p22_p0, %s24_s15), %s1993_s12 }
   0x7   : > { %p185_p3 = pnand %p1908_p1, %p184_p2  ;;  %p26_p4 = scmp.ge.s32.totalorder %s3868_s15, 2 }
   0x8   : > { %s226_s16 = smul.u32 (!%p185_p3), 3, %s1985_s10  ;;  %p270_p5 = scmp.lt.s32.totalorder (!%p185_p3), %s1985_s10, 1 }
   0x9   : > { %s3870_s15 = smov (%p26_p4, %s3868_s15), 0  ;;  %188 = sbr.rel (%p185_p3) target bundleno = 295 (0x127), region = 28 }
   0xa   : > { %s2048_s17 = sadd.s32 (!%p185_p3), %s1981_s9, %s226_s16  ;;  %p1914_p8 = scmp.ne.s32.totalorder (!%p185_p3), %s1981_s9, 0 }
   0xb   : > { %p228_p6 = scmp.lt.s32.totalorder (!%p185_p3), %s2048_s17, 4 }
   0xe   : > { %s3872_s10 = smov (!%p270_p5, %s1985_s10), 1 }
   0xf   : > { %s229_s18 = scalar_select %p228_p6, %s2048_s17, 4 }
  0x10   : > { %s1913_s19 = sshll.u32 %s3872_s10, 3 }
  0x11   : > { %s1909_s20 = sshll.u32 %s229_s18, 7  ;;  %s2055_s23 = scalar_lea.vmem %s3612_s2, %s1913_s19 }
  0x12   : > { %p235_p7 = scmp.lt.s32.totalorder %s1909_s20, 575  ;;  %277 = sbr.rel (%p1914_p8) target bundleno = 25 (0x19), region = 32 }
  0x14   : > { %s3874_s20 = smov (!%p235_p7, %s1909_s20), 575 }
  0x15   : > { %s1910_s24 = sshll.u32 %s3874_s20, 3 }
  0x16   : > { %s2060_s27 = scalar_lea.vmem %s3610_s0, %s1910_s24  ;;  %s2065_s30 = scalar_lea.vmem %s3611_s1, %s1910_s24 }
  0x17   : > { %v1999_v0 = vmov 0.0  }
  0x18   : > { %278 = vst [vmem:[%s2055_s23] sm:$0xff] %v1999_v0 }
  0x19 PF: > { %v796_v1 = vlaneseq  ;;  %s1915_s3 = sshll.u32 %s229_s18, 10  ;;  %v279_v3 = vld [vmem:[%s2060_s27] sm:$0xff]  ;;  %p1182_p9 = scmp.lt.s32.totalorder %s2048_s17, 5  ;;  %v280_v7 = vld [vmem:[%s2060_s27 + $0x8] sm:$0xff]  ;;  %v281_v10 = vld [vmem:[%s2060_s27 + $0x10] sm:$0xff] }
  0x1a   : > { %v407_v4 = vld [vmem:[%s2065_s30] sm:$0xff]  ;;  %v2074_v6 = vstv %s1915_s3  ;;  %v408_v8 = vld [vmem:[%s2065_s30 + $0x8] sm:$0xff]  ;;  %v409_v11 = vld [vmem:[%s2065_s30 + $0x10] sm:$0xff] }
  0x1b   : > { %v2069_v2 = vshrl.u32 %v796_v1, 7  ;;  %v282_v13 = vld [vmem:[%s2060_s27 + $0x18] sm:$0xff]  ;;  %v535_v15 = vsub.f32 %v279_v3, %v407_v4  ;;  %v283_v18 = vld [vmem:[%s2060_s27 + $0x20] sm:$0xff]  ;;  %v536_v20 = vsub.f32 %v280_v7, %v408_v8  ;;  %s1183_s4 = scalar_select %p1182_p9, 1, 0  ;;  %v537_v23 = vsub.f32 %v281_v10, %v409_v11  ;;  %v284_v29 = vld [vmem:[%s2060_s27 + $0x28] sm:$0xff] }
  0x1c   : > { %v410_v14 = vld [vmem:[%s2065_s30 + $0x18] sm:$0xff]  ;;  %v411_v19 = vld [vmem:[%s2065_s30 + $0x20] sm:$0xff]  ;;  %v412_v30 = vld [vmem:[%s2065_s30 + $0x28] sm:$0xff] }
  0x1d   : > { %v798_v5 = vadd.s32 8, %v2069_v2  ;;  %v799_v9 = vadd.s32 16, %v2069_v2  ;;  %v800_v12 = vadd.s32 24, %v2069_v2  ;;  %v801_v16 = vadd.s32 32, %v2069_v2  ;;  %v285_v34 = vld [vmem:[%s2060_s27 + $0x30] sm:$0xff]  ;;  %v286_v42 = vld [vmem:[%s2060_s27 + $0x38] sm:$0xff] }
  0x1e   : > { %v926_v17 = vadd.s32 %v2074_v6, %v2069_v2  ;;  %v802_v21 = vadd.s32 40, %v2069_v2  ;;  %v538_v25 = vsub.f32 %v282_v13, %v410_v14  ;;  %v803_v26 = vadd.s32 48, %v2069_v2  ;;  %v413_v35 = vld [vmem:[%s2065_s30 + $0x30] sm:$0xff]  ;;  %v414_v43 = vld [vmem:[%s2065_s30 + $0x38] sm:$0xff]  ;;  %v287_v51 = vld [vmem:[%s2060_s27 + $0x40] sm:$0xff] }
  0x1f   : > { %v927_v22 = vadd.s32 %v2074_v6, %v798_v5  ;;  %v928_v24 = vadd.s32 %v2074_v6, %v799_v9  ;;  %v804_v27 = vadd.s32 56, %v2069_v2  ;;  %v929_v28 = vadd.s32 %v2074_v6, %v800_v12  ;;  %v415_v52 = vld [vmem:[%s2065_s30 + $0x40] sm:$0xff]  ;;  %v288_v62 = vld [vmem:[%s2060_s27 + $0x48] sm:$0xff]  ;;  %v289_v10 = vld [vmem:[%s2060_s27 + $0x50] sm:$0xff] }
  0x20   : > { %v539_v31 = vsub.f32 %v283_v18, %v411_v19  ;;  %v663_v32 = vmul.f32 %v535_v15, %v535_v15  ;;  %v930_v33 = vadd.s32 %v2074_v6, %v801_v16  ;;  %vm1054_vm0 = vcmp.lt.s32.totalorder %v926_v17, 4608  ;;  %v416_v63 = vld [vmem:[%s2065_s30 + $0x48] sm:$0xff]  ;;  %v417_v11 = vld [vmem:[%s2065_s30 + $0x50] sm:$0xff]  ;;  %v290_v19 = vld [vmem:[%s2060_s27 + $0x58] sm:$0xff] }
  0x21   : > { %v664_v36 = vmul.f32 %v536_v20, %v536_v20  ;;  %v931_v37 = vadd.s32 %v2074_v6, %v802_v21  ;;  %vm1055_vm1 = vcmp.lt.s32.totalorder %v927_v22, 4608  ;;  %v1184_v38 = vstv %s1183_s4  ;;  %v418_v20 = vld [vmem:[%s2065_s30 + $0x58] sm:$0xff]  ;;  %v293_v47 = vld [vmem:[%s2060_s27 + $0x70] sm:$0xff]  ;;  %v423_v3 = vld [vmem:[%s2065_s30 + $0x80] sm:$0xff] }
  0x22   : > { %v665_v39 = vmul.f32 %v537_v23, %v537_v23  ;;  %v805_v40 = vadd.s32 64, %v2069_v2  ;;  %vm1056_vm2 = vcmp.lt.s32.totalorder %v928_v24, 4608  ;;  %vm2105_vm3 = vcmp.eq.s32.totalorder %v1184_v38, 1  ;;  %v420_v38 = vld [vmem:[%s2065_s30 + $0x68] sm:$0xff] }
  0x23   : > { %v540_v44 = vsub.f32 %v284_v29, %v412_v30  ;;  %v666_v45 = vmul.f32 %v538_v25, %v538_v25  ;;  %v932_v46 = vadd.s32 %v2074_v6, %v803_v26  ;;  %vm1057_vm4 = vcmp.lt.s32.totalorder %v929_v28, 4608  ;;  %vm2115_vm5 = vmand %vm1054_vm0, %vm2105_vm3  ;;  %v291_v28 = vld [vmem:[%s2060_s27 + $0x60] sm:$0xff] }
  0x24   : > { %v541_v48 = vsub.f32 %v285_v34, %v413_v35  ;;  %v806_v49 = vadd.s32 72, %v2069_v2  ;;  %vm1058_vm6 = vcmp.lt.s32.totalorder %v930_v33, 4608  ;;  %vm1187_vm7 = vmand %vm1055_vm1, %vm2105_vm3  ;;  %v1570_v50 = vsel %vm2115_vm5, %v663_v32, 0.0  ;;  %v419_v29 = vld [vmem:[%s2065_s30 + $0x60] sm:$0xff] }
  0x25   : > { %v667_v53 = vmul.f32 %v539_v31, %v539_v31  ;;  %v933_v54 = vadd.s32 %v2074_v6, %v804_v27  ;;  %vm1059_vm8 = vcmp.lt.s32.totalorder %v931_v37, 4608  ;;  %vm2131_vm9 = vmand %vm1056_vm2, %vm2105_vm3  ;;  %v1571_v56 = vsel %vm1187_vm7, %v664_v36, 0.0  ;;  %v292_v37 = vld [vmem:[%s2060_s27 + $0x68] sm:$0xff] }
  0x26   : > { %v542_v57 = vsub.f32 %v286_v42, %v414_v43  ;;  %v807_v58 = vadd.s32 80, %v2069_v2  ;;  %vm2139_vm10 = vmand %vm1057_vm4, %vm2105_vm3  ;;  %v1572_v60 = vsel %vm2131_vm9, %v665_v39, 0.0  ;;  %v1699_v61 = vadd.f32 %v1571_v56, %v1570_v50  ;;  %v294_v56 = vld [vmem:[%s2060_s27 + $0x78] sm:$0xff] }
  0x27   : > { %v668_v0 = vmul.f32 %v540_v44, %v540_v44  ;;  %v934_v1 = vadd.s32 %v2074_v6, %v805_v40  ;;  %vm1060_vm11 = vcmp.lt.s32.totalorder %v932_v46, 4608  ;;  %vm2151_vm12 = vmand %vm1058_vm6, %vm2105_vm3  ;;  %v1573_v4 = vsel %vm2139_vm10, %v666_v45, 0.0 }
  0x28   : > { %v543_v5 = vsub.f32 %v287_v51, %v415_v52  ;;  %v808_v7 = vadd.s32 88, %v2069_v2  ;;  %vm2161_vm13 = vmand %vm1059_vm8, %vm2105_vm3  ;;  %v1700_v9 = vadd.f32 %v1699_v61, %v1572_v60  ;;  %v669_v12 = vmul.f32 %v541_v48, %v541_v48  ;;  %v421_v48 = vld [vmem:[%s2065_s30 + $0x70] sm:$0xff] }
  0x29   : > { %v935_v13 = vadd.s32 %v2074_v6, %v806_v49  ;;  %vm1061_vm14 = vcmp.lt.s32.totalorder %v933_v54, 4608  ;;  %v1574_v14 = vsel %vm2151_vm12, %v667_v53, 0.0  ;;  %v544_v15 = vsub.f32 %v288_v62, %v416_v63  ;;  %vm2174_vm15 = vmand %vm1060_vm11, %vm2105_vm3 }
  0x2a   : > { %v809_v16 = vadd.s32 96, %v2069_v2  ;;  %v1701_v18 = vadd.f32 %v1700_v9, %v1573_v4  ;;  %v670_v21 = vmul.f32 %v542_v57, %v542_v57  ;;  %v936_v22 = vadd.s32 %v2074_v6, %v807_v58  ;;  %vm2186_vm1 = vmand %vm1061_vm14, %vm2105_vm3  ;;  %v422_v57 = vld [vmem:[%s2065_s30 + $0x78] sm:$0xff] }
  0x2b   : > { %vm1062_vm0 = vcmp.lt.s32.totalorder %v934_v1, 4608  ;;  %v1575_v23 = vsel %vm2161_vm13, %v668_v0, 0.0  ;;  %v545_v24 = vsub.f32 %v289_v10, %v417_v11  ;;  %v810_v25 = vadd.s32 104, %v2069_v2  ;;  %v295_v1 = vld [vmem:[%s2060_s27 + $0x80] sm:$0xff] }
  0x2c   : > { %v1702_v27 = vadd.f32 %v1701_v18, %v1574_v14  ;;  %v671_v30 = vmul.f32 %v543_v5, %v543_v5  ;;  %v937_v31 = vadd.s32 %v2074_v6, %v808_v7  ;;  %vm1063_vm2 = vcmp.lt.s32.totalorder %v935_v13, 4608  ;;  %vm2198_vm4 = vmand %vm1062_vm0, %vm2105_vm3  ;;  %v424_v13 = vld [vmem:[%s2065_s30 + $0x88] sm:$0xff] }
  0x2d   : > { %v1576_v32 = vsel %vm2174_vm15, %v669_v12, 0.0  ;;  %v546_v33 = vsub.f32 %v290_v19, %v418_v20  ;;  %v811_v34 = vadd.s32 112, %v2069_v2  ;;  %v672_v39 = vmul.f32 %v544_v15, %v544_v15  ;;  %vm2210_vm6 = vmand %vm1063_vm2, %vm2105_vm3  ;;  %v296_v12 = vld [vmem:[%s2060_s27 + $0x88] sm:$0xff] }
  0x2e   : > { %v1703_v36 = vadd.f32 %v1702_v27, %v1575_v23  ;;  %v938_v40 = vadd.s32 %v2074_v6, %v809_v16  ;;  %vm1064_vm5 = vcmp.lt.s32.totalorder %v936_v22, 4608  ;;  %v1577_v42 = vsel %vm2186_vm1, %v670_v21, 0.0  ;;  %v297_v21 = vld [vmem:[%s2060_s27 + $0x90] sm:$0xff] }
  0x2f   : > { %v547_v43 = vsub.f32 %v291_v28, %v419_v29  ;;  %v812_v44 = vadd.s32 120, %v2069_v2  ;;  %v673_v49 = vmul.f32 %v545_v24, %v545_v24  ;;  %v939_v50 = vadd.s32 %v2074_v6, %v810_v25  ;;  %vm2222_vm8 = vmand %vm1064_vm5, %vm2105_vm3  ;;  %v425_v22 = vld [vmem:[%s2065_s30 + $0x90] sm:$0xff] }
  0x30   : > { %v1704_v46 = vadd.f32 %v1703_v36, %v1576_v32  ;;  %vm1065_vm7 = vcmp.lt.s32.totalorder %v937_v31, 4608  ;;  %v1578_v51 = vsel %vm2198_vm4, %v671_v30, 0.0  ;;  %v548_v52 = vsub.f32 %v292_v37, %v420_v38  ;;  %v298_v30 = vld [vmem:[%s2060_s27 + $0x98] sm:$0xff] }
  0x31   : > { %v813_v53 = vadd.s32 128, %v2069_v2  ;;  %v674_v58 = vmul.f32 %v546_v33, %v546_v33  ;;  %v940_v59 = vadd.s32 %v2074_v6, %v811_v34  ;;  %vm1066_vm9 = vcmp.lt.s32.totalorder %v938_v40, 4608  ;;  %vm2234_vm10 = vmand %vm1065_vm7, %vm2105_vm3  ;;  %v426_v31 = vld [vmem:[%s2065_s30 + $0x98] sm:$0xff]  ;;  %v427_v40 = vld [vmem:[%s2065_s30 + $0xa0] sm:$0xff] }
  0x32   : > { %v1705_v55 = vadd.f32 %v1704_v46, %v1577_v42  ;;  %v1579_v60 = vsel %vm2210_vm6, %v672_v39, 0.0  ;;  %v549_v61 = vsub.f32 %v293_v47, %v421_v48  ;;  %v814_v62 = vadd.s32 136, %v2069_v2  ;;  %vm2246_vm12 = vmand %vm1066_vm9, %vm2105_vm3  ;;  %v299_v39 = vld [vmem:[%s2060_s27 + $0xa0] sm:$0xff] }
  0x33   : > { %v675_v4 = vmul.f32 %v547_v43, %v547_v43  ;;  %v941_v5 = vadd.s32 %v2074_v6, %v812_v44  ;;  %vm1067_vm11 = vcmp.lt.s32.totalorder %v939_v50, 4608  ;;  %v1580_v7 = vsel %vm2222_vm8, %v673_v49, 0.0  ;;  %v300_v49 = vld [vmem:[%s2060_s27 + $0xa8] sm:$0xff] }
  0x34   : > { %v1706_v0 = vadd.f32 %v1705_v55, %v1578_v51  ;;  %v550_v8 = vsub.f32 %v294_v56, %v422_v57  ;;  %v815_v9 = vadd.s32 144, %v2069_v2  ;;  %v676_v14 = vmul.f32 %v548_v52, %v548_v52  ;;  %vm2257_vm14 = vmand %vm1067_vm11, %vm2105_vm3  ;;  %v428_v50 = vld [vmem:[%s2065_s30 + $0xa8] sm:$0xff] }
  0x35   : > { %v942_v15 = vadd.s32 %v2074_v6, %v813_v53  ;;  %vm1068_vm13 = vcmp.lt.s32.totalorder %v940_v59, 4608  ;;  %v1581_v16 = vsel %vm2234_vm10, %v674_v58, 0.0  ;;  %v551_v17 = vsub.f32 %v295_v1, %v423_v3  ;;  %v301_v58 = vld [vmem:[%s2060_s27 + $0xb0] sm:$0xff] }
  0x36   : > { %v1707_v11 = vadd.f32 %v1706_v0, %v1579_v60  ;;  %v677_v18 = vmul.f32 %v549_v61, %v549_v61  ;;  %v816_v23 = vadd.s32 152, %v2069_v2  ;;  %v943_v24 = vadd.s32 %v2074_v6, %v814_v62  ;;  %vm2269_vm0 = vmand %vm1068_vm13, %vm2105_vm3  ;;  %v429_v59 = vld [vmem:[%s2065_s30 + $0xb0] sm:$0xff] }
  0x37   : > { %vm1069_vm15 = vcmp.lt.s32.totalorder %v941_v5, 4608  ;;  %v1582_v25 = vsel %vm2246_vm12, %v675_v4, 0.0  ;;  %v552_v26 = vsub.f32 %v296_v12, %v424_v13  ;;  %v678_v27 = vmul.f32 %v550_v8, %v550_v8  ;;  %v302_v4 = vld [vmem:[%s2060_s27 + $0xb8] sm:$0xff] }
  0x38   : > { %v1708_v20 = vadd.f32 %v1707_v11, %v1580_v7  ;;  %v817_v32 = vadd.s32 160, %v2069_v2  ;;  %v944_v33 = vadd.s32 %v2074_v6, %v815_v9  ;;  %vm1070_vm1 = vcmp.lt.s32.totalorder %v942_v15, 4608  ;;  %vm2281_vm2 = vmand %vm1069_vm15, %vm2105_vm3  ;;  %v430_v5 = vld [vmem:[%s2065_s30 + $0xb8] sm:$0xff]  ;;  %v431_v15 = vld [vmem:[%s2065_s30 + $0xc0] sm:$0xff] }
  0x39   : > { %v1583_v34 = vsel %vm2257_vm14, %v676_v14, 0.0  ;;  %v553_v35 = vsub.f32 %v297_v21, %v425_v22  ;;  %v679_v36 = vmul.f32 %v551_v17, %v551_v17  ;;  %v818_v42 = vadd.s32 168, %v2069_v2  ;;  %vm2293_vm5 = vmand %vm1070_vm1, %vm2105_vm3  ;;  %v303_v14 = vld [vmem:[%s2060_s27 + $0xc0] sm:$0xff] }
  0x3a   : > { %v1709_v29 = vadd.f32 %v1708_v20, %v1581_v16  ;;  %v945_v43 = vadd.s32 %v2074_v6, %v816_v23  ;;  %vm1071_vm4 = vcmp.lt.s32.totalorder %v943_v24, 4608  ;;  %v1584_v44 = vsel %vm2269_vm0, %v677_v18, 0.0  ;;  %v304_v23 = vld [vmem:[%s2060_s27 + $0xc8] sm:$0xff] }
  0x3b   : > { %v554_v45 = vsub.f32 %v298_v30, %v426_v31  ;;  %v680_v46 = vmul.f32 %v552_v26, %v552_v26  ;;  %v819_v51 = vadd.s32 176, %v2069_v2  ;;  %v946_v52 = vadd.s32 %v2074_v6, %v817_v32  ;;  %vm2305_vm7 = vmand %vm1071_vm4, %vm2105_vm3  ;;  %v432_v24 = vld [vmem:[%s2065_s30 + $0xc8] sm:$0xff]  ;;  %v305_v32 = vld [vmem:[%s2060_s27 + $0xd0] sm:$0xff] }
  0x3c   : > { %v1710_v38 = vadd.f32 %v1709_v29, %v1582_v25  ;;  %vm1072_vm6 = vcmp.lt.s32.totalorder %v944_v33, 4608  ;;  %v1585_v53 = vsel %vm2281_vm2, %v678_v27, 0.0  ;;  %v555_v54 = vsub.f32 %v299_v39, %v427_v40  ;;  %v433_v33 = vld [vmem:[%s2065_s30 + $0xd0] sm:$0xff] }
  0x3d   : > { %v681_v55 = vmul.f32 %v553_v35, %v553_v35  ;;  %v820_v60 = vadd.s32 184, %v2069_v2  ;;  %v947_v61 = vadd.s32 %v2074_v6, %v818_v42  ;;  %vm1073_vm8 = vcmp.lt.s32.totalorder %v945_v43, 4608  ;;  %vm2317_vm9 = vmand %vm1072_vm6, %vm2105_vm3  ;;  %v306_v42 = vld [vmem:[%s2060_s27 + $0xd8] sm:$0xff] }
  0x3e   : > { %v1711_v48 = vadd.f32 %v1710_v38, %v1583_v34  ;;  %v1586_v62 = vsel %vm2293_vm5, %v679_v36, 0.0  ;;  %v556_v63 = vsub.f32 %v300_v49, %v428_v50  ;;  %v682_v0 = vmul.f32 %v554_v45, %v554_v45  ;;  %vm2329_vm11 = vmand %vm1073_vm8, %vm2105_vm3  ;;  %v434_v43 = vld [vmem:[%s2065_s30 + $0xd8] sm:$0xff] }
  0x3f   : > { %v821_v7 = vadd.s32 192, %v2069_v2  ;;  %v948_v8 = vadd.s32 %v2074_v6, %v819_v51  ;;  %vm1074_vm10 = vcmp.lt.s32.totalorder %v946_v52, 4608  ;;  %v1587_v9 = vsel %vm2305_vm7, %v680_v46, 0.0  ;;  %v307_v51 = vld [vmem:[%s2060_s27 + $0xe0] sm:$0xff] }
  0x40   : > { %v1712_v57 = vadd.f32 %v1711_v48, %v1584_v44  ;;  %v557_v10 = vsub.f32 %v301_v58, %v429_v59  ;;  %v683_v11 = vmul.f32 %v555_v54, %v555_v54  ;;  %v822_v16 = vadd.s32 200, %v2069_v2  ;;  %vm2341_vm13 = vmand %vm1074_vm10, %vm2105_vm3  ;;  %v435_v52 = vld [vmem:[%s2065_s30 + $0xe0] sm:$0xff] }
  0x41   : > { %v949_v17 = vadd.s32 %v2074_v6, %v820_v60  ;;  %vm1075_vm12 = vcmp.lt.s32.totalorder %v947_v61, 4608  ;;  %v1588_v18 = vsel %vm2317_vm9, %v681_v55, 0.0  ;;  %v558_v19 = vsub.f32 %v302_v4, %v430_v5  ;;  %v308_v60 = vld [vmem:[%s2060_s27 + $0xe8] sm:$0xff] }
  0x42   : > { %v1713_v3 = vadd.f32 %v1712_v57, %v1585_v53  ;;  %v684_v20 = vmul.f32 %v556_v63, %v556_v63  ;;  %v823_v25 = vadd.s32 208, %v2069_v2  ;;  %v950_v26 = vadd.s32 %v2074_v6, %v821_v7  ;;  %vm2353_vm15 = vmand %vm1075_vm12, %vm2105_vm3  ;;  %v436_v61 = vld [vmem:[%s2065_s30 + $0xe8] sm:$0xff]  ;;  %v309_v7 = vld [vmem:[%s2060_s27 + $0xf0] sm:$0xff] }
  0x43   : > { %vm1076_vm14 = vcmp.lt.s32.totalorder %v948_v8, 4608  ;;  %v1589_v27 = vsel %vm2329_vm11, %v682_v0, 0.0  ;;  %v559_v28 = vsub.f32 %v303_v14, %v431_v15  ;;  %v685_v29 = vmul.f32 %v557_v10, %v557_v10  ;;  %v437_v8 = vld [vmem:[%s2065_s30 + $0xf0] sm:$0xff] }
  0x44   : > { %v1714_v13 = vadd.f32 %v1713_v3, %v1586_v62  ;;  %v824_v34 = vadd.s32 216, %v2069_v2  ;;  %v951_v35 = vadd.s32 %v2074_v6, %v822_v16  ;;  %vm1077_vm0 = vcmp.lt.s32.totalorder %v949_v17, 4608  ;;  %vm2365_vm1 = vmand %vm1076_vm14, %vm2105_vm3  ;;  %v310_v16 = vld [vmem:[%s2060_s27 + $0xf8] sm:$0xff] }
  0x45   : > { %v1590_v36 = vsel %vm2341_vm13, %v683_v11, 0.0  ;;  %v560_v37 = vsub.f32 %v304_v23, %v432_v24  ;;  %v686_v38 = vmul.f32 %v558_v19, %v558_v19  ;;  %v825_v44 = vadd.s32 224, %v2069_v2  ;;  %vm2377_vm4 = vmand %vm1077_vm0, %vm2105_vm3  ;;  %v438_v17 = vld [vmem:[%s2065_s30 + $0xf8] sm:$0xff] }
  0x46   : > { %v1715_v22 = vadd.f32 %v1714_v13, %v1587_v9  ;;  %v952_v45 = vadd.s32 %v2074_v6, %v823_v25  ;;  %vm1078_vm2 = vcmp.lt.s32.totalorder %v950_v26, 4608  ;;  %v1591_v46 = vsel %vm2353_vm15, %v684_v20, 0.0  ;;  %v311_v25 = vld [vmem:[%s2060_s27 + $0x100] sm:$0xff] }
  0x47   : > { %v561_v47 = vsub.f32 %v305_v32, %v433_v33  ;;  %v687_v48 = vmul.f32 %v559_v28, %v559_v28  ;;  %v826_v53 = vadd.s32 232, %v2069_v2  ;;  %v953_v54 = vadd.s32 %v2074_v6, %v824_v34  ;;  %vm2389_vm6 = vmand %vm1078_vm2, %vm2105_vm3  ;;  %v439_v26 = vld [vmem:[%s2065_s30 + $0x100] sm:$0xff]  ;;  %v312_v34 = vld [vmem:[%s2060_s27 + $0x108] sm:$0xff] }
  0x48   : > { %v1716_v31 = vadd.f32 %v1715_v22, %v1588_v18  ;;  %vm1079_vm5 = vcmp.lt.s32.totalorder %v951_v35, 4608  ;;  %v1592_v55 = vsel %vm2365_vm1, %v685_v29, 0.0  ;;  %v562_v56 = vsub.f32 %v306_v42, %v434_v43  ;;  %v440_v35 = vld [vmem:[%s2065_s30 + $0x108] sm:$0xff] }
  0x49   : > { %v688_v57 = vmul.f32 %v560_v37, %v560_v37  ;;  %v827_v62 = vadd.s32 240, %v2069_v2  ;;  %v954_v63 = vadd.s32 %v2074_v6, %v825_v44  ;;  %vm1080_vm7 = vcmp.lt.s32.totalorder %v952_v45, 4608  ;;  %vm2401_vm8 = vmand %vm1079_vm5, %vm2105_vm3  ;;  %v313_v44 = vld [vmem:[%s2060_s27 + $0x110] sm:$0xff] }
  0x4a   : > { %v1717_v40 = vadd.f32 %v1716_v31, %v1589_v27  ;;  %v1593_v0 = vsel %vm2377_vm4, %v686_v38, 0.0  ;;  %v563_v1 = vsub.f32 %v307_v51, %v435_v52  ;;  %v689_v3 = vmul.f32 %v561_v47, %v561_v47  ;;  %vm2413_vm10 = vmand %vm1080_vm7, %vm2105_vm3  ;;  %v441_v45 = vld [vmem:[%s2065_s30 + $0x110] sm:$0xff] }
  0x4b   : > { %v828_v9 = vadd.s32 248, %v2069_v2  ;;  %v955_v10 = vadd.s32 %v2074_v6, %v826_v53  ;;  %vm1081_vm9 = vcmp.lt.s32.totalorder %v953_v54, 4608  ;;  %v1594_v11 = vsel %vm2389_vm6, %v687_v48, 0.0  ;;  %v314_v53 = vld [vmem:[%s2060_s27 + $0x118] sm:$0xff] }
  0x4c   : > { %v1718_v50 = vadd.f32 %v1717_v40, %v1590_v36  ;;  %v564_v12 = vsub.f32 %v308_v60, %v436_v61  ;;  %v690_v13 = vmul.f32 %v562_v56, %v562_v56  ;;  %v829_v18 = vadd.s32 256, %v2069_v2  ;;  %vm2425_vm12 = vmand %vm1081_vm9, %vm2105_vm3  ;;  %v442_v54 = vld [vmem:[%s2065_s30 + $0x118] sm:$0xff] }
  0x4d   : > { %v956_v19 = vadd.s32 %v2074_v6, %v827_v62  ;;  %vm1082_vm11 = vcmp.lt.s32.totalorder %v954_v63, 4608  ;;  %v1595_v20 = vsel %vm2401_vm8, %v688_v57, 0.0  ;;  %v565_v21 = vsub.f32 %v309_v7, %v437_v8  ;;  %v315_v62 = vld [vmem:[%s2060_s27 + $0x120] sm:$0xff] }
  0x4e   : > { %v1719_v59 = vadd.f32 %v1718_v50, %v1591_v46  ;;  %v691_v22 = vmul.f32 %v563_v1, %v563_v1  ;;  %v830_v27 = vadd.s32 264, %v2069_v2  ;;  %v957_v28 = vadd.s32 %v2074_v6, %v828_v9  ;;  %vm2437_vm14 = vmand %vm1082_vm11, %vm2105_vm3  ;;  %v443_v63 = vld [vmem:[%s2065_s30 + $0x120] sm:$0xff]  ;;  %v316_v9 = vld [vmem:[%s2060_s27 + $0x128] sm:$0xff] }
  0x4f   : > { %vm1083_vm13 = vcmp.lt.s32.totalorder %v955_v10, 4608  ;;  %v1596_v29 = vsel %vm2413_vm10, %v689_v3, 0.0  ;;  %v566_v30 = vsub.f32 %v310_v16, %v438_v17  ;;  %v692_v31 = vmul.f32 %v564_v12, %v564_v12  ;;  %v444_v10 = vld [vmem:[%s2065_s30 + $0x128] sm:$0xff] }
  0x50   : > { %v1720_v5 = vadd.f32 %v1719_v59, %v1592_v55  ;;  %v831_v36 = vadd.s32 272, %v2069_v2  ;;  %v958_v37 = vadd.s32 %v2074_v6, %v829_v18  ;;  %vm1084_vm15 = vcmp.lt.s32.totalorder %v956_v19, 4608  ;;  %vm2449_vm0 = vmand %vm1083_vm13, %vm2105_vm3  ;;  %v317_v18 = vld [vmem:[%s2060_s27 + $0x130] sm:$0xff] }
  0x51   : > { %v1597_v38 = vsel %vm2425_vm12, %v690_v13, 0.0  ;;  %v567_v39 = vsub.f32 %v311_v25, %v439_v26  ;;  %v693_v40 = vmul.f32 %v565_v21, %v565_v21  ;;  %v832_v46 = vadd.s32 280, %v2069_v2  ;;  %vm2461_vm2 = vmand %vm1084_vm15, %vm2105_vm3  ;;  %v445_v19 = vld [vmem:[%s2065_s30 + $0x130] sm:$0xff] }
  0x52   : > { %v1721_v15 = vadd.f32 %v1720_v5, %v1593_v0  ;;  %v959_v47 = vadd.s32 %v2074_v6, %v830_v27  ;;  %vm1085_vm1 = vcmp.lt.s32.totalorder %v957_v28, 4608  ;;  %v1598_v48 = vsel %vm2437_vm14, %v691_v22, 0.0  ;;  %v318_v27 = vld [vmem:[%s2060_s27 + $0x138] sm:$0xff] }
  0x53   : > { %v568_v49 = vsub.f32 %v312_v34, %v440_v35  ;;  %v694_v50 = vmul.f32 %v566_v30, %v566_v30  ;;  %v833_v55 = vadd.s32 288, %v2069_v2  ;;  %v960_v56 = vadd.s32 %v2074_v6, %v831_v36  ;;  %vm2473_vm5 = vmand %vm1085_vm1, %vm2105_vm3  ;;  %v446_v28 = vld [vmem:[%s2065_s30 + $0x138] sm:$0xff]  ;;  %v319_v36 = vld [vmem:[%s2060_s27 + $0x140] sm:$0xff] }
  0x54   : > { %v1722_v24 = vadd.f32 %v1721_v15, %v1594_v11  ;;  %vm1086_vm4 = vcmp.lt.s32.totalorder %v958_v37, 4608  ;;  %v1599_v57 = vsel %vm2449_vm0, %v692_v31, 0.0  ;;  %v569_v58 = vsub.f32 %v313_v44, %v441_v45  ;;  %v447_v37 = vld [vmem:[%s2065_s30 + $0x140] sm:$0xff]  ;;  %v452_v34 = vld [vmem:[%s2065_s30 + $0x168] sm:$0xff]  ;;  %v453_v44 = vld [vmem:[%s2065_s30 + $0x170] sm:$0xff] }
  0x55   : > { %v695_v59 = vmul.f32 %v567_v39, %v567_v39  ;;  %v834_v0 = vadd.s32 296, %v2069_v2  ;;  %v961_v1 = vadd.s32 %v2074_v6, %v832_v46  ;;  %vm1087_vm6 = vcmp.lt.s32.totalorder %v959_v47, 4608  ;;  %vm2485_vm7 = vmand %vm1086_vm4, %vm2105_vm3  ;;  %v320_v46 = vld [vmem:[%s2060_s27 + $0x148] sm:$0xff] }
  0x56   : > { %v1723_v33 = vadd.f32 %v1722_v24, %v1595_v20  ;;  %v1600_v3 = vsel %vm2461_vm2, %v693_v40, 0.0  ;;  %v570_v4 = vsub.f32 %v314_v53, %v442_v54  ;;  %v696_v5 = vmul.f32 %v568_v49, %v568_v49  ;;  %vm2497_vm9 = vmand %vm1087_vm6, %vm2105_vm3  ;;  %v448_v47 = vld [vmem:[%s2065_s30 + $0x148] sm:$0xff] }
  0x57   : > { %v835_v11 = vadd.s32 304, %v2069_v2  ;;  %v962_v12 = vadd.s32 %v2074_v6, %v833_v55  ;;  %vm1088_vm8 = vcmp.lt.s32.totalorder %v960_v56, 4608  ;;  %v1601_v13 = vsel %vm2473_vm5, %v694_v50, 0.0 }
  0x58   : > { %v1724_v43 = vadd.f32 %v1723_v33, %v1596_v29  ;;  %v571_v14 = vsub.f32 %v315_v62, %v443_v63  ;;  %v697_v15 = vmul.f32 %v569_v58, %v569_v58  ;;  %v836_v20 = vadd.s32 312, %v2069_v2  ;;  %vm2509_vm11 = vmand %vm1088_vm8, %vm2105_vm3  ;;  %v449_v58 = vld [vmem:[%s2065_s30 + $0x150] sm:$0xff] }
  0x59   : > { %v963_v21 = vadd.s32 %v2074_v6, %v834_v0  ;;  %vm1089_vm10 = vcmp.lt.s32.totalorder %v961_v1, 4608  ;;  %v1602_v22 = vsel %vm2485_vm7, %v695_v59, 0.0  ;;  %v572_v23 = vsub.f32 %v316_v9, %v444_v10  ;;  %v322_v9 = vld [vmem:[%s2060_s27 + $0x158] sm:$0xff] }
  0x5a   : > { %v1725_v52 = vadd.f32 %v1724_v43, %v1597_v38  ;;  %v698_v24 = vmul.f32 %v570_v4, %v570_v4  ;;  %v837_v29 = vadd.s32 320, %v2069_v2  ;;  %v964_v30 = vadd.s32 %v2074_v6, %v835_v11  ;;  %vm2521_vm13 = vmand %vm1089_vm10, %vm2105_vm3  ;;  %v450_v10 = vld [vmem:[%s2065_s30 + $0x158] sm:$0xff] }
  0x5b   : > { %vm1090_vm12 = vcmp.lt.s32.totalorder %v962_v12, 4608  ;;  %v1603_v31 = vsel %vm2497_vm9, %v696_v5, 0.0  ;;  %v573_v32 = vsub.f32 %v317_v18, %v445_v19  ;;  %v699_v33 = vmul.f32 %v571_v14, %v571_v14 }
  0x5c   : > { %v1726_v61 = vadd.f32 %v1725_v52, %v1598_v48  ;;  %v838_v38 = vadd.s32 328, %v2069_v2  ;;  %v965_v39 = vadd.s32 %v2074_v6, %v836_v20  ;;  %vm1091_vm14 = vcmp.lt.s32.totalorder %v963_v21, 4608  ;;  %vm2533_vm15 = vmand %vm1090_vm12, %vm2105_vm3 }
  0x5d   : > { %v1604_v40 = vsel %vm2509_vm11, %v697_v15, 0.0  ;;  %v574_v42 = vsub.f32 %v318_v27, %v446_v28  ;;  %v700_v43 = vmul.f32 %v572_v23, %v572_v23  ;;  %v839_v48 = vadd.s32 336, %v2069_v2  ;;  %vm2545_vm1 = vmand %vm1091_vm14, %vm2105_vm3  ;;  %v451_v23 = vld [vmem:[%s2065_s30 + $0x160] sm:$0xff] }
  0x5e   : > { %v1727_v8 = vadd.f32 %v1726_v61, %v1599_v57  ;;  %v966_v49 = vadd.s32 %v2074_v6, %v837_v29  ;;  %vm1092_vm0 = vcmp.lt.s32.totalorder %v964_v30, 4608  ;;  %v1605_v50 = vsel %vm2521_vm13, %v698_v24, 0.0  ;;  %v321_v57 = vld [vmem:[%s2060_s27 + $0x150] sm:$0xff] }
  0x5f   : > { %v575_v51 = vsub.f32 %v319_v36, %v447_v37  ;;  %v701_v54 = vmul.f32 %v573_v32, %v573_v32  ;;  %v967_v55 = vadd.s32 %v2074_v6, %v838_v38  ;;  %vm1093_vm2 = vcmp.lt.s32.totalorder %v965_v39, 4608  ;;  %vm2556_vm4 = vmand %vm1092_vm0, %vm2105_vm3 }
  0x60   : > { %v1728_v17 = vadd.f32 %v1727_v8, %v1600_v3  ;;  %v1606_v56 = vsel %vm2533_vm15, %v699_v33, 0.0  ;;  %v576_v59 = vsub.f32 %v320_v46, %v448_v47  ;;  %v702_v60 = vmul.f32 %v574_v42, %v574_v42  ;;  %vm2566_vm6 = vmand %vm1093_vm2, %vm2105_vm3  ;;  %v324_v33 = vld [vmem:[%s2060_s27 + $0x168] sm:$0xff] }
  0x61   : > { %v840_v63 = vadd.s32 344, %v2069_v2  ;;  %v968_v0 = vadd.s32 %v2074_v6, %v839_v48  ;;  %vm1094_vm5 = vcmp.lt.s32.totalorder %v966_v49, 4608  ;;  %v1607_v1 = vsel %vm2545_vm1, %v700_v43, 0.0  ;;  %v325_v43 = vld [vmem:[%s2060_s27 + $0x170] sm:$0xff]  ;;  %v326_v49 = vld [vmem:[%s2060_s27 + $0x178] sm:$0xff] }
  0x62   : > { %v1729_v26 = vadd.f32 %v1728_v17, %v1601_v13  ;;  %v577_v5 = vsub.f32 %v321_v57, %v449_v58  ;;  %v703_v7 = vmul.f32 %v575_v51, %v575_v51  ;;  %vm1095_vm7 = vcmp.lt.s32.totalorder %v967_v55, 4608  ;;  %vm2576_vm8 = vmand %vm1094_vm5, %vm2105_vm3  ;;  %v327_v58 = vld [vmem:[%s2060_s27 + $0x180] sm:$0xff] }
  0x63   : > { %v1608_v8 = vsel %vm2556_vm4, %v701_v54, 0.0  ;;  %v704_v11 = vmul.f32 %v576_v59, %v576_v59  ;;  %v841_v14 = vadd.s32 352, %v2069_v2  ;;  %v969_v15 = vadd.s32 %v2074_v6, %v840_v63  ;;  %vm2586_vm10 = vmand %vm1095_vm7, %vm2105_vm3  ;;  %v455_v59 = vld [vmem:[%s2065_s30 + $0x180] sm:$0xff]  ;;  %v456_v63 = vld [vmem:[%s2065_s30 + $0x188] sm:$0xff] }
  0x64   : > { %v1730_v35 = vadd.f32 %v1729_v26, %v1602_v22  ;;  %vm1096_vm9 = vcmp.lt.s32.totalorder %v968_v0, 4608  ;;  %v1609_v16 = vsel %vm2566_vm6, %v702_v60, 0.0  ;;  %v578_v19 = vsub.f32 %v322_v9, %v450_v10  ;;  %v323_v22 = vld [vmem:[%s2060_s27 + $0x160] sm:$0xff] }
  0x65   : > { %v705_v20 = vmul.f32 %v577_v5, %v577_v5  ;;  %v1610_v21 = vsel %vm2576_vm8, %v703_v7, 0.0  ;;  %vm2596_vm11 = vmand %vm1096_vm9, %vm2105_vm3  ;;  %v842_v26 = vadd.s32 360, %v2069_v2  ;;  %v970_v27 = vadd.s32 %v2074_v6, %v841_v14  ;;  %v329_v7 = vld [vmem:[%s2060_s27 + $0x190] sm:$0xff]  ;;  %v464_v5 = vld [vmem:[%s2065_s30 + $0x1c8] sm:$0xff] }
  0x66   : > { %v1731_v45 = vadd.f32 %v1730_v35, %v1603_v31  ;;  %vm1097_vm12 = vcmp.lt.s32.totalorder %v969_v15, 4608  ;;  %v1611_v28 = vsel %vm2586_vm10, %v704_v11, 0.0  ;;  %v579_v30 = vsub.f32 %v323_v22, %v451_v23  ;;  %v330_v15 = vld [vmem:[%s2060_s27 + $0x198] sm:$0xff]  ;;  %v331_v22 = vld [vmem:[%s2060_s27 + $0x1a0] sm:$0xff] }
  0x67   : > { %v706_v31 = vmul.f32 %v578_v19, %v578_v19  ;;  %v1612_v32 = vsel %vm2596_vm11, %v705_v20, 0.0  ;;  %vm1229_vm13 = vmand %vm1097_vm12, %vm2105_vm3  ;;  %v843_v36 = vadd.s32 368, %v2069_v2  ;;  %v971_v37 = vadd.s32 %v2074_v6, %v842_v26  ;;  %v459_v23 = vld [vmem:[%s2065_s30 + $0x1a0] sm:$0xff] }
  0x68   : > { %v1732_v53 = vadd.f32 %v1731_v45, %v1604_v40  ;;  %vm1098_vm14 = vcmp.lt.s32.totalorder %v970_v27, 4608  ;;  %v580_v39 = vsub.f32 %v324_v33, %v452_v34  ;;  %v707_v40 = vmul.f32 %v579_v30, %v579_v30 }
  0x69   : > { %v1613_v42 = vsel %vm1229_vm13, %v706_v31, 0.0  ;;  %vm2616_vm15 = vmand %vm1098_vm14, %vm2105_vm3  ;;  %v844_v46 = vadd.s32 376, %v2069_v2  ;;  %v972_v47 = vadd.s32 %v2074_v6, %v843_v36  ;;  %vm1099_vm0 = vcmp.lt.s32.totalorder %v971_v37, 4608  ;;  %v332_v31 = vld [vmem:[%s2060_s27 + $0x1a8] sm:$0xff] }
  0x6a   : > { %v1733_v62 = vadd.f32 %v1732_v53, %v1605_v50  ;;  %v454_v50 = vld [vmem:[%s2065_s30 + $0x178] sm:$0xff]  ;;  %v581_v51 = vsub.f32 %v325_v43, %v453_v44  ;;  %v708_v52 = vmul.f32 %v580_v39, %v580_v39  ;;  %v845_v53 = vadd.s32 384, %v2069_v2  ;;  %vm2629_vm1 = vmand %vm1099_vm0, %vm2105_vm3  ;;  %v333_v39 = vld [vmem:[%s2060_s27 + $0x1b0] sm:$0xff] }
  0x6b   : > { %v1614_v54 = vsel %vm2616_vm15, %v707_v40, 0.0  ;;  %v973_v57 = vadd.s32 %v2074_v6, %v844_v46  ;;  %vm1100_vm2 = vcmp.lt.s32.totalorder %v972_v47, 4608  ;;  %v582_v60 = vsub.f32 %v326_v49, %v454_v50  ;;  %v461_v40 = vld [vmem:[%s2065_s30 + $0x1b0] sm:$0xff]  ;;  %v334_v49 = vld [vmem:[%s2060_s27 + $0x1b8] sm:$0xff] }
  0x6c   : > { %v1734_v4 = vadd.f32 %v1733_v62, %v1606_v56  ;;  %v846_v56 = vadd.s32 392, %v2069_v2  ;;  %v328_v62 = vld [vmem:[%s2060_s27 + $0x188] sm:$0xff]  ;;  %v709_v0 = vmul.f32 %v581_v51, %v581_v51  ;;  %v974_v3 = vadd.s32 %v2074_v6, %v845_v53  ;;  %vm2645_vm4 = vmand %vm1100_vm2, %vm2105_vm3  ;;  %v462_v50 = vld [vmem:[%s2065_s30 + $0x1b8] sm:$0xff] }
  0x6d   : > { %v583_v9 = vsub.f32 %v327_v58, %v455_v59  ;;  %v848_v10 = vadd.s32 408, %v2069_v2  ;;  %vm1101_vm5 = vcmp.lt.s32.totalorder %v973_v57, 4608  ;;  %v584_v12 = vsub.f32 %v328_v62, %v456_v63  ;;  %v335_v58 = vld [vmem:[%s2060_s27 + $0x1c0] sm:$0xff] }
  0x6e   : > { %v1735_v13 = vadd.f32 %v1734_v4, %v1607_v1  ;;  %v847_v1 = vadd.s32 400, %v2069_v2  ;;  %v1615_v4 = vsel %vm2629_vm1, %v708_v52, 0.0  ;;  %v975_v11 = vadd.s32 %v2074_v6, %v846_v56  ;;  %vm2661_vm7 = vmand %vm1101_vm5, %vm2105_vm3  ;;  %v463_v59 = vld [vmem:[%s2065_s30 + $0x1c0] sm:$0xff] }
  0x6f   : > { %v849_v17 = vadd.s32 416, %v2069_v2  ;;  %vm1102_vm6 = vcmp.lt.s32.totalorder %v974_v3, 4608  ;;  %v1616_v19 = vsel %vm2645_vm4, %v709_v0, 0.0  ;;  %v711_v24 = vmul.f32 %v583_v9, %v583_v9 }
  0x70   : > { %v1736_v18 = vadd.f32 %v1735_v13, %v1608_v8  ;;  %v457_v8 = vld [vmem:[%s2065_s30 + $0x190] sm:$0xff]  ;;  %v710_v13 = vmul.f32 %v582_v60, %v582_v60  ;;  %v977_v26 = vadd.s32 %v2074_v6, %v848_v10  ;;  %vm1103_vm8 = vcmp.lt.s32.totalorder %v975_v11, 4608  ;;  %vm2671_vm9 = vmand %vm1102_vm6, %vm2105_vm3 }
  0x71   : > { %v585_v20 = vsub.f32 %v329_v7, %v457_v8  ;;  %v851_v33 = vadd.s32 432, %v2069_v2  ;;  %v978_v34 = vadd.s32 %v2074_v6, %v849_v17  ;;  %v587_v36 = vsub.f32 %v331_v22, %v459_v23  ;;  %vm2683_vm11 = vmand %vm1103_vm8, %vm2105_vm3  ;;  %v338_v23 = vld [vmem:[%s2060_s27 + $0x1d8] sm:$0xff] }
  0x72   : > { %v1737_v25 = vadd.f32 %v1736_v18, %v1609_v16  ;;  %v458_v16 = vld [vmem:[%s2065_s30 + $0x198] sm:$0xff]  ;;  %v976_v18 = vadd.s32 %v2074_v6, %v847_v1  ;;  %vm1105_vm12 = vcmp.lt.s32.totalorder %v977_v26, 4608  ;;  %v1618_v44 = vsel %vm2671_vm9, %v711_v24, 0.0 }
  0x73   : > { %v586_v27 = vsub.f32 %v330_v15, %v458_v16  ;;  %v713_v37 = vmul.f32 %v585_v20, %v585_v20  ;;  %v853_v51 = vadd.s32 448, %v2069_v2  ;;  %v980_v52 = vadd.s32 %v2074_v6, %v851_v33  ;;  %vm2707_vm15 = vmand %vm1105_vm12, %vm2105_vm3  ;;  %v465_v15 = vld [vmem:[%s2065_s30 + $0x1d0] sm:$0xff]  ;;  %v466_v24 = vld [vmem:[%s2065_s30 + $0x1d8] sm:$0xff] }
  0x74   : > { %v1738_v29 = vadd.f32 %v1737_v25, %v1610_v21  ;;  %v850_v25 = vadd.s32 424, %v2069_v2  ;;  %vm1104_vm10 = vcmp.lt.s32.totalorder %v976_v18, 4608  ;;  %vm1106_vm14 = vcmp.lt.s32.totalorder %v978_v34, 4608  ;;  %v467_v33 = vld [vmem:[%s2065_s30 + $0x1e0] sm:$0xff] }
  0x75   : > { %v714_v46 = vmul.f32 %v586_v27, %v586_v27  ;;  %vm2695_vm13 = vmand %vm1104_vm10, %vm2105_vm3  ;;  %v715_v55 = vmul.f32 %v587_v36, %v587_v36  ;;  %v854_v60 = vadd.s32 456, %v2069_v2  ;;  %v590_v63 = vsub.f32 %v334_v49, %v462_v50 }
  0x76   : > { %v1739_v35 = vadd.f32 %v1738_v29, %v1611_v28  ;;  %v712_v28 = vmul.f32 %v584_v12, %v584_v12  ;;  %v979_v43 = vadd.s32 %v2074_v6, %v850_v25  ;;  %v1620_v62 = vsel %vm2695_vm13, %v713_v37, 0.0  ;;  %vm2719_vm1 = vmand %vm1106_vm14, %vm2105_vm3 }
  0x77   : > { %v855_v7 = vadd.s32 464, %v2069_v2  ;;  %v982_v8 = vadd.s32 %v2074_v6, %v853_v51  ;;  %vm1108_vm2 = vcmp.lt.s32.totalorder %v980_v52, 4608  ;;  %v1621_v9 = vsel %vm2707_vm15, %v714_v46, 0.0  ;;  %v341_v51 = vld [vmem:[%s2060_s27 + $0x1f0] sm:$0xff] }
  0x78   : > { %v1740_v38 = vadd.f32 %v1739_v35, %v1612_v32  ;;  %v460_v32 = vld [vmem:[%s2065_s30 + $0x1a8] sm:$0xff]  ;;  %v1617_v35 = vsel %vm2661_vm7, %v710_v13, 0.0  ;;  %v1619_v53 = vsel %vm2683_vm11, %v712_v28, 0.0  ;;  %vm1107_vm0 = vcmp.lt.s32.totalorder %v979_v43, 4608  ;;  %vm2743_vm6 = vmand %vm1108_vm2, %vm2105_vm3  ;;  %v469_v52 = vld [vmem:[%s2065_s30 + $0x1f0] sm:$0xff] }
  0x79   : > { %v588_v45 = vsub.f32 %v332_v31, %v460_v32  ;;  %v591_v10 = vsub.f32 %v335_v58, %v463_v59  ;;  %vm2731_vm4 = vmand %vm1107_vm0, %vm2105_vm3  ;;  %v856_v16 = vadd.s32 472, %v2069_v2  ;;  %v983_v17 = vadd.s32 %v2074_v6, %v854_v60  ;;  %v339_v32 = vld [vmem:[%s2060_s27 + $0x1e0] sm:$0xff]  ;;  %v468_v43 = vld [vmem:[%s2065_s30 + $0x1e8] sm:$0xff] }
  0x7a   : > { %v1741_v48 = vadd.f32 %v1740_v38, %v1613_v42  ;;  %v852_v42 = vadd.s32 440, %v2069_v2  ;;  %v1622_v18 = vsel %vm2719_vm1, %v715_v55, 0.0  ;;  %v718_v20 = vmul.f32 %v590_v63, %v590_v63  ;;  %v342_v60 = vld [vmem:[%s2060_s27 + $0x1f8] sm:$0xff] }
  0x7b   : > { %v716_v0 = vmul.f32 %v588_v45, %v588_v45  ;;  %v857_v25 = vadd.s32 480, %v2069_v2  ;;  %v984_v26 = vadd.s32 %v2074_v6, %v855_v7  ;;  %vm1110_vm7 = vcmp.lt.s32.totalorder %v982_v8, 4608  ;;  %v343_v7 = vld [vmem:[%s2060_s27 + $0x200] sm:$0xff] }
  0x7c   : > { %v1742_v61 = vadd.f32 %v1741_v48, %v1614_v54  ;;  %v589_v54 = vsub.f32 %v333_v39, %v461_v40  ;;  %v719_v29 = vmul.f32 %v591_v10, %v591_v10  ;;  %v858_v34 = vadd.s32 488, %v2069_v2  ;;  %vm2767_vm10 = vmand %vm1110_vm7, %vm2105_vm3  ;;  %v471_v8 = vld [vmem:[%s2065_s30 + $0x200] sm:$0xff] }
  0x7d   : > { %v1623_v27 = vsel %vm2731_vm4, %v716_v0, 0.0  ;;  %vm1111_vm9 = vcmp.lt.s32.totalorder %v983_v17, 4608  ;;  %v594_v37 = vsub.f32 %v338_v23, %v466_v24  ;;  %v986_v45 = vadd.s32 %v2074_v6, %v857_v25  ;;  %v472_v17 = vld [vmem:[%s2065_s30 + $0x208] sm:$0xff]  ;;  %v345_v25 = vld [vmem:[%s2060_s27 + $0x210] sm:$0xff] }
  0x7e   : > { %v1743_v14 = vadd.f32 %v1742_v61, %v1615_v4  ;;  %v981_v61 = vadd.s32 %v2074_v6, %v852_v42  ;;  %v336_v4 = vld [vmem:[%s2060_s27 + $0x1c8] sm:$0xff]  ;;  %v717_v11 = vmul.f32 %v589_v54, %v589_v54  ;;  %vm1112_vm11 = vcmp.lt.s32.totalorder %v984_v26, 4608  ;;  %vm2779_vm12 = vmand %vm1111_vm9, %vm2105_vm3  ;;  %v473_v26 = vld [vmem:[%s2065_s30 + $0x210] sm:$0xff] }
  0x7f   : > { %v340_v42 = vld [vmem:[%s2060_s27 + $0x1e8] sm:$0xff]  ;;  %v595_v47 = vsub.f32 %v339_v32, %v467_v33  ;;  %v987_v54 = vadd.s32 %v2074_v6, %v858_v34  ;;  %v1626_v55 = vsel %vm2767_vm10, %v719_v29, 0.0  ;;  %vm2791_vm14 = vmand %vm1112_vm11, %vm2105_vm3  ;;  %vm1114_vm15 = vcmp.lt.s32.totalorder %v986_v45, 4608  ;;  %v346_v34 = vld [vmem:[%s2060_s27 + $0x218] sm:$0xff] }
  0x80   : > { %v1744_v30 = vadd.f32 %v1743_v14, %v1616_v19  ;;  %v337_v14 = vld [vmem:[%s2060_s27 + $0x1d0] sm:$0xff]  ;;  %vm1109_vm5 = vcmp.lt.s32.totalorder %v981_v61, 4608  ;;  %v592_v19 = vsub.f32 %v336_v4, %v464_v5  ;;  %v1624_v36 = vsel %vm2743_vm6, %v717_v11, 0.0  ;;  %v470_v61 = vld [vmem:[%s2065_s30 + $0x1f8] sm:$0xff]  ;;  %vm2815_vm2 = vmand %vm1114_vm15, %vm2105_vm3 }
  0x81   : > { %v593_v28 = vsub.f32 %v337_v14, %v465_v15  ;;  %vm2755_vm8 = vmand %vm1109_vm5, %vm2105_vm3  ;;  %v596_v56 = vsub.f32 %v340_v42, %v468_v43  ;;  %v597_v1 = vsub.f32 %v341_v51, %v469_v52  ;;  %vm1115_vm1 = vcmp.lt.s32.totalorder %v987_v54, 4608  ;;  %v475_v45 = vld [vmem:[%s2065_s30 + $0x220] sm:$0xff]  ;;  %v476_v54 = vld [vmem:[%s2065_s30 + $0x228] sm:$0xff] }
  0x82   : > { %v1745_v48 = vadd.f32 %v1744_v30, %v1617_v35  ;;  %v985_v35 = vadd.s32 %v2074_v6, %v856_v16  ;;  %v720_v38 = vmul.f32 %v592_v19, %v592_v19  ;;  %v1625_v46 = vsel %vm2755_vm8, %v718_v20, 0.0  ;;  %v344_v16 = vld [vmem:[%s2060_s27 + $0x208] sm:$0xff]  ;;  %vm2827_vm5 = vmand %vm1115_vm1, %vm2105_vm3 }
  0x83   : > { %v598_v12 = vsub.f32 %v342_v60, %v470_v61  ;;  %v599_v21 = vsub.f32 %v343_v7, %v471_v8  ;;  %v600_v30 = vsub.f32 %v344_v16, %v472_v17  ;;  %v601_v39 = vsub.f32 %v345_v25, %v473_v26 }
  0x84   : > { %v1746_v57 = vadd.f32 %v1745_v48, %v1618_v44  ;;  %v859_v44 = vadd.s32 496, %v2069_v2  ;;  %v721_v48 = vmul.f32 %v593_v28, %v593_v28  ;;  %vm1113_vm13 = vcmp.lt.s32.totalorder %v985_v35, 4608  ;;  %v474_v35 = vld [vmem:[%s2065_s30 + $0x218] sm:$0xff] }
  0x85   : > { %v1627_v0 = vsel %vm2779_vm12, %v720_v38, 0.0  ;;  %vm2803_vm0 = vmand %vm1113_vm13, %vm2105_vm3  ;;  %v602_v49 = vsub.f32 %v346_v34, %v474_v35 }
  0x86   : > { %v1747_v3 = vadd.f32 %v1746_v57, %v1619_v53  ;;  %v860_v53 = vadd.s32 504, %v2069_v2  ;;  %v722_v57 = vmul.f32 %v594_v37, %v594_v37  ;;  %v988_v63 = vadd.s32 %v2074_v6, %v859_v44  ;;  %v347_v44 = vld [vmem:[%s2060_s27 + $0x220] sm:$0xff] }
  0x87   : > { %v1628_v11 = vsel %vm2791_vm14, %v721_v48, 0.0  ;;  %v603_v58 = vsub.f32 %v347_v44, %v475_v45 }
  0x88   : > { %v1748_v13 = vadd.f32 %v1747_v3, %v1620_v62  ;;  %v861_v62 = vadd.s32 512, %v2069_v2  ;;  %v723_v3 = vmul.f32 %v595_v47, %v595_v47  ;;  %v989_v10 = vadd.s32 %v2074_v6, %v860_v53  ;;  %v348_v53 = vld [vmem:[%s2060_s27 + $0x228] sm:$0xff] }
  0x89   : > { %vm1116_vm4 = vcmp.lt.s32.totalorder %v988_v63, 4608  ;;  %v1629_v20 = vsel %vm2803_vm0, %v722_v57, 0.0  ;;  %v477_v63 = vld [vmem:[%s2065_s30 + $0x230] sm:$0xff]  ;;  %v604_v4 = vsub.f32 %v348_v53, %v476_v54 }
  0x8a   : > { %v1749_v22 = vadd.f32 %v1748_v13, %v1621_v9  ;;  %v862_v9 = vadd.s32 520, %v2069_v2  ;;  %v724_v13 = vmul.f32 %v596_v56, %v596_v56  ;;  %v990_v19 = vadd.s32 %v2074_v6, %v861_v62  ;;  %vm2839_vm7 = vmand %vm1116_vm4, %vm2105_vm3  ;;  %v349_v62 = vld [vmem:[%s2060_s27 + $0x230] sm:$0xff] }
  0x8b   : > { %vm1117_vm6 = vcmp.lt.s32.totalorder %v989_v10, 4608  ;;  %v1630_v29 = vsel %vm2815_vm2, %v723_v3, 0.0  ;;  %v478_v10 = vld [vmem:[%s2065_s30 + $0x238] sm:$0xff]  ;;  %v605_v14 = vsub.f32 %v349_v62, %v477_v63 }
  0x8c   : > { %v1750_v31 = vadd.f32 %v1749_v22, %v1622_v18  ;;  %v863_v18 = vadd.s32 528, %v2069_v2  ;;  %v725_v22 = vmul.f32 %v597_v1, %v597_v1  ;;  %v991_v28 = vadd.s32 %v2074_v6, %v862_v9  ;;  %vm2851_vm9 = vmand %vm1117_vm6, %vm2105_vm3  ;;  %v350_v9 = vld [vmem:[%s2060_s27 + $0x238] sm:$0xff] }
  0x8d   : > { %vm1118_vm8 = vcmp.lt.s32.totalorder %v990_v19, 4608  ;;  %v1631_v38 = vsel %vm2827_vm5, %v724_v13, 0.0  ;;  %v479_v19 = vld [vmem:[%s2065_s30 + $0x240] sm:$0xff]  ;;  %v606_v23 = vsub.f32 %v350_v9, %v478_v10 }
  0x8e   : > { %v1751_v40 = vadd.f32 %v1750_v31, %v1623_v27  ;;  %v864_v27 = vadd.s32 536, %v2069_v2  ;;  %v726_v31 = vmul.f32 %v598_v12, %v598_v12  ;;  %v992_v37 = vadd.s32 %v2074_v6, %v863_v18  ;;  %vm2863_vm11 = vmand %vm1118_vm8, %vm2105_vm3  ;;  %v351_v18 = vld [vmem:[%s2060_s27 + $0x240] sm:$0xff] }
  0x8f   : > { %vm1119_vm10 = vcmp.lt.s32.totalorder %v991_v28, 4608  ;;  %v1632_v48 = vsel %vm2839_vm7, %v725_v22, 0.0  ;;  %v480_v28 = vld [vmem:[%s2065_s30 + $0x248] sm:$0xff]  ;;  %v607_v32 = vsub.f32 %v351_v18, %v479_v19 }
  0x90   : > { %v1752_v50 = vadd.f32 %v1751_v40, %v1624_v36  ;;  %v865_v36 = vadd.s32 544, %v2069_v2  ;;  %v727_v40 = vmul.f32 %v599_v21, %v599_v21  ;;  %v993_v47 = vadd.s32 %v2074_v6, %v864_v27  ;;  %vm2875_vm13 = vmand %vm1119_vm10, %vm2105_vm3  ;;  %v352_v27 = vld [vmem:[%s2060_s27 + $0x248] sm:$0xff] }
  0x91   : > { %vm1120_vm12 = vcmp.lt.s32.totalorder %v992_v37, 4608  ;;  %v1633_v57 = vsel %vm2851_vm9, %v726_v31, 0.0  ;;  %v481_v37 = vld [vmem:[%s2065_s30 + $0x250] sm:$0xff]  ;;  %v608_v42 = vsub.f32 %v352_v27, %v480_v28 }
  0x92   : > { %v1753_v59 = vadd.f32 %v1752_v50, %v1625_v46  ;;  %v866_v46 = vadd.s32 552, %v2069_v2  ;;  %v728_v50 = vmul.f32 %v600_v30, %v600_v30  ;;  %v994_v56 = vadd.s32 %v2074_v6, %v865_v36  ;;  %vm2887_vm15 = vmand %vm1120_vm12, %vm2105_vm3  ;;  %v353_v36 = vld [vmem:[%s2060_s27 + $0x250] sm:$0xff] }
  0x93   : > { %vm1121_vm14 = vcmp.lt.s32.totalorder %v993_v47, 4608  ;;  %v1634_v3 = vsel %vm2863_vm11, %v727_v40, 0.0  ;;  %v482_v47 = vld [vmem:[%s2065_s30 + $0x258] sm:$0xff]  ;;  %v609_v51 = vsub.f32 %v353_v36, %v481_v37 }
  0x94   : > { %v1754_v5 = vadd.f32 %v1753_v59, %v1626_v55  ;;  %v867_v55 = vadd.s32 560, %v2069_v2  ;;  %v729_v59 = vmul.f32 %v601_v39, %v601_v39  ;;  %v995_v1 = vadd.s32 %v2074_v6, %v866_v46  ;;  %vm2899_vm1 = vmand %vm1121_vm14, %vm2105_vm3  ;;  %v354_v46 = vld [vmem:[%s2060_s27 + $0x258] sm:$0xff] }
  0x95   : > { %vm1122_vm0 = vcmp.lt.s32.totalorder %v994_v56, 4608  ;;  %v1635_v13 = vsel %vm2875_vm13, %v728_v50, 0.0  ;;  %v483_v56 = vld [vmem:[%s2065_s30 + $0x260] sm:$0xff]  ;;  %v610_v60 = vsub.f32 %v354_v46, %v482_v47 }
  0x96   : > { %v1755_v15 = vadd.f32 %v1754_v5, %v1627_v0  ;;  %v868_v0 = vadd.s32 568, %v2069_v2  ;;  %v730_v5 = vmul.f32 %v602_v49, %v602_v49  ;;  %v996_v12 = vadd.s32 %v2074_v6, %v867_v55  ;;  %vm2911_vm4 = vmand %vm1122_vm0, %vm2105_vm3  ;;  %v355_v55 = vld [vmem:[%s2060_s27 + $0x260] sm:$0xff] }
  0x97   : > { %vm1123_vm2 = vcmp.lt.s32.totalorder %v995_v1, 4608  ;;  %v1636_v22 = vsel %vm2887_vm15, %v729_v59, 0.0  ;;  %v484_v1 = vld [vmem:[%s2065_s30 + $0x268] sm:$0xff]  ;;  %v611_v7 = vsub.f32 %v355_v55, %v483_v56 }
  0x98   : > { %v1756_v24 = vadd.f32 %v1755_v15, %v1628_v11  ;;  %v869_v11 = vadd.s32 576, %v2069_v2  ;;  %v731_v15 = vmul.f32 %v603_v58, %v603_v58  ;;  %v997_v21 = vadd.s32 %v2074_v6, %v868_v0  ;;  %vm2923_vm6 = vmand %vm1123_vm2, %vm2105_vm3  ;;  %v356_v0 = vld [vmem:[%s2060_s27 + $0x268] sm:$0xff] }
  0x99   : > { %vm1124_vm5 = vcmp.lt.s32.totalorder %v996_v12, 4608  ;;  %v1637_v31 = vsel %vm2899_vm1, %v730_v5, 0.0  ;;  %v485_v12 = vld [vmem:[%s2065_s30 + $0x270] sm:$0xff]  ;;  %v612_v16 = vsub.f32 %v356_v0, %v484_v1 }
  0x9a   : > { %v1757_v33 = vadd.f32 %v1756_v24, %v1629_v20  ;;  %v870_v20 = vadd.s32 584, %v2069_v2  ;;  %v732_v24 = vmul.f32 %v604_v4, %v604_v4  ;;  %v998_v30 = vadd.s32 %v2074_v6, %v869_v11  ;;  %vm2935_vm8 = vmand %vm1124_vm5, %vm2105_vm3  ;;  %v357_v11 = vld [vmem:[%s2060_s27 + $0x270] sm:$0xff] }
  0x9b   : > { %vm1125_vm7 = vcmp.lt.s32.totalorder %v997_v21, 4608  ;;  %v1638_v40 = vsel %vm2911_vm4, %v731_v15, 0.0  ;;  %v486_v21 = vld [vmem:[%s2065_s30 + $0x278] sm:$0xff]  ;;  %v613_v25 = vsub.f32 %v357_v11, %v485_v12 }
  0x9c   : > { %v1758_v43 = vadd.f32 %v1757_v33, %v1630_v29  ;;  %v871_v29 = vadd.s32 592, %v2069_v2  ;;  %v733_v33 = vmul.f32 %v605_v14, %v605_v14  ;;  %v999_v39 = vadd.s32 %v2074_v6, %v870_v20  ;;  %vm2947_vm10 = vmand %vm1125_vm7, %vm2105_vm3  ;;  %v358_v20 = vld [vmem:[%s2060_s27 + $0x278] sm:$0xff] }
  0x9d   : > { %vm1126_vm9 = vcmp.lt.s32.totalorder %v998_v30, 4608  ;;  %v1639_v50 = vsel %vm2923_vm6, %v732_v24, 0.0  ;;  %v487_v30 = vld [vmem:[%s2065_s30 + $0x280] sm:$0xff]  ;;  %v614_v34 = vsub.f32 %v358_v20, %v486_v21 }
  0x9e   : > { %v1759_v52 = vadd.f32 %v1758_v43, %v1631_v38  ;;  %v872_v38 = vadd.s32 600, %v2069_v2  ;;  %v734_v43 = vmul.f32 %v606_v23, %v606_v23  ;;  %v1000_v49 = vadd.s32 %v2074_v6, %v871_v29  ;;  %vm2959_vm12 = vmand %vm1126_vm9, %vm2105_vm3  ;;  %v359_v29 = vld [vmem:[%s2060_s27 + $0x280] sm:$0xff] }
  0x9f   : > { %vm1127_vm11 = vcmp.lt.s32.totalorder %v999_v39, 4608  ;;  %v1640_v59 = vsel %vm2935_vm8, %v733_v33, 0.0  ;;  %v488_v39 = vld [vmem:[%s2065_s30 + $0x288] sm:$0xff]  ;;  %v615_v44 = vsub.f32 %v359_v29, %v487_v30 }
  0xa0   : > { %v1760_v61 = vadd.f32 %v1759_v52, %v1632_v48  ;;  %v873_v48 = vadd.s32 608, %v2069_v2  ;;  %v735_v52 = vmul.f32 %v607_v32, %v607_v32  ;;  %v1001_v58 = vadd.s32 %v2074_v6, %v872_v38  ;;  %vm2971_vm14 = vmand %vm1127_vm11, %vm2105_vm3  ;;  %v360_v38 = vld [vmem:[%s2060_s27 + $0x288] sm:$0xff] }
  0xa1   : > { %vm1128_vm13 = vcmp.lt.s32.totalorder %v1000_v49, 4608  ;;  %v1641_v5 = vsel %vm2947_vm10, %v734_v43, 0.0  ;;  %v489_v49 = vld [vmem:[%s2065_s30 + $0x290] sm:$0xff]  ;;  %v616_v53 = vsub.f32 %v360_v38, %v488_v39 }
  0xa2   : > { %v1761_v8 = vadd.f32 %v1760_v61, %v1633_v57  ;;  %v874_v57 = vadd.s32 616, %v2069_v2  ;;  %v736_v61 = vmul.f32 %v608_v42, %v608_v42  ;;  %v1002_v4 = vadd.s32 %v2074_v6, %v873_v48  ;;  %vm2983_vm0 = vmand %vm1128_vm13, %vm2105_vm3  ;;  %v361_v48 = vld [vmem:[%s2060_s27 + $0x290] sm:$0xff] }
  0xa3   : > { %vm1129_vm15 = vcmp.lt.s32.totalorder %v1001_v58, 4608  ;;  %v1642_v15 = vsel %vm2959_vm12, %v735_v52, 0.0  ;;  %v490_v58 = vld [vmem:[%s2065_s30 + $0x298] sm:$0xff]  ;;  %v617_v62 = vsub.f32 %v361_v48, %v489_v49 }
  0xa4   : > { %v1762_v17 = vadd.f32 %v1761_v8, %v1634_v3  ;;  %v875_v3 = vadd.s32 624, %v2069_v2  ;;  %v737_v8 = vmul.f32 %v609_v51, %v609_v51  ;;  %v1003_v14 = vadd.s32 %v2074_v6, %v874_v57  ;;  %vm2995_vm2 = vmand %vm1129_vm15, %vm2105_vm3  ;;  %v362_v57 = vld [vmem:[%s2060_s27 + $0x298] sm:$0xff] }
  0xa5   : > { %vm1130_vm1 = vcmp.lt.s32.totalorder %v1002_v4, 4608  ;;  %v1643_v24 = vsel %vm2971_vm14, %v736_v61, 0.0  ;;  %v491_v4 = vld [vmem:[%s2065_s30 + $0x2a0] sm:$0xff]  ;;  %v618_v9 = vsub.f32 %v362_v57, %v490_v58 }
  0xa6   : > { %v1763_v26 = vadd.f32 %v1762_v17, %v1635_v13  ;;  %v876_v13 = vadd.s32 632, %v2069_v2  ;;  %v738_v17 = vmul.f32 %v610_v60, %v610_v60  ;;  %v1004_v23 = vadd.s32 %v2074_v6, %v875_v3  ;;  %vm3007_vm5 = vmand %vm1130_vm1, %vm2105_vm3  ;;  %v363_v3 = vld [vmem:[%s2060_s27 + $0x2a0] sm:$0xff] }
  0xa7   : > { %vm1131_vm4 = vcmp.lt.s32.totalorder %v1003_v14, 4608  ;;  %v1644_v33 = vsel %vm2983_vm0, %v737_v8, 0.0  ;;  %v492_v14 = vld [vmem:[%s2065_s30 + $0x2a8] sm:$0xff]  ;;  %v619_v18 = vsub.f32 %v363_v3, %v491_v4 }
  0xa8   : > { %v1764_v35 = vadd.f32 %v1763_v26, %v1636_v22  ;;  %v877_v22 = vadd.s32 640, %v2069_v2  ;;  %v739_v26 = vmul.f32 %v611_v7, %v611_v7  ;;  %v1005_v32 = vadd.s32 %v2074_v6, %v876_v13  ;;  %vm3019_vm7 = vmand %vm1131_vm4, %vm2105_vm3  ;;  %v364_v13 = vld [vmem:[%s2060_s27 + $0x2a8] sm:$0xff] }
  0xa9   : > { %vm1132_vm6 = vcmp.lt.s32.totalorder %v1004_v23, 4608  ;;  %v1645_v43 = vsel %vm2995_vm2, %v738_v17, 0.0  ;;  %v493_v23 = vld [vmem:[%s2065_s30 + $0x2b0] sm:$0xff]  ;;  %v620_v27 = vsub.f32 %v364_v13, %v492_v14 }
  0xaa   : > { %v1765_v45 = vadd.f32 %v1764_v35, %v1637_v31  ;;  %v878_v31 = vadd.s32 648, %v2069_v2  ;;  %v740_v35 = vmul.f32 %v612_v16, %v612_v16  ;;  %v1006_v42 = vadd.s32 %v2074_v6, %v877_v22  ;;  %vm3031_vm9 = vmand %vm1132_vm6, %vm2105_vm3  ;;  %v365_v22 = vld [vmem:[%s2060_s27 + $0x2b0] sm:$0xff] }
  0xab   : > { %vm1133_vm8 = vcmp.lt.s32.totalorder %v1005_v32, 4608  ;;  %v1646_v52 = vsel %vm3007_vm5, %v739_v26, 0.0  ;;  %v494_v32 = vld [vmem:[%s2065_s30 + $0x2b8] sm:$0xff]  ;;  %v621_v36 = vsub.f32 %v365_v22, %v493_v23 }
  0xac   : > { %v1766_v54 = vadd.f32 %v1765_v45, %v1638_v40  ;;  %v879_v40 = vadd.s32 656, %v2069_v2  ;;  %v741_v45 = vmul.f32 %v613_v25, %v613_v25  ;;  %v1007_v51 = vadd.s32 %v2074_v6, %v878_v31  ;;  %vm3043_vm11 = vmand %vm1133_vm8, %vm2105_vm3  ;;  %v366_v31 = vld [vmem:[%s2060_s27 + $0x2b8] sm:$0xff] }
  0xad   : > { %vm1134_vm10 = vcmp.lt.s32.totalorder %v1006_v42, 4608  ;;  %v1647_v61 = vsel %vm3019_vm7, %v740_v35, 0.0  ;;  %v495_v42 = vld [vmem:[%s2065_s30 + $0x2c0] sm:$0xff]  ;;  %v622_v46 = vsub.f32 %v366_v31, %v494_v32 }
  0xae   : > { %v1767_v63 = vadd.f32 %v1766_v54, %v1639_v50  ;;  %v880_v50 = vadd.s32 664, %v2069_v2  ;;  %v742_v54 = vmul.f32 %v614_v34, %v614_v34  ;;  %v1008_v60 = vadd.s32 %v2074_v6, %v879_v40  ;;  %vm3055_vm13 = vmand %vm1134_vm10, %vm2105_vm3  ;;  %v367_v40 = vld [vmem:[%s2060_s27 + $0x2c0] sm:$0xff] }
  0xaf   : > { %vm1135_vm12 = vcmp.lt.s32.totalorder %v1007_v51, 4608  ;;  %v1648_v8 = vsel %vm3031_vm9, %v741_v45, 0.0  ;;  %v496_v51 = vld [vmem:[%s2065_s30 + $0x2c8] sm:$0xff]  ;;  %v623_v55 = vsub.f32 %v367_v40, %v495_v42 }
  0xb0   : > { %v1768_v10 = vadd.f32 %v1767_v63, %v1640_v59  ;;  %v881_v59 = vadd.s32 672, %v2069_v2  ;;  %v743_v63 = vmul.f32 %v615_v44, %v615_v44  ;;  %v1009_v7 = vadd.s32 %v2074_v6, %v880_v50  ;;  %vm3067_vm15 = vmand %vm1135_vm12, %vm2105_vm3  ;;  %v368_v50 = vld [vmem:[%s2060_s27 + $0x2c8] sm:$0xff] }
  0xb1   : > { %vm1136_vm14 = vcmp.lt.s32.totalorder %v1008_v60, 4608  ;;  %v1649_v17 = vsel %vm3043_vm11, %v742_v54, 0.0  ;;  %v497_v60 = vld [vmem:[%s2065_s30 + $0x2d0] sm:$0xff]  ;;  %v624_v0 = vsub.f32 %v368_v50, %v496_v51 }
  0xb2   : > { %v1769_v19 = vadd.f32 %v1768_v10, %v1641_v5  ;;  %v882_v5 = vadd.s32 680, %v2069_v2  ;;  %v744_v10 = vmul.f32 %v616_v53, %v616_v53  ;;  %v1010_v16 = vadd.s32 %v2074_v6, %v881_v59  ;;  %vm3079_vm1 = vmand %vm1136_vm14, %vm2105_vm3  ;;  %v369_v59 = vld [vmem:[%s2060_s27 + $0x2d0] sm:$0xff] }
  0xb3   : > { %vm1137_vm0 = vcmp.lt.s32.totalorder %v1009_v7, 4608  ;;  %v1650_v26 = vsel %vm3055_vm13, %v743_v63, 0.0  ;;  %v498_v7 = vld [vmem:[%s2065_s30 + $0x2d8] sm:$0xff]  ;;  %v625_v11 = vsub.f32 %v369_v59, %v497_v60 }
  0xb4   : > { %v1770_v28 = vadd.f32 %v1769_v19, %v1642_v15  ;;  %v883_v15 = vadd.s32 688, %v2069_v2  ;;  %v745_v19 = vmul.f32 %v617_v62, %v617_v62  ;;  %v1011_v25 = vadd.s32 %v2074_v6, %v882_v5  ;;  %vm3091_vm4 = vmand %vm1137_vm0, %vm2105_vm3  ;;  %v370_v5 = vld [vmem:[%s2060_s27 + $0x2d8] sm:$0xff] }
  0xb5   : > { %vm1138_vm2 = vcmp.lt.s32.totalorder %v1010_v16, 4608  ;;  %v1651_v35 = vsel %vm3067_vm15, %v744_v10, 0.0  ;;  %v499_v16 = vld [vmem:[%s2065_s30 + $0x2e0] sm:$0xff]  ;;  %v626_v20 = vsub.f32 %v370_v5, %v498_v7 }
  0xb6   : > { %v1771_v37 = vadd.f32 %v1770_v28, %v1643_v24  ;;  %v884_v24 = vadd.s32 696, %v2069_v2  ;;  %v746_v28 = vmul.f32 %v618_v9, %v618_v9  ;;  %v1012_v34 = vadd.s32 %v2074_v6, %v883_v15  ;;  %vm3103_vm6 = vmand %vm1138_vm2, %vm2105_vm3  ;;  %v371_v15 = vld [vmem:[%s2060_s27 + $0x2e0] sm:$0xff] }
  0xb7   : > { %vm1139_vm5 = vcmp.lt.s32.totalorder %v1011_v25, 4608  ;;  %v1652_v45 = vsel %vm3079_vm1, %v745_v19, 0.0  ;;  %v500_v25 = vld [vmem:[%s2065_s30 + $0x2e8] sm:$0xff]  ;;  %v627_v29 = vsub.f32 %v371_v15, %v499_v16 }
  0xb8   : > { %v1772_v47 = vadd.f32 %v1771_v37, %v1644_v33  ;;  %v885_v33 = vadd.s32 704, %v2069_v2  ;;  %v747_v37 = vmul.f32 %v619_v18, %v619_v18  ;;  %v1013_v44 = vadd.s32 %v2074_v6, %v884_v24  ;;  %vm3115_vm8 = vmand %vm1139_vm5, %vm2105_vm3  ;;  %v372_v24 = vld [vmem:[%s2060_s27 + $0x2e8] sm:$0xff] }
  0xb9   : > { %vm1140_vm7 = vcmp.lt.s32.totalorder %v1012_v34, 4608  ;;  %v1653_v54 = vsel %vm3091_vm4, %v746_v28, 0.0  ;;  %v501_v34 = vld [vmem:[%s2065_s30 + $0x2f0] sm:$0xff]  ;;  %v628_v38 = vsub.f32 %v372_v24, %v500_v25 }
  0xba   : > { %v1773_v56 = vadd.f32 %v1772_v47, %v1645_v43  ;;  %v886_v43 = vadd.s32 712, %v2069_v2  ;;  %v748_v47 = vmul.f32 %v620_v27, %v620_v27  ;;  %v1014_v53 = vadd.s32 %v2074_v6, %v885_v33  ;;  %vm3127_vm10 = vmand %vm1140_vm7, %vm2105_vm3  ;;  %v373_v33 = vld [vmem:[%s2060_s27 + $0x2f0] sm:$0xff] }
  0xbb   : > { %vm1141_vm9 = vcmp.lt.s32.totalorder %v1013_v44, 4608  ;;  %v1654_v63 = vsel %vm3103_vm6, %v747_v37, 0.0  ;;  %v502_v44 = vld [vmem:[%s2065_s30 + $0x2f8] sm:$0xff]  ;;  %v629_v48 = vsub.f32 %v373_v33, %v501_v34 }
  0xbc   : > { %v1774_v1 = vadd.f32 %v1773_v56, %v1646_v52  ;;  %v887_v52 = vadd.s32 720, %v2069_v2  ;;  %v749_v56 = vmul.f32 %v621_v36, %v621_v36  ;;  %v1015_v62 = vadd.s32 %v2074_v6, %v886_v43  ;;  %vm3139_vm12 = vmand %vm1141_vm9, %vm2105_vm3  ;;  %v374_v43 = vld [vmem:[%s2060_s27 + $0x2f8] sm:$0xff] }
  0xbd   : > { %vm1142_vm11 = vcmp.lt.s32.totalorder %v1014_v53, 4608  ;;  %v1655_v10 = vsel %vm3115_vm8, %v748_v47, 0.0  ;;  %v503_v53 = vld [vmem:[%s2065_s30 + $0x300] sm:$0xff]  ;;  %v630_v57 = vsub.f32 %v374_v43, %v502_v44 }
  0xbe   : > { %v1775_v12 = vadd.f32 %v1774_v1, %v1647_v61  ;;  %v888_v61 = vadd.s32 728, %v2069_v2  ;;  %v750_v1 = vmul.f32 %v622_v46, %v622_v46  ;;  %v1016_v9 = vadd.s32 %v2074_v6, %v887_v52  ;;  %vm3151_vm14 = vmand %vm1142_vm11, %vm2105_vm3  ;;  %v375_v52 = vld [vmem:[%s2060_s27 + $0x300] sm:$0xff] }
  0xbf   : > { %vm1143_vm13 = vcmp.lt.s32.totalorder %v1015_v62, 4608  ;;  %v1656_v19 = vsel %vm3127_vm10, %v749_v56, 0.0  ;;  %v504_v62 = vld [vmem:[%s2065_s30 + $0x308] sm:$0xff]  ;;  %v631_v3 = vsub.f32 %v375_v52, %v503_v53 }
  0xc0   : > { %v1776_v21 = vadd.f32 %v1775_v12, %v1648_v8  ;;  %v889_v8 = vadd.s32 736, %v2069_v2  ;;  %v751_v12 = vmul.f32 %v623_v55, %v623_v55  ;;  %v1017_v18 = vadd.s32 %v2074_v6, %v888_v61  ;;  %vm3163_vm0 = vmand %vm1143_vm13, %vm2105_vm3  ;;  %v376_v61 = vld [vmem:[%s2060_s27 + $0x308] sm:$0xff] }
  0xc1   : > { %vm1144_vm15 = vcmp.lt.s32.totalorder %v1016_v9, 4608  ;;  %v1657_v28 = vsel %vm3139_vm12, %v750_v1, 0.0  ;;  %v505_v9 = vld [vmem:[%s2065_s30 + $0x310] sm:$0xff]  ;;  %v632_v13 = vsub.f32 %v376_v61, %v504_v62 }
  0xc2   : > { %v1777_v30 = vadd.f32 %v1776_v21, %v1649_v17  ;;  %v890_v17 = vadd.s32 744, %v2069_v2  ;;  %v752_v21 = vmul.f32 %v624_v0, %v624_v0  ;;  %v1018_v27 = vadd.s32 %v2074_v6, %v889_v8  ;;  %vm3175_vm2 = vmand %vm1144_vm15, %vm2105_vm3  ;;  %v377_v8 = vld [vmem:[%s2060_s27 + $0x310] sm:$0xff] }
  0xc3   : > { %vm1145_vm1 = vcmp.lt.s32.totalorder %v1017_v18, 4608  ;;  %v1658_v37 = vsel %vm3151_vm14, %v751_v12, 0.0  ;;  %v506_v18 = vld [vmem:[%s2065_s30 + $0x318] sm:$0xff]  ;;  %v633_v22 = vsub.f32 %v377_v8, %v505_v9 }
  0xc4   : > { %v1778_v39 = vadd.f32 %v1777_v30, %v1650_v26  ;;  %v891_v26 = vadd.s32 752, %v2069_v2  ;;  %v753_v30 = vmul.f32 %v625_v11, %v625_v11  ;;  %v1019_v36 = vadd.s32 %v2074_v6, %v890_v17  ;;  %vm3187_vm5 = vmand %vm1145_vm1, %vm2105_vm3  ;;  %v378_v17 = vld [vmem:[%s2060_s27 + $0x318] sm:$0xff] }
  0xc5   : > { %vm1146_vm4 = vcmp.lt.s32.totalorder %v1018_v27, 4608  ;;  %v1659_v47 = vsel %vm3163_vm0, %v752_v21, 0.0  ;;  %v507_v27 = vld [vmem:[%s2065_s30 + $0x320] sm:$0xff]  ;;  %v634_v31 = vsub.f32 %v378_v17, %v506_v18 }
  0xc6   : > { %v1779_v49 = vadd.f32 %v1778_v39, %v1651_v35  ;;  %v892_v35 = vadd.s32 760, %v2069_v2  ;;  %v754_v39 = vmul.f32 %v626_v20, %v626_v20  ;;  %v1020_v46 = vadd.s32 %v2074_v6, %v891_v26  ;;  %vm3199_vm7 = vmand %vm1146_vm4, %vm2105_vm3  ;;  %v379_v26 = vld [vmem:[%s2060_s27 + $0x320] sm:$0xff] }
  0xc7   : > { %vm1147_vm6 = vcmp.lt.s32.totalorder %v1019_v36, 4608  ;;  %v1660_v56 = vsel %vm3175_vm2, %v753_v30, 0.0  ;;  %v508_v36 = vld [vmem:[%s2065_s30 + $0x328] sm:$0xff]  ;;  %v635_v40 = vsub.f32 %v379_v26, %v507_v27 }
  0xc8   : > { %v1780_v58 = vadd.f32 %v1779_v49, %v1652_v45  ;;  %v893_v45 = vadd.s32 768, %v2069_v2  ;;  %v755_v49 = vmul.f32 %v627_v29, %v627_v29  ;;  %v1021_v55 = vadd.s32 %v2074_v6, %v892_v35  ;;  %vm3211_vm9 = vmand %vm1147_vm6, %vm2105_vm3  ;;  %v380_v35 = vld [vmem:[%s2060_s27 + $0x328] sm:$0xff] }
  0xc9   : > { %vm1148_vm8 = vcmp.lt.s32.totalorder %v1020_v46, 4608  ;;  %v1661_v1 = vsel %vm3187_vm5, %v754_v39, 0.0  ;;  %v509_v46 = vld [vmem:[%s2065_s30 + $0x330] sm:$0xff]  ;;  %v636_v50 = vsub.f32 %v380_v35, %v508_v36 }
  0xca   : > { %v1781_v4 = vadd.f32 %v1780_v58, %v1653_v54  ;;  %v894_v54 = vadd.s32 776, %v2069_v2  ;;  %v756_v58 = vmul.f32 %v628_v38, %v628_v38  ;;  %v1022_v0 = vadd.s32 %v2074_v6, %v893_v45  ;;  %vm3223_vm11 = vmand %vm1148_vm8, %vm2105_vm3  ;;  %v381_v45 = vld [vmem:[%s2060_s27 + $0x330] sm:$0xff] }
  0xcb   : > { %vm1149_vm10 = vcmp.lt.s32.totalorder %v1021_v55, 4608  ;;  %v1662_v12 = vsel %vm3199_vm7, %v755_v49, 0.0  ;;  %v510_v55 = vld [vmem:[%s2065_s30 + $0x338] sm:$0xff]  ;;  %v637_v59 = vsub.f32 %v381_v45, %v509_v46 }
  0xcc   : > { %v1782_v14 = vadd.f32 %v1781_v4, %v1654_v63  ;;  %v895_v63 = vadd.s32 784, %v2069_v2  ;;  %v757_v4 = vmul.f32 %v629_v48, %v629_v48  ;;  %v1023_v11 = vadd.s32 %v2074_v6, %v894_v54  ;;  %vm3235_vm13 = vmand %vm1149_vm10, %vm2105_vm3  ;;  %v382_v54 = vld [vmem:[%s2060_s27 + $0x338] sm:$0xff] }
  0xcd   : > { %vm1150_vm12 = vcmp.lt.s32.totalorder %v1022_v0, 4608  ;;  %v1663_v21 = vsel %vm3211_vm9, %v756_v58, 0.0  ;;  %v511_v0 = vld [vmem:[%s2065_s30 + $0x340] sm:$0xff]  ;;  %v638_v5 = vsub.f32 %v382_v54, %v510_v55 }
  0xce   : > { %v1783_v23 = vadd.f32 %v1782_v14, %v1655_v10  ;;  %v896_v10 = vadd.s32 792, %v2069_v2  ;;  %v758_v14 = vmul.f32 %v630_v57, %v630_v57  ;;  %v1024_v20 = vadd.s32 %v2074_v6, %v895_v63  ;;  %vm3247_vm15 = vmand %vm1150_vm12, %vm2105_vm3  ;;  %v383_v63 = vld [vmem:[%s2060_s27 + $0x340] sm:$0xff] }
  0xcf   : > { %vm1151_vm14 = vcmp.lt.s32.totalorder %v1023_v11, 4608  ;;  %v1664_v30 = vsel %vm3223_vm11, %v757_v4, 0.0  ;;  %v512_v11 = vld [vmem:[%s2065_s30 + $0x348] sm:$0xff]  ;;  %v639_v15 = vsub.f32 %v383_v63, %v511_v0 }
  0xd0   : > { %v1784_v32 = vadd.f32 %v1783_v23, %v1656_v19  ;;  %v897_v19 = vadd.s32 800, %v2069_v2  ;;  %v759_v23 = vmul.f32 %v631_v3, %v631_v3  ;;  %v1025_v29 = vadd.s32 %v2074_v6, %v896_v10  ;;  %vm3259_vm1 = vmand %vm1151_vm14, %vm2105_vm3  ;;  %v384_v10 = vld [vmem:[%s2060_s27 + $0x348] sm:$0xff] }
  0xd1   : > { %vm1152_vm0 = vcmp.lt.s32.totalorder %v1024_v20, 4608  ;;  %v1665_v39 = vsel %vm3235_vm13, %v758_v14, 0.0  ;;  %v513_v20 = vld [vmem:[%s2065_s30 + $0x350] sm:$0xff]  ;;  %v640_v24 = vsub.f32 %v384_v10, %v512_v11 }
  0xd2   : > { %v1785_v42 = vadd.f32 %v1784_v32, %v1657_v28  ;;  %v898_v28 = vadd.s32 808, %v2069_v2  ;;  %v760_v32 = vmul.f32 %v632_v13, %v632_v13  ;;  %v1026_v38 = vadd.s32 %v2074_v6, %v897_v19  ;;  %vm3271_vm4 = vmand %vm1152_vm0, %vm2105_vm3  ;;  %v385_v19 = vld [vmem:[%s2060_s27 + $0x350] sm:$0xff] }
  0xd3   : > { %vm1153_vm2 = vcmp.lt.s32.totalorder %v1025_v29, 4608  ;;  %v1666_v49 = vsel %vm3247_vm15, %v759_v23, 0.0  ;;  %v514_v29 = vld [vmem:[%s2065_s30 + $0x358] sm:$0xff]  ;;  %v641_v33 = vsub.f32 %v385_v19, %v513_v20 }
  0xd4   : > { %v1786_v51 = vadd.f32 %v1785_v42, %v1658_v37  ;;  %v899_v37 = vadd.s32 816, %v2069_v2  ;;  %v761_v42 = vmul.f32 %v633_v22, %v633_v22  ;;  %v1027_v48 = vadd.s32 %v2074_v6, %v898_v28  ;;  %vm3283_vm6 = vmand %vm1153_vm2, %vm2105_vm3  ;;  %v386_v28 = vld [vmem:[%s2060_s27 + $0x358] sm:$0xff] }
  0xd5   : > { %vm1154_vm5 = vcmp.lt.s32.totalorder %v1026_v38, 4608  ;;  %v1667_v58 = vsel %vm3259_vm1, %v760_v32, 0.0  ;;  %v515_v38 = vld [vmem:[%s2065_s30 + $0x360] sm:$0xff]  ;;  %v642_v43 = vsub.f32 %v386_v28, %v514_v29 }
  0xd6   : > { %v1787_v60 = vadd.f32 %v1786_v51, %v1659_v47  ;;  %v900_v47 = vadd.s32 824, %v2069_v2  ;;  %v762_v51 = vmul.f32 %v634_v31, %v634_v31  ;;  %v1028_v57 = vadd.s32 %v2074_v6, %v899_v37  ;;  %vm3295_vm8 = vmand %vm1154_vm5, %vm2105_vm3  ;;  %v387_v37 = vld [vmem:[%s2060_s27 + $0x360] sm:$0xff] }
  0xd7   : > { %vm1155_vm7 = vcmp.lt.s32.totalorder %v1027_v48, 4608  ;;  %v1668_v4 = vsel %vm3271_vm4, %v761_v42, 0.0  ;;  %v516_v48 = vld [vmem:[%s2065_s30 + $0x368] sm:$0xff]  ;;  %v643_v52 = vsub.f32 %v387_v37, %v515_v38 }
  0xd8   : > { %v1788_v7 = vadd.f32 %v1787_v60, %v1660_v56  ;;  %v901_v56 = vadd.s32 832, %v2069_v2  ;;  %v763_v60 = vmul.f32 %v635_v40, %v635_v40  ;;  %v1029_v3 = vadd.s32 %v2074_v6, %v900_v47  ;;  %vm3307_vm10 = vmand %vm1155_vm7, %vm2105_vm3  ;;  %v388_v47 = vld [vmem:[%s2060_s27 + $0x368] sm:$0xff] }
  0xd9   : > { %vm1156_vm9 = vcmp.lt.s32.totalorder %v1028_v57, 4608  ;;  %v1669_v14 = vsel %vm3283_vm6, %v762_v51, 0.0  ;;  %v517_v57 = vld [vmem:[%s2065_s30 + $0x370] sm:$0xff]  ;;  %v644_v61 = vsub.f32 %v388_v47, %v516_v48 }
  0xda   : > { %v1789_v16 = vadd.f32 %v1788_v7, %v1661_v1  ;;  %v902_v1 = vadd.s32 840, %v2069_v2  ;;  %v764_v7 = vmul.f32 %v636_v50, %v636_v50  ;;  %v1030_v13 = vadd.s32 %v2074_v6, %v901_v56  ;;  %vm3319_vm12 = vmand %vm1156_vm9, %vm2105_vm3  ;;  %v389_v56 = vld [vmem:[%s2060_s27 + $0x370] sm:$0xff] }
  0xdb   : > { %vm1157_vm11 = vcmp.lt.s32.totalorder %v1029_v3, 4608  ;;  %v1670_v23 = vsel %vm3295_vm8, %v763_v60, 0.0  ;;  %v518_v3 = vld [vmem:[%s2065_s30 + $0x378] sm:$0xff]  ;;  %v645_v8 = vsub.f32 %v389_v56, %v517_v57 }
  0xdc   : > { %v1790_v25 = vadd.f32 %v1789_v16, %v1662_v12  ;;  %v903_v12 = vadd.s32 848, %v2069_v2  ;;  %v765_v16 = vmul.f32 %v637_v59, %v637_v59  ;;  %v1031_v22 = vadd.s32 %v2074_v6, %v902_v1  ;;  %vm3331_vm14 = vmand %vm1157_vm11, %vm2105_vm3  ;;  %v390_v1 = vld [vmem:[%s2060_s27 + $0x378] sm:$0xff] }
  0xdd   : > { %vm1158_vm13 = vcmp.lt.s32.totalorder %v1030_v13, 4608  ;;  %v1671_v32 = vsel %vm3307_vm10, %v764_v7, 0.0  ;;  %v519_v13 = vld [vmem:[%s2065_s30 + $0x380] sm:$0xff]  ;;  %v646_v17 = vsub.f32 %v390_v1, %v518_v3 }
  0xde   : > { %v1791_v34 = vadd.f32 %v1790_v25, %v1663_v21  ;;  %v904_v21 = vadd.s32 856, %v2069_v2  ;;  %v766_v25 = vmul.f32 %v638_v5, %v638_v5  ;;  %v1032_v31 = vadd.s32 %v2074_v6, %v903_v12  ;;  %vm3343_vm0 = vmand %vm1158_vm13, %vm2105_vm3  ;;  %v391_v12 = vld [vmem:[%s2060_s27 + $0x380] sm:$0xff] }
  0xdf   : > { %vm1159_vm15 = vcmp.lt.s32.totalorder %v1031_v22, 4608  ;;  %v1672_v42 = vsel %vm3319_vm12, %v765_v16, 0.0  ;;  %v520_v22 = vld [vmem:[%s2065_s30 + $0x388] sm:$0xff]  ;;  %v647_v26 = vsub.f32 %v391_v12, %v519_v13 }
  0xe0   : > { %v1792_v44 = vadd.f32 %v1791_v34, %v1664_v30  ;;  %v905_v30 = vadd.s32 864, %v2069_v2  ;;  %v767_v34 = vmul.f32 %v639_v15, %v639_v15  ;;  %v1033_v40 = vadd.s32 %v2074_v6, %v904_v21  ;;  %vm3355_vm2 = vmand %vm1159_vm15, %vm2105_vm3  ;;  %v392_v21 = vld [vmem:[%s2060_s27 + $0x388] sm:$0xff] }
  0xe1   : > { %vm1160_vm1 = vcmp.lt.s32.totalorder %v1032_v31, 4608  ;;  %v1673_v51 = vsel %vm3331_vm14, %v766_v25, 0.0  ;;  %v521_v31 = vld [vmem:[%s2065_s30 + $0x390] sm:$0xff]  ;;  %v648_v35 = vsub.f32 %v392_v21, %v520_v22 }
  0xe2   : > { %v1793_v53 = vadd.f32 %v1792_v44, %v1665_v39  ;;  %v906_v39 = vadd.s32 872, %v2069_v2  ;;  %v768_v44 = vmul.f32 %v640_v24, %v640_v24  ;;  %v1034_v50 = vadd.s32 %v2074_v6, %v905_v30  ;;  %vm3367_vm5 = vmand %vm1160_vm1, %vm2105_vm3  ;;  %v393_v30 = vld [vmem:[%s2060_s27 + $0x390] sm:$0xff] }
  0xe3   : > { %vm1161_vm4 = vcmp.lt.s32.totalorder %v1033_v40, 4608  ;;  %v1674_v60 = vsel %vm3343_vm0, %v767_v34, 0.0  ;;  %v522_v40 = vld [vmem:[%s2065_s30 + $0x398] sm:$0xff]  ;;  %v649_v45 = vsub.f32 %v393_v30, %v521_v31 }
  0xe4   : > { %v1794_v62 = vadd.f32 %v1793_v53, %v1666_v49  ;;  %v907_v49 = vadd.s32 880, %v2069_v2  ;;  %v769_v53 = vmul.f32 %v641_v33, %v641_v33  ;;  %v1035_v59 = vadd.s32 %v2074_v6, %v906_v39  ;;  %vm3379_vm7 = vmand %vm1161_vm4, %vm2105_vm3  ;;  %v394_v39 = vld [vmem:[%s2060_s27 + $0x398] sm:$0xff] }
  0xe5   : > { %vm1162_vm6 = vcmp.lt.s32.totalorder %v1034_v50, 4608  ;;  %v1675_v7 = vsel %vm3355_vm2, %v768_v44, 0.0  ;;  %v523_v50 = vld [vmem:[%s2065_s30 + $0x3a0] sm:$0xff]  ;;  %v650_v54 = vsub.f32 %v394_v39, %v522_v40 }
  0xe6   : > { %v1795_v9 = vadd.f32 %v1794_v62, %v1667_v58  ;;  %v908_v58 = vadd.s32 888, %v2069_v2  ;;  %v770_v62 = vmul.f32 %v642_v43, %v642_v43  ;;  %v1036_v5 = vadd.s32 %v2074_v6, %v907_v49  ;;  %vm3391_vm9 = vmand %vm1162_vm6, %vm2105_vm3  ;;  %v395_v49 = vld [vmem:[%s2060_s27 + $0x3a0] sm:$0xff] }
  0xe7   : > { %vm1163_vm8 = vcmp.lt.s32.totalorder %v1035_v59, 4608  ;;  %v1676_v16 = vsel %vm3367_vm5, %v769_v53, 0.0  ;;  %v524_v59 = vld [vmem:[%s2065_s30 + $0x3a8] sm:$0xff]  ;;  %v651_v63 = vsub.f32 %v395_v49, %v523_v50 }
  0xe8   : > { %v1796_v18 = vadd.f32 %v1795_v9, %v1668_v4  ;;  %v909_v4 = vadd.s32 896, %v2069_v2  ;;  %v771_v9 = vmul.f32 %v643_v52, %v643_v52  ;;  %v1037_v15 = vadd.s32 %v2074_v6, %v908_v58  ;;  %vm3403_vm11 = vmand %vm1163_vm8, %vm2105_vm3  ;;  %v396_v58 = vld [vmem:[%s2060_s27 + $0x3a8] sm:$0xff] }
  0xe9   : > { %vm1164_vm10 = vcmp.lt.s32.totalorder %v1036_v5, 4608  ;;  %v1677_v25 = vsel %vm3379_vm7, %v770_v62, 0.0  ;;  %v525_v5 = vld [vmem:[%s2065_s30 + $0x3b0] sm:$0xff]  ;;  %v652_v10 = vsub.f32 %v396_v58, %v524_v59 }
  0xea   : > { %v1797_v27 = vadd.f32 %v1796_v18, %v1669_v14  ;;  %v910_v14 = vadd.s32 904, %v2069_v2  ;;  %v772_v18 = vmul.f32 %v644_v61, %v644_v61  ;;  %v1038_v24 = vadd.s32 %v2074_v6, %v909_v4  ;;  %vm3415_vm13 = vmand %vm1164_vm10, %vm2105_vm3  ;;  %v397_v4 = vld [vmem:[%s2060_s27 + $0x3b0] sm:$0xff] }
  0xeb   : > { %vm1165_vm12 = vcmp.lt.s32.totalorder %v1037_v15, 4608  ;;  %v1678_v34 = vsel %vm3391_vm9, %v771_v9, 0.0  ;;  %v526_v15 = vld [vmem:[%s2065_s30 + $0x3b8] sm:$0xff]  ;;  %v653_v19 = vsub.f32 %v397_v4, %v525_v5 }
  0xec   : > { %v1798_v36 = vadd.f32 %v1797_v27, %v1670_v23  ;;  %v911_v23 = vadd.s32 912, %v2069_v2  ;;  %v773_v27 = vmul.f32 %v645_v8, %v645_v8  ;;  %v1039_v33 = vadd.s32 %v2074_v6, %v910_v14  ;;  %vm3427_vm15 = vmand %vm1165_vm12, %vm2105_vm3  ;;  %v398_v14 = vld [vmem:[%s2060_s27 + $0x3b8] sm:$0xff] }
  0xed   : > { %vm1166_vm14 = vcmp.lt.s32.totalorder %v1038_v24, 4608  ;;  %v1679_v44 = vsel %vm3403_vm11, %v772_v18, 0.0  ;;  %v527_v24 = vld [vmem:[%s2065_s30 + $0x3c0] sm:$0xff]  ;;  %v654_v28 = vsub.f32 %v398_v14, %v526_v15 }
  0xee   : > { %v1799_v46 = vadd.f32 %v1798_v36, %v1671_v32  ;;  %v912_v32 = vadd.s32 920, %v2069_v2  ;;  %v774_v36 = vmul.f32 %v646_v17, %v646_v17  ;;  %v1040_v43 = vadd.s32 %v2074_v6, %v911_v23  ;;  %vm3439_vm1 = vmand %vm1166_vm14, %vm2105_vm3  ;;  %v399_v23 = vld [vmem:[%s2060_s27 + $0x3c0] sm:$0xff] }
  0xef   : > { %vm1167_vm0 = vcmp.lt.s32.totalorder %v1039_v33, 4608  ;;  %v1680_v53 = vsel %vm3415_vm13, %v773_v27, 0.0  ;;  %v528_v33 = vld [vmem:[%s2065_s30 + $0x3c8] sm:$0xff]  ;;  %v655_v37 = vsub.f32 %v399_v23, %v527_v24 }
  0xf0   : > { %v1800_v55 = vadd.f32 %v1799_v46, %v1672_v42  ;;  %v913_v42 = vadd.s32 928, %v2069_v2  ;;  %v775_v46 = vmul.f32 %v647_v26, %v647_v26  ;;  %v1041_v52 = vadd.s32 %v2074_v6, %v912_v32  ;;  %vm3451_vm4 = vmand %vm1167_vm0, %vm2105_vm3  ;;  %v400_v32 = vld [vmem:[%s2060_s27 + $0x3c8] sm:$0xff] }
  0xf1   : > { %vm1168_vm2 = vcmp.lt.s32.totalorder %v1040_v43, 4608  ;;  %v1681_v62 = vsel %vm3427_vm15, %v774_v36, 0.0  ;;  %v529_v43 = vld [vmem:[%s2065_s30 + $0x3d0] sm:$0xff]  ;;  %v656_v47 = vsub.f32 %v400_v32, %v528_v33 }
  0xf2   : > { %v1801_v0 = vadd.f32 %v1800_v55, %v1673_v51  ;;  %v914_v51 = vadd.s32 936, %v2069_v2  ;;  %v776_v55 = vmul.f32 %v648_v35, %v648_v35  ;;  %v1042_v61 = vadd.s32 %v2074_v6, %v913_v42  ;;  %vm3463_vm6 = vmand %vm1168_vm2, %vm2105_vm3  ;;  %v401_v42 = vld [vmem:[%s2060_s27 + $0x3d0] sm:$0xff] }
  0xf3   : > { %vm1169_vm5 = vcmp.lt.s32.totalorder %v1041_v52, 4608  ;;  %v1682_v9 = vsel %vm3439_vm1, %v775_v46, 0.0  ;;  %v530_v52 = vld [vmem:[%s2065_s30 + $0x3d8] sm:$0xff]  ;;  %v657_v56 = vsub.f32 %v401_v42, %v529_v43 }
  0xf4   : > { %v1802_v11 = vadd.f32 %v1801_v0, %v1674_v60  ;;  %v915_v60 = vadd.s32 944, %v2069_v2  ;;  %v777_v0 = vmul.f32 %v649_v45, %v649_v45  ;;  %v1043_v8 = vadd.s32 %v2074_v6, %v914_v51  ;;  %vm3475_vm8 = vmand %vm1169_vm5, %vm2105_vm3  ;;  %v402_v51 = vld [vmem:[%s2060_s27 + $0x3d8] sm:$0xff] }
  0xf5   : > { %vm1170_vm7 = vcmp.lt.s32.totalorder %v1042_v61, 4608  ;;  %v1683_v18 = vsel %vm3451_vm4, %v776_v55, 0.0  ;;  %v531_v61 = vld [vmem:[%s2065_s30 + $0x3e0] sm:$0xff]  ;;  %v658_v1 = vsub.f32 %v402_v51, %v530_v52 }
  0xf6   : > { %v1803_v20 = vadd.f32 %v1802_v11, %v1675_v7  ;;  %v916_v7 = vadd.s32 952, %v2069_v2  ;;  %v778_v11 = vmul.f32 %v650_v54, %v650_v54  ;;  %v1044_v17 = vadd.s32 %v2074_v6, %v915_v60  ;;  %vm3487_vm10 = vmand %vm1170_vm7, %vm2105_vm3  ;;  %v403_v60 = vld [vmem:[%s2060_s27 + $0x3e0] sm:$0xff] }
  0xf7   : > { %vm1171_vm9 = vcmp.lt.s32.totalorder %v1043_v8, 4608  ;;  %v1684_v27 = vsel %vm3463_vm6, %v777_v0, 0.0  ;;  %v532_v8 = vld [vmem:[%s2065_s30 + $0x3e8] sm:$0xff]  ;;  %v659_v12 = vsub.f32 %v403_v60, %v531_v61  ;;  %v786_v24 = vmul.f32 %v658_v1, %v658_v1 }
  0xf8   : > { %v1804_v29 = vadd.f32 %v1803_v20, %v1676_v16  ;;  %v917_v16 = vadd.s32 960, %v2069_v2  ;;  %v779_v20 = vmul.f32 %v651_v63, %v651_v63  ;;  %v1045_v26 = vadd.s32 %v2074_v6, %v916_v7  ;;  %vm3499_vm12 = vmand %vm1171_vm9, %vm2105_vm3  ;;  %v404_v7 = vld [vmem:[%s2060_s27 + $0x3e8] sm:$0xff] }
  0xf9   : > { %vm1172_vm11 = vcmp.lt.s32.totalorder %v1044_v17, 4608  ;;  %v1685_v36 = vsel %vm3475_vm8, %v778_v11, 0.0  ;;  %v533_v17 = vld [vmem:[%s2065_s30 + $0x3f0] sm:$0xff]  ;;  %v660_v21 = vsub.f32 %v404_v7, %v532_v8 }
  0xfa   : > { %v1805_v38 = vadd.f32 %v1804_v29, %v1677_v25  ;;  %v918_v25 = vadd.s32 968, %v2069_v2  ;;  %v780_v29 = vmul.f32 %v652_v10, %v652_v10  ;;  %v1046_v35 = vadd.s32 %v2074_v6, %v917_v16  ;;  %vm3511_vm14 = vmand %vm1172_vm11, %vm2105_vm3  ;;  %v405_v16 = vld [vmem:[%s2060_s27 + $0x3f0] sm:$0xff] }
  0xfb   : > { %vm1173_vm13 = vcmp.lt.s32.totalorder %v1045_v26, 4608  ;;  %v1686_v46 = vsel %vm3487_vm10, %v779_v20, 0.0  ;;  %v406_v26 = vld [vmem:[%s2060_s27 + $0x3f8] sm:$0xff] }
  0xfc   : > { %v1806_v48 = vadd.f32 %v1805_v38, %v1678_v34  ;;  %v919_v34 = vadd.s32 976, %v2069_v2  ;;  %v781_v38 = vmul.f32 %v653_v19, %v653_v19  ;;  %v1047_v45 = vadd.s32 %v2074_v6, %v918_v25  ;;  %vm3523_vm0 = vmand %vm1173_vm13, %vm2105_vm3 }
  0xfd   : > { %vm1174_vm15 = vcmp.lt.s32.totalorder %v1046_v35, 4608  ;;  %v1687_v55 = vsel %vm3499_vm12, %v780_v29, 0.0 }
  0xfe   : > { %v1807_v57 = vadd.f32 %v1806_v48, %v1679_v44  ;;  %v920_v44 = vadd.s32 984, %v2069_v2  ;;  %v782_v48 = vmul.f32 %v654_v28, %v654_v28  ;;  %v1048_v54 = vadd.s32 %v2074_v6, %v919_v34  ;;  %vm3535_vm2 = vmand %vm1174_vm15, %vm2105_vm3 }
  0xff   : > { %vm1175_vm1 = vcmp.lt.s32.totalorder %v1047_v45, 4608  ;;  %v1688_v0 = vsel %vm3511_vm14, %v781_v38, 0.0  ;;  %v661_v28 = vsub.f32 %v405_v16, %v533_v17 }
 0x100   : > { %v1808_v3 = vadd.f32 %v1807_v57, %v1680_v53  ;;  %v921_v53 = vadd.s32 992, %v2069_v2  ;;  %v783_v57 = vmul.f32 %v655_v37, %v655_v37  ;;  %v1049_v63 = vadd.s32 %v2074_v6, %v920_v44  ;;  %vm3547_vm5 = vmand %vm1175_vm1, %vm2105_vm3 }
 0x101   : > { %vm1176_vm4 = vcmp.lt.s32.totalorder %v1048_v54, 4608  ;;  %v1689_v11 = vsel %vm3523_vm0, %v782_v48, 0.0  ;;  %v788_v37 = vmul.f32 %v660_v21, %v660_v21  ;;  %v789_v39 = vmul.f32 %v661_v28, %v661_v28 }
 0x102   : > { %v1809_v13 = vadd.f32 %v1808_v3, %v1681_v62  ;;  %v922_v62 = vadd.s32 1000, %v2069_v2  ;;  %v784_v3 = vmul.f32 %v656_v47, %v656_v47  ;;  %v1050_v10 = vadd.s32 %v2074_v6, %v921_v53  ;;  %vm3559_vm7 = vmand %vm1176_vm4, %vm2105_vm3 }
 0x103   : > { %vm1177_vm6 = vcmp.lt.s32.totalorder %v1049_v63, 4608  ;;  %v1690_v20 = vsel %vm3535_vm2, %v783_v57, 0.0 }
 0x104   : > { %v1810_v22 = vadd.f32 %v1809_v13, %v1682_v9  ;;  %v923_v9 = vadd.s32 1008, %v2069_v2  ;;  %v785_v13 = vmul.f32 %v657_v56, %v657_v56  ;;  %v1051_v19 = vadd.s32 %v2074_v6, %v922_v62  ;;  %vm3570_vm9 = vmand %vm1177_vm6, %vm2105_vm3 }
 0x105   : > { %vm1178_vm8 = vcmp.lt.s32.totalorder %v1050_v10, 4608  ;;  %v1693_v38 = vsel %vm3570_vm9, %v786_v24, 0.0 }
 0x106   : > { %v1811_v31 = vadd.f32 %v1810_v22, %v1683_v18  ;;  %v924_v18 = vadd.s32 1016, %v2069_v2  ;;  %v1052_v25 = vadd.s32 %v2074_v6, %v923_v9  ;;  %v1691_v2 = vsel %vm3547_vm5, %v784_v3, 0.0  ;;  %vm3579_vm11 = vmand %vm1178_vm8, %vm2105_vm3 }
 0x107   : > { %vm1179_vm10 = vcmp.lt.s32.totalorder %v1051_v19, 4608  ;;  %v1692_v33 = vsel %vm3559_vm7, %v785_v13, 0.0 }
 0x108   : > { %v1812_v40 = vadd.f32 %v1811_v31, %v1684_v27  ;;  %v534_v27 = vld [vmem:[%s2065_s30 + $0x3f8] sm:$0xff]  ;;  %v787_v31 = vmul.f32 %v659_v12, %v659_v12  ;;  %v1053_v32 = vadd.s32 %v2074_v6, %v924_v18  ;;  %vm1180_vm12 = vcmp.lt.s32.totalorder %v1052_v25, 4608  ;;  %vm1311_vm13 = vmand %vm1179_vm10, %vm2105_vm3 }
 0x109   : > { %vm1312_vm15 = vmand %vm1180_vm12, %vm2105_vm3  ;;  %v1695_v44 = vsel %vm1311_vm13, %v788_v37, 0.0 }
 0x10a   : > { %v1813_v50 = vadd.f32 %v1812_v40, %v1685_v36  ;;  %v662_v36 = vsub.f32 %v406_v26, %v534_v27  ;;  %vm1181_vm14 = vcmp.lt.s32.totalorder %v1053_v32, 4608  ;;  %v1694_v40 = vsel %vm3579_vm11, %v787_v31, 0.0 }
 0x10b   : > { %vm1313_vm0 = vmand %vm1181_vm14, %vm2105_vm3 }
 0x10c   : > { %v1814_v59 = vadd.f32 %v1813_v50, %v1686_v46  ;;  %v790_v43 = vmul.f32 %v662_v36, %v662_v36  ;;  %v1696_v46 = vsel %vm1312_vm15, %v789_v39, 0.0  ;;  %v1698_v50 = vld [vmem:[%s2055_s23] sm:$0xff] }
 0x10e   : > { %v1815_v5 = vadd.f32 %v1814_v59, %v1687_v55  ;;  %v1697_v48 = vsel %vm1313_vm0, %v790_v43, 0.0 }
 0x110   : > { %v1816_v15 = vadd.f32 %v1815_v5, %v1688_v0 }
 0x112   : > { %v1817_v23 = vadd.f32 %v1816_v15, %v1689_v11 }
 0x114   : > { %v1818_v30 = vadd.f32 %v1817_v23, %v1690_v20 }
 0x116   : > { %v1819_v35 = vadd.f32 %v1818_v30, %v1691_v2 }
 0x118   : > { %v1820_v6 = vadd.f32 %v1819_v35, %v1692_v33 }
 0x11a   : > { %v1821_v42 = vadd.f32 %v1820_v6, %v1693_v38 }
 0x11c   : > { %v1822_v45 = vadd.f32 %v1821_v42, %v1694_v40 }
 0x11e   : > { %v1823_v47 = vadd.f32 %v1822_v45, %v1695_v44 }
 0x120   : > { %v1824_v49 = vadd.f32 %v1823_v47, %v1696_v46 }
 0x122   : > { %v1825_v51 = vadd.f32 %v1824_v49, %v1697_v48 }
 0x124   : > { %v1826_v52 = vadd.f32 %v1825_v51, %v1698_v50 }
 0x126   : > { %1827 = vst [vmem:[%s2055_s23] sm:$0xff] %v1826_v52 }
 0x127 PF: > { %s12_s13 = sadd.s32 1, %s1997_s13   ;;  %s3861_s9 = smov %s1989_s11 }
 0x128   : > { %p9_p10 = scmp.ge.s32.totalorder %s12_s13, 8   ;;  %s3862_s10 = smov %s1993_s12 }
 0x129   : > { %s3863_s11 = smov %s3866_s14  ;;  %s3864_s12 = smov %s3870_s15 }
 0x12a   :  { %11 = sbr.rel (!%p9_p10) target bundleno = 3 (0x3), region = 65 }

// kernel: nst_loss.6
= control target key start
LH: loop header
LB: loop body
LE: loop exit
PB: predicated region body
PF: predicated region fallthrough
CT: control target
= control target key end

     0   :  { %s136_s0 = inlined_call_operand.vmem [shape: f32[8,128], index: 0, kind: input, shape index: {}]   ;;  %s137_s1 = inlined_call_operand.vmem [shape: f32[8,128], index: 1, kind: input, shape index: {}]   ;;  %s138_s2 = inlined_call_operand.vmem [shape: f32[1,8,128], index: 2, kind: output, shape index: {}]  }
   0x1   :  { %v70_v0 = vld [vmem:[%s136_s0] sm:$0xff] }
   0x2   :  { %v71_v1 = vld [vmem:[%s137_s1] sm:$0xff] }
   0x3   :  { %v72_v2 = vsub.f32 %v70_v0, %v71_v1 }
   0x5   :  { %v73_v3 = vmul.f32 %v72_v2, %v72_v2 }
   0x7   :  { %94 = vst [vmem:[%s138_s2] sm:$0xff] %v73_v3 }

// kernel: squeeze.11
= control target key start
LH: loop header
LB: loop body
LE: loop exit
PB: predicated region body
PF: predicated region fallthrough
CT: control target
= control target key end

     0   :  { %s7_s6 = smov 3  ;;  %s21_s9 = smov 3  ;;  %vm4_vm0 = vcmask 130048   ;;  %vm11_vm1 = vcmask 1048448   ;;  %vm18_vm2 = vcmask 917248   ;;  %vm25_vm3 = vcmask 786048   ;;  %s119_s0 = inlined_call_operand.vmem [shape: f32[1,16,16], index: 0, kind: input, shape index: {}]   ;;  %s120_s1 = inlined_call_operand.vmem [shape: f32[256], index: 1, kind: output, shape index: {}]  }
   0x1   :  { %v61_v0 = vld [vmem:[%s119_s0 + $0x7] ss:$8 sm:%s7_s6]   ;;  %s75_s10 = smov 112   ;;  %v63_v1 = vld [vmem:[%s119_s0 + $0x5] ss:$8 sm:%s21_s9]   ;;  %s76_s13 = smov 80  }
   0x2   :  { %9 = vrot.lane.b32.xlu0 %v61_v0, %s75_s10  ;;  %23 = vrot.lane.b32.xlu1 %v63_v1, %s76_s13  ;;  %s14_s14 = smov 3  ;;  %s28_s15 = smov 3  ;;  %vm32_vm4 = vcmask 654848   ;;  %vm39_vm5 = vcmask 523648   ;;  %vm46_vm6 = vcmask 392448   ;;  %vm53_vm7 = vcmask 261248  }
   0x3   :  { %s35_s16 = smov 3  ;;  %v62_v3 = vld [vmem:[%s119_s0 + $0x6] ss:$8 sm:%s14_s14]   ;;  %s77_s21 = smov 48   ;;  %v64_v4 = vld [vmem:[%s119_s0 + $0x4] ss:$8 sm:%s28_s15]  }
   0x4   :  { %v65_v2 = vld [vmem:[%s119_s0 + $0x3] ss:$8 sm:%s35_s16]   ;;  %s42_s24 = smov 3  ;;  %s78_s25 = smov 96  }
   0x5   :  { %37 = vrot.lane.b32.xlu2 %v65_v2, %s77_s21  ;;  %s79_s26 = smov 64   ;;  %s49_s27 = smov 3  ;;  %v66_v5 = vld [vmem:[%s119_s0 + $0x2] ss:$8 sm:%s42_s24]  }
   0x6   :  { %v67_v6 = vld [vmem:[%s119_s0 + $0x1] ss:$8 sm:%s49_s27]   ;;  %s80_s3 = smov 32   ;;  %s81_s4 = smov 16  }
   0x7   :  { %s2_s5 = smov 3 }
   0x8   :  { %v3_v7 = vld [vmem:[%s119_s0] ss:$8 sm:%s2_s5]  }
   0x9   :  { %5 = vst.msk [vmem:[#allocation0] sm:$0x3] %vm4_vm0, %v3_v7  }
   0xa   :  { %16 = vrot.lane.b32.xlu0 %v62_v3, %s78_s25  ;;  %30 = vrot.lane.b32.xlu1 %v64_v4, %s79_s26 }
   0xd   :  { %44 = vrot.lane.b32.xlu2 %v66_v5, %s80_s3 }
  0x12   :  { %51 = vrot.lane.b32.xlu0 %v67_v6, %s81_s4 }
  0x5f   :  { %v38_v8 = vpop.permute.xlu2 %37  }
  0x67   :  { %v45_v9 = vpop.permute.xlu2 %44  }
  0x74   :  { %v10_v10 = vpop.permute.xlu0 %9   ;;  %v24_v11 = vpop.permute.xlu1 %23  }
  0x75   :  { %12 = vst.msk [vmem:[#allocation0] sm:$0x3] %vm11_vm1, %v10_v10  }
  0x7c   :  { %v17_v12 = vpop.permute.xlu0 %16   ;;  %v31_v13 = vpop.permute.xlu1 %30  }
  0x7d   :  { %19 = vst.msk [vmem:[#allocation0] sm:$0x3] %vm18_vm2, %v17_v12  }
  0x7e   :  { %26 = vst.msk [vmem:[#allocation0] sm:$0x3] %vm25_vm3, %v24_v11  }
  0x7f   :  { %33 = vst.msk [vmem:[#allocation0] sm:$0x3] %vm32_vm4, %v31_v13  }
  0x80   :  { %40 = vst.msk [vmem:[#allocation0] sm:$0x3] %vm39_vm5, %v38_v8  }
  0x81   :  { %47 = vst.msk [vmem:[#allocation0] sm:$0x3] %vm46_vm6, %v45_v9  }
  0x84   :  { %v52_v14 = vpop.permute.xlu0 %51  }
  0x85   :  { %54 = vst.msk [vmem:[#allocation0] sm:$0x3] %vm53_vm7, %v52_v14  }
  0x8c   :  { %v57_v15 = vld [vmem:[#allocation0] sm:$0x3] }
  0x8d   :  { %60 = vst [vmem:[%s120_s1] sm:$0x3] %v57_v15 }

// kernel: squeeze.10
= control target key start
LH: loop header
LB: loop body
LE: loop exit
PB: predicated region body
PF: predicated region fallthrough
CT: control target
= control target key end

     0   :  { %s67_s10 = smov 56   ;;  %s68_s11 = smov 40   ;;  %vm3_vm0 = vcmask 64512   ;;  %vm9_vm1 = vcmask 523712   ;;  %vm15_vm2 = vcmask 458112   ;;  %vm21_vm3 = vcmask 392512   ;;  %s111_s0 = inlined_call_operand.vmem [shape: f32[1,8,8], index: 0, kind: input, shape index: {}]   ;;  %s112_s1 = inlined_call_operand.vmem [shape: f32[64], index: 1, kind: output, shape index: {}]  }
   0x1   :  { %v53_v0 = vld [vmem:[%s111_s0 + $0x7] sm:$0x1]   ;;  %v55_v1 = vld [vmem:[%s111_s0 + $0x5] sm:$0x1]   ;;  %v57_v2 = vld [vmem:[%s111_s0 + $0x3] sm:$0x1]  }
   0x2   :  { %7 = vrot.lane.b32.xlu0 %v53_v0, %s67_s10  ;;  %19 = vrot.lane.b32.xlu1 %v55_v1, %s68_s11  ;;  %s69_s14 = smov 24   ;;  %v54_v3 = vld [vmem:[%s111_s0 + $0x6] sm:$0x1]   ;;  %v56_v4 = vld [vmem:[%s111_s0 + $0x4] sm:$0x1]   ;;  %s70_s21 = smov 48  }
   0x3   :  { %31 = vrot.lane.b32.xlu2 %v57_v2, %s69_s14  ;;  %v58_v5 = vld [vmem:[%s111_s0 + $0x2] sm:$0x1]   ;;  %s71_s22 = smov 32   ;;  %s72_s23 = smov 16   ;;  %v59_v6 = vld [vmem:[%s111_s0 + $0x1] sm:$0x1]  }
   0x4   :  { %s73_s26 = smov 8   ;;  %v2_v7 = vld [vmem:[%s111_s0] sm:$0x1]   ;;  %vm27_vm4 = vcmask 326912   ;;  %vm33_vm5 = vcmask 261312   ;;  %vm39_vm6 = vcmask 195712  }
   0x5   :  { %4 = vst.msk [vmem:[#allocation0] sm:$0x1] %vm3_vm0, %v2_v7   ;;  %vm45_vm7 = vcmask 130112  }
   0xa   :  { %13 = vrot.lane.b32.xlu0 %v54_v3, %s70_s21  ;;  %25 = vrot.lane.b32.xlu1 %v56_v4, %s71_s22 }
   0xb   :  { %37 = vrot.lane.b32.xlu2 %v58_v5, %s72_s23 }
  0x12   :  { %43 = vrot.lane.b32.xlu0 %v59_v6, %s73_s26 }
  0x5d   :  { %v32_v8 = vpop.permute.xlu2 %31  }
  0x65   :  { %v38_v9 = vpop.permute.xlu2 %37  }
  0x74   :  { %v8_v10 = vpop.permute.xlu0 %7   ;;  %v20_v11 = vpop.permute.xlu1 %19  }
  0x75   :  { %10 = vst.msk [vmem:[#allocation0] sm:$0x1] %vm9_vm1, %v8_v10  }
  0x7c   :  { %v14_v12 = vpop.permute.xlu0 %13   ;;  %v26_v13 = vpop.permute.xlu1 %25  }
  0x7d   :  { %16 = vst.msk [vmem:[#allocation0] sm:$0x1] %vm15_vm2, %v14_v12  }
  0x7e   :  { %22 = vst.msk [vmem:[#allocation0] sm:$0x1] %vm21_vm3, %v20_v11  }
  0x7f   :  { %28 = vst.msk [vmem:[#allocation0] sm:$0x1] %vm27_vm4, %v26_v13  }
  0x80   :  { %34 = vst.msk [vmem:[#allocation0] sm:$0x1] %vm33_vm5, %v32_v8  }
  0x81   :  { %40 = vst.msk [vmem:[#allocation0] sm:$0x1] %vm39_vm6, %v38_v9  }
  0x84   :  { %v44_v14 = vpop.permute.xlu0 %43  }
  0x85   :  { %46 = vst.msk [vmem:[#allocation0] sm:$0x1] %vm45_vm7, %v44_v14  }
  0x8c   :  { %v49_v15 = vld [vmem:[#allocation0] sm:$0x1] }
  0x8d   :  { %52 = vst [vmem:[%s112_s1] sm:$0x1] %v49_v15 }

// kernel: squeeze.9
= control target key start
LH: loop header
LB: loop body
LE: loop exit
PB: predicated region body
PF: predicated region fallthrough
CT: control target
= control target key end

     0   :  { %s37_s8 = smov 4   ;;  %s38_s9 = smov 8   ;;  %vm7_vm0 = vcmask 31744   ;;  %vm13_vm1 = vcmask 130144   ;;  %vm19_vm2 = vcmask 97344   ;;  %vm25_vm3 = vcmask 64544   ;;  %s55_s0 = inlined_call_operand.vmem [shape: f32[1,4,4], index: 0, kind: input, shape index: {}]   ;;  %s56_s1 = inlined_call_operand.vmem [shape: f32[16], index: 1, kind: output, shape index: {}]  }
   0x1   :  { %v4_v0 = vld [vmem:[%s55_s0] sm:$0xf]  ;;  %s36_s0 = smov 12  }
   0x2   :  { %5 = vst [vmem:[#allocation1] sm:$0xf] %v4_v0 }
   0x9   :  { %v10_v1 = vld [vmem:[#allocation1 + $0x3] sm:$0x1]   ;;  %v22_v2 = vld [vmem:[#allocation1 + $0x1] sm:$0x1]   ;;  %v16_v3 = vld [vmem:[#allocation1 + $0x2] sm:$0x1]  }
   0xa   :  { %11 = vrot.lane.b32.xlu0 %v10_v1, %s36_s0  ;;  %23 = vrot.lane.b32.xlu1 %v22_v2, %s37_s8  ;;  %v6_v4 = vld [vmem:[#allocation1] sm:$0x1]  }
   0xb   :  { %8 = vst.msk [vmem:[#allocation0] sm:$0x1] %vm7_vm0, %v6_v4  }
  0x12   :  { %17 = vrot.lane.b32.xlu0 %v16_v3, %s38_s9 }
  0x7c   :  { %v12_v5 = vpop.permute.xlu0 %11   ;;  %v24_v6 = vpop.permute.xlu1 %23  }
  0x7d   :  { %14 = vst.msk [vmem:[#allocation0] sm:$0x1] %vm13_vm1, %v12_v5  }
  0x84   :  { %v18_v7 = vpop.permute.xlu0 %17  }
  0x85   :  { %20 = vst.msk [vmem:[#allocation0] sm:$0x1] %vm19_vm2, %v18_v7  }
  0x86   :  { %26 = vst.msk [vmem:[#allocation0] sm:$0x1] %vm25_vm3, %v24_v6  }
  0x8d   :  { %v29_v8 = vld [vmem:[#allocation0] sm:$0x1] }
  0x8e   :  { %32 = vst [vmem:[%s56_s1] sm:$0x1] %v29_v8 }

// kernel: nst_loss.9
= control target key start
LH: loop header
LB: loop body
LE: loop exit
PB: predicated region body
PF: predicated region fallthrough
CT: control target
= control target key end

     0   :  { %v127_v0 = vlaneseq  ;;  %v8135_v1 = vmov 0   ;;  %s3535_s6 = smov 64   ;;  %v3536_v53 = vmov 839922192   ;;  %v3537_v57 = vmov 1985246804   ;;  %s8133_s0 = inlined_call_operand.vmem [shape: f32[3,60,64], index: 0, kind: input, shape index: {}]   ;;  %s8134_s1 = inlined_call_operand.vmem [shape: f32[180,64], index: 1, kind: output, shape index: {}]  }
   0x1   :  { %3531 = vset.pattern.permute.xlu1 %v8135_v1  ;;  %3533 = vset.pattern.permute.xlu0 %v8135_v1  ;;  %v3562_v3 = vld [vmem:[%s8133_s0] sm:$0xff]  ;;  %v3567_v4 = vld [vmem:[%s8133_s0 + $0x8] sm:$0xff]  ;;  %v3575_v6 = vld [vmem:[%s8133_s0 + $0x10] sm:$0xff]  ;;  %v137_v54 = vunpack.c.l.s4 %v3536_v53  ;;  %v141_v58 = vunpack.c.l.s4 %v3537_v57  ;;  %vm215_vm15 = vcmask 1048064  }
   0x2   :  { %v3554_v2 = vand.u32 127, %v127_v0  ;;  %3532 = vset.pattern.permute.xlu2 %v8135_v1  ;;  %8476 = vst [vmem:[#allocation3_spill] sm:$0xff] %v3567_v4  ;;  %v3570_v5 = vrot.slane %v3562_v3, 4  ;;  %v3578_v7 = vrot.slane %v3567_v4, 4  ;;  %v3583_v8 = vld [vmem:[%s8133_s0 + $0x18] sm:$0xff]  ;;  %v3587_v9 = vrot.slane %v3575_v6, 4 }
   0x3   :  { %8477 = vst [vmem:[#allocation4_spill] sm:$0xff] %v3575_v6  ;;  %v3594_v10 = vld [vmem:[%s8133_s0 + $0x20] sm:$0xff]  ;;  %v3597_v11 = vrot.slane %v3583_v8, 4  ;;  %v3604_v12 = vld [vmem:[%s8133_s0 + $0x28] sm:$0xff]  ;;  %v3614_v14 = vld [vmem:[%s8133_s0 + $0x30] sm:$0xff]  ;;  %v3792_v55 = vshrl.u32 %v127_v0, 7  ;;  %v3819_v0 = vunpack.c.0.s8 %v137_v54  ;;  %v3827_v1 = vunpack.c.0.s8 %v141_v58 }
   0x4   :  { %216 = vrot.lane.b32.xlu0 %v3554_v2, %s3535_s6  ;;  %8478 = vst [vmem:[#allocation5_spill] sm:$0xff] %v3578_v7  ;;  %v3608_v13 = vrot.slane %v3594_v10, 4  ;;  %v3619_v15 = vld [vmem:[%s8133_s0 + $0x38] sm:$0xf]  ;;  %v3623_v16 = vrot.slane %v3604_v12, 4  ;;  %v3631_v18 = vrot.slane %v3614_v14, 4 }
   0x5   :  { %8479 = vst [vmem:[#allocation6_spill] sm:$0xff] %v3583_v8  ;;  %v3643_v21 = vld [vmem:[%s8133_s0 + $0x40] sm:$0xff]  ;;  %v3648_v22 = vld [vmem:[%s8133_s0 + $0x48] sm:$0xff]  ;;  %v3662_v25 = vld [vmem:[%s8133_s0 + $0x50] sm:$0xff]  ;;  %v3806_v61 = vadd.s32 24, %v3792_v55 }
   0x6   :  { %222 = vst [vmem:[#allocation1] ss:$2 sm:$0xff] %v3562_v3  ;;  %v3654_v23 = vrot.slane %v3643_v21, 4  ;;  %v3668_v26 = vld [vmem:[%s8133_s0 + $0x78] sm:$0xf]  ;;  %v3671_v27 = vrot.slane %v3648_v22, 4 }
   0x7   :  { %8480 = vst [vmem:[#allocation7_spill] sm:$0xff] %v3587_v9  ;;  %v3679_v29 = vrot.slane %v3662_v25, 4  ;;  %v3687_v30 = vld [vmem:[%s8133_s0 + $0x58] sm:$0xff]  ;;  %v3695_v32 = vld [vmem:[%s8133_s0 + $0x60] sm:$0xff]  ;;  %v3709_v35 = vld [vmem:[%s8133_s0 + $0x68] sm:$0xff]  ;;  %v3837_v54 = vperm.slane %v3806_v61, %v3819_v0 }
   0x8   :  { %224 = vst [vmem:[#allocation1 + $0x1] ss:$2 sm:$0xff] %v3570_v5  ;;  %v3698_v33 = vrot.slane %v3687_v30, 4  ;;  %v3713_v36 = vrot.slane %v3695_v32, 4  ;;  %v3720_v38 = vrot.slane %v3709_v35, 4  ;;  %v3728_v39 = vld [vmem:[%s8133_s0 + $0x70] sm:$0xff] }
   0x9   :  { %226 = vst [vmem:[#allocation1 + $0x10] ss:$2 sm:$0xff] %v3567_v4  ;;  %v3737_v41 = vld [vmem:[%s8133_s0 + $0x80] sm:$0xff]  ;;  %v3740_v42 = vrot.slane %v3728_v39, 4  ;;  %v3749_v44 = vld [vmem:[%s8133_s0 + $0x88] sm:$0xff]  ;;  %v3763_v47 = vld [vmem:[%s8133_s0 + $0x90] sm:$0xff] }
   0xa   :  { %8481 = vst [vmem:[#allocation8_spill] sm:$0xff] %v3597_v11  ;;  %v3755_v45 = vrot.slane %v3737_v41, 4  ;;  %v3772_v49 = vld [vmem:[%s8133_s0 + $0x98] sm:$0xff]  ;;  %v3775_v50 = vrot.slane %v3749_v44, 4  ;;  %v3786_v52 = vrot.slane %v3763_v47, 4  ;;  %v3799_v59 = vld [vmem:[%s8133_s0 + $0xa0] sm:$0xff] }
   0xb   :  { %228 = vst [vmem:[#allocation1 + $0x11] ss:$2 sm:$0xff] %v3578_v7  ;;  %v3783_v51 = vld [vmem:[%s8133_s0 + $0xb8] sm:$0xf]  ;;  %v3802_v60 = vrot.slane %v3772_v49, 4  ;;  %v3816_v63 = vld [vmem:[%s8133_s0 + $0xa8] sm:$0xff] }
   0xc   :  { %230 = vst [vmem:[#allocation1 + $0x20] ss:$2 sm:$0xff] %v3575_v6  ;;  %v3822_v53 = vrot.slane %v3799_v59, 4  ;;  %v3845_v58 = vrot.slane %v3816_v63, 4  ;;  %vm477_vm0 = vcmp.lt.s32.totalorder %v3837_v54, 60 }
   0xd   :  { %8482 = vst [vmem:[#allocation9_spill] sm:$0xff] %v3604_v12 }
   0xe   :  { %232 = vst [vmem:[#allocation1 + $0x21] ss:$2 sm:$0xff] %v3587_v9 }
   0xf   :  { %8483 = vst [vmem:[#allocation10_spill] sm:$0xff] %v3608_v13  ;;  %v3625_v17 = vld.sshfl [vmem:[#allocation1] sm:$0xff pattern:$0x75316420] }
  0x10   :  { %234 = vst [vmem:[#allocation1 + $0x30] ss:$2 sm:$0xff] %v3583_v8  ;;  %320 = vrot.lane.b32.xlu1 %v3625_v17, %s3535_s6 }
  0x11   :  { %8484 = vst [vmem:[#allocation11_spill] sm:$0xff] %v3614_v14 }
  0x12   :  { %8485 = vst [vmem:[#allocation12_spill] sm:$0xff] %v3619_v15  ;;  %v3633_v19 = vld.sshfl [vmem:[#allocation1 + $0x10] sm:$0xff pattern:$0x75316420] }
  0x13   :  { %236 = vst [vmem:[#allocation1 + $0x31] ss:$2 sm:$0xff] %v3597_v11 }
  0x14   :  { %8486 = vst [vmem:[#allocation13_spill] sm:$0xff] %v3623_v16 }
  0x15   :  { %241 = vst [vmem:[#allocation1] ss:$2 sm:$0xff] %v3594_v10  ;;  %v3637_v20 = vld.sshfl [vmem:[#allocation1 + $0x20] sm:$0xff pattern:$0x75316420] }
  0x16   :  { %8487 = vst [vmem:[#allocation14_spill] sm:$0xff] %v3631_v18  ;;  %326 = vrot.lane.b32.xlu2 %v3637_v20, %s3535_s6 }
  0x17   :  { %242 = vst [vmem:[#allocation1 + $0x1] ss:$2 sm:$0xff] %v3608_v13 }
  0x18   :  { %243 = vst [vmem:[#allocation1 + $0x10] ss:$2 sm:$0xff] %v3604_v12  ;;  %323 = vrot.lane.b32.xlu1 %v3633_v19, %s3535_s6 }
  0x19   :  { %244 = vst [vmem:[#allocation1 + $0x11] ss:$2 sm:$0xff] %v3623_v16 }
  0x1a   :  { %8488 = vst [vmem:[#allocation15_spill] sm:$0xff] %v3643_v21  ;;  %v3656_v24 = vld.sshfl [vmem:[#allocation1 + $0x30] sm:$0xff pattern:$0x75316420] }
  0x1b   :  { %8489 = vst [vmem:[#allocation16_spill] sm:$0xff] %v3648_v22 }
  0x1c   :  { %245 = vst [vmem:[#allocation1 + $0x20] ss:$2 sm:$0xff] %v3614_v14 }
  0x1d   :  { %8490 = vst [vmem:[#allocation17_spill] sm:$0xff] %v3654_v23 }
  0x1e   :  { %246 = vst [vmem:[#allocation1 + $0x21] ss:$2 sm:$0xff] %v3631_v18  ;;  %v3674_v28 = vld.sshfl [vmem:[#allocation1] sm:$0xff pattern:$0x75316420]  ;;  %329 = vrot.lane.b32.xlu2 %v3656_v24, %s3535_s6 }
  0x1f   :  { %8491 = vst [vmem:[#allocation18_spill] sm:$0xff] %v3662_v25  ;;  %332 = vrot.lane.b32.xlu0 %v3674_v28, %s3535_s6 }
  0x20   :  { %247 = vst [vmem:[#allocation1 + $0x30] ss:$2 sm:$0xff] %v3619_v15  ;;  %v3689_v31 = vld.sshfl [vmem:[#allocation1 + $0x10] sm:$0xff pattern:$0x75316420] }
  0x21   :  { %8492 = vst [vmem:[#allocation19_spill] sm:$0xff] %v3668_v26  ;;  %335 = vrot.lane.b32.xlu1 %v3689_v31, %s3535_s6 }
  0x22   :  { %8493 = vst [vmem:[#allocation20_spill] sm:$0xff] %v3671_v27 }
  0x23   :  { %248 = vst [vmem:[#allocation1 + $0x31] ss:$2 sm:$0xff] %v3643_v21  ;;  %v3859_v21 = vperm.slane %v3792_v55, %v3819_v0 }
  0x24   :  { %8494 = vst [vmem:[#allocation21_spill] sm:$0xff] %v3679_v29 }
  0x25   :  { %253 = vst [vmem:[#allocation1] ss:$2 sm:$0xff] %v3654_v23  ;;  %v3701_v34 = vld.sshfl [vmem:[#allocation1 + $0x20] sm:$0xff pattern:$0x75316420]  ;;  %vm471_vm2 = vcmp.lt.s32.totalorder %v3859_v21, 60 }
  0x26   :  { %8495 = vst [vmem:[#allocation22_spill] sm:$0xff] %v3687_v30  ;;  %338 = vrot.lane.b32.xlu2 %v3701_v34, %s3535_s6 }
  0x27   :  { %254 = vst [vmem:[#allocation1 + $0x1] ss:$2 sm:$0xff] %v3648_v22 }
  0x28   :  { %8496 = vst [vmem:[#allocation23_spill] sm:$0xff] %v3695_v32 }
  0x29   :  { %8497 = vst [vmem:[#allocation24_spill] sm:$0xff] %v3698_v33 }
  0x2a   :  { %255 = vst [vmem:[#allocation1 + $0x10] ss:$2 sm:$0xff] %v3671_v27  ;;  %v3715_v37 = vld.sshfl [vmem:[#allocation1 + $0x30] sm:$0xff pattern:$0x75316420] }
  0x2b   :  { %256 = vst [vmem:[#allocation1 + $0x11] ss:$2 sm:$0xff] %v3662_v25  ;;  %341 = vrot.lane.b32.xlu0 %v3715_v37, %s3535_s6 }
  0x2c   :  { %8498 = vst [vmem:[#allocation25_spill] sm:$0xff] %v3709_v35 }
  0x2d   :  { %257 = vst [vmem:[#allocation1 + $0x20] ss:$2 sm:$0xff] %v3679_v29 }
  0x2e   :  { %8499 = vst [vmem:[#allocation26_spill] sm:$0xff] %v3713_v36  ;;  %v3730_v40 = vld.sshfl [vmem:[#allocation1] sm:$0xff pattern:$0x75316420] }
  0x2f   :  { %258 = vst [vmem:[#allocation1 + $0x21] ss:$2 sm:$0xff] %v3687_v30  ;;  %344 = vrot.lane.b32.xlu1 %v3730_v40, %s3535_s6 }
  0x30   :  { %259 = vst [vmem:[#allocation1 + $0x30] ss:$2 sm:$0xff] %v3698_v33  ;;  %v3852_v33 = vperm.slane %v3806_v61, %v3827_v1 }
  0x31   :  { %8500 = vst [vmem:[#allocation27_spill] sm:$0xff] %v3720_v38 }
  0x32   :  { %260 = vst [vmem:[#allocation1 + $0x31] ss:$2 sm:$0xff] %v3695_v32  ;;  %v3743_v43 = vld.sshfl [vmem:[#allocation1 + $0x10] sm:$0xff pattern:$0x75316420]  ;;  %v3848_v32 = vadd.s32 8, %v3792_v55 }
  0x33   :  { %8501 = vst [vmem:[#allocation28_spill] sm:$0xff] %v3728_v39  ;;  %347 = vrot.lane.b32.xlu2 %v3743_v43, %s3535_s6  ;;  %vm478_vm1 = vcmp.lt.s32.totalorder %v3852_v33, 60 }
  0x34   :  { %8502 = vst [vmem:[#allocation29_spill] sm:$0xff] %v3737_v41 }
  0x35   :  { %8503 = vst [vmem:[#allocation30_spill] sm:$0xff] %v3740_v42 }
  0x36   :  { %265 = vst [vmem:[#allocation1] ss:$2 sm:$0xff] %v3713_v36  ;;  %v3757_v46 = vld.sshfl [vmem:[#allocation1 + $0x20] sm:$0xff pattern:$0x75316420] }
  0x37   :  { %266 = vst [vmem:[#allocation1 + $0x1] ss:$2 sm:$0xff] %v3709_v35  ;;  %350 = vrot.lane.b32.xlu0 %v3757_v46, %s3535_s6 }
  0x38   :  { %8504 = vst [vmem:[#allocation31_spill] sm:$0xff] %v3749_v44 }
  0x39   :  { %267 = vst [vmem:[#allocation1 + $0x10] ss:$2 sm:$0xff] %v3720_v38  ;;  %v3766_v48 = vld.sshfl [vmem:[#allocation1 + $0x30] sm:$0xff pattern:$0x75316420] }
  0x3a   :  { %8505 = vst [vmem:[#allocation32_spill] sm:$0xff] %v3755_v45  ;;  %353 = vrot.lane.b32.xlu1 %v3766_v48, %s3535_s6 }
  0x3b   :  { %268 = vst [vmem:[#allocation1 + $0x11] ss:$2 sm:$0xff] %v3728_v39 }
  0x3c   :  { %8506 = vst [vmem:[#allocation33_spill] sm:$0xff] %v3763_v47 }
  0x3d   :  { %269 = vst [vmem:[#allocation1 + $0x20] ss:$2 sm:$0xff] %v3740_v42 }
  0x3e   :  { %270 = vst [vmem:[#allocation1 + $0x21] ss:$2 sm:$0xff] %v3668_v26  ;;  %v3794_v56 = vld.sshfl [vmem:[#allocation1] sm:$0xff pattern:$0x75316420] }
  0x3f   :  { %8507 = vst [vmem:[#allocation34_spill] sm:$0xff] %v3772_v49  ;;  %356 = vrot.lane.b32.xlu2 %v3794_v56, %s3535_s6 }
  0x40   :  { %8508 = vst [vmem:[#allocation35_spill] sm:$0xff] %v3775_v50 }
  0x41   :  { %271 = vst [vmem:[#allocation1 + $0x30] ss:$2 sm:$0xff] %v3737_v41  ;;  %v3833_v41 = vld [vmem:[%s8133_s0 + $0xb0] sm:$0xff]  ;;  %s3538_s0 = smov 1  }
  0x42   :  { %8509 = vst [vmem:[#allocation36_spill] sm:$0xff] %v3783_v51  ;;  %v3808_v62 = vld.sshfl [vmem:[#allocation1 + $0x10] sm:$0xff pattern:$0x75316420]  ;;  %v3863_v15 = vrot.slane %v3833_v41, 4 }
  0x43   :  { %8510 = vst [vmem:[#allocation37_spill] sm:$0xff] %v3786_v52  ;;  %359 = vrot.lane.b32.xlu0 %v3808_v62, %s3535_s6 }
  0x44   :  { %272 = vst [vmem:[#allocation1 + $0x31] ss:$2 sm:$0xff] %v3755_v45 }
  0x45   :  { %8511 = vst [vmem:[#allocation38_spill] sm:$0xff] %v3792_v55  ;;  %v3824_v57 = vld.sshfl [vmem:[#allocation1 + $0x20] sm:$0xff pattern:$0x75316420] }
  0x46   :  { %8512 = vst [vmem:[#allocation39_spill] sm:$0xff] %v3799_v59  ;;  %362 = vrot.lane.b32.xlu1 %v3824_v57, %s3535_s6 }
  0x47   :  { %8513 = vst [vmem:[#allocation40_spill] sm:$0xff] %v3802_v60 }
  0x48   :  { %277 = vst [vmem:[#allocation1] ss:$2 sm:$0xff] %v3749_v44 }
  0x49   :  { %8514 = vst [vmem:[#allocation41_spill] sm:$0xff] %v3806_v61  ;;  %v3871_v61 = vadd.s32 56, %v3792_v55 }
  0x4a   :  { %278 = vst [vmem:[#allocation1 + $0x1] ss:$2 sm:$0xff] %v3775_v50  ;;  %v3866_v50 = vadd.s32 16, %v3792_v55 }
  0x4b   :  { %8515 = vst [vmem:[#allocation42_spill] sm:$0xff] %v3816_v63  ;;  %v3839_v45 = vld.sshfl [vmem:[#allocation1 + $0x30] sm:$0xff pattern:$0x75316420] }
  0x4c   :  { %279 = vst [vmem:[#allocation1 + $0x10] ss:$2 sm:$0xff] %v3763_v47  ;;  %v3910_v47 = vperm.slane %v3866_v50, %v3827_v1  ;;  %365 = vrot.lane.b32.xlu2 %v3839_v45, %s3535_s6 }
  0x4d   :  { %8516 = vst [vmem:[#allocation43_spill] sm:$0xff] %v3822_v53 }
  0x4e   :  { %280 = vst [vmem:[#allocation1 + $0x11] ss:$2 sm:$0xff] %v3786_v52  ;;  %vm476_vm7 = vcmp.lt.s32.totalorder %v3910_v47, 60 }
  0x4f   :  { %281 = vst [vmem:[#allocation1 + $0x20] ss:$2 sm:$0xff] %v3772_v49  ;;  %v3890_v49 = vadd.s32 32, %v3792_v55 }
  0x50   :  { %8517 = vst [vmem:[#allocation44_spill] sm:$0xff] %v3833_v41 }
  0x51   :  { %8518 = vst [vmem:[#allocation45_spill] sm:$0xff] %v3837_v54  ;;  %v3868_v52 = vld.sshfl [vmem:[#allocation1] sm:$0xff pattern:$0x75316420]  ;;  %v3900_v54 = vperm.slane %v3866_v50, %v3819_v0 }
  0x52   :  { %282 = vst [vmem:[#allocation1 + $0x21] ss:$2 sm:$0xff] %v3802_v60  ;;  %368 = vrot.lane.b32.xlu0 %v3868_v52, %s3535_s6 }
  0x53   :  { %8519 = vst [vmem:[#allocation46_spill] sm:$0xff] %v3845_v58  ;;  %vm475_vm6 = vcmp.lt.s32.totalorder %v3900_v54, 60 }
  0x54   :  { %8520 = vst [vmem:[#allocation47_spill] sm:$0xff] %v3848_v32 }
  0x55   :  { %8521 = vst [vmem:[#allocation48_spill] sm:$0xff] %v3852_v33  ;;  %v3885_v11 = vld.sshfl [vmem:[#allocation1 + $0x10] sm:$0xff pattern:$0x75316420]  ;;  %v8531_v33 = vmov 0  }
  0x56   :  { %283 = vst [vmem:[#allocation1 + $0x30] ss:$2 sm:$0xff] %v3799_v59  ;;  %v3875_v59 = vperm.slane %v3792_v55, %v3827_v1  ;;  %v3974_v39 = vsel %vm475_vm6, 1, %v8531_v33  ;;  %371 = vrot.lane.b32.xlu1 %v3885_v11, %s3535_s6 }
  0x57   :  { %8522 = vst [vmem:[#allocation49_spill] sm:$0xff] %v3859_v21 }
  0x58   :  { %284 = vst [vmem:[#allocation1 + $0x31] ss:$2 sm:$0xff] %v3822_v53  ;;  %v3883_v53 = vperm.slane %v3848_v32, %v3819_v0  ;;  %vm472_vm3 = vcmp.lt.s32.totalorder %v3875_v59, 60 }
  0x59   :  { %8523 = vst [vmem:[#allocation50_spill] sm:$0xff] %v3863_v15  ;;  %v3902_v44 = vld.sshfl [vmem:[#allocation1 + $0x20] sm:$0xff pattern:$0x75316420] }
  0x5a   :  { %8524 = vst [vmem:[#allocation51_spill] sm:$0xff] %v3866_v50  ;;  %vm473_vm4 = vcmp.lt.s32.totalorder %v3883_v53, 60  ;;  %v3929_v50 = vadd.s32 40, %v3792_v55  ;;  %374 = vrot.lane.b32.xlu2 %v3902_v44, %s3535_s6 }
  0x5b   :  { %8525 = vst [vmem:[#allocation52_spill] sm:$0xff] %v3871_v61  ;;  %v3954_v21 = vsel %vm473_vm4, 1, %v8531_v33  ;;  %vm1866_vm4 = vcmask 1042432  }
  0x5c   :  { %8526 = vst [vmem:[#allocation53_spill] sm:$0xff] %v3875_v59  ;;  %v3935_v59 = vsel %vm471_vm2, 1, %v8531_v33 }
  0x5d   :  { %289 = vst [vmem:[#allocation1] ss:$2 sm:$0xff] %v3816_v63  ;;  %v3894_v63 = vperm.slane %v3848_v32, %v3827_v1  ;;  %v3915_v32 = vsel %vm478_vm1, 1, %v8531_v33 }
  0x5e   :  { %8527 = vst [vmem:[#allocation54_spill] sm:$0xff] %v3883_v53  ;;  %v3944_v53 = vsel %vm472_vm3, 1, %v8531_v33 }
  0x5f   :  { %290 = vst [vmem:[#allocation1 + $0x1] ss:$2 sm:$0xff] %v3845_v58  ;;  %v3906_v58 = vsel %vm477_vm0, 1, %v8531_v33  ;;  %vm474_vm5 = vcmp.lt.s32.totalorder %v3894_v63, 60 }
  0x60   :  { %8528 = vst [vmem:[#allocation55_spill] sm:$0xff] %v3890_v49  ;;  %v3964_v35 = vsel %vm474_vm5, 1, %v8531_v33  ;;  %vm1867_vm5 = vcmask 1046532  }
  0x61   :  { %8529 = vst [vmem:[#allocation56_spill] sm:$0xff] %v3894_v63  ;;  %v3948_v63 = vadd.s32 48, %v3792_v55  ;;  %v3969_v55 = vperm.slane %v3929_v50, %v3819_v0  ;;  %vm4688_vm6 = vmor %vm1866_vm4, %vm1867_vm5 }
  0x62   :  { %291 = vst [vmem:[#allocation1 + $0x10] ss:$2 sm:$0xff] %v3833_v41  ;;  %v3923_v41 = vld.sshfl [vmem:[#allocation1 + $0x30] sm:$0xff pattern:$0x75316420] }
  0x63   :  { %8530 = vst [vmem:[#allocation57_spill] sm:$0xff] %v3900_v54  ;;  %v3960_v54 = vperm.slane %v3890_v49, %v3827_v1  ;;  %v3988_v60 = vperm.slane %v3948_v63, %v3819_v0  ;;  %377 = vrot.lane.b32.xlu0 %v3923_v41, %s3535_s6  ;;  %vm481_vm11 = vcmp.lt.s32.totalorder %v3969_v55, 60 }
  0x64   :  { %292 = vst [vmem:[#allocation1 + $0x11] ss:$2 sm:$0xff] %v3863_v15  ;;  %v3921_v15 = vperm.slane %v3871_v61, %v3819_v0  ;;  %v3940_v61 = vperm.slane %v3890_v49, %v3819_v0  ;;  %v3979_v49 = vperm.slane %v3929_v50, %v3827_v1 }
  0x65   :  { %8532 = vst [vmem:[#allocation58_spill] sm:$0xff] %v3906_v58  ;;  %vm480_vm10 = vcmp.lt.s32.totalorder %v3960_v54, 60  ;;  %vm483_vm13 = vcmp.lt.s32.totalorder %v3988_v60, 60 }
  0x66   :  { %8533 = vst [vmem:[#allocation59_spill] sm:$0xff] %v3910_v47  ;;  %vm485_vm8 = vcmp.lt.s32.totalorder %v3921_v15, 60  ;;  %vm479_vm9 = vcmp.lt.s32.totalorder %v3940_v61, 60  ;;  %vm482_vm12 = vcmp.lt.s32.totalorder %v3979_v49, 60 }
  0x67   :  { %293 = vst [vmem:[#allocation1 + $0x20] ss:$2 sm:$0xff] %v3783_v51  ;;  %v3950_v51 = vld.sshfl [vmem:[#allocation1] sm:$0xff pattern:$0x75316420]  ;;  %v3993_v36 = vsel %vm485_vm8, 1, %v8531_v33 }
  0x68   :  { %8534 = vst [vmem:[#allocation60_spill] sm:$0xff] %v3915_v32  ;;  %v4012_v38 = vsel %vm479_vm9, 1, %v8531_v33  ;;  %380 = vrot.lane.b32.xlu1 %v3950_v51, %s3535_s6  ;;  %vm8414_vm9 = vcmask 1047556  }
  0x69   :  { %8535 = vst [vmem:[#allocation61_spill] sm:$0xff] %v3921_v15  ;;  %v3983_v15 = vsel %vm476_vm7, 1, %v8531_v33 }
  0x6a   :  { %8536 = vst [vmem:[#allocation62_spill] sm:$0xff] %v3929_v50  ;;  %v4000_v50 = vperm.slane %v3948_v63, %v3827_v1  ;;  %v4017_v1 = vsel %vm480_vm10, 1, %v8531_v33 }
  0x6b   :  { %8537 = vst [vmem:[#allocation63_spill] sm:$0xff] %v3935_v59  ;;  %v3971_v47 = vld.sshfl [vmem:[#allocation1 + $0x10] sm:$0xff pattern:$0x75316420] }
  0x6c   :  { %546 = vst [vmem:[#allocation1 + $0x30] ss:$2 sm:$0xff] %v3906_v58  ;;  %vm484_vm14 = vcmp.lt.s32.totalorder %v4000_v50, 60  ;;  %383 = vrot.lane.b32.xlu2 %v3971_v47, %s3535_s6 }
  0x6d   :  { %8538 = vst [vmem:[#allocation64_spill] sm:$0xff] %v3940_v61  ;;  %v4035_v61 = vsel %vm484_vm14, 1, %v8531_v33 }
  0x6e   :  { %8539 = vst [vmem:[#allocation65_spill] sm:$0xff] %v3944_v53  ;;  %v3990_v42 = vld.sshfl [vmem:[#allocation1 + $0x20] sm:$0xff pattern:$0x75316420] }
  0x6f   :  { %548 = vst [vmem:[#allocation1 + $0x31] ss:$2 sm:$0xff] %v3915_v32  ;;  %386 = vrot.lane.b32.xlu0 %v3990_v42, %s3535_s6 }
  0x70   :  { %8540 = vst [vmem:[#allocation66_spill] sm:$0xff] %v3948_v63  ;;  %v4024_v63 = vsel %vm481_vm11, 1, %v8531_v33 }
  0x71   :  { %8541 = vst [vmem:[#allocation67_spill] sm:$0xff] %v3954_v21 }
  0x72   :  { %8542 = vst [vmem:[#allocation68_spill] sm:$0xff] %v3960_v54 }
  0x73   :  { %8543 = vst [vmem:[#allocation69_spill] sm:$0xff] %v3964_v35 }
  0x74   :  { %534 = vst [vmem:[#allocation1] ss:$2 sm:$0xff] %v3935_v59 }
  0x75   :  { %8544 = vst [vmem:[#allocation70_spill] sm:$0xff] %v3969_v55  ;;  %v4027_v55 = vsel %vm482_vm12, 1, %v8531_v33 }
  0x76   :  { %8545 = vst [vmem:[#allocation71_spill] sm:$0xff] %v3974_v39  ;;  %v552_v0 = vld.sshfl [vmem:[#allocation1 + $0x30] sm:$0xff pattern:$0x75316420] }
  0x77   :  { %536 = vst [vmem:[#allocation1 + $0x1] ss:$2 sm:$0xff] %v3944_v53  ;;  %458 = vrot.lane.b32.xlu0 %v3554_v2, %s3538_s0 }
  0x78   :  { %8546 = vst [vmem:[#allocation72_spill] sm:$0xff] %v3979_v49 }
  0x79   :  { %8547 = vst [vmem:[#allocation73_spill] sm:$0xff] %v3983_v15 }
  0x7a   :  { %538 = vst [vmem:[#allocation1 + $0x10] ss:$2 sm:$0xff] %v3954_v21 }
  0x7b   :  { %8548 = vst [vmem:[#allocation74_spill] sm:$0xff] %v3988_v60  ;;  %v4031_v60 = vsel %vm483_vm13, 1, %v8531_v33 }
  0x7c   :  { %8549 = vst [vmem:[#allocation75_spill] sm:$0xff] %v3993_v36 }
  0x7d   :  { %540 = vst [vmem:[#allocation1 + $0x11] ss:$2 sm:$0xff] %v3964_v35 }
  0x7e   :  { %8550 = vst [vmem:[#allocation76_spill] sm:$0xff] %v4000_v50  ;;  %v549_v49 = vld.sshfl [vmem:[#allocation1] sm:$0xff pattern:$0x75316420] }
  0x7f   :  { %542 = vst [vmem:[#allocation1 + $0x20] ss:$2 sm:$0xff] %v3974_v39  ;;  %609 = vrot.lane.b32.xlu0 %v549_v49, %s3538_s0 }
  0x80   :  { %544 = vst [vmem:[#allocation1 + $0x21] ss:$2 sm:$0xff] %v3983_v15 }
  0x81   :  { %8551 = vst [vmem:[#allocation77_spill] sm:$0xff] %v4012_v38 }
  0x82   :  { %559 = vst [vmem:[#allocation1 + $0x30] ss:$2 sm:$0xff] %v3993_v36 }
  0x83   :  { %8552 = vst [vmem:[#allocation78_spill] sm:$0xff] %v4017_v1 }
  0x84   :  { %560 = vst [vmem:[#allocation1 + $0x31] ss:$2 sm:$0xff] %v3935_v59  ;;  %v550_v54 = vld.sshfl [vmem:[#allocation1 + $0x10] sm:$0xff pattern:$0x75316420] }
  0x85   :  { %8553 = vst [vmem:[#allocation79_spill] sm:$0xff] %v4024_v63  ;;  %611 = vrot.lane.b32.xlu1 %v550_v54, %s3538_s0 }
  0x86   :  { %8554 = vst [vmem:[#allocation80_spill] sm:$0xff] %v4027_v55 }
  0x87   :  { %553 = vst [vmem:[#allocation1] ss:$2 sm:$0xff] %v4012_v38  ;;  %v551_v50 = vld.sshfl [vmem:[#allocation1 + $0x20] sm:$0xff pattern:$0x75316420]  ;;  %615 = vrot.lane.b32.xlu0 %v552_v0, %s3538_s0 }
  0x88   :  { %8555 = vst [vmem:[#allocation81_spill] sm:$0xff] %v4031_v60  ;;  %613 = vrot.lane.b32.xlu2 %v551_v50, %s3538_s0 }
  0x89   :  { %554 = vst [vmem:[#allocation1 + $0x1] ss:$2 sm:$0xff] %v4017_v1 }
  0x8a   :  { %8556 = vst [vmem:[#allocation82_spill] sm:$0xff] %v4035_v61 }
  0x8b   :  { %555 = vst [vmem:[#allocation1 + $0x10] ss:$2 sm:$0xff] %v4024_v63  ;;  %v564_v22 = vld.sshfl [vmem:[#allocation1 + $0x30] sm:$0xff pattern:$0x75316420] }
  0x8c   :  { %556 = vst [vmem:[#allocation1 + $0x11] ss:$2 sm:$0xff] %v4027_v55 }
  0x8d   :  { %557 = vst [vmem:[#allocation1 + $0x20] ss:$2 sm:$0xff] %v4031_v60 }
  0x8e   :  { %558 = vst [vmem:[#allocation1 + $0x21] ss:$2 sm:$0xff] %v4035_v61 }
  0x8f   :  { %571 = vst [vmem:[#allocation1 + $0x30] ss:$2 sm:$0xff] %v3915_v32 }
  0x90   :  { %572 = vst [vmem:[#allocation1 + $0x31] ss:$2 sm:$0xff] %v4012_v38  ;;  %v561_v25 = vld.sshfl [vmem:[#allocation1] sm:$0xff pattern:$0x75316420] }
  0x91   :  { %565 = vst [vmem:[#allocation1] ss:$2 sm:$0xff] %v3944_v53  ;;  %617 = vrot.lane.b32.xlu1 %v561_v25, %s3538_s0 }
  0x92   :  { %566 = vst [vmem:[#allocation1 + $0x1] ss:$2 sm:$0xff] %v3954_v21 }
  0x93   :  { %v562_v26 = vld.sshfl [vmem:[#allocation1 + $0x10] sm:$0xff pattern:$0x75316420] }
  0x94   :  { %567 = vst [vmem:[#allocation1 + $0x10] ss:$2 sm:$0xff] %v3964_v35  ;;  %619 = vrot.lane.b32.xlu2 %v562_v26, %s3538_s0 }
  0x95   :  { %v563_v29 = vld.sshfl [vmem:[#allocation1 + $0x20] sm:$0xff pattern:$0x75316420]  ;;  %568 = vst [vmem:[#allocation1 + $0x11] ss:$2 sm:$0xff] %v3974_v39 }
  0x96   :  { %569 = vst [vmem:[#allocation1 + $0x20] ss:$2 sm:$0xff] %v3983_v15  ;;  %621 = vrot.lane.b32.xlu0 %v563_v29, %s3538_s0 }
  0x97   :  { %570 = vst [vmem:[#allocation1 + $0x21] ss:$2 sm:$0xff] %v3906_v58  ;;  %v576_v23 = vld.sshfl [vmem:[#allocation1 + $0x30] sm:$0xff pattern:$0x75316420] }
  0x98   :  { %583 = vst [vmem:[#allocation1 + $0x30] ss:$2 sm:$0xff] %v3935_v59 }
  0x99   :  { %584 = vst [vmem:[#allocation1 + $0x31] ss:$2 sm:$0xff] %v3944_v53  ;;  %v573_v54 = vld.sshfl [vmem:[#allocation1] sm:$0xff pattern:$0x75316420]  ;;  %623 = vrot.lane.b32.xlu1 %v564_v22, %s3538_s0 }
  0x9a   :  { %577 = vst [vmem:[#allocation1] ss:$2 sm:$0xff] %v4017_v1 }
  0x9b   :  { %578 = vst [vmem:[#allocation1 + $0x1] ss:$2 sm:$0xff] %v4024_v63 }
  0x9c   :  { %v574_v27 = vld.sshfl [vmem:[#allocation1 + $0x10] sm:$0xff pattern:$0x75316420]  ;;  %625 = vrot.lane.b32.xlu2 %v573_v54, %s3538_s0 }
  0x9d   :  { %579 = vst [vmem:[#allocation1 + $0x10] ss:$2 sm:$0xff] %v4027_v55 }
  0x9e   :  { %v575_v30 = vld.sshfl [vmem:[#allocation1 + $0x20] sm:$0xff pattern:$0x75316420]  ;;  %580 = vst [vmem:[#allocation1 + $0x11] ss:$2 sm:$0xff] %v4031_v60  ;;  %627 = vrot.lane.b32.xlu0 %v574_v27, %s3538_s0 }
  0x9f   :  { %581 = vst [vmem:[#allocation1 + $0x20] ss:$2 sm:$0xff] %v4035_v61 }
  0xa0   :  { %582 = vst [vmem:[#allocation1 + $0x21] ss:$2 sm:$0xff] %v3993_v36  ;;  %v4070_v50 = vld.sshfl [vmem:[#allocation1 + $0x30] sm:$0xff pattern:$0x75316420] }
  0xa1   :  { %595 = vst [vmem:[#allocation1 + $0x30] ss:$2 sm:$0xff] %v4012_v38  ;;  %629 = vrot.lane.b32.xlu1 %v575_v30, %s3538_s0  ;;  %v327_v30 = vpop.permute.xlu2 %326 }
  0xa2   :  { %596 = vst [vmem:[#allocation1 + $0x31] ss:$2 sm:$0xff] %v4017_v1  ;;  %v585_v25 = vld.sshfl [vmem:[#allocation1] sm:$0xff pattern:$0x75316420]  ;;  %v328_v27 = vsel %vm215_vm15, %v327_v30, %v3637_v20 }
  0xa3   :  { %589 = vst [vmem:[#allocation1] ss:$2 sm:$0xff] %v3954_v21 }
  0xa4   :  { %590 = vst [vmem:[#allocation1 + $0x1] ss:$2 sm:$0xff] %v3964_v35  ;;  %631 = vrot.lane.b32.xlu2 %v576_v23, %s3538_s0  ;;  %v8599_v35 = vld [vmem:[#allocation44_spill] sm:$0xff] }
  0xa5   :  { %v586_v49 = vld.sshfl [vmem:[#allocation1 + $0x10] sm:$0xff pattern:$0x75316420] }
  0xa6   :  { %591 = vst [vmem:[#allocation1 + $0x10] ss:$2 sm:$0xff] %v3974_v39  ;;  %633 = vrot.lane.b32.xlu0 %v585_v25, %s3538_s0  ;;  %v8598_v39 = vld [vmem:[#allocation35_spill] sm:$0xff] }
  0xa7   :  { %v587_v26 = vld.sshfl [vmem:[#allocation1 + $0x20] sm:$0xff pattern:$0x75316420]  ;;  %592 = vst [vmem:[#allocation1 + $0x11] ss:$2 sm:$0xff] %v3983_v15  ;;  %v8597_v15 = vld [vmem:[#allocation37_spill] sm:$0xff] }
  0xa8   :  { %593 = vst [vmem:[#allocation1 + $0x20] ss:$2 sm:$0xff] %v3906_v58  ;;  %v321_v58 = vpop.permute.xlu1 %320 }
  0xa9   :  { %594 = vst [vmem:[#allocation1 + $0x21] ss:$2 sm:$0xff] %v3915_v32  ;;  %635 = vrot.lane.b32.xlu1 %v586_v49, %s3538_s0  ;;  %v330_v29 = vpop.permute.xlu2 %329  ;;  %v217_v32 = vpop.permute.xlu0 %216 }
  0xaa   :  { %v218_v23 = vsel %vm215_vm15, %v217_v32, %v3554_v2  ;;  %v331_v25 = vsel %vm215_vm15, %v330_v29, %v3656_v24 }
  0xab   :  { %v4084_v22 = vld.sshfl [vmem:[#allocation1] sm:$0xff pattern:$0x75316420] }
  0xac   :  { %601 = vst [vmem:[#allocation1] ss:$2 sm:$0xff] %v4024_v63  ;;  %637 = vrot.lane.b32.xlu2 %v587_v26, %s3538_s0 }
  0xad   :  { %602 = vst [vmem:[#allocation1 + $0x1] ss:$2 sm:$0xff] %v4027_v55 }
  0xae   :  { %v4088_v0 = vld.sshfl [vmem:[#allocation1 + $0x10] sm:$0xff pattern:$0x75316420]  ;;  %219 = vrot.lane.b32.xlu0 %v218_v23, %s3535_s6 }
  0xaf   :  { %603 = vst [vmem:[#allocation1 + $0x10] ss:$2 sm:$0xff] %v4031_v60 }
  0xb0   :  { %v4093_v54 = vld.sshfl [vmem:[#allocation1 + $0x20] sm:$0xff pattern:$0x75316420]  ;;  %604 = vst [vmem:[#allocation1 + $0x11] ss:$2 sm:$0xff] %v4035_v61  ;;  %v324_v49 = vpop.permute.xlu1 %323 }
  0xb1   :  { %605 = vst [vmem:[#allocation1 + $0x20] ss:$2 sm:$0xff] %v3993_v36  ;;  %v339_v61 = vpop.permute.xlu2 %338  ;;  %v322_v36 = vsel %vm215_vm15, %v321_v58, %v3625_v17  ;;  %v333_v26 = vpop.permute.xlu0 %332  ;;  %v325_v32 = vsel %vm215_vm15, %v324_v49, %v3633_v19 }
  0xb2   :  { %389 = vrot.lane.b32.xlu1 %v322_v36, %s3535_s6  ;;  %v340_v36 = vsel %vm215_vm15, %v339_v61, %v3701_v34 }
  0xb4   :  { %391 = vrot.lane.b32.xlu2 %v325_v32, %s3535_s6 }
  0xb6   :  { %393 = vrot.lane.b32.xlu0 %v328_v27, %s3535_s6  ;;  %v334_v27 = vsel %vm215_vm15, %v333_v26, %v3674_v28 }
  0xb8   :  { %v336_v23 = vpop.permute.xlu1 %335 }
  0xb9   :  { %v348_v58 = vpop.permute.xlu2 %347  ;;  %v342_v30 = vpop.permute.xlu0 %341  ;;  %v337_v29 = vsel %vm215_vm15, %v336_v23, %v3689_v31 }
  0xba   :  { %395 = vrot.lane.b32.xlu1 %v331_v25, %s3535_s6  ;;  %v349_v49 = vsel %vm215_vm15, %v348_v58, %v3743_v43  ;;  %v343_v60 = vsel %vm215_vm15, %v342_v30, %v3715_v37 }
  0xbc   :  { %397 = vrot.lane.b32.xlu2 %v334_v27, %s3535_s6 }
  0xbe   :  { %399 = vrot.lane.b32.xlu0 %v337_v29, %s3535_s6 }
  0xc0   :  { %v345_v32 = vpop.permute.xlu1 %344 }
  0xc1   :  { %v357_v25 = vpop.permute.xlu2 %356  ;;  %v351_v61 = vpop.permute.xlu0 %350  ;;  %v346_v26 = vsel %vm215_vm15, %v345_v32, %v3730_v40 }
  0xc2   :  { %401 = vrot.lane.b32.xlu1 %v340_v36, %s3535_s6  ;;  %v358_v23 = vsel %vm215_vm15, %v357_v25, %v3794_v56  ;;  %v352_v29 = vsel %vm215_vm15, %v351_v61, %v3757_v46 }
  0xc4   :  { %403 = vrot.lane.b32.xlu2 %v343_v60, %s3535_s6 }
  0xc6   :  { %405 = vrot.lane.b32.xlu0 %v346_v26, %s3535_s6 }
  0xc8   :  { %v354_v27 = vpop.permute.xlu1 %353 }
  0xc9   :  { %v366_v36 = vpop.permute.xlu2 %365  ;;  %v360_v58 = vpop.permute.xlu0 %359  ;;  %v355_v30 = vsel %vm215_vm15, %v354_v27, %v3766_v48 }
  0xca   :  { %407 = vrot.lane.b32.xlu1 %v349_v49, %s3535_s6  ;;  %v367_v60 = vsel %vm215_vm15, %v366_v36, %v3839_v45  ;;  %v361_v26 = vsel %vm215_vm15, %v360_v58, %v3808_v62 }
  0xcc   :  { %409 = vrot.lane.b32.xlu2 %v352_v29, %s3535_s6 }
  0xce   :  { %411 = vrot.lane.b32.xlu0 %v355_v30, %s3535_s6 }
  0xd0   :  { %v363_v32 = vpop.permute.xlu1 %362 }
  0xd1   :  { %v375_v49 = vpop.permute.xlu2 %374  ;;  %v369_v25 = vpop.permute.xlu0 %368  ;;  %v364_v61 = vsel %vm215_vm15, %v363_v32, %v3824_v57 }
  0xd2   :  { %413 = vrot.lane.b32.xlu1 %v358_v23, %s3535_s6  ;;  %v376_v23 = vsel %vm215_vm15, %v375_v49, %v3902_v44  ;;  %v370_v29 = vsel %vm215_vm15, %v369_v25, %v3868_v52 }
  0xd4   :  { %415 = vrot.lane.b32.xlu2 %v361_v26, %s3535_s6 }
  0xd6   :  { %417 = vrot.lane.b32.xlu0 %v364_v61, %s3535_s6 }
  0xd8   :  { %v372_v27 = vpop.permute.xlu1 %371 }
  0xd9   :  { %v378_v36 = vpop.permute.xlu0 %377  ;;  %v373_v58 = vsel %vm215_vm15, %v372_v27, %v3885_v11  ;;  %v384_v30 = vpop.permute.xlu2 %383 }
  0xda   :  { %419 = vrot.lane.b32.xlu1 %v367_v60, %s3535_s6  ;;  %v379_v49 = vsel %vm215_vm15, %v378_v36, %v3923_v41  ;;  %v385_v61 = vsel %vm215_vm15, %v384_v30, %v3971_v47  ;;  %v600_v36 = vld.sshfl [vmem:[#allocation1 + $0x30] sm:$0xff pattern:$0x75316420]  ;;  %v606_v30 = vld.sshfl [vmem:[#allocation1] sm:$0xff pattern:$0x75316420] }
  0xdc   :  { %421 = vrot.lane.b32.xlu2 %v370_v29, %s3535_s6 }
  0xde   :  { %423 = vrot.lane.b32.xlu0 %v373_v58, %s3535_s6 }
  0xe0   :  { %v381_v60 = vpop.permute.xlu1 %380 }
  0xe1   :  { %v387_v32 = vpop.permute.xlu0 %386  ;;  %v382_v26 = vsel %vm215_vm15, %v381_v60, %v3950_v51  ;;  %v608_v60 = vld.sshfl [vmem:[#allocation1 + $0x20] sm:$0xff pattern:$0x75316420] }
  0xe2   :  { %425 = vrot.lane.b32.xlu1 %v376_v23, %s3535_s6  ;;  %v4169_v25 = vpop.permute.xlu2 %613  ;;  %v388_v58 = vsel %vm215_vm15, %v387_v32, %v3990_v42 }
  0xe3   :  { %8557 = vst [vmem:[#allocation83_spill] sm:$0xff] %v4169_v25 }
  0xe4   :  { %427 = vrot.lane.b32.xlu2 %v379_v49, %s3535_s6 }
  0xe6   :  { %429 = vrot.lane.b32.xlu0 %v382_v26, %s3535_s6 }
  0xe9   :  { %v4173_v23 = vpop.permute.xlu0 %458 }
  0xea   :  { %641 = vrot.lane.b32.xlu1 %v4084_v22, %s3538_s0 }
  0xec   :  { %643 = vrot.lane.b32.xlu2 %v4088_v0, %s3538_s0 }
  0xee   :  { %639 = vrot.lane.b32.xlu0 %v4070_v50, %s3538_s0  ;;  %v4182_v22 = vpop.permute.xlu2 %619  ;;  %v607_v50 = vld.sshfl [vmem:[#allocation1 + $0x10] sm:$0xff pattern:$0x75316420] }
  0xef   :  { %8559 = vst [vmem:[#allocation85_spill] sm:$0xff] %v4182_v22 }
  0xf1   :  { %v4184_v29 = vpop.permute.xlu0 %609 }
  0xf2   :  { %431 = vrot.lane.b32.xlu1 %v385_v61, %s3535_s6  ;;  %8560 = vst [vmem:[#allocation86_spill] sm:$0xff] %v4184_v29 }
  0xf4   :  { %433 = vrot.lane.b32.xlu2 %v388_v58, %s3535_s6  ;;  %s3539_s6 = smov 127  }
  0xf6   :  { %645 = vrot.lane.b32.xlu0 %v4093_v54, %s3538_s0  ;;  %v4194_v49 = vpop.permute.xlu2 %625 }
  0xf7   :  { %v4178_v27 = vpop.permute.xlu1 %611  ;;  %8562 = vst [vmem:[#allocation88_spill] sm:$0xff] %v4194_v49 }
  0xf8   :  { %8558 = vst [vmem:[#allocation84_spill] sm:$0xff] %v4178_v27 }
  0xf9   :  { %v4196_v26 = vpop.permute.xlu0 %615 }
  0xfa   :  { %647 = vrot.lane.b32.xlu1 %v600_v36, %s3538_s0  ;;  %8563 = vst [vmem:[#allocation89_spill] sm:$0xff] %v4196_v26 }
  0xfc   :  { %649 = vrot.lane.b32.xlu2 %v606_v30, %s3538_s0 }
  0xfe   :  { %651 = vrot.lane.b32.xlu0 %v607_v50, %s3538_s0  ;;  %v4205_v54 = vpop.permute.xlu2 %631 }
  0xff   :  { %8566 = vst [vmem:[#allocation92_spill] sm:$0xff] %v4205_v54 }
 0x102   :  { %653 = vrot.lane.b32.xlu1 %v608_v60, %s3538_s0 }
 0x103   :  { %v4192_v0 = vpop.permute.xlu1 %617 }
 0x104   :  { %8561 = vst [vmem:[#allocation87_spill] sm:$0xff] %v4192_v0  ;;  %v8594_v0 = vld [vmem:[#allocation31_spill] sm:$0xff] }
 0x106   :  { %v4211_v22 = vpop.permute.xlu2 %637 }
 0x107   :  { %8569 = vst [vmem:[#allocation95_spill] sm:$0xff] %v4211_v22 }
 0x108   :  { %v4203_v61 = vpop.permute.xlu0 %621 }
 0x109   :  { %8565 = vst [vmem:[#allocation91_spill] sm:$0xff] %v4203_v61 }
 0x10b   :  { %v4201_v32 = vpop.permute.xlu1 %623 }
 0x10c   :  { %8564 = vst [vmem:[#allocation90_spill] sm:$0xff] %v4201_v32 }
 0x10e   :  { %v392_v60 = vpop.permute.xlu2 %391 }
 0x110   :  { %v4209_v58 = vpop.permute.xlu0 %627 }
 0x111   :  { %8568 = vst [vmem:[#allocation94_spill] sm:$0xff] %v4209_v58 }
 0x113   :  { %v4207_v36 = vpop.permute.xlu1 %629 }
 0x114   :  { %8567 = vst [vmem:[#allocation93_spill] sm:$0xff] %v4207_v36  ;;  %v436_v36 = vsel %vm215_vm15, %v392_v60, %v3633_v19 }
 0x115   :  { %v725_v19 = vrot.slane %v436_v36, 4 }
 0x116   :  { %v398_v22 = vpop.permute.xlu2 %397 }
 0x117   :  { %v439_v60 = vsel %vm215_vm15, %v398_v22, %v3674_v28 }
 0x118   :  { %v4213_v49 = vpop.permute.xlu0 %633 }
 0x119   :  { %8570 = vst [vmem:[#allocation96_spill] sm:$0xff] %v4213_v49 }
 0x11b   :  { %v4215_v26 = vpop.permute.xlu1 %635 }
 0x11c   :  { %8571 = vst [vmem:[#allocation97_spill] sm:$0xff] %v4215_v26 }
 0x11e   :  { %v4238_v32 = vpop.permute.xlu2 %403 }
 0x120   :  { %v220_v30 = vpop.permute.xlu0 %219 }
 0x121   :  { %v4219_v50 = vsel %vm215_vm15, %v220_v30, %v3554_v2 }
 0x122   :  { %462 = vrot.lane.b32.xlu1 %v4219_v50, %s3539_s6 }
 0x124   :  { %v390_v54 = vpop.permute.xlu1 %389 }
 0x125   :  { %v435_v58 = vsel %vm215_vm15, %v390_v54, %v3625_v17 }
 0x126   :  { %746 = vrot.lane.b32.xlu2 %v435_v58, %s3539_s6  ;;  %v724_v17 = vrot.slane %v435_v58, 4  ;;  %v410_v58 = vpop.permute.xlu2 %409 }
 0x128   :  { %v394_v49 = vpop.permute.xlu0 %393 }
 0x129   :  { %v437_v26 = vsel %vm215_vm15, %v394_v49, %v3637_v20 }
 0x12a   :  { %754 = vrot.lane.b32.xlu0 %v437_v26, %s3539_s6  ;;  %750 = vrot.lane.b32.xlu1 %v436_v36, %s3539_s6  ;;  %v726_v54 = vrot.slane %v437_v26, 4 }
 0x12c   :  { %v396_v30 = vpop.permute.xlu1 %395 }
 0x12d   :  { %v4234_v61 = vsel %vm215_vm15, %v396_v30, %v3656_v24  ;;  %v728_v30 = vrot.slane %v439_v60, 4 }
 0x12e   :  { %758 = vrot.lane.b32.xlu2 %v4234_v61, %s3539_s6 }
 0x130   :  { %v400_v24 = vpop.permute.xlu0 %399 }
 0x131   :  { %v440_v26 = vsel %vm215_vm15, %v400_v24, %v3689_v31  ;;  %v445_v31 = vsel %vm215_vm15, %v410_v58, %v3757_v46 }
 0x132   :  { %748 = vrot.lane.b32.xlu0 %v724_v17, %s3539_s6  ;;  %756 = vrot.lane.b32.xlu1 %v726_v54, %s3539_s6  ;;  %v729_v36 = vrot.slane %v440_v26, 4  ;;  %v416_v54 = vpop.permute.xlu2 %415 }
 0x134   :  { %v402_v20 = vpop.permute.xlu1 %401 }
 0x135   :  { %v441_v49 = vsel %vm215_vm15, %v402_v20, %v3701_v34 }
 0x136   :  { %752 = vrot.lane.b32.xlu2 %v725_v19, %s3539_s6  ;;  %v730_v34 = vrot.slane %v441_v49, 4 }
 0x138   :  { %v406_v17 = vpop.permute.xlu0 %405 }
 0x139   :  { %v443_v22 = vsel %vm215_vm15, %v406_v17, %v3730_v40  ;;  %v734_v40 = vrot.slane %v445_v31, 4  ;;  %v448_v17 = vsel %vm215_vm15, %v416_v54, %v3808_v62 }
 0x13a   :  { %762 = vrot.lane.b32.xlu0 %v439_v60, %s3539_s6  ;;  %770 = vrot.lane.b32.xlu1 %v441_v49, %s3539_s6  ;;  %v422_v49 = vpop.permute.xlu2 %421  ;;  %v732_v24 = vrot.slane %v443_v22, 4 }
 0x13c   :  { %v408_v28 = vpop.permute.xlu1 %407 }
 0x13d   :  { %v444_v19 = vsel %vm215_vm15, %v408_v28, %v3743_v43  ;;  %v737_v28 = vrot.slane %v448_v17, 4 }
 0x13e   :  { %766 = vrot.lane.b32.xlu2 %v440_v26, %s3539_s6  ;;  %v733_v26 = vrot.slane %v444_v19, 4 }
 0x140   :  { %v4263_v20 = vpop.permute.xlu0 %411 }
 0x142   :  { %768 = vrot.lane.b32.xlu0 %v729_v36, %s3539_s6  ;;  %764 = vrot.lane.b32.xlu1 %v728_v30, %s3539_s6  ;;  %v4271_v43 = vpop.permute.xlu2 %427 }
 0x144   :  { %v414_v60 = vpop.permute.xlu1 %413 }
 0x145   :  { %v447_v36 = vsel %vm215_vm15, %v414_v60, %v3794_v56 }
 0x146   :  { %772 = vrot.lane.b32.xlu2 %v730_v34, %s3539_s6  ;;  %v736_v34 = vrot.slane %v447_v36, 4 }
 0x148   :  { %v418_v46 = vpop.permute.xlu0 %417 }
 0x149   :  { %v449_v58 = vsel %vm215_vm15, %v418_v46, %v3824_v57 }
 0x14a   :  { %778 = vrot.lane.b32.xlu0 %v443_v22, %s3539_s6  ;;  %786 = vrot.lane.b32.xlu1 %v445_v31, %s3539_s6  ;;  %v4284_v57 = vpop.permute.xlu2 %643  ;;  %v738_v56 = vrot.slane %v449_v58, 4 }
 0x14b   :  { %8572 = vst [vmem:[#allocation98_spill] sm:$0xff] %v4284_v57  ;;  %v8592_v57 = vld [vmem:[#allocation25_spill] sm:$0xff] }
 0x14c   :  { %v4275_v30 = vpop.permute.xlu1 %419 }
 0x14e   :  { %782 = vrot.lane.b32.xlu2 %v444_v19, %s3539_s6  ;;  %v451_v19 = vsel %vm215_vm15, %v422_v49, %v3868_v52 }
 0x150   :  { %v424_v31 = vpop.permute.xlu0 %423 }
 0x151   :  { %v452_v54 = vsel %vm215_vm15, %v424_v31, %v3885_v11 }
 0x152   :  { %784 = vrot.lane.b32.xlu0 %v733_v26, %s3539_s6  ;;  %780 = vrot.lane.b32.xlu1 %v732_v24, %s3539_s6  ;;  %v434_v24 = vpop.permute.xlu2 %433  ;;  %v740_v26 = vrot.slane %v451_v19, 4 }
 0x154   :  { %v426_v22 = vpop.permute.xlu1 %425 }
 0x155   :  { %v453_v62 = vsel %vm215_vm15, %v426_v22, %v3902_v44 }
 0x156   :  { %788 = vrot.lane.b32.xlu2 %v734_v40, %s3539_s6  ;;  %v741_v40 = vrot.slane %v452_v54, 4  ;;  %v742_v44 = vrot.slane %v453_v62, 4 }
 0x158   :  { %v430_v46 = vpop.permute.xlu0 %429 }
 0x159   :  { %v455_v11 = vsel %vm215_vm15, %v430_v46, %v3950_v51  ;;  %v457_v51 = vsel %vm215_vm15, %v434_v24, %v3990_v42 }
 0x15a   :  { %794 = vrot.lane.b32.xlu0 %v447_v36, %s3539_s6  ;;  %802 = vrot.lane.b32.xlu1 %v449_v58, %s3539_s6  ;;  %v4301_v52 = vpop.permute.xlu2 %649  ;;  %v744_v58 = vrot.slane %v455_v11, 4 }
 0x15b   :  { %8574 = vst [vmem:[#allocation100_spill] sm:$0xff] %v4301_v52 }
 0x15c   :  { %v4296_v60 = vpop.permute.xlu1 %641 }
 0x15d   :  { %8573 = vst [vmem:[#allocation99_spill] sm:$0xff] %v4296_v60 }
 0x15e   :  { %798 = vrot.lane.b32.xlu2 %v448_v17, %s3539_s6 }
 0x160   :  { %v4310_v17 = vpop.permute.xlu0 %639 }
 0x161   :  { %8575 = vst [vmem:[#allocation101_spill] sm:$0xff] %v4310_v17  ;;  %v8614_v17 = vld [vmem:[#allocation57_spill] sm:$0xff] }
 0x162   :  { %800 = vrot.lane.b32.xlu0 %v737_v28, %s3539_s6  ;;  %796 = vrot.lane.b32.xlu1 %v736_v34, %s3539_s6 }
 0x164   :  { %v432_v49 = vpop.permute.xlu1 %431 }
 0x165   :  { %v456_v36 = vsel %vm215_vm15, %v432_v49, %v3971_v47  ;;  %v727_v47 = vrot.slane %v4234_v61, 4 }
 0x166   :  { %804 = vrot.lane.b32.xlu2 %v738_v56, %s3539_s6  ;;  %v745_v28 = vrot.slane %v456_v36, 4 }
 0x16a   :  { %810 = vrot.lane.b32.xlu0 %v451_v19, %s3539_s6  ;;  %818 = vrot.lane.b32.xlu1 %v453_v62, %s3539_s6  ;;  %v442_v19 = vsel %vm215_vm15, %v4238_v32, %v3715_v37  ;;  %v446_v37 = vsel %vm215_vm15, %v4263_v20, %v3766_v48  ;;  %v454_v20 = vsel %vm215_vm15, %v4271_v43, %v3923_v41 }
 0x16b   :  { %v735_v61 = vrot.slane %v446_v37, 4 }
 0x16c   :  { %v4313_v22 = vpop.permute.xlu1 %647 }
 0x16d   :  { %8576 = vst [vmem:[#allocation102_spill] sm:$0xff] %v4313_v22 }
 0x16e   :  { %814 = vrot.lane.b32.xlu2 %v452_v54, %s3539_s6  ;;  %v731_v54 = vrot.slane %v442_v19, 4 }
 0x172   :  { %816 = vrot.lane.b32.xlu0 %v741_v40, %s3539_s6  ;;  %812 = vrot.lane.b32.xlu1 %v740_v26, %s3539_s6  ;;  %v4325_v40 = vpop.permute.xlu0 %645 }
 0x173   :  { %8577 = vst [vmem:[#allocation103_spill] sm:$0xff] %v4325_v40 }
 0x174   :  { %v4329_v24 = vpop.permute.xlu1 %653 }
 0x175   :  { %8578 = vst [vmem:[#allocation104_spill] sm:$0xff] %v4329_v24  ;;  %v8591_v24 = vld [vmem:[#allocation28_spill] sm:$0xff] }
 0x176   :  { %820 = vrot.lane.b32.xlu2 %v742_v44, %s3539_s6  ;;  %v450_v44 = vsel %vm215_vm15, %v4275_v30, %v3839_v45  ;;  %v743_v45 = vrot.slane %v454_v20, 4 }
 0x17a   :  { %826 = vrot.lane.b32.xlu0 %v455_v11, %s3539_s6  ;;  %828 = vrot.lane.b32.xlu1 %v744_v58, %s3539_s6  ;;  %v4341_v49 = vpop.permute.xlu0 %651  ;;  %v739_v58 = vrot.slane %v450_v44, 4 }
 0x17b   :  { %8579 = vst [vmem:[#allocation105_spill] sm:$0xff] %v4341_v49 }
 0x17e   :  { %830 = vrot.lane.b32.xlu2 %v456_v36, %s3539_s6 }
 0x180   :  { %v747_v34 = vpop.permute.xlu2 %746 }
 0x181   :  { %v881_v56 = vsub.f32 %v3562_v3, %v747_v34 }
 0x182   :  { %834 = vrot.lane.b32.xlu1 %v457_v51, %s3539_s6  ;;  %832 = vrot.lane.b32.xlu0 %v745_v28, %s3539_s6 }
 0x183   :  { %v926_v31 = vand.u32 2147483647, %v881_v56 }
 0x185   :  { %1016 = vst [vmem:[#allocation1] ss:$2 sm:$0xff] %v926_v31 }
 0x186   :  { %760 = vrot.lane.b32.xlu2 %v727_v47, %s3539_s6 }
 0x188   :  { %v759_v62 = vpop.permute.xlu2 %758 }
 0x189   :  { %v887_v26 = vsub.f32 %v3583_v8, %v759_v62 }
 0x18a   :  { %776 = vrot.lane.b32.xlu1 %v731_v54, %s3539_s6  ;;  %774 = vrot.lane.b32.xlu0 %v442_v19, %s3539_s6 }
 0x18b   :  { %v932_v42 = vand.u32 2147483647, %v887_v26 }
 0x18d   :  { %1028 = vst [vmem:[#allocation1 + $0x30] ss:$2 sm:$0xff] %v932_v42 }
 0x18e   :  { %790 = vrot.lane.b32.xlu2 %v446_v37, %s3539_s6 }
 0x190   :  { %v753_v32 = vpop.permute.xlu2 %752 }
 0x191   :  { %v884_v46 = vsub.f32 %v3578_v7, %v753_v32 }
 0x192   :  { %806 = vrot.lane.b32.xlu1 %v450_v44, %s3539_s6  ;;  %792 = vrot.lane.b32.xlu0 %v735_v61, %s3539_s6 }
 0x193   :  { %v929_v11 = vand.u32 2147483647, %v884_v46 }
 0x194   :  { %v463_v48 = vpop.permute.xlu1 %462 }
 0x195   :  { %1022 = vst [vmem:[#allocation1 + $0x11] ss:$2 sm:$0xff] %v929_v11  ;;  %v464_v36 = vsub.s32 %v3554_v2, %v463_v48 }
 0x196   :  { %808 = vrot.lane.b32.xlu2 %v739_v58, %s3539_s6 }
 0x197   :  { %vm465_vm0 = vcmp.eq.s32.totalorder %v464_v36, 1 }
 0x198   :  { %v767_v34 = vpop.permute.xlu2 %766  ;;  %v466_v56 = vsel %vm465_vm0, 1, %v8531_v33  ;;  %v8617_v33 = vld [vmem:[#allocation59_spill] sm:$0xff] }
 0x199   :  { %v891_v47 = vsub.f32 %v3604_v12, %v767_v34 }
 0x19a   :  { %824 = vrot.lane.b32.xlu1 %v743_v45, %s3539_s6  ;;  %822 = vrot.lane.b32.xlu0 %v454_v20, %s3539_s6 }
 0x19b   :  { %v936_v61 = vand.u32 2147483647, %v891_v47 }
 0x19c   :  { %v755_v30 = vpop.permute.xlu0 %754  ;;  %v751_v28 = vpop.permute.xlu1 %750 }
 0x19d   :  { %v885_v51 = vsub.f32 %v3575_v6, %v755_v30  ;;  %v883_v31 = vsub.f32 %v3567_v4, %v751_v28 }
 0x19e   :  { %467 = vrot.lane.b32.xlu2 %v466_v56, %s3538_s0 }
 0x19f   :  { %v930_v2 = vand.u32 2147483647, %v885_v51  ;;  %v928_v41 = vand.u32 2147483647, %v883_v31 }
 0x1a0   :  { %v773_v43 = vpop.permute.xlu2 %772 }
 0x1a1   :  { %1024 = vst [vmem:[#allocation1 + $0x20] ss:$2 sm:$0xff] %v930_v2  ;;  %v894_v58 = vsub.f32 %v3631_v18, %v773_v43  ;;  %v8580_v43 = vld [vmem:[#allocation22_spill] sm:$0xff] }
 0x1a2   :  { %1020 = vst [vmem:[#allocation1 + $0x10] ss:$2 sm:$0xff] %v928_v41 }
 0x1a3   :  { %v939_v28 = vand.u32 2147483647, %v894_v58 }
 0x1a4   :  { %v749_v19 = vpop.permute.xlu0 %748  ;;  %v757_v62 = vpop.permute.xlu1 %756 }
 0x1a5   :  { %v882_v54 = vsub.f32 %v3570_v5, %v749_v19  ;;  %v886_v26 = vsub.f32 %v3587_v9, %v757_v62 }
 0x1a7   :  { %v927_v42 = vand.u32 2147483647, %v882_v54  ;;  %v931_v37 = vand.u32 2147483647, %v886_v26 }
 0x1a8   :  { %v783_v32 = vpop.permute.xlu2 %782 }
 0x1a9   :  { %v1032_v46 = vld.sshfl [vmem:[#allocation1 + $0x10] sm:$0xff pattern:$0x75316420]  ;;  %1018 = vst [vmem:[#allocation1 + $0x1] ss:$2 sm:$0xff] %v927_v42 }
 0x1aa   :  { %1037 = vst [vmem:[#allocation1 + $0x10] ss:$2 sm:$0xff] %v936_v61  ;;  %1093 = vrot.lane.b32.xlu0 %v1032_v46, %s3538_s0  ;;  %v8581_v42 = vld [vmem:[#allocation20_spill] sm:$0xff] }
 0x1ab   :  { %1026 = vst [vmem:[#allocation1 + $0x21] ss:$2 sm:$0xff] %v931_v37  ;;  %v899_v37 = vsub.f32 %v8581_v42, %v783_v32 }
 0x1ac   :  { %v763_v44 = vpop.permute.xlu0 %762  ;;  %v771_v11 = vpop.permute.xlu1 %770 }
 0x1ad   :  { %v889_v48 = vsub.f32 %v3594_v10, %v763_v44  ;;  %v893_v20 = vsub.f32 %v3614_v14, %v771_v11  ;;  %v8582_v11 = vld [vmem:[#allocation17_spill] sm:$0xff] }
 0x1af   :  { %v934_v36 = vand.u32 2147483647, %v889_v48  ;;  %v938_v30 = vand.u32 2147483647, %v893_v20  ;;  %v8583_v48 = vld [vmem:[#allocation21_spill] sm:$0xff] }
 0x1b0   :  { %v789_v34 = vpop.permute.xlu2 %788  ;;  %v1031_v45 = vld.sshfl [vmem:[#allocation1] sm:$0xff pattern:$0x75316420] }
 0x1b1   :  { %1035 = vst [vmem:[#allocation1] ss:$2 sm:$0xff] %v934_v36  ;;  %1091 = vrot.lane.b32.xlu2 %v1031_v45, %s3538_s0  ;;  %v902_v47 = vsub.f32 %v8580_v43, %v789_v34  ;;  %v944_v36 = vand.u32 2147483647, %v899_v37 }
 0x1b2   :  { %v1033_v56 = vld.sshfl [vmem:[#allocation1 + $0x20] sm:$0xff pattern:$0x75316420] }
 0x1b3   :  { %1040 = vst [vmem:[#allocation1 + $0x21] ss:$2 sm:$0xff] %v939_v28  ;;  %1095 = vrot.lane.b32.xlu1 %v1033_v56, %s3538_s0  ;;  %v947_v26 = vand.u32 2147483647, %v902_v47 }
 0x1b4   :  { %1039 = vst [vmem:[#allocation1 + $0x20] ss:$2 sm:$0xff] %v938_v30  ;;  %v769_v51 = vpop.permute.xlu0 %768  ;;  %v765_v31 = vpop.permute.xlu1 %764 }
 0x1b5   :  { %v892_v2 = vsub.f32 %v3623_v16, %v769_v51  ;;  %v890_v41 = vsub.f32 %v3608_v13, %v765_v31  ;;  %v8584_v31 = vld [vmem:[#allocation19_spill] sm:$0xff] }
 0x1b7   :  { %v937_v19 = vand.u32 2147483647, %v892_v2  ;;  %v935_v62 = vand.u32 2147483647, %v890_v41  ;;  %v8585_v41 = vld [vmem:[#allocation18_spill] sm:$0xff] }
 0x1b8   :  { %v799_v54 = vpop.permute.xlu2 %798 }
 0x1b9   :  { %1038 = vst [vmem:[#allocation1 + $0x11] ss:$2 sm:$0xff] %v937_v19  ;;  %v8586_v19 = vld [vmem:[#allocation16_spill] sm:$0xff] }
 0x1ba   :  { %1036 = vst [vmem:[#allocation1 + $0x1] ss:$2 sm:$0xff] %v935_v62 }
 0x1bb   :  { %v4367_v61 = vld.sshfl [vmem:[#allocation1 + $0x20] sm:$0xff pattern:$0x75316420] }
 0x1bc   :  { %1052 = vst [vmem:[#allocation1 + $0x21] ss:$2 sm:$0xff] %v947_v26  ;;  %v779_v46 = vpop.permute.xlu0 %778  ;;  %v787_v44 = vpop.permute.xlu1 %786 }
 0x1bd   :  { %v897_v58 = vsub.f32 %v8582_v11, %v779_v46  ;;  %v901_v20 = vsub.f32 %v8583_v48, %v787_v44 }
 0x1bf   :  { %v942_v45 = vand.u32 2147483647, %v897_v58  ;;  %v946_v34 = vand.u32 2147483647, %v901_v20  ;;  %v8587_v20 = vld [vmem:[#allocation27_spill] sm:$0xff] }
 0x1c0   :  { %v805_v30 = vpop.permute.xlu2 %804  ;;  %v1044_v28 = vld.sshfl [vmem:[#allocation1 + $0x10] sm:$0xff pattern:$0x75316420] }
 0x1c1   :  { %1049 = vst [vmem:[#allocation1 + $0x10] ss:$2 sm:$0xff] %v944_v36  ;;  %v1043_v56 = vld.sshfl [vmem:[#allocation1] sm:$0xff pattern:$0x75316420]  ;;  %1101 = vrot.lane.b32.xlu1 %v1044_v28, %s3538_s0  ;;  %v910_v2 = vsub.f32 %v8584_v31, %v805_v30  ;;  %v907_v36 = vsub.f32 %v8587_v20, %v799_v54 }
 0x1c2   :  { %1047 = vst [vmem:[#allocation1] ss:$2 sm:$0xff] %v942_v45  ;;  %1099 = vrot.lane.b32.xlu0 %v1043_v56, %s3538_s0  ;;  %v8588_v28 = vld [vmem:[#allocation26_spill] sm:$0xff] }
 0x1c3   :  { %1051 = vst [vmem:[#allocation1 + $0x20] ss:$2 sm:$0xff] %v946_v34  ;;  %v955_v44 = vand.u32 2147483647, %v910_v2  ;;  %v8589_v30 = vld [vmem:[#allocation30_spill] sm:$0xff] }
 0x1c4   :  { %v785_v32 = vpop.permute.xlu0 %784  ;;  %v781_v51 = vpop.permute.xlu1 %780 }
 0x1c5   :  { %v900_v47 = vsub.f32 %v8585_v41, %v785_v32  ;;  %v898_v62 = vsub.f32 %v8586_v19, %v781_v51  ;;  %v952_v32 = vand.u32 2147483647, %v907_v36 }
 0x1c7   :  { %v945_v26 = vand.u32 2147483647, %v900_v47  ;;  %v943_v37 = vand.u32 2147483647, %v898_v62 }
 0x1c8   :  { %v815_v46 = vpop.permute.xlu2 %814 }
 0x1c9   :  { %1050 = vst [vmem:[#allocation1 + $0x11] ss:$2 sm:$0xff] %v945_v26 }
 0x1ca   :  { %v4376_v58 = vld.sshfl [vmem:[#allocation1 + $0x20] sm:$0xff pattern:$0x75316420]  ;;  %1048 = vst [vmem:[#allocation1 + $0x1] ss:$2 sm:$0xff] %v943_v37  ;;  %v8590_v37 = vld [vmem:[#allocation40_spill] sm:$0xff] }
 0x1cb   :  { %1064 = vst [vmem:[#allocation1 + $0x21] ss:$2 sm:$0xff] %v955_v44 }
 0x1cc   :  { %v795_v45 = vpop.permute.xlu0 %794  ;;  %v803_v34 = vpop.permute.xlu1 %802 }
 0x1cd   :  { %v905_v56 = vsub.f32 %v8588_v28, %v795_v45  ;;  %v909_v52 = vsub.f32 %v8589_v30, %v803_v34 }
 0x1cf   :  { %v950_v49 = vand.u32 2147483647, %v905_v56  ;;  %v954_v51 = vand.u32 2147483647, %v909_v52 }
 0x1d0   :  { %v821_v47 = vpop.permute.xlu2 %820  ;;  %v4381_v62 = vld.sshfl [vmem:[#allocation1 + $0x10] sm:$0xff pattern:$0x75316420] }
 0x1d1   :  { %1061 = vst [vmem:[#allocation1 + $0x10] ss:$2 sm:$0xff] %v952_v32  ;;  %v1055_v2 = vld.sshfl [vmem:[#allocation1] sm:$0xff pattern:$0x75316420]  ;;  %v918_v44 = vsub.f32 %v8590_v37, %v821_v47 }
 0x1d2   :  { %1059 = vst [vmem:[#allocation1] ss:$2 sm:$0xff] %v950_v49  ;;  %1107 = vrot.lane.b32.xlu1 %v1055_v2, %s3538_s0  ;;  %v8593_v49 = vld [vmem:[#allocation33_spill] sm:$0xff]  ;;  %v8595_v47 = vld [vmem:[#allocation34_spill] sm:$0xff] }
 0x1d3   :  { %1063 = vst [vmem:[#allocation1 + $0x20] ss:$2 sm:$0xff] %v954_v51  ;;  %v963_v60 = vand.u32 2147483647, %v918_v44  ;;  %v915_v32 = vsub.f32 %v8593_v49, %v815_v46  ;;  %v8596_v44 = vld [vmem:[#allocation8_spill] sm:$0xff] }
 0x1d4   :  { %v801_v54 = vpop.permute.xlu0 %800  ;;  %v797_v26 = vpop.permute.xlu1 %796 }
 0x1d5   :  { %v908_v45 = vsub.f32 %v8591_v24, %v801_v54  ;;  %v906_v34 = vsub.f32 %v8592_v57, %v797_v26  ;;  %v960_v54 = vand.u32 2147483647, %v915_v32 }
 0x1d7   :  { %v953_v36 = vand.u32 2147483647, %v908_v45  ;;  %v951_v56 = vand.u32 2147483647, %v906_v34 }
 0x1d8   :  { %v831_v52 = vpop.permute.xlu2 %830 }
 0x1d9   :  { %1062 = vst [vmem:[#allocation1 + $0x11] ss:$2 sm:$0xff] %v953_v36 }
 0x1da   :  { %v4387_v25 = vld.sshfl [vmem:[#allocation1 + $0x20] sm:$0xff pattern:$0x75316420]  ;;  %1060 = vst [vmem:[#allocation1 + $0x1] ss:$2 sm:$0xff] %v951_v56 }
 0x1db   :  { %1076 = vst [vmem:[#allocation1 + $0x21] ss:$2 sm:$0xff] %v963_v60 }
 0x1dc   :  { %v811_v51 = vpop.permute.xlu0 %810  ;;  %v819_v2 = vpop.permute.xlu1 %818 }
 0x1dd   :  { %v913_v29 = vsub.f32 %v8594_v0, %v811_v51  ;;  %v917_v27 = vsub.f32 %v8595_v47, %v819_v2 }
 0x1df   :  { %v958_v55 = vand.u32 2147483647, %v913_v29  ;;  %v962_v26 = vand.u32 2147483647, %v917_v27 }
 0x1e0   :  { %v761_v45 = vpop.permute.xlu2 %760  ;;  %v4392_v34 = vld.sshfl [vmem:[#allocation1 + $0x10] sm:$0xff pattern:$0x75316420] }
 0x1e1   :  { %v888_v36 = vsub.f32 %v8596_v44, %v761_v45  ;;  %1073 = vst [vmem:[#allocation1 + $0x10] ss:$2 sm:$0xff] %v960_v54  ;;  %v1067_v63 = vld.sshfl [vmem:[#allocation1] sm:$0xff pattern:$0x75316420]  ;;  %v923_v45 = vsub.f32 %v8599_v35, %v831_v52  ;;  %v460_v52 = vsub.s32 %v4219_v50, %v4173_v23  ;;  %v8607_v50 = vld [vmem:[#allocation49_spill] sm:$0xff] }
 0x1e2   :  { %1071 = vst [vmem:[#allocation1] ss:$2 sm:$0xff] %v958_v55  ;;  %v8621_v44 = vld [vmem:[#allocation23_spill] sm:$0xff] }
 0x1e3   :  { %v933_v56 = vand.u32 2147483647, %v888_v36  ;;  %1075 = vst [vmem:[#allocation1 + $0x20] ss:$2 sm:$0xff] %v962_v26  ;;  %v8600_v26 = vld [vmem:[#allocation42_spill] sm:$0xff]  ;;  %vm461_vm1 = vcmp.eq.s32.totalorder %v460_v52, 1 }
 0x1e4   :  { %v817_v60 = vpop.permute.xlu0 %816  ;;  %v813_v46 = vpop.permute.xlu1 %812 }
 0x1e5   :  { %1030 = vst [vmem:[#allocation1 + $0x31] ss:$2 sm:$0xff] %v933_v56  ;;  %v916_v51 = vsub.f32 %v8597_v15, %v817_v60  ;;  %v914_v2 = vsub.f32 %v8598_v39, %v813_v46  ;;  %v8601_v56 = vld [vmem:[#allocation46_spill] sm:$0xff]  ;;  %v968_v60 = vand.u32 2147483647, %v923_v45 }
 0x1e7   :  { %v961_v32 = vand.u32 2147483647, %v916_v51  ;;  %v959_v29 = vand.u32 2147483647, %v914_v2 }
 0x1e8   :  { %v4397_v27 = vpop.permute.xlu2 %790 }
 0x1e9   :  { %1074 = vst [vmem:[#allocation1 + $0x11] ss:$2 sm:$0xff] %v961_v32 }
 0x1ea   :  { %1072 = vst [vmem:[#allocation1 + $0x1] ss:$2 sm:$0xff] %v959_v29 }
 0x1ec   :  { %v1034_v54 = vld.sshfl [vmem:[#allocation1 + $0x30] sm:$0xff pattern:$0x75316420]  ;;  %v827_v21 = vpop.permute.xlu0 %826  ;;  %v829_v55 = vpop.permute.xlu1 %828 }
 0x1ed   :  { %1097 = vrot.lane.b32.xlu2 %v1034_v54, %s3538_s0  ;;  %v921_v36 = vsub.f32 %v8600_v26, %v827_v21  ;;  %v922_v1 = vsub.f32 %v8601_v56, %v829_v55  ;;  %v8602_v21 = vld [vmem:[#allocation50_spill] sm:$0xff] }
 0x1ef   :  { %v966_v38 = vand.u32 2147483647, %v921_v36  ;;  %v967_v46 = vand.u32 2147483647, %v922_v1  ;;  %v8603_v1 = vld [vmem:[#allocation36_spill] sm:$0xff] }
 0x1f0   :  { %v4403_v51 = vpop.permute.xlu2 %808  ;;  %v4405_v2 = vld.sshfl [vmem:[#allocation1 + $0x10] sm:$0xff pattern:$0x75316420] }
 0x1f1   :  { %1085 = vst [vmem:[#allocation1 + $0x10] ss:$2 sm:$0xff] %v968_v60  ;;  %v4407_v32 = vld.sshfl [vmem:[#allocation1] sm:$0xff pattern:$0x75316420] }
 0x1f2   :  { %1083 = vst [vmem:[#allocation1] ss:$2 sm:$0xff] %v966_v38  ;;  %v4415_v60 = vld.sshfl [vmem:[#allocation1 + $0x20] sm:$0xff pattern:$0x75316420]  ;;  %v8604_v38 = vmov 0 }
 0x1f3   :  { %1084 = vst [vmem:[#allocation1 + $0x1] ss:$2 sm:$0xff] %v967_v46 }
 0x1f4   :  { %v833_v29 = vpop.permute.xlu0 %832  ;;  %v835_v54 = vpop.permute.xlu1 %834 }
 0x1f5   :  { %1103 = vrot.lane.b32.xlu2 %v4367_v61, %s3538_s0  ;;  %v924_v45 = vsub.f32 %v8602_v21, %v833_v29  ;;  %v925_v55 = vsub.f32 %v8603_v1, %v835_v54  ;;  %v8608_v61 = vld [vmem:[#allocation53_spill] sm:$0xff]  ;;  %v8622_v21 = vld [vmem:[#allocation72_spill] sm:$0xff] }
 0x1f7   :  { %v969_v36 = vand.u32 2147483647, %v924_v45  ;;  %v970_v53 = vand.u32 2147483647, %v925_v55  ;;  %v8610_v45 = vld [vmem:[#allocation15_spill] sm:$0xff] }
 0x1f8   :  { %v468_v59 = vpop.permute.xlu2 %467 }
 0x1f9   :  { %vm469_vm2 = vcmp.ne.s32.totalorder %v468_v59, 0  ;;  %1086 = vst [vmem:[#allocation1 + $0x11] ss:$2 sm:$0xff] %v969_v36  ;;  %v8609_v59 = vld [vmem:[#allocation12_spill] sm:$0xff]  ;;  %v8611_v36 = vld [vmem:[#allocation54_spill] sm:$0xff] }
 0x1fa   :  { %vm4417_vm3 = vmor %vm461_vm1, %vm469_vm2  ;;  %v4421_v23 = vld.sshfl [vmem:[#allocation1] sm:$0xff pattern:$0x75316420]  ;;  %1087 = vst [vmem:[#allocation1 + $0x20] ss:$2 sm:$0xff] %v970_v53  ;;  %v8612_v53 = vld [vmem:[#allocation56_spill] sm:$0xff] }
 0x1fb   :  { %v8605_v38 = vsel %vm4417_vm3, 4294967295, %v8604_v38  ;;  %1201 = vst [vmem:[#allocation1] ss:$2 sm:$0xff] %v8607_v50 }
 0x1fc   :  { %8606 = vst [vmem:[#allocation106_spill] sm:$0xff] %v8605_v38  ;;  %v775_v46 = vpop.permute.xlu0 %774  ;;  %v777_v52 = vpop.permute.xlu1 %776  ;;  %v8615_v38 = vld [vmem:[#allocation64_spill] sm:$0xff] }
 0x1fd   :  { %1203 = vst [vmem:[#allocation1 + $0x1] ss:$2 sm:$0xff] %v8608_v61  ;;  %1109 = vrot.lane.b32.xlu2 %v4381_v62, %s3538_s0  ;;  %v895_v29 = vsub.f32 %v8609_v59, %v775_v46  ;;  %v896_v55 = vsub.f32 %v8610_v45, %v777_v52  ;;  %v8616_v46 = vld [vmem:[#allocation68_spill] sm:$0xff] }
 0x1ff   :  { %v940_v40 = vand.u32 2147483647, %v895_v29  ;;  %v941_v62 = vand.u32 2147483647, %v896_v55  ;;  %v8619_v29 = vld [vmem:[#allocation24_spill] sm:$0xff] }
 0x200   :  { %v4428_v54 = vld.sshfl [vmem:[#allocation1 + $0x10] sm:$0xff pattern:$0x75316420]  ;;  %v903_v59 = vsub.f32 %v8619_v29, %v4397_v27 }
 0x201   :  { %1205 = vst [vmem:[#allocation1 + $0x10] ss:$2 sm:$0xff] %v8611_v36  ;;  %v4432_v1 = vld.sshfl [vmem:[#allocation1 + $0x20] sm:$0xff pattern:$0x75316420]  ;;  %v8626_v27 = vld [vmem:[#allocation76_spill] sm:$0xff] }
 0x202   :  { %1207 = vst [vmem:[#allocation1 + $0x11] ss:$2 sm:$0xff] %v8612_v53 }
 0x203   :  { %1209 = vst [vmem:[#allocation1 + $0x20] ss:$2 sm:$0xff] %v8614_v17 }
 0x204   :  { %v4435_v22 = vld.sshfl [vmem:[#allocation1] sm:$0xff pattern:$0x75316420]  ;;  %1211 = vst [vmem:[#allocation1 + $0x21] ss:$2 sm:$0xff] %v8617_v33  ;;  %v793_v52 = vpop.permute.xlu0 %792  ;;  %v807_v29 = vpop.permute.xlu1 %806 }
 0x205   :  { %8613 = vst [vmem:[#allocation54_spill] sm:$0xff] %v4435_v22  ;;  %1115 = vrot.lane.b32.xlu2 %v1067_v63, %s3538_s0  ;;  %v8620_v22 = vld [vmem:[#allocation70_spill] sm:$0xff]  ;;  %v904_v8 = vsub.f32 %v8621_v44, %v793_v52 }
 0x206   :  { %1220 = vst [vmem:[#allocation1] ss:$2 sm:$0xff] %v8615_v38 }
 0x207   :  { %1221 = vst [vmem:[#allocation1 + $0x1] ss:$2 sm:$0xff] %v8616_v46 }
 0x208   :  { %1041 = vst [vmem:[#allocation1 + $0x30] ss:$2 sm:$0xff] %v940_v40  ;;  %v948_v40 = vand.u32 2147483647, %v903_v59 }
 0x209   :  { %1042 = vst [vmem:[#allocation1 + $0x31] ss:$2 sm:$0xff] %v941_v62  ;;  %v4442_v45 = vld.sshfl [vmem:[#allocation1 + $0x10] sm:$0xff pattern:$0x75316420] }
 0x20a   :  { %8618 = vst [vmem:[#allocation56_spill] sm:$0xff] %v4442_v45  ;;  %v949_v62 = vand.u32 2147483647, %v904_v8  ;;  %v8625_v45 = vld [vmem:[#allocation74_spill] sm:$0xff]  ;;  %v8629_v8 = vld [vmem:[#allocation29_spill] sm:$0xff] }
 0x20b   :  { %1222 = vst [vmem:[#allocation1 + $0x10] ss:$2 sm:$0xff] %v8620_v22  ;;  %v4452_v63 = vld.sshfl [vmem:[#allocation1 + $0x20] sm:$0xff pattern:$0x75316420] }
 0x20c   :  { %1223 = vst [vmem:[#allocation1 + $0x11] ss:$2 sm:$0xff] %v8622_v21 }
 0x20d   :  { %8624 = vst [vmem:[#allocation68_spill] sm:$0xff] %v4452_v63  ;;  %v8628_v63 = vld [vmem:[#allocation32_spill] sm:$0xff] }
 0x20e   :  { %v4449_v55 = vld.sshfl [vmem:[#allocation1] sm:$0xff pattern:$0x75316420]  ;;  %1224 = vst [vmem:[#allocation1 + $0x20] ss:$2 sm:$0xff] %v8625_v45  ;;  %v912_v59 = vsub.f32 %v8628_v63, %v4403_v51  ;;  %v8632_v51 = vld [vmem:[#allocation45_spill] sm:$0xff]  ;;  %v825_v63 = vpop.permute.xlu1 %824 }
 0x20f   :  { %8623 = vst [vmem:[#allocation57_spill] sm:$0xff] %v4449_v55  ;;  %v911_v55 = vsub.f32 %v8629_v8, %v807_v29  ;;  %v823_v29 = vpop.permute.xlu0 %822 }
 0x210   :  { %1232 = vst [vmem:[#allocation1] ss:$2 sm:$0xff] %v8608_v61  ;;  %v1046_v35 = vld.sshfl [vmem:[#allocation1 + $0x30] sm:$0xff pattern:$0x75316420] }
 0x211   :  { %1233 = vst [vmem:[#allocation1 + $0x1] ss:$2 sm:$0xff] %v8611_v36  ;;  %1105 = vrot.lane.b32.xlu0 %v1046_v35, %s3538_s0 }
 0x212   :  { %1225 = vst [vmem:[#allocation1 + $0x21] ss:$2 sm:$0xff] %v8626_v27 }
 0x213   :  { %1053 = vst [vmem:[#allocation1 + $0x30] ss:$2 sm:$0xff] %v948_v40  ;;  %v4458_v52 = vld.sshfl [vmem:[#allocation1 + $0x10] sm:$0xff pattern:$0x75316420] }
 0x214   :  { %8627 = vst [vmem:[#allocation59_spill] sm:$0xff] %v4458_v52  ;;  %v957_v40 = vand.u32 2147483647, %v912_v59  ;;  %v8634_v59 = vld [vmem:[#allocation39_spill] sm:$0xff] }
 0x215   :  { %1054 = vst [vmem:[#allocation1 + $0x31] ss:$2 sm:$0xff] %v949_v62  ;;  %v956_v62 = vand.u32 2147483647, %v911_v55  ;;  %v919_v55 = vsub.f32 %v8634_v59, %v823_v29 }
 0x216   :  { %1234 = vst [vmem:[#allocation1 + $0x10] ss:$2 sm:$0xff] %v8612_v53 }
 0x217   :  { %1235 = vst [vmem:[#allocation1 + $0x11] ss:$2 sm:$0xff] %v8614_v17 }
 0x218   :  { %v4465_v44 = vld.sshfl [vmem:[#allocation1] sm:$0xff pattern:$0x75316420] }
 0x219   :  { %8630 = vst [vmem:[#allocation70_spill] sm:$0xff] %v4465_v44  ;;  %v4469_v35 = vld.sshfl [vmem:[#allocation1 + $0x20] sm:$0xff pattern:$0x75316420]  ;;  %1111 = vrot.lane.b32.xlu0 %v4376_v58, %s3538_s0 }
 0x21a   :  { %1244 = vst [vmem:[#allocation1] ss:$2 sm:$0xff] %v8616_v46 }
 0x21b   :  { %1245 = vst [vmem:[#allocation1 + $0x1] ss:$2 sm:$0xff] %v8620_v22 }
 0x21c   :  { %8631 = vst [vmem:[#allocation72_spill] sm:$0xff] %v4469_v35  ;;  %v1058_v52 = vld.sshfl [vmem:[#allocation1 + $0x30] sm:$0xff pattern:$0x75316420]  ;;  %v8635_v35 = vld [vmem:[#allocation43_spill] sm:$0xff] }
 0x21d   :  { %1236 = vst [vmem:[#allocation1 + $0x20] ss:$2 sm:$0xff] %v8617_v33  ;;  %1113 = vrot.lane.b32.xlu1 %v1058_v52, %s3538_s0  ;;  %v920_v8 = vsub.f32 %v8635_v35, %v825_v63  ;;  %v964_v52 = vand.u32 2147483647, %v919_v55 }
 0x21e   :  { %1237 = vst [vmem:[#allocation1 + $0x21] ss:$2 sm:$0xff] %v8632_v51  ;;  %v4476_v44 = vld.sshfl [vmem:[#allocation1 + $0x10] sm:$0xff pattern:$0x75316420] }
 0x21f   :  { %1066 = vst [vmem:[#allocation1 + $0x31] ss:$2 sm:$0xff] %v957_v40 }
 0x220   :  { %8633 = vst [vmem:[#allocation107_spill] sm:$0xff] %v4476_v44  ;;  %v8638_v44 = vld [vmem:[#allocation61_spill] sm:$0xff] }
 0x221   :  { %1065 = vst [vmem:[#allocation1 + $0x30] ss:$2 sm:$0xff] %v956_v62  ;;  %1117 = vrot.lane.b32.xlu0 %v4392_v34, %s3538_s0  ;;  %v965_v62 = vand.u32 2147483647, %v920_v8  ;;  %v8642_v34 = vld [vmem:[#allocation48_spill] sm:$0xff] }
 0x222   :  { %1246 = vst [vmem:[#allocation1 + $0x10] ss:$2 sm:$0xff] %v8622_v21  ;;  %v4482_v58 = vld.sshfl [vmem:[#allocation1] sm:$0xff pattern:$0x75316420] }
 0x223   :  { %1247 = vst [vmem:[#allocation1 + $0x11] ss:$2 sm:$0xff] %v8625_v45 }
 0x224   :  { %8636 = vst [vmem:[#allocation108_spill] sm:$0xff] %v4482_v58 }
 0x225   :  { %1256 = vst [vmem:[#allocation1] ss:$2 sm:$0xff] %v8611_v36  ;;  %v4486_v40 = vld.sshfl [vmem:[#allocation1 + $0x20] sm:$0xff pattern:$0x75316420]  ;;  %1119 = vrot.lane.b32.xlu1 %v4387_v25, %s3538_s0 }
 0x226   :  { %1257 = vst [vmem:[#allocation1 + $0x1] ss:$2 sm:$0xff] %v8612_v53 }
 0x227   :  { %8637 = vst [vmem:[#allocation109_spill] sm:$0xff] %v4486_v40 }
 0x228   :  { %1248 = vst [vmem:[#allocation1 + $0x20] ss:$2 sm:$0xff] %v8626_v27  ;;  %v1070_v29 = vld.sshfl [vmem:[#allocation1 + $0x30] sm:$0xff pattern:$0x75316420] }
 0x229   :  { %1249 = vst [vmem:[#allocation1 + $0x21] ss:$2 sm:$0xff] %v8638_v44  ;;  %1121 = vrot.lane.b32.xlu2 %v1070_v29, %s3538_s0  ;;  %1123 = vrot.lane.b32.xlu0 %v4407_v32, %s3538_s0 }
 0x22a   :  { %1077 = vst [vmem:[#allocation1 + $0x30] ss:$2 sm:$0xff] %v964_v52  ;;  %v4495_v63 = vld.sshfl [vmem:[#allocation1 + $0x10] sm:$0xff pattern:$0x75316420] }
 0x22b   :  { %1078 = vst [vmem:[#allocation1 + $0x31] ss:$2 sm:$0xff] %v965_v62 }
 0x22c   :  { %8639 = vst [vmem:[#allocation110_spill] sm:$0xff] %v4495_v63 }
 0x22d   :  { %1258 = vst [vmem:[#allocation1 + $0x10] ss:$2 sm:$0xff] %v8614_v17  ;;  %v4498_v40 = vld.sshfl [vmem:[#allocation1] sm:$0xff pattern:$0x75316420]  ;;  %1125 = vrot.lane.b32.xlu1 %v4405_v2, %s3538_s0 }
 0x22e   :  { %8640 = vst [vmem:[#allocation111_spill] sm:$0xff] %v4498_v40 }
 0x22f   :  { %1259 = vst [vmem:[#allocation1 + $0x11] ss:$2 sm:$0xff] %v8617_v33 }
 0x230   :  { %1268 = vst [vmem:[#allocation1] ss:$2 sm:$0xff] %v8620_v22  ;;  %v4505_v25 = vld.sshfl [vmem:[#allocation1 + $0x20] sm:$0xff pattern:$0x75316420] }
 0x231   :  { %1269 = vst [vmem:[#allocation1 + $0x1] ss:$2 sm:$0xff] %v8622_v21  ;;  %1127 = vrot.lane.b32.xlu2 %v4415_v60, %s3538_s0 }
 0x232   :  { %8641 = vst [vmem:[#allocation112_spill] sm:$0xff] %v4505_v25  ;;  %v1082_v55 = vld.sshfl [vmem:[#allocation1 + $0x30] sm:$0xff pattern:$0x75316420] }
 0x233   :  { %1260 = vst [vmem:[#allocation1 + $0x20] ss:$2 sm:$0xff] %v8632_v51  ;;  %1129 = vrot.lane.b32.xlu0 %v1082_v55, %s3538_s0 }
 0x234   :  { %1261 = vst [vmem:[#allocation1 + $0x21] ss:$2 sm:$0xff] %v8642_v34 }
 0x235   :  { %1131 = vrot.lane.b32.xlu1 %v4421_v23, %s3538_s0  ;;  %1213 = vst [vmem:[#allocation1 + $0x30] ss:$2 sm:$0xff] %v8632_v51 }
 0x236   :  { %v4513_v8 = vld.sshfl [vmem:[#allocation1 + $0x10] sm:$0xff pattern:$0x75316420]  ;;  %1215 = vst [vmem:[#allocation1 + $0x31] ss:$2 sm:$0xff] %v8642_v34 }
 0x237   :  { %8643 = vst [vmem:[#allocation113_spill] sm:$0xff] %v4513_v8 }
 0x238   :  { %1270 = vst [vmem:[#allocation1 + $0x10] ss:$2 sm:$0xff] %v8625_v45  ;;  %v4516_v32 = vld.sshfl [vmem:[#allocation1] sm:$0xff pattern:$0x75316420] }
 0x239   :  { %8644 = vst [vmem:[#allocation114_spill] sm:$0xff] %v4516_v32  ;;  %1133 = vrot.lane.b32.xlu2 %v4428_v54, %s3538_s0 }
 0x23a   :  { %1271 = vst [vmem:[#allocation1 + $0x11] ss:$2 sm:$0xff] %v8626_v27 }
 0x23b   :  { %1301 = vst [vmem:[#allocation1] ss:$2 sm:$0xff] %v3562_v3  ;;  %v4522_v2 = vld.sshfl [vmem:[#allocation1 + $0x20] sm:$0xff pattern:$0x75316420]  ;;  %1135 = vrot.lane.b32.xlu0 %v4432_v1, %s3538_s0 }
 0x23c   :  { %1303 = vst [vmem:[#allocation1 + $0x1] ss:$2 sm:$0xff] %v3570_v5 }
 0x23d   :  { %8645 = vst [vmem:[#allocation115_spill] sm:$0xff] %v4522_v2  ;;  %v4545_v54 = vld.sshfl [vmem:[#allocation1 + $0x30] sm:$0xff pattern:$0x75316420] }
 0x23e   :  { %1272 = vst [vmem:[#allocation1 + $0x20] ss:$2 sm:$0xff] %v8638_v44 }
 0x23f   :  { %8648 = vst [vmem:[#allocation118_spill] sm:$0xff] %v4545_v54 }
 0x240   :  { %1226 = vst [vmem:[#allocation1 + $0x30] ss:$2 sm:$0xff] %v8638_v44  ;;  %v8704_v44 = vld [vmem:[#allocation101_spill] sm:$0xff] }
 0x241   :  { %v4531_v60 = vld.sshfl [vmem:[#allocation1 + $0x10] sm:$0xff pattern:$0x75316420]  ;;  %1227 = vst [vmem:[#allocation1 + $0x31] ss:$2 sm:$0xff] %v8607_v50  ;;  %vm670_vm7 = vcmp.ne.s32.totalorder %v8704_v44, 0 }
 0x242   :  { %8646 = vst [vmem:[#allocation116_spill] sm:$0xff] %v4531_v60 }
 0x243   :  { %1305 = vst [vmem:[#allocation1 + $0x10] ss:$2 sm:$0xff] %v3567_v4  ;;  %v4536_v52 = vld.sshfl [vmem:[#allocation1] sm:$0xff pattern:$0x75316420] }
 0x244   :  { %8647 = vst [vmem:[#allocation117_spill] sm:$0xff] %v4536_v52 }
 0x245   :  { %1307 = vst [vmem:[#allocation1 + $0x11] ss:$2 sm:$0xff] %v3578_v7  ;;  %v4541_v23 = vld.sshfl [vmem:[#allocation1 + $0x20] sm:$0xff pattern:$0x75316420] }
 0x246   :  { %1320 = vst [vmem:[#allocation1] ss:$2 sm:$0xff] %v3594_v10 }
 0x247   :  { %1321 = vst [vmem:[#allocation1 + $0x1] ss:$2 sm:$0xff] %v3608_v13 }
 0x248   :  { %1309 = vst [vmem:[#allocation1 + $0x20] ss:$2 sm:$0xff] %v3575_v6 }
 0x249   :  { %1311 = vst [vmem:[#allocation1 + $0x21] ss:$2 sm:$0xff] %v3587_v9 }
 0x24c   :  { %v4548_v62 = vld.sshfl [vmem:[#allocation1 + $0x10] sm:$0xff pattern:$0x75316420] }
 0x24d   :  { %1322 = vst [vmem:[#allocation1 + $0x10] ss:$2 sm:$0xff] %v3604_v12  ;;  %v8705_v12 = vrot.slane %v4516_v32, 5 }
 0x24e   :  { %v4551_v1 = vld.sshfl [vmem:[#allocation1] sm:$0xff pattern:$0x75316420]  ;;  %1323 = vst [vmem:[#allocation1 + $0x11] ss:$2 sm:$0xff] %v3623_v16 }
 0x24f   :  { %8649 = vst [vmem:[#allocation119_spill] sm:$0xff] %v4551_v1 }
 0x250   :  { %1332 = vst [vmem:[#allocation1] ss:$2 sm:$0xff] %v8582_v11  ;;  %v4556_v29 = vld.sshfl [vmem:[#allocation1 + $0x20] sm:$0xff pattern:$0x75316420]  ;;  %v1970_v11 = vrot.slane %v4513_v8, 5 }
 0x251   :  { %1333 = vst [vmem:[#allocation1 + $0x1] ss:$2 sm:$0xff] %v8586_v19 }
 0x252   :  { %8650 = vst [vmem:[#allocation120_spill] sm:$0xff] %v4556_v29 }
 0x253   :  { %1324 = vst [vmem:[#allocation1 + $0x20] ss:$2 sm:$0xff] %v3614_v14 }
 0x254   :  { %1325 = vst [vmem:[#allocation1 + $0x21] ss:$2 sm:$0xff] %v3631_v18  ;;  %v4573_v18 = vld.sshfl [vmem:[#allocation1 + $0x30] sm:$0xff pattern:$0x75316420] }
 0x255   :  { %v4561_v55 = vld.sshfl [vmem:[#allocation1 + $0x10] sm:$0xff pattern:$0x75316420]  ;;  %8653 = vst [vmem:[#allocation123_spill] sm:$0xff] %v4573_v18 }
 0x256   :  { %1334 = vst [vmem:[#allocation1 + $0x10] ss:$2 sm:$0xff] %v8581_v42 }
 0x257   :  { %1335 = vst [vmem:[#allocation1 + $0x11] ss:$2 sm:$0xff] %v8585_v41 }
 0x258   :  { %v4564_v9 = vld.sshfl [vmem:[#allocation1] sm:$0xff pattern:$0x75316420]  ;;  %1238 = vst [vmem:[#allocation1 + $0x30] ss:$2 sm:$0xff] %v8642_v34 }
 0x259   :  { %8651 = vst [vmem:[#allocation121_spill] sm:$0xff] %v4564_v9 }
 0x25a   :  { %1344 = vst [vmem:[#allocation1] ss:$2 sm:$0xff] %v8588_v28 }
 0x25b   :  { %1345 = vst [vmem:[#allocation1 + $0x1] ss:$2 sm:$0xff] %v8592_v57  ;;  %v4569_v16 = vld.sshfl [vmem:[#allocation1 + $0x20] sm:$0xff pattern:$0x75316420] }
 0x25c   :  { %8652 = vst [vmem:[#allocation122_spill] sm:$0xff] %v4569_v16 }
 0x25d   :  { %1336 = vst [vmem:[#allocation1 + $0x20] ss:$2 sm:$0xff] %v8583_v48 }
 0x25e   :  { %1337 = vst [vmem:[#allocation1 + $0x21] ss:$2 sm:$0xff] %v8580_v43  ;;  %v4576_v14 = vld.sshfl [vmem:[#allocation1 + $0x10] sm:$0xff pattern:$0x75316420] }
 0x25f   :  { %8654 = vst [vmem:[#allocation124_spill] sm:$0xff] %v4576_v14 }
 0x260   :  { %1346 = vst [vmem:[#allocation1 + $0x10] ss:$2 sm:$0xff] %v8587_v20  ;;  %v4631_v20 = vpop.permute.xlu2 %1091 }
 0x261   :  { %1347 = vst [vmem:[#allocation1 + $0x11] ss:$2 sm:$0xff] %v8591_v24  ;;  %v8671_v24 = vld [vmem:[#allocation12_spill] sm:$0xff] }
 0x262   :  { %v4579_v42 = vld.sshfl [vmem:[#allocation1] sm:$0xff pattern:$0x75316420]  ;;  %1239 = vst [vmem:[#allocation1 + $0x31] ss:$2 sm:$0xff] %v8615_v38 }
 0x263   :  { %8655 = vst [vmem:[#allocation125_spill] sm:$0xff] %v4579_v42 }
 0x264   :  { %1356 = vst [vmem:[#allocation1] ss:$2 sm:$0xff] %v8594_v0  ;;  %v8668_v0 = vld [vmem:[#allocation6_spill] sm:$0xff] }
 0x265   :  { %1357 = vst [vmem:[#allocation1 + $0x1] ss:$2 sm:$0xff] %v8598_v39  ;;  %v4584_v41 = vld.sshfl [vmem:[#allocation1 + $0x20] sm:$0xff pattern:$0x75316420] }
 0x266   :  { %8656 = vst [vmem:[#allocation126_spill] sm:$0xff] %v4584_v41 }
 0x267   :  { %1348 = vst [vmem:[#allocation1 + $0x20] ss:$2 sm:$0xff] %v8589_v30 }
 0x268   :  { %1349 = vst [vmem:[#allocation1 + $0x21] ss:$2 sm:$0xff] %v8584_v31  ;;  %v4589_v43 = vld.sshfl [vmem:[#allocation1 + $0x10] sm:$0xff pattern:$0x75316420] }
 0x269   :  { %8657 = vst [vmem:[#allocation127_spill] sm:$0xff] %v4589_v43  ;;  %v4600_v30 = vld.sshfl [vmem:[#allocation1 + $0x30] sm:$0xff pattern:$0x75316420] }
 0x26a   :  { %1358 = vst [vmem:[#allocation1 + $0x10] ss:$2 sm:$0xff] %v8593_v49 }
 0x26b   :  { %1359 = vst [vmem:[#allocation1 + $0x11] ss:$2 sm:$0xff] %v8597_v15  ;;  %v8664_v15 = vld [vmem:[#allocation50_spill] sm:$0xff] }
 0x26c   :  { %v4592_v48 = vld.sshfl [vmem:[#allocation1] sm:$0xff pattern:$0x75316420]  ;;  %8660 = vst [vmem:[#allocation130_spill] sm:$0xff] %v4600_v30  ;;  %v4629_v30 = vpop.permute.xlu0 %1093 }
 0x26d   :  { %8658 = vst [vmem:[#allocation128_spill] sm:$0xff] %v4592_v48 }
 0x26e   :  { %1368 = vst [vmem:[#allocation1] ss:$2 sm:$0xff] %v8600_v26 }
 0x26f   :  { %1369 = vst [vmem:[#allocation1 + $0x1] ss:$2 sm:$0xff] %v8601_v56  ;;  %v4597_v39 = vld.sshfl [vmem:[#allocation1 + $0x20] sm:$0xff pattern:$0x75316420]  ;;  %v8663_v56 = vld [vmem:[#allocation44_spill] sm:$0xff] }
 0x270   :  { %8659 = vst [vmem:[#allocation129_spill] sm:$0xff] %v4597_v39  ;;  %v8677_v39 = vld [vmem:[#allocation23_spill] sm:$0xff] }
 0x271   :  { %1360 = vst [vmem:[#allocation1 + $0x20] ss:$2 sm:$0xff] %v8595_v47 }
 0x272   :  { %1361 = vst [vmem:[#allocation1 + $0x21] ss:$2 sm:$0xff] %v8590_v37  ;;  %v4608_v26 = vld.sshfl [vmem:[#allocation1 + $0x10] sm:$0xff pattern:$0x75316420] }
 0x273   :  { %1250 = vst [vmem:[#allocation1 + $0x30] ss:$2 sm:$0xff] %v8607_v50 }
 0x274   :  { %8662 = vst [vmem:[#allocation132_spill] sm:$0xff] %v4608_v26  ;;  %v8676_v26 = vld [vmem:[#allocation24_spill] sm:$0xff] }
 0x275   :  { %1370 = vst [vmem:[#allocation1 + $0x10] ss:$2 sm:$0xff] %v8663_v56  ;;  %v8669_v56 = vld [vmem:[#allocation8_spill] sm:$0xff] }
 0x276   :  { %v4604_v31 = vld.sshfl [vmem:[#allocation1] sm:$0xff pattern:$0x75316420]  ;;  %1371 = vst [vmem:[#allocation1 + $0x11] ss:$2 sm:$0xff] %v8664_v15 }
 0x277   :  { %8661 = vst [vmem:[#allocation131_spill] sm:$0xff] %v4604_v31  ;;  %v1863_v31 = vrot.slane %v4516_v32, 4  ;;  %v8711_v32 = vld [vmem:[#allocation102_spill] sm:$0xff] }
 0x278   :  { %1678 = vst [vmem:[#allocation1] ss:$2 sm:$0xff] %v8607_v50  ;;  %vm674_vm10 = vcmp.ne.s32.totalorder %v8711_v32, 0  ;;  %v8732_v32 = vmov 0 }
 0x279   :  { %1680 = vst [vmem:[#allocation1 + $0x1] ss:$2 sm:$0xff] %v8608_v61 }
 0x27a   :  { %1251 = vst [vmem:[#allocation1 + $0x31] ss:$2 sm:$0xff] %v8608_v61 }
 0x27b   :  { %8673 = vst [vmem:[#allocation137_spill] sm:$0xff] %v4629_v30 }
 0x27c   :  { %8674 = vst [vmem:[#allocation138_spill] sm:$0xff] %v4631_v20 }
 0x27d   :  { %v4613_v49 = vld.sshfl [vmem:[#allocation1 + $0x10] sm:$0xff pattern:$0x75316420] }
 0x27e   :  { %8665 = vst [vmem:[#allocation133_spill] sm:$0xff] %v4613_v49  ;;  %v8672_v49 = vld [vmem:[#allocation15_spill] sm:$0xff] }
 0x27f   :  { %1682 = vst [vmem:[#allocation1 + $0x10] ss:$2 sm:$0xff] %v8611_v36 }
 0x280   :  { %1684 = vst [vmem:[#allocation1 + $0x11] ss:$2 sm:$0xff] %v8612_v53 }
 0x281   :  { %v4617_v37 = vld.sshfl [vmem:[#allocation1 + $0x30] sm:$0xff pattern:$0x75316420] }
 0x282   :  { %8666 = vst [vmem:[#allocation134_spill] sm:$0xff] %v4617_v37 }
 0x283   :  { %1262 = vst [vmem:[#allocation1 + $0x30] ss:$2 sm:$0xff] %v8615_v38 }
 0x284   :  { %1263 = vst [vmem:[#allocation1 + $0x31] ss:$2 sm:$0xff] %v8616_v46 }
 0x28b   :  { %v4621_v47 = vld.sshfl [vmem:[#allocation1 + $0x30] sm:$0xff pattern:$0x75316420] }
 0x28c   :  { %8667 = vst [vmem:[#allocation135_spill] sm:$0xff] %v4621_v47  ;;  %v4637_v47 = vpop.permute.xlu0 %1099 }
 0x28d   :  { %1313 = vst [vmem:[#allocation1 + $0x30] ss:$2 sm:$0xff] %v8668_v0  ;;  %v4639_v0 = vpop.permute.xlu2 %1097 }
 0x28e   :  { %1315 = vst [vmem:[#allocation1 + $0x31] ss:$2 sm:$0xff] %v8669_v56 }
 0x28f   :  { %8678 = vst [vmem:[#allocation140_spill] sm:$0xff] %v4637_v47 }
 0x290   :  { %8679 = vst [vmem:[#allocation141_spill] sm:$0xff] %v4639_v0  ;;  %v4657_v0 = vld.sshfl [vmem:[#allocation1] sm:$0xff pattern:$0x75316420] }
 0x291   :  { %8688 = vst [vmem:[#allocation148_spill] sm:$0xff] %v4657_v0  ;;  %v1855_v0 = vrot.slane %v4482_v58, 4 }
 0x292   :  { %1697 = vst [vmem:[#allocation1] ss:$2 sm:$0xff] %v8615_v38 }
 0x293   :  { %1698 = vst [vmem:[#allocation1 + $0x1] ss:$2 sm:$0xff] %v8616_v46 }
 0x295   :  { %v4625_v15 = vld.sshfl [vmem:[#allocation1 + $0x30] sm:$0xff pattern:$0x75316420]  ;;  %v4647_v30 = vpop.permute.xlu2 %1103 }
 0x296   :  { %8670 = vst [vmem:[#allocation136_spill] sm:$0xff] %v4625_v15  ;;  %v8681_v15 = vld [vmem:[#allocation29_spill] sm:$0xff] }
 0x297   :  { %1326 = vst [vmem:[#allocation1 + $0x30] ss:$2 sm:$0xff] %v8671_v24  ;;  %v8682_v24 = vld [vmem:[#allocation32_spill] sm:$0xff] }
 0x298   :  { %1327 = vst [vmem:[#allocation1 + $0x31] ss:$2 sm:$0xff] %v8672_v49  ;;  %v4645_v49 = vpop.permute.xlu0 %1105 }
 0x299   :  { %8683 = vst [vmem:[#allocation143_spill] sm:$0xff] %v4645_v49  ;;  %v1859_v49 = vrot.slane %v4498_v40, 4 }
 0x29a   :  { %8684 = vst [vmem:[#allocation144_spill] sm:$0xff] %v4647_v30 }
 0x29b   :  { %v4700_v43 = vrot.slane %v1859_v49, 5 }
 0x29d   :  { %v4655_v47 = vpop.permute.xlu2 %1109 }
 0x29e   :  { %8687 = vst [vmem:[#allocation147_spill] sm:$0xff] %v4655_v47 }
 0x29f   :  { %v4633_v37 = vld.sshfl [vmem:[#allocation1 + $0x30] sm:$0xff pattern:$0x75316420] }
 0x2a0   :  { %8675 = vst [vmem:[#allocation139_spill] sm:$0xff] %v4633_v37 }
 0x2a1   :  { %1338 = vst [vmem:[#allocation1 + $0x30] ss:$2 sm:$0xff] %v8676_v26  ;;  %v8691_v26 = vmov 0  }
 0x2a2   :  { %1339 = vst [vmem:[#allocation1 + $0x31] ss:$2 sm:$0xff] %v8677_v39  ;;  %v4653_v39 = vpop.permute.xlu0 %1111 }
 0x2a3   :  { %8686 = vst [vmem:[#allocation146_spill] sm:$0xff] %v4653_v39 }
 0x2a9   :  { %v4641_v56 = vld.sshfl [vmem:[#allocation1 + $0x30] sm:$0xff pattern:$0x75316420] }
 0x2aa   :  { %8680 = vst [vmem:[#allocation142_spill] sm:$0xff] %v4641_v56  ;;  %v4684_v30 = vpop.permute.xlu0 %1117 }
 0x2ab   :  { %1350 = vst [vmem:[#allocation1 + $0x30] ss:$2 sm:$0xff] %v8681_v15  ;;  %v8690_v15 = vld [vmem:[#allocation57_spill] sm:$0xff] }
 0x2ac   :  { %1351 = vst [vmem:[#allocation1 + $0x31] ss:$2 sm:$0xff] %v8682_v24  ;;  %v8689_v24 = vld [vmem:[#allocation54_spill] sm:$0xff]  ;;  %v1847_v39 = vrot.slane %v8690_v15, 4  ;;  %v8696_v41 = vrot.slane %v8690_v15, 5  ;;  %v4696_v15 = vpop.permute.xlu2 %1115 }
 0x2ad   :  { %v3520_v54 = vrot.slane %v8689_v24, 9  ;;  %v8695_v56 = vrot.slane %v8689_v24, 4  ;;  %8697 = vst [vmem:[#allocation149_spill] sm:$0xff] %v4684_v30 }
 0x2ae   :  { %v1894_v28 = vrot.slane %v8696_v41, 4  ;;  %8702 = vst [vmem:[#allocation150_spill] sm:$0xff] %v4696_v15  ;;  %v1943_v41 = vrot.slane %v1855_v0, 5 }
 0x2af   :  { %v1871_v37 = vrot.slane %v8695_v56, 5  ;;  %v8701_v56 = vrot.slane %v4482_v58, 5  ;;  %v1864_v58 = vrot.slane %v4531_v60, 4 }
 0x2b1   :  { %v1942_v7 = vrot.slane %v8701_v56, 4  ;;  %v4713_v0 = vsel %vm4688_vm6, %v3520_v54, %v1871_v37  ;;  %v1969_v54 = vrot.slane %v4700_v43, 4 }
 0x2b2   :  { %v4738_v16 = vpop.permute.xlu0 %1123 }
 0x2b3   :  { %v4649_v20 = vld.sshfl [vmem:[#allocation1 + $0x30] sm:$0xff pattern:$0x75316420]  ;;  %v1944_v15 = vsel %vm4688_vm6, %v1942_v7, %v1943_v41  ;;  %8715 = vst [vmem:[#allocation102_spill] sm:$0xff] %v4738_v16 }
 0x2b4   :  { %8685 = vst [vmem:[#allocation145_spill] sm:$0xff] %v4649_v20  ;;  %v1895_v20 = vrot.slane %v1847_v39, 5  ;;  %v1990_v39 = vrot.slane %v8705_v12, 4  ;;  %v4768_v13 = vsub.s32 %v8616_v46, %v1944_v15  ;;  %v8723_v15 = vld [vmem:[#allocation109_spill] sm:$0xff] }
 0x2b5   :  { %1362 = vst [vmem:[#allocation1 + $0x30] ss:$2 sm:$0xff] %v8634_v59  ;;  %v486_v59 = vsel %vm4417_vm3, 1, %v8691_v26 }
 0x2b6   :  { %1363 = vst [vmem:[#allocation1 + $0x31] ss:$2 sm:$0xff] %v8635_v35  ;;  %v8693_v35 = vld [vmem:[#allocation70_spill] sm:$0xff]  ;;  %v487_v18 = vperm.slane %v486_v59, 0  ;;  %v8698_v59 = vmov 0  ;;  %v1896_v49 = vsel %vm4688_vm6, %v1894_v28, %v1895_v20  ;;  %v1897_v56 = vrot.slane %v1895_v20, 4 }
 0x2b7   :  { %v1851_v47 = vrot.slane %v8693_v35, 4  ;;  %v8699_v59 = vsel %vm4688_vm6, 4294967295, %v8698_v59  ;;  %v8710_v28 = vld [vmem:[#allocation56_spill] sm:$0xff]  ;;  %vm2074_vm2 = vcmp.eq.s32.totalorder %v4768_v13, 1 }
 0x2b8   :  { %vm4705_vm8 = vcmp.eq.s32.totalorder %v487_v18, 1 }
 0x2b9   :  { %v1919_v6 = vrot.slane %v1851_v47, 5  ;;  %v1991_v47 = vrot.slane %v1863_v31, 5  ;;  %v1945_v31 = vrot.slane %v1943_v41, 4  ;;  %v8714_v41 = vld [vmem:[#allocation103_spill] sm:$0xff]  ;;  %vm4749_vm12 = vmand %vm4705_vm8, %vm670_vm7 }
 0x2ba   :  { %vm673_vm11 = vcmp.ne.s32.totalorder %v8714_v41, 0  ;;  %vm4830_vm13 = vmand %vm4705_vm8, %vm674_vm10  ;;  %v4877_v41 = vrot.slane %v1970_v11, 4 }
 0x2bb   :  { %v1921_v18 = vrot.slane %v1919_v6, 4  ;;  %v1993_v4 = vrot.slane %v1991_v47, 4  ;;  %vm4847_vm14 = vmand %vm4705_vm8, %vm673_vm11 }
 0x2bc   :  { %v8733_v32 = vsel %vm4847_vm14, 4294967295, %v8732_v32  ;;  %8741 = vst [vmem:[#allocation162_spill] sm:$0xff] %v4877_v41  ;;  %vm9102_vm14 = vcmask 1040384  }
 0x2bd   :  { %v4673_v57 = vld.sshfl [vmem:[#allocation1 + $0x30] sm:$0xff pattern:$0x75316420]  ;;  %8734 = vst [vmem:[#allocation158_spill] sm:$0xff] %v8733_v32 }
 0x2be   :  { %8694 = vst [vmem:[#allocation106_spill] sm:$0xff] %v4673_v57  ;;  %v8700_v57 = vrot.slane %v8693_v35, 5  ;;  %v8706_v35 = vmov 0 }
 0x2bf   :  { %1690 = vst [vmem:[#allocation1 + $0x30] ss:$2 sm:$0xff] %v8632_v51  ;;  %v8707_v35 = vsel %vm4705_vm8, 4294967295, %v8706_v35 }
 0x2c0   :  { %1692 = vst [vmem:[#allocation1 + $0x31] ss:$2 sm:$0xff] %v8642_v34  ;;  %v1918_v19 = vrot.slane %v8700_v57, 4  ;;  %v8703_v34 = vrot.slane %v4498_v40, 5  ;;  %v8713_v40 = vld [vmem:[#allocation107_spill] sm:$0xff] }
 0x2c1   :  { %8708 = vst [vmem:[#allocation101_spill] sm:$0xff] %v8707_v35  ;;  %v4709_v57 = vld.sshfl [vmem:[#allocation1] sm:$0xff pattern:$0x75316420]  ;;  %v1852_v7 = vrot.slane %v8713_v40, 4  ;;  %v1922_v51 = vrot.slane %v8713_v40, 5  ;;  %v4757_v40 = vsub.s32 %v8615_v38, %v1896_v49  ;;  %v4813_v38 = vsel %vm4688_vm6, %v1969_v54, %v1970_v11  ;;  %v4834_v54 = vpop.permute.xlu0 %1129 }
 0x2c2   :  { %v1966_v30 = vrot.slane %v8703_v34, 4  ;;  %8709 = vst [vmem:[#allocation151_spill] sm:$0xff] %v4709_v57  ;;  %v1873_v34 = vrot.slane %v1871_v37, 4  ;;  %v1920_v12 = vsel %vm4688_vm6, %v1918_v19, %v1919_v6  ;;  %v1844_v57 = vrot.slane %v8710_v28, 4  ;;  %v8712_v6 = vld [vmem:[#allocation59_spill] sm:$0xff] }
 0x2c3   :  { %1709 = vst [vmem:[#allocation1] ss:$2 sm:$0xff] %v8608_v61  ;;  %v1992_v19 = vsel %vm4688_vm6, %v1990_v39, %v1991_v47  ;;  %v1848_v20 = vrot.slane %v8712_v6, 4  ;;  %v1898_v48 = vrot.slane %v8712_v6, 5  ;;  %v1946_v39 = vrot.slane %v4495_v63, 5 }
 0x2c4   :  { %1710 = vst [vmem:[#allocation1 + $0x1] ss:$2 sm:$0xff] %v8611_v36  ;;  %v1968_v37 = vsel %vm4688_vm6, %v1966_v30, %v4700_v43  ;;  %v1874_v43 = vrot.slane %v8710_v28, 5  ;;  %v8716_v47 = vmov 0  ;;  %v4753_v30 = vpop.permute.xlu2 %1121  ;;  %v4760_v6 = vsub.s32 %v8608_v61, %v1920_v12  ;;  %v8720_v12 = vld [vmem:[#allocation68_spill] sm:$0xff] }
 0x2c5   :  { %v8717_v47 = vsel %vm4749_vm12, 4294967295, %v8716_v47  ;;  %8719 = vst [vmem:[#allocation152_spill] sm:$0xff] %v4753_v30  ;;  %v1994_v28 = vrot.slane %v4531_v60, 5  ;;  %v4771_v14 = vsub.s32 %v8611_v36, %v1968_v37  ;;  %v3522_v49 = vrot.slane %v4536_v52, 9 }
 0x2c6   :  { %8718 = vst [vmem:[#allocation103_spill] sm:$0xff] %v8717_v47  ;;  %v4775_v16 = vsub.s32 %v8620_v22, %v1992_v19  ;;  %v4780_v44 = vsel %vm4688_vm6, %v1873_v34, %v1874_v43  ;;  %v8722_v47 = vld [vmem:[#allocation72_spill] sm:$0xff]  ;;  %v4788_v37 = vsel %vm4688_vm6, %v1897_v56, %v1898_v48  ;;  %v4792_v19 = vsel %vm4688_vm6, %v1921_v18, %v1922_v51 }
 0x2c7   :  { %v8724_v34 = vrot.slane %v4536_v52, 4  ;;  %v4801_v27 = vsel %vm4688_vm6, %v1945_v31, %v1946_v39  ;;  %v8725_v56 = vrot.slane %v8689_v24, 4  ;;  %v2546_v31 = vrot.slane %v4551_v1, 4  ;;  %8730 = vst [vmem:[#allocation156_spill] sm:$0xff] %v4834_v54 }
 0x2c8   :  { %v4822_v52 = vrot.slane %v1874_v43, 4  ;;  %v4824_v24 = vrot.slane %v1844_v57, 5  ;;  %v4839_v60 = vrot.slane %v1898_v48, 4  ;;  %v4841_v43 = vrot.slane %v1848_v20, 5 }
 0x2c9   :  { %v2567_v26 = vrot.slane %v8724_v34, 5  ;;  %v4808_v18 = vsel %vm8414_vm9, %v8725_v56, %v4541_v23  ;;  %v4817_v34 = vsel %vm4688_vm6, %v1993_v4, %v1994_v28  ;;  %v8727_v23 = vmov 0  ;;  %v4836_v4 = vld.sshfl [vmem:[#allocation1 + $0x20] sm:$0xff pattern:$0x75316420] }
 0x2ca   :  { %8726 = vst [vmem:[#allocation154_spill] sm:$0xff] %v4808_v18  ;;  %v8728_v23 = vsel %vm4830_vm13, 4294967295, %v8727_v23  ;;  %v8737_v48 = vrot.slane %v4551_v1, 5  ;;  %v4864_v45 = vrot.slane %v1922_v51, 4  ;;  %v4866_v18 = vrot.slane %v1852_v7, 5 }
 0x2cb   :  { %v4782_v30 = vld.sshfl [vmem:[#allocation1] sm:$0xff pattern:$0x75316420]  ;;  %8729 = vst [vmem:[#allocation155_spill] sm:$0xff] %v8728_v23  ;;  %v2569_v56 = vrot.slane %v2567_v26, 4  ;;  %v4868_v23 = vrot.slane %v1946_v39, 4 }
 0x2cc   :  { %8721 = vst [vmem:[#allocation153_spill] sm:$0xff] %v4782_v30  ;;  %v2568_v30 = vsel %vm4688_vm6, %v3522_v49, %v2567_v26  ;;  %v4851_v57 = vpop.permute.xlu2 %1127  ;;  %v2590_v20 = vrot.slane %v8737_v48, 4  ;;  %v4870_v49 = vrot.slane %v2546_v31, 5  ;;  %v8739_v26 = vrot.slane %v4495_v63, 4 }
 0x2cd   :  { %1721 = vst [vmem:[#allocation1] ss:$2 sm:$0xff] %v8616_v46  ;;  %v2746_v42 = vsub.f32 %v3562_v3, %v2568_v30  ;;  %v2543_v35 = vrot.slane %v4548_v62, 4  ;;  %v2570_v3 = vrot.slane %v4548_v62, 5  ;;  %v8743_v11 = vrot.slane %v4513_v8, 4 }
 0x2ce   :  { %1722 = vst [vmem:[#allocation1 + $0x1] ss:$2 sm:$0xff] %v8620_v22  ;;  %v4875_v48 = vrot.slane %v8739_v26, 5  ;;  %v2592_v39 = vsel %vm4688_vm6, %v2590_v20, %v4870_v49  ;;  %v4896_v62 = vrot.slane %v1994_v28, 4  ;;  %v4899_v51 = vrot.slane %v1864_v58, 5 }
 0x2cf   :  { %8731 = vst [vmem:[#allocation157_spill] sm:$0xff] %v4836_v4  ;;  %v8736_v4 = vld [vmem:[#allocation36_spill] sm:$0xff]  ;;  %v4893_v31 = vrot.slane %v8743_v11, 5  ;;  %v4917_v11 = vsel %vm4688_vm6, %v2569_v56, %v2570_v3  ;;  %v2006_v20 = vsub.s32 %v8608_v61, %v4780_v44  ;;  %v2593_v28 = vrot.slane %v4870_v49, 4 }
 0x2d0   :  { %8735 = vst [vmem:[#allocation159_spill] sm:$0xff] %v4851_v57  ;;  %v2594_v54 = vrot.slane %v4561_v55, 5  ;;  %v4930_v58 = vsub.f32 %v3594_v10, %v2592_v39  ;;  %v8748_v56 = vsub.s32 %v8607_v50, %v4713_v0  ;;  %vm2058_vm0 = vcmp.eq.s32.totalorder %v4757_v40, 1 }
 0x2d1   :  { %1372 = vst [vmem:[#allocation1 + $0x20] ss:$2 sm:$0xff] %v8736_v4  ;;  %v4940_v7 = vrot.slane %v2570_v3, 4  ;;  %v2550_v44 = vrot.slane %v4564_v9, 4  ;;  %v2547_v10 = vrot.slane %v4561_v55, 4  ;;  %vm2066_vm1 = vcmp.eq.s32.totalorder %v4760_v6, 1 }
 0x2d2   :  { %8738 = vst [vmem:[#allocation160_spill] sm:$0xff] %v4868_v23  ;;  %vm4935_vm15 = vcmp.eq.s32.totalorder %v8748_v56, 1  ;;  %v4948_v0 = vrot.slane %v2543_v35, 5  ;;  %vm2082_vm3 = vcmp.eq.s32.totalorder %v4771_v14, 1  ;;  %vm2090_vm4 = vcmp.eq.s32.totalorder %v4775_v16, 1  ;;  %v8775_v23 = vld [vmem:[#allocation76_spill] sm:$0xff] }
 0x2d3   :  { %8740 = vst [vmem:[#allocation161_spill] sm:$0xff] %v4875_v48  ;;  %v4954_v39 = vand.u32 2147483647, %v2746_v42  ;;  %v8754_v55 = vrot.slane %v8720_v12, 5  ;;  %v8755_v32 = vrot.slane %v8720_v12, 4  ;;  %v4974_v56 = vrot.slane %v2594_v54, 4 }
 0x2d4   :  { %8744 = vst [vmem:[#allocation164_spill] sm:$0xff] %v4893_v31  ;;  %v8758_v3 = vrot.slane %v8722_v47, 4  ;;  %v8759_v4 = vrot.slane %v4564_v9, 5  ;;  %v4985_v63 = vrot.slane %v2550_v44, 5  ;;  %v5006_v44 = vsel %vm4688_vm6, %v2593_v28, %v2594_v54 }
 0x2d5   :  { %v4886_v30 = vld.sshfl [vmem:[#allocation1] sm:$0xff pattern:$0x75316420]  ;;  %8745 = vst [vmem:[#allocation165_spill] sm:$0xff] %v4896_v62  ;;  %v4959_v49 = vrot.slane %v8754_v55, 4  ;;  %v4963_v35 = vrot.slane %v8755_v32, 5 }
 0x2d6   :  { %8742 = vst [vmem:[#allocation163_spill] sm:$0xff] %v4886_v30  ;;  %v4987_v30 = vrot.slane %v2547_v10, 5  ;;  %v1927_v55 = vrot.slane %v4866_v18, 4  ;;  %v8763_v32 = vrot.slane %v8723_v15, 4  ;;  %v8764_v10 = vrot.slane %v4505_v25, 5 }
 0x2d7   :  { %1733 = vst [vmem:[#allocation1] ss:$2 sm:$0xff] %v8611_v36  ;;  %v8766_v9 = vrot.slane %v4505_v25, 4  ;;  %v1975_v54 = vrot.slane %v4893_v31, 4  ;;  %v8769_v28 = vrot.slane %v4522_v2, 4  ;;  %vm2051_vm5 = vcmp.eq.s32.totalorder %v2006_v20, 1 }
 0x2d8   :  { %1734 = vst [vmem:[#allocation1 + $0x1] ss:$2 sm:$0xff] %v8612_v53  ;;  %v4925_v26 = vld.sshfl [vmem:[#allocation1 + $0x20] sm:$0xff pattern:$0x75316420]  ;;  %v5000_v61 = vrot.slane %v8763_v32, 5 }
 0x2d9   :  { %8746 = vst [vmem:[#allocation166_spill] sm:$0xff] %v4925_v26  ;;  %v8756_v26 = vrot.slane %v8722_v47, 5  ;;  %v5010_v42 = vrot.slane %v8764_v10, 4  ;;  %v5017_v32 = vld.sshfl [vmem:[#allocation1 + $0x10] sm:$0xff pattern:$0x75316420] }
 0x2da   :  { %8747 = vst [vmem:[#allocation167_spill] sm:$0xff] %v4930_v58  ;;  %v5021_v50 = vrot.slane %v8766_v9, 5  ;;  %v5046_v10 = vrot.slane %v8769_v28, 5  ;;  %v8783_v40 = vrot.slane %v4556_v29, 4 }
 0x2db   :  { %8751 = vst [vmem:[#allocation168_spill] sm:$0xff] %v4940_v7  ;;  %v4968_v8 = vrot.slane %v8756_v26, 4  ;;  %v2614_v26 = vrot.slane %v8759_v4, 4  ;;  %v1951_v4 = vrot.slane %v4875_v48, 4  ;;  %v8770_v7 = vld [vmem:[#allocation154_spill] sm:$0xff]  ;;  %v8773_v48 = vmov 0  }
 0x2dc   :  { %1686 = vst [vmem:[#allocation1 + $0x20] ss:$2 sm:$0xff] %v8614_v17  ;;  %v2000_v41 = vrot.slane %v8770_v7, 5  ;;  %v5059_v28 = vsel %vm2058_vm0, 1, %v8773_v48  ;;  %v5066_v20 = vsel %vm2066_vm1, 1, %v8773_v48  ;;  %v5071_v31 = vsel %vm2074_vm2, 1, %v8773_v48 }
 0x2dd   :  { %8752 = vst [vmem:[#allocation169_spill] sm:$0xff] %v4948_v0  ;;  %v2616_v9 = vsel %vm4688_vm6, %v2614_v26, %v4985_v63  ;;  %v8771_v26 = vld [vmem:[#allocation74_spill] sm:$0xff]  ;;  %v5080_v57 = vsel %vm2082_vm3, 1, %v8773_v48  ;;  %v5085_v6 = vsel %vm2090_vm4, 1, %v8773_v48  ;;  %v2096_v13 = vsel %vm2051_vm5, 1, %v8773_v48 }
 0x2de   :  { %1688 = vst [vmem:[#allocation1 + $0x21] ss:$2 sm:$0xff] %v8617_v33  ;;  %v5096_v14 = vrot.slane %v8783_v40, 5  ;;  %v8787_v40 = vld [vmem:[#allocation17_spill] sm:$0xff] }
 0x2df   :  { %8753 = vst [vmem:[#allocation170_spill] sm:$0xff] %v4954_v39  ;;  %v4979_v39 = vrot.slane %v8758_v3, 5  ;;  %v4991_v1 = vld.sshfl [vmem:[#allocation1] sm:$0xff pattern:$0x75316420]  ;;  %v8762_v3 = vrot.slane %v8723_v15, 5 }
 0x2e0   :  { %8757 = vst [vmem:[#allocation171_spill] sm:$0xff] %v4974_v56 }
 0x2e1   :  { %8760 = vst [vmem:[#allocation172_spill] sm:$0xff] %v4985_v63  ;;  %v4996_v58 = vrot.slane %v8762_v3, 4  ;;  %v8772_v3 = vld [vmem:[#allocation125_spill] sm:$0xff]  ;;  %v8780_v63 = vld [vmem:[#allocation124_spill] sm:$0xff] }
 0x2e2   :  { %8761 = vst [vmem:[#allocation173_spill] sm:$0xff] %v4991_v1  ;;  %v2551_v7 = vrot.slane %v8780_v63, 4 }
 0x2e3   :  { %1745 = vst [vmem:[#allocation1] ss:$2 sm:$0xff] %v8620_v22 }
 0x2e4   :  { %1746 = vst [vmem:[#allocation1 + $0x1] ss:$2 sm:$0xff] %v8622_v21 }
 0x2e5   :  { %8765 = vst [vmem:[#allocation174_spill] sm:$0xff] %v5017_v32  ;;  %v5031_v1 = vld.sshfl [vmem:[#allocation1 + $0x20] sm:$0xff pattern:$0x75316420]  ;;  %v8768_v32 = vrot.slane %v4522_v2, 5 }
 0x2e6   :  { %8767 = vst [vmem:[#allocation175_spill] sm:$0xff] %v5031_v1  ;;  %v2554_v1 = vrot.slane %v8772_v3, 4 }
 0x2e7   :  { %1699 = vst [vmem:[#allocation1 + $0x10] ss:$2 sm:$0xff] %v8620_v22  ;;  %v5041_v62 = vrot.slane %v8768_v32, 4  ;;  %v2095_v32 = vsel %vm4935_vm15, 1, %v8773_v48 }
 0x2e8   :  { %1700 = vst [vmem:[#allocation1 + $0x11] ss:$2 sm:$0xff] %v8622_v21 }
 0x2e9   :  { %1701 = vst [vmem:[#allocation1 + $0x20] ss:$2 sm:$0xff] %v8771_v26  ;;  %v8799_v26 = vsub.s32 %v8611_v36, %v4792_v19  ;;  %v8809_v19 = vsub.s32 %v8622_v21, %v4817_v34  ;;  %v8815_v34 = vrot.slane %v4899_v51, 4 }
 0x2ea   :  { %8774 = vst [vmem:[#allocation176_spill] sm:$0xff] %v5059_v28  ;;  %v8786_v28 = vrot.slane %v8772_v3, 5 }
 0x2eb   :  { %1702 = vst [vmem:[#allocation1 + $0x21] ss:$2 sm:$0xff] %v8775_v23  ;;  %v5100_v16 = vld.sshfl [vmem:[#allocation1] sm:$0xff pattern:$0x75316420]  ;;  %vm5187_vm10 = vcmp.eq.s32.totalorder %v8799_v26, 1 }
 0x2ec   :  { %8776 = vst [vmem:[#allocation177_spill] sm:$0xff] %v5066_v20  ;;  %v8781_v20 = vrot.slane %v4556_v29, 5  ;;  %v5112_v29 = vsub.f32 %v8787_v40, %v2616_v9  ;;  %v8793_v9 = vrot.slane %v4841_v43, 4  ;;  %vm5209_vm0 = vcmp.eq.s32.totalorder %v8809_v19, 1 }
 0x2ed   :  { %8777 = vst [vmem:[#allocation178_spill] sm:$0xff] %v5071_v31  ;;  %v2575_v31 = vrot.slane %v4948_v0, 4  ;;  %v5106_v0 = vrot.slane %v8786_v28, 4  ;;  %v1884_v28 = vsel %vm4688_vm6, %v4959_v49, %v4963_v35  ;;  %v8794_v49 = vrot.slane %v8723_v15, 5 }
 0x2ee   :  { %8778 = vst [vmem:[#allocation179_spill] sm:$0xff] %v5080_v57  ;;  %v5092_v23 = vrot.slane %v8781_v20, 4  ;;  %v8784_v57 = vld [vmem:[#allocation10_spill] sm:$0xff]  ;;  %v8795_v20 = vrot.slane %v4505_v25, 5  ;;  %v5226_v19 = vsel %vm4688_vm6, %v8815_v34, %v2000_v41 }
 0x2ef   :  { %8779 = vst [vmem:[#allocation180_spill] sm:$0xff] %v5085_v6  ;;  %v2755_v56 = vsub.f32 %v8784_v57, %v5006_v44  ;;  %v8789_v44 = vrot.slane %v8720_v12, 5  ;;  %v8790_v57 = vrot.slane %v4824_v24, 4 }
 0x2f0   :  { %8782 = vst [vmem:[#allocation124_spill] sm:$0xff] %v5092_v23  ;;  %v5109_v23 = vrot.slane %v2554_v1, 5  ;;  %v8792_v1 = vrot.slane %v8722_v47, 5  ;;  %v5236_v47 = vrot.slane %v2551_v7, 5 }
 0x2f1   :  { %8785 = vst [vmem:[#allocation10_spill] sm:$0xff] %v5100_v16  ;;  %v5120_v6 = vsel %vm4688_vm6, %v8790_v57, %v8789_v44  ;;  %v1908_v44 = vsel %vm4688_vm6, %v4968_v8, %v4979_v39  ;;  %v5157_v8 = vsel %vm4688_vm6, %v1951_v4, %v8795_v20  ;;  %v8798_v20 = vsub.s32 %v8616_v46, %v4788_v37  ;;  %v8805_v37 = vld [vmem:[#allocation45_spill] sm:$0xff]  ;;  %v8813_v16 = vld [vmem:[#allocation128_spill] sm:$0xff] }
 0x2f2   :  { %2140 = vst [vmem:[#allocation1] ss:$2 sm:$0xff] %v2095_v32  ;;  %v5126_v32 = vld.sshfl [vmem:[#allocation1 + $0x10] sm:$0xff pattern:$0x75316420]  ;;  %v5134_v40 = vsel %vm4688_vm6, %v8793_v9, %v8792_v1  ;;  %v1932_v1 = vsel %vm4688_vm6, %v4996_v58, %v5000_v61  ;;  %v8797_v58 = vrot.slane %v4522_v2, 5  ;;  %v8816_v2 = vsel %vm4688_vm6, %v4822_v52, %v4824_v24 }
 0x2f3   :  { %8788 = vst [vmem:[#allocation17_spill] sm:$0xff] %v5112_v29  ;;  %vm2059_vm7 = vcmp.eq.s32.totalorder %v8798_v20, 1  ;;  %v5182_v57 = vrot.slane %v2000_v41, 4  ;;  %v8806_v20 = vsub.s32 %v8612_v53, %v4813_v38  ;;  %v8814_v38 = vrot.slane %v8780_v63, 5  ;;  %v8822_v52 = vld [vmem:[#allocation176_spill] sm:$0xff]  ;;  %v8851_v4 = vld [vmem:[#allocation49_spill] sm:$0xff] }
 0x2f4   :  { %2142 = vst [vmem:[#allocation1 + $0x1] ss:$2 sm:$0xff] %v2096_v13  ;;  %v5145_v13 = vsel %vm4688_vm6, %v1927_v55, %v8794_v49  ;;  %v5163_v49 = vld.sshfl [vmem:[#allocation1 + $0x20] sm:$0xff pattern:$0x75316420]  ;;  %v5171_v9 = vsel %vm4688_vm6, %v1975_v54, %v8797_v58  ;;  %v8802_v58 = vsub.s32 %v8620_v22, %v4801_v27  ;;  %v2104_v3 = vsel %vm2059_vm7, 1, %v8773_v48 }
 0x2f5   :  { %8791 = vst [vmem:[#allocation181_spill] sm:$0xff] %v5126_v32  ;;  %vm5202_vm15 = vcmp.eq.s32.totalorder %v8806_v20, 1  ;;  %v8812_v27 = vld [vmem:[#allocation122_spill] sm:$0xff]  ;;  %v5219_v20 = vrot.slane %v8814_v38, 4  ;;  %v5234_v25 = vsub.s32 %v8611_v36, %v8816_v2  ;;  %v8817_v38 = vsub.f32 %v3570_v5, %v4917_v11  ;;  %v8855_v26 = vld [vmem:[#allocation177_spill] sm:$0xff] }
 0x2f6   :  { %1711 = vst [vmem:[#allocation1 + $0x10] ss:$2 sm:$0xff] %v8612_v53  ;;  %vm5194_vm11 = vcmp.eq.s32.totalorder %v8802_v58, 1  ;;  %v2548_v58 = vrot.slane %v8812_v27, 4  ;;  %v8819_v41 = vsel %vm4688_vm6, %v4839_v60, %v4841_v43  ;;  %v8820_v24 = vsel %vm4688_vm6, %v4864_v45, %v4866_v18  ;;  %v8823_v60 = vld [vmem:[#allocation160_spill] sm:$0xff]  ;;  %v8824_v43 = vld [vmem:[#allocation161_spill] sm:$0xff] }
 0x2f7   :  { %8796 = vst [vmem:[#allocation182_spill] sm:$0xff] %v5163_v49  ;;  %v5241_v15 = vand.u32 2147483647, %v8817_v38  ;;  %v5251_v34 = vsub.s32 %v8620_v22, %v8819_v41  ;;  %v5259_v36 = vsub.s32 %v8612_v53, %v8820_v24  ;;  %v5261_v5 = vand.u32 2147483647, %v2755_v56  ;;  %v8826_v45 = vld [vmem:[#allocation162_spill] sm:$0xff] }
 0x2f8   :  { %1712 = vst [vmem:[#allocation1 + $0x11] ss:$2 sm:$0xff] %v8614_v17  ;;  %v8825_v22 = vsel %vm4688_vm6, %v8823_v60, %v8824_v43  ;;  %v8827_v18 = vld [vmem:[#allocation164_spill] sm:$0xff]  ;;  %v8829_v38 = vld [vmem:[#allocation165_spill] sm:$0xff]  ;;  %v8831_v24 = vld [vmem:[#allocation74_spill] sm:$0xff]  ;;  %vm2052_vm1 = vcmp.eq.s32.totalorder %v5234_v25, 1  ;;  %v8852_v55 = vsel %vm4688_vm6, %v5010_v42, %v5021_v50 }
 0x2f9   :  { %1713 = vst [vmem:[#allocation1 + $0x20] ss:$2 sm:$0xff] %v8617_v33  ;;  %v5271_v7 = vsub.s32 %v8622_v21, %v8825_v22  ;;  %v8828_v11 = vsel %vm4688_vm6, %v8826_v45, %v8827_v18  ;;  %v8830_v41 = vsel %vm4688_vm6, %v8829_v38, %v4899_v51  ;;  %v8833_v22 = vld [vmem:[#allocation120_spill] sm:$0xff]  ;;  %v8839_v60 = vld [vmem:[#allocation3_spill] sm:$0xff]  ;;  %v2008_v51 = vsub.s32 %v8612_v53, %v5120_v6 }
 0x2fa   :  { %1714 = vst [vmem:[#allocation1 + $0x21] ss:$2 sm:$0xff] %v8805_v37  ;;  %v5279_v56 = vsub.s32 %v8614_v17, %v8828_v11  ;;  %v8834_v2 = vrot.slane %v8833_v22, 5  ;;  %v8835_v18 = vld [vmem:[#allocation124_spill] sm:$0xff]  ;;  %v8844_v11 = vld [vmem:[#allocation9_spill] sm:$0xff]  ;;  %v2032_v53 = vsub.s32 %v8831_v24, %v5157_v8  ;;  %vm2060_vm2 = vcmp.eq.s32.totalorder %v5251_v34, 1 }
 0x2fb   :  { %8818 = vst [vmem:[#allocation45_spill] sm:$0xff] %v5241_v15  ;;  %v5243_v32 = vld.sshfl [vmem:[#allocation1] sm:$0xff pattern:$0x75316420]  ;;  %v8836_v38 = vld [vmem:[#allocation168_spill] sm:$0xff]  ;;  %vm2068_vm3 = vcmp.eq.s32.totalorder %v5259_v36, 1 }
 0x2fc   :  { %8821 = vst [vmem:[#allocation122_spill] sm:$0xff] %v5261_v5  ;;  %v5296_v45 = vsel %vm4688_vm6, %v2575_v31, %v8834_v2  ;;  %v5312_v22 = vld.sshfl [vmem:[#allocation1 + $0x30] sm:$0xff pattern:$0x75316420]  ;;  %v8842_v31 = vld [vmem:[#allocation171_spill] sm:$0xff]  ;;  %v8850_v54 = vrot.slane %v8812_v27, 5 }
 0x2fd   :  { %2159 = vst [vmem:[#allocation1] ss:$2 sm:$0xff] %v8822_v52  ;;  %v5287_v52 = vsub.s32 %v8831_v24, %v8830_v41  ;;  %v8837_v41 = vld [vmem:[#allocation169_spill] sm:$0xff]  ;;  %v8843_v2 = vsel %vm4688_vm6, %v8842_v31, %v4987_v30  ;;  %v5338_v31 = vsub.s32 %v8617_v33, %v1932_v1  ;;  %v8847_v6 = vld [vmem:[#allocation76_spill] sm:$0xff]  ;;  %v8849_v1 = vld [vmem:[#allocation127_spill] sm:$0xff]  ;;  %vm5450_vm7 = vcmp.eq.s32.totalorder %v2032_v53, 1 }
 0x2fe   :  { %2160 = vst [vmem:[#allocation1 + $0x1] ss:$2 sm:$0xff] %v2104_v3  ;;  %v8838_v3 = vsel %vm4688_vm6, %v8836_v38, %v8837_v41  ;;  %v5320_v5 = vsub.f32 %v8844_v11, %v8843_v2  ;;  %v5325_v38 = vsub.s32 %v8614_v17, %v1884_v28  ;;  %v2024_v11 = vsub.s32 %v8614_v17, %v5145_v13  ;;  %v8892_v36 = vld [vmem:[#allocation126_spill] sm:$0xff] }
 0x2ff   :  { %v5290_v43 = vld.sshfl [vmem:[#allocation1 + $0x10] sm:$0xff pattern:$0x75316420]  ;;  %v5309_v29 = vsub.f32 %v8839_v60, %v8838_v3  ;;  %8841 = vst [vmem:[#allocation161_spill] sm:$0xff] %v5312_v22  ;;  %v2016_v60 = vsub.s32 %v8622_v21, %v5134_v40  ;;  %v5333_v3 = vsub.s32 %v8831_v24, %v1908_v44  ;;  %v2112_v28 = vsel %vm5187_vm10, 1, %v8773_v48 }
 0x300   :  { %8832 = vst [vmem:[#allocation176_spill] sm:$0xff] %v5290_v43  ;;  %v5356_v40 = vsel %vm5194_vm11, 1, %v8773_v48  ;;  %v5362_v44 = vsel %vm5202_vm15, 1, %v8773_v48  ;;  %v5367_v13 = vsel %vm5209_vm0, 1, %v8773_v48  ;;  %v2555_v8 = vrot.slane %v8849_v1, 4 }
 0x301   :  { %8840 = vst [vmem:[#allocation160_spill] sm:$0xff] %v5309_v29  ;;  %v5329_v41 = vld.sshfl [vmem:[#allocation1 + $0x20] sm:$0xff pattern:$0x75316420]  ;;  %v5372_v2 = vrot.slane %v8850_v54, 4  ;;  %v5381_v15 = vsub.s32 %v8847_v6, %v8852_v55  ;;  %v2040_v54 = vsub.s32 %v8617_v33, %v5171_v9  ;;  %v8854_v22 = vsel %vm4688_vm6, %v5041_v62, %v5046_v10  ;;  %v8885_v29 = vld [vmem:[#allocation48_spill] sm:$0xff] }
 0x302   :  { %1723 = vst [vmem:[#allocation1 + $0x10] ss:$2 sm:$0xff] %v8622_v21  ;;  %v8848_v21 = vld [vmem:[#allocation61_spill] sm:$0xff]  ;;  %v5397_v42 = vsub.s32 %v8805_v37, %v8854_v22  ;;  %v8856_v43 = vrot.slane %v8780_v63, 5  ;;  %v2640_v62 = vsel %vm4688_vm6, %v5106_v0, %v5109_v23  ;;  %v2048_v22 = vsub.s32 %v8847_v6, %v5226_v19  ;;  %v8867_v19 = vld [vmem:[#allocation154_spill] sm:$0xff] }
 0x303   :  { %8845 = vst [vmem:[#allocation162_spill] sm:$0xff] %v5320_v5  ;;  %v8862_v63 = vrot.slane %v8813_v16, 4  ;;  %vm5424_vm10 = vcmp.eq.s32.totalorder %v2008_v51, 1  ;;  %vm5429_vm15 = vcmp.eq.s32.totalorder %v2016_v60, 1  ;;  %vm5442_vm9 = vcmp.eq.s32.totalorder %v2024_v11, 1  ;;  %v8878_v11 = vld [vmem:[#allocation4_spill] sm:$0xff] }
 0x304   :  { %8846 = vst [vmem:[#allocation164_spill] sm:$0xff] %v5329_v41  ;;  %v5383_v41 = vrot.slane %v2548_v58, 5  ;;  %v8859_v58 = vrot.slane %v8813_v16, 5  ;;  %vm2070_vm11 = vcmp.eq.s32.totalorder %v5338_v31, 1  ;;  %vm5455_vm4 = vcmp.eq.s32.totalorder %v2040_v54, 1  ;;  %v8881_v16 = vld [vmem:[#allocation26_spill] sm:$0xff] }
 0x305   :  { %1724 = vst [vmem:[#allocation1 + $0x11] ss:$2 sm:$0xff] %v8831_v24  ;;  %v5387_v49 = vld.sshfl [vmem:[#allocation1] sm:$0xff pattern:$0x75316420]  ;;  %vm5473_vm5 = vcmp.eq.s32.totalorder %v2048_v22, 1 }
 0x306   :  { %1725 = vst [vmem:[#allocation1 + $0x20] ss:$2 sm:$0xff] %v8847_v6  ;;  %v5416_v55 = vrot.slane %v8859_v58, 4  ;;  %v8869_v58 = vld [vmem:[#allocation5_spill] sm:$0xff]  ;;  %v5480_v5 = vsel %vm2052_vm1, 1, %v8773_v48  ;;  %vm8887_vm0 = vcmp.eq.s32.totalorder %v5271_v7, 1 }
 0x307   :  { %1726 = vst [vmem:[#allocation1 + $0x21] ss:$2 sm:$0xff] %v8848_v21  ;;  %v2749_v51 = vsub.f32 %v8869_v58, %v5296_v45  ;;  %v8877_v45 = vsel %vm4688_vm6, %v8835_v18, %v5096_v14  ;;  %v5498_v25 = vsel %vm8887_vm0, 1, %v8773_v48  ;;  %vm8888_vm1 = vcmp.eq.s32.totalorder %v5279_v56, 1 }
 0x308   :  { %1703 = vst [vmem:[#allocation1 + $0x30] ss:$2 sm:$0xff] %v8848_v21  ;;  %v5467_v53 = vsub.f32 %v8878_v11, %v8877_v45  ;;  %v2552_v22 = vrot.slane %v8892_v36, 4  ;;  %v8893_v11 = vld [vmem:[#allocation118_spill] sm:$0xff]  ;;  %v8896_v56 = vrot.slane %v4987_v30, 4  ;;  %vm8913_vm0 = vcmp.eq.s32.totalorder %v5325_v38, 1 }
 0x309   :  { %1704 = vst [vmem:[#allocation1 + $0x31] ss:$2 sm:$0xff] %v8851_v4  ;;  %v1886_v7 = vrot.slane %v8893_v11, 5  ;;  %v5598_v38 = vsel %vm2070_vm11, 1, %v8773_v48  ;;  %v5616_v31 = vsel %vm5455_vm4, 1, %v8773_v48  ;;  %vm8448_vm4 = vcmask 1046528  }
 0x30a   :  { %8853 = vst [vmem:[#allocation165_spill] sm:$0xff] %v5387_v49  ;;  %v8857_v49 = vld [vmem:[#allocation172_spill] sm:$0xff] }
 0x30b   :  { %2171 = vst [vmem:[#allocation1] ss:$2 sm:$0xff] %v8855_v26  ;;  %v8858_v12 = vrot.slane %v8857_v49, 4  ;;  %v5422_v49 = vrot.slane %v8862_v63, 5 }
 0x30c   :  { %8860 = vst [vmem:[#allocation74_spill] sm:$0xff] %v5416_v55  ;;  %v5418_v26 = vld.sshfl [vmem:[#allocation1 + $0x10] sm:$0xff pattern:$0x75316420] }
 0x30d   :  { %v2619_v9 = vsel %vm4688_vm6, %v8858_v12, %v8856_v43  ;;  %2172 = vst [vmem:[#allocation1 + $0x1] ss:$2 sm:$0xff] %v2112_v28  ;;  %v8868_v43 = vrot.slane %v8867_v19, 9  ;;  %v5471_v19 = vsub.f32 %v8881_v16, %v2640_v62  ;;  %v5493_v16 = vsel %vm2068_vm3, 1, %v8773_v48 }
 0x30e   :  { %8861 = vst [vmem:[#allocation120_spill] sm:$0xff] %v5418_v26  ;;  %v5447_v60 = vld.sshfl [vmem:[#allocation1 + $0x20] sm:$0xff pattern:$0x75316420]  ;;  %v5503_v62 = vsel %vm8888_vm1, 1, %v8773_v48  ;;  %vm8914_vm1 = vcmp.eq.s32.totalorder %v5333_v3, 1 }
 0x30f   :  { %1735 = vst [vmem:[#allocation1 + $0x10] ss:$2 sm:$0xff] %v8614_v17  ;;  %v2004_v28 = vsel %vm4688_vm6, %v5182_v57, %v8868_v43  ;;  %v8880_v43 = vld [vmem:[#allocation16_spill] sm:$0xff]  ;;  %v5593_v12 = vsel %vm5442_vm9, 1, %v8773_v48  ;;  %v5606_v3 = vsel %vm5450_vm7, 1, %v8773_v48  ;;  %vm8917_vm9 = vcmp.eq.s32.totalorder %v5397_v42, 1 }
 0x310   :  { %8872 = vst [vmem:[#allocation124_spill] sm:$0xff] %v5447_v60  ;;  %v2763_v58 = vsub.f32 %v8880_v43, %v2619_v9  ;;  %v5483_v18 = vld.sshfl [vmem:[#allocation1 + $0x30] sm:$0xff pattern:$0x75316420]  ;;  %v5488_v9 = vsel %vm2060_vm2, 1, %v8773_v48  ;;  %vm8890_vm2 = vcmp.eq.s32.totalorder %v5287_v52, 1  ;;  %v2049_v30 = vsub.s32 %v8848_v21, %v2004_v28 }
 0x311   :  { %1736 = vst [vmem:[#allocation1 + $0x11] ss:$2 sm:$0xff] %v8617_v33  ;;  %v5509_v34 = vsel %vm8890_vm2, 1, %v8773_v48  ;;  %v8894_v43 = vld [vmem:[#allocation64_spill] sm:$0xff]  ;;  %v8895_v60 = vrot.slane %v8812_v27, 5  ;;  %v8897_v52 = vrot.slane %v8849_v1, 5  ;;  %v2622_v27 = vsel %vm4688_vm6, %v5219_v20, %v5236_v47 }
 0x312   :  { %1737 = vst [vmem:[#allocation1 + $0x20] ss:$2 sm:$0xff] %v8805_v37  ;;  %v5547_v20 = vand.u32 2147483647, %v2763_v58  ;;  %v8907_v58 = vld [vmem:[#allocation13_spill] sm:$0xff]  ;;  %vm5569_vm3 = vcmp.eq.s32.totalorder %v2049_v30, 1 }
 0x313   :  { %8879 = vst [vmem:[#allocation168_spill] sm:$0xff] %v5467_v53  ;;  %v2601_v26 = vsel %vm4688_vm6, %v8896_v56, %v8895_v60  ;;  %v5524_v55 = vrot.slane %v8897_v52, 4  ;;  %v2604_v52 = vsel %vm4688_vm6, %v5372_v2, %v5383_v41  ;;  %v8905_v60 = vrot.slane %v5109_v23, 4 }
 0x314   :  { %8882 = vst [vmem:[#allocation169_spill] sm:$0xff] %v5471_v19  ;;  %v5528_v45 = vld.sshfl [vmem:[#allocation1] sm:$0xff pattern:$0x75316420]  ;;  %v2098_v23 = vsel %vm5424_vm10, 1, %v8773_v48  ;;  %vm8916_vm10 = vcmp.eq.s32.totalorder %v5381_v15, 1 }
 0x315   :  { %1738 = vst [vmem:[#allocation1 + $0x21] ss:$2 sm:$0xff] %v8885_v29  ;;  %v5611_v63 = vsel %vm8916_vm10, 1, %v8773_v48  ;;  %v5627_v17 = vsel %vm5473_vm5, 1, %v8773_v48  ;;  %v8918_v15 = vld [vmem:[#allocation123_spill] sm:$0xff]  ;;  %v5639_v53 = vrot.slane %v2552_v22, 5 }
 0x316   :  { %8886 = vst [vmem:[#allocation3_spill] sm:$0xff] %v5483_v18  ;;  %v2624_v18 = vrot.slane %v8892_v36, 5  ;;  %v8900_v36 = vld [vmem:[#allocation178_spill] sm:$0xff]  ;;  %v1846_v19 = vrot.slane %v8893_v11, 4  ;;  %v8927_v22 = vld [vmem:[#allocation25_spill] sm:$0xff] }
 0x317   :  { %8889 = vst [vmem:[#allocation171_spill] sm:$0xff] %v5503_v62  ;;  %v5535_v62 = vand.u32 2147483647, %v2749_v51  ;;  %v8903_v51 = vrot.slane %v4963_v35, 4 }
 0x318   :  { %1715 = vst [vmem:[#allocation1 + $0x30] ss:$2 sm:$0xff] %v8885_v29  ;;  %v5637_v2 = vrot.slane %v2624_v18, 4 }
 0x319   :  { %8891 = vst [vmem:[#allocation9_spill] sm:$0xff] %v5509_v34  ;;  %v5526_v34 = vrot.slane %v2555_v8, 5  ;;  %v5541_v8 = vld.sshfl [vmem:[#allocation1 + $0x10] sm:$0xff pattern:$0x75316420] }
 0x31a   :  { %1716 = vst [vmem:[#allocation1 + $0x31] ss:$2 sm:$0xff] %v8894_v43 }
 0x31b   :  { %8898 = vst [vmem:[#allocation76_spill] sm:$0xff] %v5528_v45  ;;  %v2646_v30 = vsel %vm4688_vm6, %v5524_v55, %v5526_v34  ;;  %v2647_v57 = vrot.slane %v5526_v34, 4  ;;  %v1888_v45 = vrot.slane %v1886_v7, 4  ;;  %v8930_v34 = vrot.slane %v8918_v15, 5 }
 0x31c   :  { %8899 = vst [vmem:[#allocation61_spill] sm:$0xff] %v5535_v62  ;;  %v8908_v62 = vld [vmem:[#allocation20_spill] sm:$0xff]  ;;  %v5566_v35 = vld.sshfl [vmem:[#allocation1 + $0x20] sm:$0xff pattern:$0x75316420] }
 0x31d   :  { %2183 = vst [vmem:[#allocation1] ss:$2 sm:$0xff] %v8900_v36  ;;  %v1887_v36 = vsel %vm4688_vm6, %v8903_v51, %v1886_v7  ;;  %v5564_v28 = vsub.f32 %v8908_v62, %v2622_v27  ;;  %v5588_v62 = vsel %vm8914_vm1, 1, %v8773_v48  ;;  %v8936_v7 = vld [vmem:[#allocation132_spill] sm:$0xff] }
 0x31e   :  { %2184 = vst [vmem:[#allocation1 + $0x1] ss:$2 sm:$0xff] %v5356_v40  ;;  %v8904_v40 = vrot.slane %v8849_v1, 5  ;;  %v2099_v1 = vsel %vm8913_vm0, 1, %v8773_v48  ;;  %v2010_v0 = vsub.s32 %v8617_v33, %v1887_v36  ;;  %v5621_v33 = vsel %vm8917_vm9, 1, %v8773_v48  ;;  %v8920_v36 = vld [vmem:[#allocation47_spill] sm:$0xff] }
 0x31f   :  { %8901 = vst [vmem:[#allocation127_spill] sm:$0xff] %v5541_v8 }
 0x320   :  { %8902 = vst [vmem:[#allocation49_spill] sm:$0xff] %v5547_v20  ;;  %v2643_v56 = vsel %vm4688_vm6, %v8905_v60, %v8904_v40  ;;  %v2757_v20 = vsub.f32 %v8907_v58, %v2601_v26  ;;  %v5582_v26 = vsel %vm5429_vm15, 1, %v8773_v48  ;;  %v8919_v60 = vld [vmem:[#allocation38_spill] sm:$0xff]  ;;  %v8921_v40 = vld [vmem:[#allocation53_spill] sm:$0xff]  ;;  %v8922_v58 = vrot.slane %v5236_v47, 4  ;;  %v8924_v47 = vld [vmem:[#allocation179_spill] sm:$0xff] }
 0x321   :  { %1747 = vst [vmem:[#allocation1 + $0x10] ss:$2 sm:$0xff] %v8831_v24  ;;  %v5601_v27 = vld.sshfl [vmem:[#allocation1 + $0x30] sm:$0xff pattern:$0x75316420]  ;;  %v1473_v51 = vrot.slane %v8919_v60, 1 }
 0x322   :  { %8909 = vst [vmem:[#allocation177_spill] sm:$0xff] %v5564_v28  ;;  %v2625_v42 = vsel %vm4688_vm6, %v8922_v58, %v2624_v18  ;;  %vm2055_vm5 = vcmp.eq.s32.totalorder %v2010_v0, 1  ;;  %v8925_v58 = vld [vmem:[#allocation11_spill] sm:$0xff]  ;;  %v5654_v8 = vand.u32 2147483647, %v2757_v20  ;;  %v8931_v0 = vrot.slane %v4979_v39, 4 }
 0x323   :  { %8910 = vst [vmem:[#allocation172_spill] sm:$0xff] %v5566_v35  ;;  %v5651_v18 = vsub.f32 %v8925_v58, %v2604_v52  ;;  %v2771_v35 = vsub.f32 %v8927_v22, %v2643_v56  ;;  %v8932_v52 = vrot.slane %v8920_v36, 1  ;;  %v8934_v58 = vld [vmem:[#allocation18_spill] sm:$0xff]  ;;  %v5679_v39 = vsel %vm5569_vm3, 1, %v8773_v48 }
 0x324   :  { %1748 = vst [vmem:[#allocation1 + $0x11] ss:$2 sm:$0xff] %v8847_v6  ;;  %v2765_v22 = vsub.f32 %v8934_v58, %v2625_v42  ;;  %v8937_v42 = vld [vmem:[#allocation27_spill] sm:$0xff] }
 0x325   :  { %1749 = vst [vmem:[#allocation1 + $0x20] ss:$2 sm:$0xff] %v8848_v21  ;;  %v5641_v54 = vld.sshfl [vmem:[#allocation1] sm:$0xff pattern:$0x75316420]  ;;  %v1475_v56 = vsel %vm8448_vm4, %v1473_v51, %v8932_v52  ;;  %v1889_v51 = vrot.slane %v1846_v19, 5  ;;  %v5684_v52 = vsub.f32 %v8937_v42, %v2646_v30 }
 0x326   :  { %8915 = vst [vmem:[#allocation5_spill] sm:$0xff] %v5601_v27  ;;  %v8929_v27 = vld [vmem:[#allocation129_spill] sm:$0xff]  ;;  %v5695_v19 = vand.u32 2147483647, %v2765_v22  ;;  %v8946_v22 = vld [vmem:[#allocation180_spill] sm:$0xff]  ;;  %v8947_v42 = vld [vmem:[#allocation134_spill] sm:$0xff] }
 0x327   :  { %1727 = vst [vmem:[#allocation1 + $0x30] ss:$2 sm:$0xff] %v8851_v4  ;;  %v2648_v55 = vrot.slane %v8929_v27, 5  ;;  %v1890_v30 = vsel %vm4688_vm6, %v1888_v45, %v1889_v51  ;;  %v1858_v24 = vrot.slane %v8947_v42, 4  ;;  %v8948_v45 = vld [vmem:[#allocation135_spill] sm:$0xff] }
 0x328   :  { %1728 = vst [vmem:[#allocation1 + $0x31] ss:$2 sm:$0xff] %v8921_v40 }
 0x329   :  { %8923 = vst [vmem:[#allocation4_spill] sm:$0xff] %v5641_v54 }
 0x32a   :  { %2195 = vst [vmem:[#allocation1] ss:$2 sm:$0xff] %v8924_v47  ;;  %v1911_v47 = vsel %vm4688_vm6, %v8931_v0, %v8930_v34  ;;  %v2556_v34 = vrot.slane %v8929_v27, 4  ;;  %v5693_v27 = vrot.slane %v2648_v55, 4 }
 0x32b   :  { %8926 = vst [vmem:[#allocation16_spill] sm:$0xff] %v5651_v18  ;;  %v5668_v20 = vld.sshfl [vmem:[#allocation1 + $0x10] sm:$0xff pattern:$0x75316420]  ;;  %v2018_v58 = vsub.s32 %v8847_v6, %v1911_v47  ;;  %v1891_v47 = vrot.slane %v1889_v51, 4  ;;  %v8949_v51 = vrot.slane %v5000_v61, 4  ;;  %v2628_v61 = vsel %vm4688_vm6, %v5637_v2, %v5639_v53 }
 0x32c   :  { %8928 = vst [vmem:[#allocation26_spill] sm:$0xff] %v5654_v8  ;;  %v5672_v54 = vld.sshfl [vmem:[#allocation1 + $0x20] sm:$0xff pattern:$0x75316420]  ;;  %v5691_v8 = vand.u32 2147483647, %v2771_v35 }
 0x32d   :  { %2196 = vst [vmem:[#allocation1 + $0x1] ss:$2 sm:$0xff] %v5362_v44  ;;  %v2100_v44 = vsel %vm2055_vm5, 1, %v8773_v48  ;;  %v5701_v6 = vrot.slane %v2556_v34, 5  ;;  %vm2063_vm7 = vcmp.eq.s32.totalorder %v2018_v58, 1  ;;  %v2011_v34 = vsub.s32 %v8805_v37, %v1890_v30  ;;  %v8950_v35 = vld [vmem:[#allocation57_spill] sm:$0xff] }
 0x32e   :  { %8933 = vst [vmem:[#allocation48_spill] sm:$0xff] %v5668_v20  ;;  %v2108_v30 = vsel %vm2063_vm7, 1, %v8773_v48  ;;  %v8953_v2 = vrot.slane %v8918_v15, 5  ;;  %v8955_v58 = vld [vmem:[#allocation136_spill] sm:$0xff] }
 0x32f   :  { %8935 = vst [vmem:[#allocation126_spill] sm:$0xff] %v5672_v54  ;;  %v5688_v28 = vld.sshfl [vmem:[#allocation1 + $0x30] sm:$0xff pattern:$0x75316420]  ;;  %vm2056_vm15 = vcmp.eq.s32.totalorder %v2011_v34, 1  ;;  %v2545_v54 = vrot.slane %v8955_v58, 4 }
 0x330   :  { %2144 = vst [vmem:[#allocation1 + $0x10] ss:$2 sm:$0xff] %v5480_v5  ;;  %v1518_v5 = vsub.s32 %v8919_v60, %v1475_v56  ;;  %v2582_v20 = vrot.slane %v8955_v58, 5  ;;  %v2101_v34 = vsel %vm2056_vm15, 1, %v8773_v48  ;;  %v8961_v58 = vld [vmem:[#allocation63_spill] sm:$0xff] }
 0x331   :  { %2146 = vst [vmem:[#allocation1 + $0x11] ss:$2 sm:$0xff] %v2098_v23  ;;  %v8943_v23 = vld [vmem:[#allocation130_spill] sm:$0xff] }
 0x332   :  { %8938 = vst [vmem:[#allocation118_spill] sm:$0xff] %v5684_v52  ;;  %v1934_v0 = vrot.slane %v8943_v23, 5  ;;  %vm1541_vm11 = vcmp.eq.s32.totalorder %v1518_v5, 1  ;;  %v8951_v52 = vrot.slane %v8950_v35, 5 }
 0x333   :  { %2148 = vst [vmem:[#allocation1 + $0x20] ss:$2 sm:$0xff] %v2099_v1  ;;  %v1850_v1 = vrot.slane %v8918_v15, 4 }
 0x334   :  { %8939 = vst [vmem:[#allocation64_spill] sm:$0xff] %v5688_v28  ;;  %v5704_v56 = vld.sshfl [vmem:[#allocation1] sm:$0xff pattern:$0x75316420]  ;;  %v5746_v18 = vrot.slane %v1934_v0, 4  ;;  %v5772_v28 = vrot.slane %v1858_v24, 5 }
 0x335   :  { %8940 = vst [vmem:[#allocation178_spill] sm:$0xff] %v5691_v8  ;;  %v1935_v8 = vsel %vm4688_vm6, %v8949_v51, %v1934_v0  ;;  %v8952_v51 = vld [vmem:[#allocation148_spill] sm:$0xff] }
 0x336   :  { %2150 = vst [vmem:[#allocation1 + $0x21] ss:$2 sm:$0xff] %v2100_v44  ;;  %v1854_v44 = vrot.slane %v8943_v23, 4  ;;  %v8956_v0 = vrot.slane %v8952_v51, 7  ;;  %v8963_v23 = vld [vmem:[#allocation65_spill] sm:$0xff] }
 0x337   :  { %8941 = vst [vmem:[#allocation13_spill] sm:$0xff] %v5693_v27  ;;  %v1893_v27 = vsel %vm4688_vm6, %v1891_v47, %v8951_v52  ;;  %v1958_v52 = vrot.slane %v8947_v42, 5  ;;  %v1982_v47 = vrot.slane %v8948_v45, 5 }
 0x338   :  { %8942 = vst [vmem:[#allocation20_spill] sm:$0xff] %v5695_v19  ;;  %v5718_v5 = vld.sshfl [vmem:[#allocation1 + $0x10] sm:$0xff pattern:$0x75316420]  ;;  %v1912_v19 = vrot.slane %v8953_v2, 4  ;;  %v8957_v2 = vld [vmem:[#allocation54_spill] sm:$0xff] }
 0x339   :  { %1739 = vst [vmem:[#allocation1 + $0x30] ss:$2 sm:$0xff] %v8894_v43 }
 0x33a   :  { %8944 = vst [vmem:[#allocation123_spill] sm:$0xff] %v5701_v6 }
 0x33b   :  { %8945 = vst [vmem:[#allocation38_spill] sm:$0xff] %v5704_v56 }
 0x33c   :  { %2207 = vst [vmem:[#allocation1] ss:$2 sm:$0xff] %v8946_v22  ;;  %v1913_v22 = vrot.slane %v1850_v1, 5  ;;  %v2649_v1 = vsel %vm4688_vm6, %v2647_v57, %v2648_v55  ;;  %v2012_v57 = vsub.s32 %v8885_v29, %v1893_v27  ;;  %v8954_v55 = vrot.slane %v8919_v60, 7 }
 0x33d   :  { %2208 = vst [vmem:[#allocation1 + $0x1] ss:$2 sm:$0xff] %v5367_v13  ;;  %v5727_v13 = vsel %vm1541_vm11, 1, %v8773_v48  ;;  %v5737_v6 = vld.sshfl [vmem:[#allocation1 + $0x20] sm:$0xff pattern:$0x75316420]  ;;  %v1798_v27 = vsub.s32 %v8957_v2, %v8956_v0 }
 0x33e   :  { %1740 = vst [vmem:[#allocation1 + $0x31] ss:$2 sm:$0xff] %v8616_v46  ;;  %vm2057_vm3 = vcmp.eq.s32.totalorder %v2012_v57, 1  ;;  %v8964_v0 = vld [vmem:[#allocation28_spill] sm:$0xff]  ;;  %v8969_v57 = vld [vmem:[#allocation70_spill] sm:$0xff] }
 0x33f   :  { %2161 = vst [vmem:[#allocation1 + $0x10] ss:$2 sm:$0xff] %v5488_v9  ;;  %v2026_v9 = vsub.s32 %v8805_v37, %v1935_v8  ;;  %v5754_v37 = vrot.slane %v1854_v44, 5  ;;  %v5770_v8 = vrot.slane %v1958_v52, 4  ;;  %vm1821_vm10 = vcmp.eq.s32.totalorder %v1798_v27, 1  ;;  %v8982_v27 = vld [vmem:[#allocation139_spill] sm:$0xff] }
 0x340   :  { %2162 = vst [vmem:[#allocation1 + $0x11] ss:$2 sm:$0xff] %v5582_v26  ;;  %v1426_v26 = vsub.s32 %v8919_v60, %v8954_v55  ;;  %v8965_v55 = vrot.slane %v5021_v50, 4 }
 0x341   :  { %2163 = vst [vmem:[#allocation1 + $0x20] ss:$2 sm:$0xff] %v5588_v62  ;;  %v1915_v62 = vrot.slane %v1913_v22, 4  ;;  %vm2071_vm2 = vcmp.eq.s32.totalorder %v2026_v9, 1  ;;  %v1914_v9 = vsel %vm4688_vm6, %v1912_v19, %v1913_v22  ;;  %v2102_v22 = vsel %vm2057_vm3, 1, %v8773_v48 }
 0x342   :  { %2164 = vst [vmem:[#allocation1 + $0x21] ss:$2 sm:$0xff] %v2108_v30  ;;  %v8959_v30 = vld [vmem:[#allocation21_spill] sm:$0xff]  ;;  %vm1449_vm0 = vcmp.eq.s32.totalorder %v1426_v26, 1 }
 0x343   :  { %v5765_v56 = vsub.f32 %v8959_v30, %v2628_v61  ;;  %v1959_v61 = vsel %vm4688_vm6, %v8965_v55, %v1958_v52  ;;  %v8966_v30 = vrot.slane %v5727_v13, 7  ;;  %v8971_v52 = vrot.slane %v5243_v32, 7 }
 0x344   :  { %v5761_v42 = vld.sshfl [vmem:[#allocation1] sm:$0xff pattern:$0x75316420] }
 0x345   :  { %8958 = vst [vmem:[#allocation47_spill] sm:$0xff] %v5761_v42  ;;  %v5768_v44 = vld.sshfl [vmem:[#allocation1 + $0x30] sm:$0xff pattern:$0x75316420]  ;;  %v2773_v42 = vsub.f32 %v8964_v0, %v2649_v1  ;;  %vm5784_vm1 = vcmp.ne.s32.totalorder %v8966_v30, 0  ;;  %v2116_v1 = vsel %vm2071_vm2, 1, %v8773_v48  ;;  %v2019_v0 = vsub.s32 %v8848_v21, %v1914_v9 }
 0x346   :  { %8960 = vst [vmem:[#allocation53_spill] sm:$0xff] %v5765_v56  ;;  %vm5797_vm9 = vcmp.ne.s32.totalorder %v8971_v52, 0  ;;  %vm5812_vm5 = vmor %vm1449_vm0, %vm5784_vm1  ;;  %v2606_v9 = vrot.slane %v8982_v27, 5  ;;  %vm2495_vm0 = vcmp.lt.s32.totalorder %v8957_v2, 60 }
 0x347   :  { %2329 = vst [vmem:[#allocation1] ss:$2 sm:$0xff] %v8961_v58  ;;  %v5788_v24 = vld.sshfl [vmem:[#allocation1 + $0x10] sm:$0xff pattern:$0x75316420]  ;;  %v8970_v58 = vrot.slane %v8969_v57, 5  ;;  %vm5829_vm7 = vmor %vm1821_vm10, %vm5797_vm9 }
 0x348   :  { %8962 = vst [vmem:[#allocation179_spill] sm:$0xff] %v5768_v44  ;;  %v1938_v44 = vsel %vm4688_vm6, %v5746_v18, %v5754_v37  ;;  %vm2064_vm15 = vcmp.eq.s32.totalorder %v2019_v0, 1  ;;  %vm2306_vm2 = vmand %vm5812_vm5, %vm5829_vm7 }
 0x349   :  { %2331 = vst [vmem:[#allocation1 + $0x1] ss:$2 sm:$0xff] %v8963_v23  ;;  %v1917_v50 = vsel %vm4688_vm6, %v1915_v62, %v8970_v58  ;;  %v5803_v55 = vld.sshfl [vmem:[#allocation1 + $0x20] sm:$0xff pattern:$0x75316420]  ;;  %v1984_v62 = vrot.slane %v1982_v47, 4  ;;  %v2034_v58 = vsub.s32 %v8848_v21, %v1959_v61 }
 0x34a   :  { %2152 = vst [vmem:[#allocation1 + $0x30] ss:$2 sm:$0xff] %v2101_v34  ;;  %v8978_v61 = vrot.slane %v8948_v45, 4  ;;  %v2020_v21 = vsub.s32 %v8851_v4, %v1917_v50  ;;  %v1939_v50 = vrot.slane %v5754_v37, 4  ;;  %v8985_v37 = vld [vmem:[#allocation77_spill] sm:$0xff]  ;;  %v2608_v45 = vrot.slane %v2606_v9, 4 }
 0x34b   :  { %2173 = vst [vmem:[#allocation1 + $0x10] ss:$2 sm:$0xff] %v5493_v16  ;;  %v5817_v16 = vand.u32 2147483647, %v2773_v42  ;;  %v2584_v42 = vrot.slane %v2582_v20, 4  ;;  %vm5854_vm11 = vcmp.eq.s32.totalorder %v2034_v58, 1 }
 0x34c   :  { %2174 = vst [vmem:[#allocation1 + $0x11] ss:$2 sm:$0xff] %v5593_v12  ;;  %v8977_v12 = vrot.slane %v5046_v10, 4  ;;  %v1985_v34 = vrot.slane %v8978_v61, 5  ;;  %vm5864_vm3 = vcmp.eq.s32.totalorder %v2020_v21, 1  ;;  %v8991_v21 = vrot.slane %v5383_v41, 4 }
 0x34d   :  { %2175 = vst [vmem:[#allocation1 + $0x20] ss:$2 sm:$0xff] %v5598_v38  ;;  %v8981_v38 = vrot.slane %v5096_v14, 4  ;;  %v1962_v14 = vsel %vm4688_vm6, %v5770_v8, %v5772_v28  ;;  %v2124_v57 = vsel %vm5854_vm11, 1, %v8773_v48  ;;  %v2110_v30 = vsel %vm5864_vm3, 1, %v8773_v48 }
 0x34e   :  { %8976 = vst [vmem:[#allocation11_spill] sm:$0xff] %v5817_v16  ;;  %v1983_v52 = vsel %vm4688_vm6, %v8977_v12, %v1982_v47  ;;  %v5837_v47 = vrot.slane %v2545_v54, 5  ;;  %v1986_v54 = vsel %vm4688_vm6, %v1984_v62, %v1985_v34  ;;  %v8989_v62 = vld [vmem:[#allocation51_spill] sm:$0xff]  ;;  %v2549_v12 = vrot.slane %v8982_v27, 4 }
 0x34f   :  { %2176 = vst [vmem:[#allocation1 + $0x21] ss:$2 sm:$0xff] %v2116_v1  ;;  %v2583_v10 = vsel %vm4688_vm6, %v8981_v38, %v2582_v20  ;;  %v1963_v1 = vrot.slane %v5772_v28, 4  ;;  %v1987_v28 = vrot.slane %v1985_v34, 4  ;;  %v1476_v58 = vrot.slane %v8989_v62, 1  ;;  %v8990_v38 = vld [vmem:[#allocation41_spill] sm:$0xff] }
 0x350   :  { %2154 = vst [vmem:[#allocation1 + $0x31] ss:$2 sm:$0xff] %v2102_v22  ;;  %v5850_v20 = vld.sshfl [vmem:[#allocation1] sm:$0xff pattern:$0x75316420]  ;;  %v2042_v61 = vsub.s32 %v8885_v29, %v1983_v52  ;;  %v8438_v16 = vrot.slane %v8990_v38, 1  ;;  %v2607_v56 = vsel %vm4688_vm6, %v8991_v21, %v2606_v9  ;;  %v2586_v41 = vsel %vm4688_vm6, %v2584_v42, %v5837_v47 }
 0x351   :  { %v8437_v18 = vrot.slane %v5850_v20, 7  ;;  %2348 = vst [vmem:[#allocation1] ss:$2 sm:$0xff] %v8985_v37  ;;  %v8988_v22 = vld [vmem:[#allocation78_spill] sm:$0xff]  ;;  %v2109_v52 = vsel %vm2064_vm15, 1, %v8773_v48  ;;  %v8992_v27 = vld [vmem:[#allocation7_spill] sm:$0xff] }
 0x352   :  { %2349 = vst [vmem:[#allocation1 + $0x1] ss:$2 sm:$0xff] %v8988_v22  ;;  %v2751_v9 = vsub.f32 %v8992_v27, %v2583_v10  ;;  %v8993_v21 = vld [vmem:[#allocation108_spill] sm:$0xff]  ;;  %v5911_v10 = vsub.s32 %v8851_v4, %v1962_v14  ;;  %v5920_v2 = vrot.slane %v2549_v12, 5  ;;  %v2587_v4 = vrot.slane %v5837_v47, 4  ;;  %v8999_v12 = vld [vmem:[#allocation114_spill] sm:$0xff] }
 0x353   :  { %vm2449_vm1 = vcmp.ne.s32.totalorder %v8437_v18, 0  ;;  %v5876_v34 = vld.sshfl [vmem:[#allocation1 + $0x10] sm:$0xff pattern:$0x75316420]  ;;  %v8994_v19 = vrot.slane %v8993_v21, 5  ;;  %vm2087_vm5 = vcmp.eq.s32.totalorder %v2042_v61, 1 }
 0x354   :  { %vm2472_vm10 = vmand %vm2306_vm2, %vm2449_vm1  ;;  %2185 = vst [vmem:[#allocation1 + $0x10] ss:$2 sm:$0xff] %v5498_v25  ;;  %v2027_v25 = vsub.s32 %v8885_v29, %v1938_v44  ;;  %v1479_v29 = vsel %vm8448_vm4, %v1476_v58, %v8438_v16  ;;  %v8997_v44 = vld [vmem:[#allocation111_spill] sm:$0xff]  ;;  %vm2080_vm11 = vcmp.eq.s32.totalorder %v5911_v10, 1  ;;  %vm8449_vm1 = vcmask 1040384   ;;  %v9060_v21 = vld [vmem:[#allocation73_spill] sm:$0xff] }
 0x355   :  { %v1941_v0 = vsel %vm4688_vm6, %v1939_v50, %v8994_v19  ;;  %vm2518_vm9 = vmand %vm2472_vm10, %vm2495_vm0  ;;  %2186 = vst [vmem:[#allocation1 + $0x11] ss:$2 sm:$0xff] %v5606_v3  ;;  %v8995_v50 = vrot.slane %v8920_v36, 1  ;;  %v8996_v19 = vld [vmem:[#allocation14_spill] sm:$0xff]  ;;  %v5924_v3 = vsub.s32 %v8894_v43, %v1986_v54  ;;  %v8998_v14 = vrot.slane %v8997_v44, 5  ;;  %v9039_v44 = vld [vmem:[#allocation52_spill] sm:$0xff] }
 0x356   :  { %v5906_v26 = vld.sshfl [vmem:[#allocation1 + $0x20] sm:$0xff pattern:$0x75316420]  ;;  %v2836_v42 = vsel %vm2518_vm9, 1, %v8773_v48  ;;  %v2759_v18 = vsub.f32 %v8996_v19, %v2607_v56  ;;  %v2028_v54 = vsub.s32 %v8894_v43, %v1941_v0  ;;  %vm2072_vm7 = vcmp.eq.s32.totalorder %v2027_v25, 1 }
 0x357   :  { %v1477_v27 = vsel %vm8448_vm4, %v8995_v50, %v1476_v58  ;;  %2187 = vst [vmem:[#allocation1 + $0x20] ss:$2 sm:$0xff] %v5611_v63  ;;  %v5918_v8 = vld.sshfl [vmem:[#allocation1 + $0x30] sm:$0xff pattern:$0x75316420]  ;;  %2860 = vperm.xlu1 %3531, %v2836_v42   ;;  %v1965_v63 = vsel %vm4688_vm6, %v1963_v1, %v8998_v14  ;;  %v9000_v50 = vrot.slane %v8999_v12, 5  ;;  %v2610_v1 = vsel %vm4688_vm6, %v2608_v45, %v5920_v2 }
 0x358   :  { %2188 = vst [vmem:[#allocation1 + $0x21] ss:$2 sm:$0xff] %v2124_v57  ;;  %v9001_v42 = vld [vmem:[#allocation6_spill] sm:$0xff]  ;;  %v5942_v57 = vand.u32 2147483647, %v2751_v9  ;;  %v1519_v47 = vsub.s32 %v8920_v36, %v1477_v27  ;;  %vm2088_vm15 = vcmp.eq.s32.totalorder %v5924_v3, 1  ;;  %v2036_v14 = vsub.s32 %v8921_v40, %v1965_v63 }
 0x359   :  { %v1989_v56 = vsel %vm4688_vm6, %v1987_v28, %v9000_v50  ;;  %2165 = vst [vmem:[#allocation1 + $0x30] ss:$2 sm:$0xff] %v2109_v52  ;;  %v5940_v19 = vsub.f32 %v9001_v42, %v2586_v41  ;;  %v9004_v58 = vld [vmem:[#allocation142_spill] sm:$0xff]  ;;  %v1520_v28 = vsub.s32 %v8989_v62, %v1479_v29  ;;  %v5951_v61 = vand.u32 2147483647, %v2759_v18  ;;  %v9010_v27 = vld [vmem:[#allocation171_spill] sm:$0xff] }
 0x35a   :  { %9003 = vst [vmem:[#allocation129_spill] sm:$0xff] %v5942_v57  ;;  %v2630_v16 = vrot.slane %v9004_v58, 5  ;;  %v2553_v52 = vrot.slane %v9004_v58, 4  ;;  %v9006_v41 = vrot.slane %v5639_v53, 4  ;;  %v2132_v45 = vsel %vm2087_vm5, 1, %v8773_v48  ;;  %v9011_v29 = vld [vmem:[#allocation12_spill] sm:$0xff] }
 0x35b   :  { %9002 = vst [vmem:[#allocation25_spill] sm:$0xff] %v5940_v19  ;;  %vm2073_vm2 = vcmp.eq.s32.totalorder %v2028_v54, 1  ;;  %v2117_v18 = vsel %vm2072_vm7, 1, %v8773_v48  ;;  %vm5965_vm3 = vcmp.eq.s32.totalorder %v1519_v47, 1  ;;  %v5971_v53 = vsub.f32 %v9011_v29, %v2610_v1  ;;  %v9014_v42 = vld [vmem:[#allocation22_spill] sm:$0xff] }
 0x35c   :  { %2166 = vst [vmem:[#allocation1 + $0x31] ss:$2 sm:$0xff] %v2110_v30  ;;  %v2631_v9 = vsel %vm4688_vm6, %v9006_v41, %v2630_v16  ;;  %v5961_v0 = vld.sshfl [vmem:[#allocation1 + $0x10] sm:$0xff pattern:$0x75316420]  ;;  %v2044_v50 = vsub.s32 %v8616_v46, %v1989_v56  ;;  %vm1543_vm0 = vcmp.eq.s32.totalorder %v1520_v28, 1 }
 0x35d   :  { %9005 = vst [vmem:[#allocation18_spill] sm:$0xff] %v5951_v61  ;;  %v2767_v58 = vsub.f32 %v9014_v42, %v2631_v9  ;;  %v2118_v47 = vsel %vm2073_vm2, 1, %v8773_v48  ;;  %v1382_v41 = vrot.slane %v8920_v36, 7  ;;  %v1384_v1 = vrot.slane %v8989_v62, 7  ;;  %v9015_v63 = vld [vmem:[#allocation174_spill] sm:$0xff]  ;;  %v9016_v28 = vld [vmem:[#allocation175_spill] sm:$0xff] }
 0x35e   :  { %9007 = vst [vmem:[#allocation27_spill] sm:$0xff] %v5961_v0  ;;  %v1565_v46 = vsel %vm5965_vm3, 1, %v8773_v48  ;;  %v1754_v56 = vrot.slane %v9015_v63, 7  ;;  %v8440_v9 = vrot.slane %v9016_v28, 7  ;;  %v9019_v30 = vld [vmem:[#allocation55_spill] sm:$0xff]  ;;  %v6001_v43 = vrot.slane %v2553_v52, 5 }
 0x35f   :  { %2197 = vst [vmem:[#allocation1 + $0x10] ss:$2 sm:$0xff] %v9010_v27  ;;  %v5975_v54 = vld.sshfl [vmem:[#allocation1 + $0x20] sm:$0xff pattern:$0x75316420]  ;;  %v5993_v27 = vrot.slane %v2630_v16, 4  ;;  %v1385_v16 = vsel %vm8449_vm1, %v1382_v41, %v1384_v1 }
 0x360   :  { %9012 = vst [vmem:[#allocation180_spill] sm:$0xff] %v5971_v53  ;;  %v8439_v25 = vrot.slane %v9019_v30, 1  ;;  %v6003_v12 = vand.u32 2147483647, %v2767_v58  ;;  %vm2081_vm10 = vcmp.eq.s32.totalorder %v2036_v14, 1  ;;  %vm6005_vm9 = vcmp.eq.s32.totalorder %v2044_v50, 1 }
 0x361   :  { %9013 = vst [vmem:[#allocation57_spill] sm:$0xff] %v5975_v54  ;;  %v1757_v52 = vsel %vm8449_vm1, %v1754_v56, %v8440_v9  ;;  %v2216_v50 = vrot.slane %v5718_v5, 7  ;;  %v2218_v58 = vrot.slane %v5737_v6, 7  ;;  %v2126_v42 = vsel %vm2081_vm10, 1, %v8773_v48  ;;  %v9026_v5 = vld [vmem:[#allocation74_spill] sm:$0xff]  ;;  %v9030_v61 = vld [vmem:[#allocation68_spill] sm:$0xff] }
 0x362   :  { %2198 = vst [vmem:[#allocation1 + $0x11] ss:$2 sm:$0xff] %v5616_v31  ;;  %v5989_v31 = vsel %vm1543_vm0, 1, %v8773_v48  ;;  %v1428_v3 = vsub.s32 %v8989_v62, %v1385_v16  ;;  %v1800_v9 = vsub.s32 %v9030_v61, %v1757_v52  ;;  %v6050_v53 = vadd.s32 64, %v8919_v60 }
 0x363   :  { %2199 = vst [vmem:[#allocation1 + $0x20] ss:$2 sm:$0xff] %v5621_v33  ;;  %v5983_v40 = vld.sshfl [vmem:[#allocation1 + $0x30] sm:$0xff pattern:$0x75316420]  ;;  %v9017_v33 = vld [vmem:[#allocation119_spill] sm:$0xff] }
 0x364   :  { %2200 = vst [vmem:[#allocation1 + $0x21] ss:$2 sm:$0xff] %v2132_v45  ;;  %v9018_v29 = vrot.slane %v9017_v33, 5  ;;  %v9034_v16 = vrot.slane %v8952_v51, 7  ;;  %v9035_v52 = vrot.slane %v8990_v38, 7  ;;  %v8444_v6 = vrot.slane %v5918_v8, 7 }
 0x365   :  { %2177 = vst [vmem:[#allocation1 + $0x30] ss:$2 sm:$0xff] %v2117_v18  ;;  %v1588_v18 = vrot.slane %v1565_v46, 7  ;;  %v9037_v51 = vld [vmem:[#allocation56_spill] sm:$0xff]  ;;  %v1486_v19 = vrot.slane %v9039_v44, 1  ;;  %vm6081_vm7 = vcmp.eq.s32.totalorder %v1428_v3, 1 }
 0x366   :  { %v2589_v45 = vsel %vm4688_vm6, %v2587_v4, %v9018_v29  ;;  %2178 = vst [vmem:[#allocation1 + $0x31] ss:$2 sm:$0xff] %v2118_v47  ;;  %v9023_v4 = vrot.slane %v8990_v38, 1  ;;  %v2125_v29 = vsel %vm2080_vm11, 1, %v8773_v48 }
 0x367   :  { %9020 = vst [vmem:[#allocation148_spill] sm:$0xff] %v6003_v12  ;;  %v9029_v12 = vrot.slane %v5989_v31, 7  ;;  %v6206_v3 = vld.sshfl [vmem:[#allocation1] sm:$0xff pattern:$0x75316420] }
 0x368   :  { %v1481_v47 = vsel %vm8448_vm4, %v9023_v4, %v8439_v25  ;;  %v6030_v4 = vsel %vm2088_vm15, 1, %v8773_v48  ;;  %v9025_v25 = vld [vmem:[#allocation9_spill] sm:$0xff]  ;;  %vm6086_vm15 = vcmp.eq.s32.totalorder %v1800_v9, 1  ;;  %2360 = vst [vmem:[#allocation1] ss:$2 sm:$0xff] %v8963_v23 }
 0x369   :  { %v6019_v14 = vld.sshfl [vmem:[#allocation1 + $0x10] sm:$0xff pattern:$0x75316420]  ;;  %v1521_v46 = vsub.s32 %v8990_v38, %v1481_v47 }
 0x36a   :  { %9024 = vst [vmem:[#allocation136_spill] sm:$0xff] %v6019_v14  ;;  %v9027_v47 = vld [vmem:[#allocation8_spill] sm:$0xff]  ;;  %v9036_v14 = vrot.slane %v5727_v13, 7 }
 0x36b   :  { %2209 = vst [vmem:[#allocation1 + $0x10] ss:$2 sm:$0xff] %v9025_v25  ;;  %v2753_v33 = vsub.f32 %v9027_v47, %v2589_v45  ;;  %v6040_v10 = vld.sshfl [vmem:[#allocation1 + $0x20] sm:$0xff pattern:$0x75316420]  ;;  %vm1544_vm5 = vcmp.eq.s32.totalorder %v1521_v46, 1  ;;  %v1591_v25 = vsel %vm8449_vm1, %v1588_v18, %v9029_v12  ;;  %v2219_v45 = vsel %vm8449_vm1, %v2216_v50, %v2218_v58 }
 0x36c   :  { %9028 = vst [vmem:[#allocation54_spill] sm:$0xff] %v6040_v10  ;;  %v9031_v47 = vld [vmem:[#allocation161_spill] sm:$0xff]  ;;  %v1755_v12 = vsel %vm8449_vm1, %v9034_v16, %v1754_v56  ;;  %v6066_v46 = vsel %vm1544_vm5, 1, %v8773_v48  ;;  %v9038_v56 = vld [vmem:[#allocation66_spill] sm:$0xff]  ;;  %vm1634_vm11 = vcmp.ne.s32.totalorder %v1591_v25, 0  ;;  %vm2262_vm2 = vcmp.ne.s32.totalorder %v2219_v45, 0 }
 0x36d   :  { %2210 = vst [vmem:[#allocation1 + $0x11] ss:$2 sm:$0xff] %v5627_v17  ;;  %v6054_v10 = vld.sshfl [vmem:[#allocation1 + $0x30] sm:$0xff pattern:$0x75316420]  ;;  %v9033_v17 = vrot.slane %v8919_v60, 7  ;;  %vm6148_vm5 = vmor %vm6081_vm7, %vm1634_vm11 }
 0x36e   :  { %2211 = vst [vmem:[#allocation1 + $0x20] ss:$2 sm:$0xff] %v5679_v39  ;;  %v1387_v39 = vsel %vm8449_vm1, %v1384_v1, %v9035_v52  ;;  %v8446_v16 = vrot.slane %v9038_v56, 1  ;;  %v6076_v1 = vand.u32 2147483647, %v2753_v33  ;;  %vm6162_vm0 = vmor %vm6086_vm15, %vm2262_vm2  ;;  %vm9114_vm2 = vcmask 1040384  }
 0x36f   :  { %9032 = vst [vmem:[#allocation21_spill] sm:$0xff] %v6054_v10  ;;  %v1383_v62 = vsel %vm8449_vm1, %v9033_v17, %v1382_v41  ;;  %v1589_v41 = vsel %vm8449_vm1, %v9036_v14, %v1588_v18  ;;  %v1799_v17 = vsub.s32 %v9037_v51, %v1755_v12  ;;  %v1429_v63 = vsub.s32 %v8990_v38, %v1387_v39  ;;  %v9055_v14 = vld [vmem:[#allocation69_spill] sm:$0xff]  ;;  %vm9116_vm13 = vmmov %vm9114_vm2 }
 0x370   :  { %2189 = vst [vmem:[#allocation1 + $0x30] ss:$2 sm:$0xff] %v2125_v29  ;;  %v1427_v57 = vsub.s32 %v8920_v36, %v1383_v62  ;;  %v2134_v29 = vsel %vm6005_vm9, 1, %v8773_v48  ;;  %v9050_v62 = vld [vmem:[#allocation67_spill] sm:$0xff]  ;;  %v9051_v12 = vrot.slane %v9031_v47, 7  ;;  %v2221_v39 = vsel %vm8449_vm1, %v2218_v58, %v8444_v6  ;;  %vm9120_vm12 = vmmov %vm9114_vm2 }
 0x371   :  { %2190 = vst [vmem:[#allocation1 + $0x31] ss:$2 sm:$0xff] %v2126_v42  ;;  %v9045_v42 = vrot.slane %v5243_v32, 7  ;;  %v9052_v32 = vrot.slane %v9016_v28, 7  ;;  %vm6112_vm10 = vcmp.eq.s32.totalorder %v1799_v17, 1  ;;  %v9057_v58 = vld [vmem:[#allocation71_spill] sm:$0xff] }
 0x372   :  { %9040 = vst [vmem:[#allocation65_spill] sm:$0xff] %v6076_v1  ;;  %vm6097_vm3 = vcmp.eq.s32.totalorder %v1427_v57, 1  ;;  %v9061_v36 = vrot.slane %v6066_v46, 7  ;;  %v9062_v28 = vrot.slane %v5989_v31, 7  ;;  %v8452_v1 = vrot.slane %v5803_v55, 7 }
 0x373   :  { %v2217_v18 = vsel %vm8449_vm1, %v9045_v42, %v2216_v50  ;;  %v1759_v50 = vsel %vm8449_vm1, %v9052_v32, %v9051_v12  ;;  %v1487_v42 = vsel %vm8448_vm4, %v8446_v16, %v1486_v19  ;;  %v9056_v12 = vrot.slane %v6050_v53, 1  ;;  %v9059_v16 = vld [vmem:[#allocation3_spill] sm:$0xff]  ;;  %2361 = vst [vmem:[#allocation1 + $0x1] ss:$2 sm:$0xff] %v9050_v62 }
 0x374   :  { %v6093_v33 = vld.sshfl [vmem:[#allocation1 + $0x10] sm:$0xff pattern:$0x75316420]  ;;  %v1524_v17 = vsub.s32 %v9038_v56, %v1487_v42  ;;  %v1593_v54 = vsel %vm8449_vm1, %v9062_v28, %v9061_v36  ;;  %v9064_v42 = vrot.slane %v9039_v44, 7  ;;  %v9068_v36 = vrot.slane %v9059_v16, 7 }
 0x375   :  { %9046 = vst [vmem:[#allocation28_spill] sm:$0xff] %v6093_v33  ;;  %v6101_v9 = vld.sshfl [vmem:[#allocation1 + $0x20] sm:$0xff pattern:$0x75316420]  ;;  %v1489_v32 = vsel %vm8448_vm4, %v1486_v19, %v9056_v12  ;;  %v1801_v19 = vsub.s32 %v8893_v11, %v1759_v50  ;;  %vm9080_vm7 = vcmp.ne.s32.totalorder %v2217_v18, 0  ;;  %v8466_v25 = vrot.slane %v5788_v24, 7 }
 0x376   :  { %9049 = vst [vmem:[#allocation139_spill] sm:$0xff] %v6101_v9  ;;  %v1525_v6 = vsub.s32 %v9039_v44, %v1489_v32  ;;  %v9058_v9 = vld [vmem:[#allocation182_spill] sm:$0xff]  ;;  %v9065_v32 = vrot.slane %v9038_v56, 7  ;;  %vm1547_vm4 = vcmp.eq.s32.totalorder %v1524_v17, 1 }
 0x377   :  { %2333 = vst [vmem:[#allocation1 + $0x10] ss:$2 sm:$0xff] %v9050_v62  ;;  %v9069_v50 = vrot.slane %v9058_v9, 7 }
 0x378   :  { %2335 = vst [vmem:[#allocation1 + $0x11] ss:$2 sm:$0xff] %v9055_v14  ;;  %v6137_v12 = vld.sshfl [vmem:[#allocation1 + $0x30] sm:$0xff pattern:$0x75316420]  ;;  %v1395_v33 = vsel %vm8449_vm1, %v9065_v32, %v9064_v42  ;;  %vm1548_vm9 = vcmp.eq.s32.totalorder %v1525_v6, 1 }
 0x379   :  { %2337 = vst [vmem:[#allocation1 + $0x20] ss:$2 sm:$0xff] %v9057_v58  ;;  %v1433_v31 = vsub.s32 %v9039_v44, %v1395_v33  ;;  %v1767_v28 = vsel %vm8449_vm1, %v9069_v50, %v9068_v36  ;;  %v6170_v52 = vsel %vm1548_vm9, 1, %v8773_v48  ;;  %v8451_v33 = vrot.slane %v5983_v40, 7  ;;  %v9085_v32 = vld [vmem:[#allocation79_spill] sm:$0xff] }
 0x37a   :  { %2339 = vst [vmem:[#allocation1 + $0x21] ss:$2 sm:$0xff] %v9060_v21  ;;  %v1805_v6 = vsub.s32 %v8918_v15, %v1767_v28  ;;  %vm9073_vm1 = vcmp.ne.s32.totalorder %v1589_v41, 0  ;;  %v8450_v13 = vrot.slane %v6170_v52, 7  ;;  %vm6188_vm9 = vcmp.eq.s32.totalorder %v1801_v19, 1 }
 0x37b   :  { %9063 = vst [vmem:[#allocation77_spill] sm:$0xff] %v6137_v12  ;;  %vm6178_vm15 = vmor %vm6097_vm3, %vm9073_vm1  ;;  %vm9083_vm3 = vcmask 1040384   ;;  %v9086_v36 = vmov 0  ;;  %v9090_v28 = vsel %vm4688_vm6, %v9026_v5, %v5422_v49  ;;  %v1388_v5 = vrot.slane %v9019_v30, 7 }
 0x37c   :  { %2201 = vst [vmem:[#allocation1 + $0x30] ss:$2 sm:$0xff] %v6030_v4  ;;  %v6167_v4 = vsel %vm1547_vm4, 1, %v8773_v48  ;;  %vm6184_vm4 = vcmp.eq.s32.totalorder %v1429_v63, 1  ;;  %vm6195_vm1 = vmor %vm6112_vm10, %vm9080_vm7  ;;  %v6204_v63 = vsel %vm9083_vm3, %v8452_v1, %v8451_v33  ;;  %vm6227_vm11 = vcmp.eq.s32.totalorder %v1805_v6, 1 }
 0x37d   :  { %2202 = vst [vmem:[#allocation1 + $0x31] ss:$2 sm:$0xff] %v2134_v29  ;;  %v8453_v29 = vrot.slane %v6167_v4, 7  ;;  %vm9084_vm10 = vmmov %vm9083_vm3  ;;  %vm6222_vm3 = vcmp.eq.s32.totalorder %v1433_v31, 1  ;;  %v9093_v31 = vrot.slane %v8936_v7, 5  ;;  %v9094_v33 = vrot.slane %v5422_v49, 4 }
 0x37e   :  { %9072 = vst [vmem:[#allocation78_spill] sm:$0xff] %v6170_v52  ;;  %v9087_v36 = vsel %vm6222_vm3, 4294967295, %v9086_v36  ;;  %v9106_v42 = vrot.slane %v5920_v2, 4  ;;  %v9168_v49 = vld [vmem:[#allocation164_spill] sm:$0xff] }
 0x37f   :  { %v2345_v19 = vld.sshfl [vmem:[#allocation1 + $0x10] sm:$0xff pattern:$0x75316420]  ;;  %v6214_v18 = vsel %vm9084_vm10, %v8453_v29, %v8450_v13  ;;  %v6246_v6 = vsel %vm4688_vm6, %v9094_v33, %v9093_v31  ;;  %vm9098_vm10 = vcmp.ne.s32.totalorder %v2221_v39, 0  ;;  %v9101_v33 = vrot.slane %v5850_v20, 7  ;;  %v9104_v39 = vld [vmem:[#allocation121_spill] sm:$0xff] }
 0x380   :  { %v2405_v57 = vrot.slane %v2345_v19, 7  ;;  %2350 = vst [vmem:[#allocation1 + $0x10] ss:$2 sm:$0xff] %v9085_v32  ;;  %v9091_v19 = vld [vmem:[#allocation31_spill] sm:$0xff]  ;;  %v9096_v29 = vld [vmem:[#allocation80_spill] sm:$0xff]  ;;  %vm6261_vm7 = vmor %vm6188_vm9, %vm9098_vm10  ;;  %v9105_v12 = vrot.slane %v9104_v39, 5 }
 0x381   :  { %v6238_v13 = vsub.f32 %v9091_v19, %v9090_v28  ;;  %9095 = vst [vmem:[#allocation41_spill] sm:$0xff] %v6246_v6  ;;  %v6248_v1 = vld.sshfl [vmem:[#allocation1 + $0x20] sm:$0xff pattern:$0x75316420]  ;;  %v9097_v19 = vld [vmem:[#allocation81_spill] sm:$0xff]  ;;  %v2634_v28 = vsel %vm4688_vm6, %v5993_v27, %v6001_v43  ;;  %v9113_v27 = vrot.slane %v8990_v38, 7 }
 0x382   :  { %2351 = vst [vmem:[#allocation1 + $0x11] ss:$2 sm:$0xff] %v9096_v29  ;;  %v2406_v31 = vsel %vm9102_vm14, %v9101_v33, %v2405_v57  ;;  %v9103_v6 = vld [vmem:[#allocation62_spill] sm:$0xff]  ;;  %v6280_v10 = vsel %vm4688_vm6, %v9106_v42, %v9105_v12  ;;  %vm9109_vm14 = vcmp.ne.s32.totalorder %v1593_v54, 0  ;;  %v9115_v12 = vrot.slane %v6248_v1, 7  ;;  %v9167_v33 = vld [vmem:[#allocation176_spill] sm:$0xff] }
 0x383   :  { %9092 = vst [vmem:[#allocation51_spill] sm:$0xff] %v6238_v13  ;;  %v1482_v7 = vrot.slane %v9103_v6, 1  ;;  %v9108_v20 = vld [vmem:[#allocation82_spill] sm:$0xff]  ;;  %vm6286_vm9 = vmor %vm6184_vm4, %vm9109_vm14  ;;  %vm2450_vm10 = vcmp.ne.s32.totalorder %v2406_v31, 0  ;;  %v6295_v2 = vsel %vm9114_vm2, %v9113_v27, %v1388_v5  ;;  %v9119_v54 = vrot.slane %v9103_v6, 7 }
 0x384   :  { %2352 = vst [vmem:[#allocation1 + $0x20] ss:$2 sm:$0xff] %v9097_v19  ;;  %v6290_v13 = vld.sshfl [vmem:[#allocation1 + $0x30] sm:$0xff pattern:$0x75316420]  ;;  %v2408_v39 = vsel %vm9116_vm13, %v2405_v57, %v9115_v12  ;;  %v9117_v42 = vld [vmem:[#allocation58_spill] sm:$0xff]  ;;  %vm9118_vm4 = vmand %vm6178_vm15, %vm6195_vm1 }
 0x385   :  { %9107 = vst [vmem:[#allocation7_spill] sm:$0xff] %v6280_v10  ;;  %vm2473_vm14 = vmand %vm9118_vm4, %vm2450_vm10  ;;  %v1391_v17 = vsel %vm9120_vm12, %v1388_v5, %v9119_v54  ;;  %v9121_v38 = vrot.slane %v9019_v30, 1  ;;  %vm9122_vm2 = vcmask 1046528   ;;  %v9123_v27 = vrot.slane %v9038_v56, 1  ;;  %v9125_v12 = vld [vmem:[#allocation60_spill] sm:$0xff] }
 0x386   :  { %2353 = vst [vmem:[#allocation1 + $0x21] ss:$2 sm:$0xff] %v9108_v20  ;;  %vm9124_vm8 = vmmov %vm9122_vm2  ;;  %vm2451_vm13 = vcmp.ne.s32.totalorder %v2408_v39, 0  ;;  %vm9126_vm6 = vcmp.lt.s32.totalorder %v9037_v51, 60  ;;  %v1431_v45 = vsub.s32 %v9103_v6, %v1391_v17  ;;  %v9128_v39 = vld [vmem:[#allocation151_spill] sm:$0xff]  ;;  %v9130_v51 = vld [vmem:[#allocation165_spill] sm:$0xff] }
 0x387   :  { %9112 = vst [vmem:[#allocation14_spill] sm:$0xff] %v6290_v13  ;;  %v1483_v31 = vsel %vm9122_vm2, %v9121_v38, %v1482_v7  ;;  %v1485_v57 = vsel %vm9124_vm8, %v1482_v7, %v9123_v27  ;;  %vm2519_vm3 = vmand %vm2473_vm14, %vm9126_vm6  ;;  %v1760_v54 = vrot.slane %v9128_v39, 7  ;;  %v9129_v38 = vld [vmem:[#allocation181_spill] sm:$0xff]  ;;  %v2222_v13 = vrot.slane %v9130_v51, 7 }
 0x388   :  { %2341 = vst [vmem:[#allocation1 + $0x30] ss:$2 sm:$0xff] %v9117_v42  ;;  %v1522_v41 = vsub.s32 %v9019_v30, %v1483_v31  ;;  %v1523_v5 = vsub.s32 %v9103_v6, %v1485_v57  ;;  %vm9127_vm12 = vmand %vm6148_vm5, %vm6162_vm0  ;;  %v2837_v7 = vsel %vm2519_vm3, 1, %v8773_v48  ;;  %v8464_v27 = vrot.slane %v9129_v38, 7 }
 0x389   :  { %2343 = vst [vmem:[#allocation1 + $0x31] ss:$2 sm:$0xff] %v9125_v12  ;;  %vm2474_vm15 = vmand %vm9127_vm12, %vm2451_vm13  ;;  %vm9131_vm6 = vcmp.lt.s32.totalorder %v9030_v61, 60  ;;  %2863 = vperm.xlu2 %3532, %v2837_v7   ;;  %vm6333_vm1 = vcmp.eq.s32.totalorder %v1431_v45, 1  ;;  %vm9134_vm3 = vcmask 1040384   ;;  %vm9138_vm14 = vcmp.ne.s32.totalorder %v6204_v63, 0 }
 0x38a   :  { %vm2520_vm8 = vmand %vm2474_vm15, %vm9131_vm6  ;;  %vm1545_vm0 = vcmp.eq.s32.totalorder %v1522_v41, 1  ;;  %vm1546_vm5 = vcmp.eq.s32.totalorder %v1523_v5, 1  ;;  %v1763_v61 = vsel %vm9134_vm3, %v1760_v54, %v8464_v27  ;;  %v6346_v7 = vld.sshfl [vmem:[#allocation1 + $0x10] sm:$0xff pattern:$0x75316420]  ;;  %v9135_v5 = vld [vmem:[#allocation59_spill] sm:$0xff]  ;;  %vm9142_vm15 = vnez %v9087_v36 }
 0x38b   :  { %v2838_v17 = vsel %vm2520_vm8, 1, %v8773_v48  ;;  %v1568_v31 = vsel %vm1545_vm0, 1, %v8773_v48  ;;  %v6341_v57 = vsel %vm1546_vm5, 1, %v8773_v48  ;;  %vm2309_vm10 = vmand %vm6286_vm9, %vm6261_vm7  ;;  %v1803_v39 = vsub.s32 %v9135_v5, %v1763_v61  ;;  %2362 = vst [vmem:[#allocation1 + $0x10] ss:$2 sm:$0xff] %v9055_v14  ;;  %v9137_v27 = vld [vmem:[#allocation24_spill] sm:$0xff] }
 0x38c   :  { %2866 = vperm.xlu0 %3533, %v2838_v17   ;;  %v1594_v45 = vrot.slane %v1568_v31, 7  ;;  %v8467_v41 = vrot.slane %v6341_v57, 7  ;;  %vm9136_vm4 = vmmov %vm9134_vm3  ;;  %v6359_v52 = vsub.f32 %v9137_v27, %v2634_v28  ;;  %v2411_v61 = vrot.slane %v6206_v3, 7  ;;  %2363 = vst [vmem:[#allocation1 + $0x11] ss:$2 sm:$0xff] %v9057_v58 }
 0x38d   :  { %v2225_v51 = vsel %vm9136_vm4, %v2222_v13, %v8466_v25  ;;  %vm6365_vm2 = vmor %vm6227_vm11, %vm9138_vm14  ;;  %v6369_v31 = vld.sshfl [vmem:[#allocation1 + $0x20] sm:$0xff pattern:$0x75316420]  ;;  %v8469_v25 = vrot.slane %v6346_v7, 7  ;;  %vm9141_vm12 = vcmp.ne.s32.totalorder %v6214_v18, 0  ;;  %vm1826_vm8 = vcmp.eq.s32.totalorder %v1803_v39, 1 }
 0x38e   :  { %vm2265_vm13 = vcmp.ne.s32.totalorder %v2225_v51, 0  ;;  %vm6377_vm6 = vmor %vm9142_vm15, %vm9141_vm12  ;;  %2364 = vst [vmem:[#allocation1 + $0x20] ss:$2 sm:$0xff] %v9060_v21  ;;  %vm2500_vm0 = vcmp.lt.s32.totalorder %v9135_v5, 60  ;;  %v1430_v3 = vsub.s32 %v9019_v30, %v6295_v2  ;;  %v9149_v51 = vrot.slane %v9031_v47, 7  ;;  %v9151_v2 = vld [vmem:[#allocation75_spill] sm:$0xff] }
 0x38f   :  { %vm9145_vm11 = vmmov %vm9134_vm3  ;;  %2365 = vst [vmem:[#allocation1 + $0x21] ss:$2 sm:$0xff] %v9117_v42  ;;  %v2414_v39 = vsel %vm9136_vm4, %v2411_v61, %v8469_v25  ;;  %v2635_v18 = vrot.slane %v6001_v43, 4  ;;  %v9154_v47 = vld [vmem:[#allocation63_spill] sm:$0xff]  ;;  %v6449_v5 = vadd.s32 72, %v8919_v60  ;;  %v9192_v28 = vrot.slane %v6167_v4, 7 }
 0x390   :  { %v1597_v63 = vsel %vm9145_vm11, %v1594_v45, %v8467_v41  ;;  %v2347_v36 = vld.sshfl [vmem:[#allocation1 + $0x30] sm:$0xff pattern:$0x75316420]  ;;  %vm6391_vm3 = vmor %vm1826_vm8, %vm2265_vm13  ;;  %vm2454_vm15 = vcmp.ne.s32.totalorder %v2414_v39, 0  ;;  %v9193_v17 = vrot.slane %v6341_v57, 7 }
 0x391   :  { %vm1637_vm5 = vcmp.ne.s32.totalorder %v1597_v63, 0  ;;  %vm9150_vm14 = vmmov %vm9136_vm4  ;;  %v2409_v30 = vrot.slane %v2347_v36, 7  ;;  %2354 = vst [vmem:[#allocation1 + $0x30] ss:$2 sm:$0xff] %v9151_v2  ;;  %v9152_v63 = vrot.slane %v6066_v46, 7  ;;  %v9157_v46 = vrot.slane %v6248_v1, 7 }
 0x392   :  { %v1761_v41 = vsel %vm9150_vm14, %v9149_v51, %v1760_v54  ;;  %vm1660_vm12 = vmor %vm6333_vm1, %vm1637_vm5  ;;  %2355 = vst [vmem:[#allocation1 + $0x31] ss:$2 sm:$0xff] %v9154_v47  ;;  %v9155_v54 = vrot.slane %v5918_v8, 7  ;;  %v9176_v36 = vld [vmem:[#allocation125_spill] sm:$0xff] }
 0x393   :  { %vm9153_vm13 = vmmov %vm9136_vm4  ;;  %v1802_v10 = vsub.s32 %v8950_v35, %v1761_v41  ;;  %v9177_v41 = vrot.slane %v9176_v36, 5 }
 0x394   :  { %v1595_v50 = vsel %vm9153_vm13, %v9152_v63, %v1594_v45  ;;  %vm2311_vm8 = vmand %vm1660_vm12, %vm6391_vm3  ;;  %vm6426_vm13 = vcmp.eq.s32.totalorder %v1430_v3, 1  ;;  %v8471_v3 = vrot.slane %v9167_v33, 7 }
 0x395   :  { %vm9156_vm1 = vmmov %vm9136_vm4  ;;  %vm1636_vm4 = vcmp.ne.s32.totalorder %v1595_v50, 0  ;;  %vm6438_vm11 = vcmp.eq.s32.totalorder %v1802_v10, 1  ;;  %v6457_v10 = vadd.s32 88, %v8919_v60  ;;  %v8470_v50 = vrot.slane %v9168_v49, 7 }
 0x396   :  { %v2223_v0 = vsel %vm9156_vm1, %v9155_v54, %v2222_v13  ;;  %vm9158_vm5 = vmmov %vm9156_vm1 }
 0x397   :  { %v2410_v45 = vsel %vm9158_vm5, %v9157_v46, %v2409_v30  ;;  %vm2477_vm14 = vmand %vm2311_vm8, %vm2454_vm15  ;;  %vm2264_vm15 = vcmp.ne.s32.totalorder %v2223_v0, 0  ;;  %v8475_v46 = vrot.slane %v6457_v10, 1 }
 0x398   :  { %vm9161_vm3 = vmmov %vm9156_vm1  ;;  %vm2452_vm12 = vcmp.ne.s32.totalorder %v2410_v45, 0  ;;  %vm2499_vm1 = vcmp.lt.s32.totalorder %v8950_v35, 60 }
 0x399   :  { %v2412_v8 = vsel %vm9161_vm3, %v2409_v30, %v2411_v61  ;;  %vm6434_vm5 = vmand %vm2477_vm14, %vm2500_vm0  ;;  %v6452_v61 = vadd.s32 80, %v8919_v60  ;;  %vm9166_vm0 = vcmp.lt.s32.totalorder %v8893_v11, 60  ;;  %v8473_v11 = vrot.slane %v6449_v5, 7  ;;  %v6489_v0 = vld.sshfl [vmem:[#allocation1 + $0x30] sm:$0xff pattern:$0x75316420] }
 0x39a   :  { %vm2475_vm8 = vmand %vm2309_vm10, %vm2452_vm12  ;;  %vm2453_vm3 = vcmp.ne.s32.totalorder %v2412_v8, 0  ;;  %v8474_v30 = vrot.slane %v6449_v5, 1  ;;  %vm9173_vm10 = vcmask 1040384   ;;  %v2841_v13 = vsel %vm6434_vm5, 1, %v8773_v48  ;;  %2366 = vst [vmem:[#allocation1 + $0x30] ss:$2 sm:$0xff] %v9125_v12 }
 0x39b   :  { %vm2521_vm14 = vmand %vm2475_vm8, %vm9166_vm0  ;;  %v8472_v51 = vrot.slane %v6452_v61, 7  ;;  %v1492_v54 = vrot.slane %v6452_v61, 1  ;;  %v1773_v45 = vsel %vm9173_vm10, %v8471_v3, %v8470_v50  ;;  %v9175_v50 = vld [vmem:[#allocation109_spill] sm:$0xff]  ;;  %v2417_v63 = vrot.slane %v6489_v0, 7  ;;  %2367 = vst [vmem:[#allocation1 + $0x31] ss:$2 sm:$0xff] %v8985_v37 }
 0x39c   :  { %v2839_v27 = vsel %vm2521_vm14, 1, %v8773_v48  ;;  %vm6465_vm7 = vmor %vm6426_vm13, %vm1636_vm4  ;;  %v1808_v3 = vsub.s32 %v9175_v50, %v1773_v45  ;;  %vm9178_vm13 = vnez %v8699_v59  ;;  %vm9179_vm5 = vcmask 1046528  }
 0x39d   :  { %2869 = vperm.xlu1 %3531, %v2839_v27   ;;  %vm6475_vm9 = vmor %vm6438_vm11, %vm2264_vm15  ;;  %v6487_v27 = vld.sshfl [vmem:[#allocation1 + $0x20] sm:$0xff pattern:$0x75316420]  ;;  %v6509_v1 = vsel %vm9178_vm13, %v2635_v18, %v9177_v41  ;;  %v1493_v39 = vsel %vm9179_vm5, %v8474_v30, %v1492_v54  ;;  %v9181_v41 = vrot.slane %v5906_v26, 7 }
 0x39e   :  { %vm2310_vm11 = vmand %vm6465_vm7, %vm6475_vm9  ;;  %v2423_v43 = vrot.slane %v6487_v27, 7  ;;  %v1527_v8 = vsub.s32 %v6449_v5, %v1493_v39  ;;  %2376 = vst [vmem:[#allocation1 + $0x20] ss:$2 sm:$0xff] %v9108_v20  ;;  %v9210_v39 = vrot.slane %v6369_v31, 7  ;;  %v6787_v27 = vadd.s32 112, %v8919_v60 }
 0x39f   :  { %vm9174_vm4 = vmmov %vm9173_vm10  ;;  %2377 = vst [vmem:[#allocation1 + $0x21] ss:$2 sm:$0xff] %v9151_v2 }
 0x3a0   :  { %v1401_v25 = vsel %vm9174_vm4, %v8473_v11, %v8472_v51  ;;  %vm2476_vm12 = vmand %vm2310_vm11, %vm2453_vm3  ;;  %v6520_v51 = vld.sshfl [vmem:[#allocation1 + $0x10] sm:$0xff pattern:$0x75316420]  ;;  %v9182_v11 = vrot.slane %v5876_v34, 7  ;;  %vm1550_vm9 = vcmp.eq.s32.totalorder %v1527_v8, 1  ;;  %v9190_v8 = vrot.slane %v9103_v6, 7 }
 0x3a1   :  { %vm9180_vm15 = vmmov %vm9179_vm5  ;;  %v1436_v18 = vsub.s32 %v6452_v61, %v1401_v25  ;;  %2374 = vst [vmem:[#allocation1 + $0x10] ss:$2 sm:$0xff] %v9096_v29 }
 0x3a2   :  { %v1495_v45 = vsel %vm9180_vm15, %v1492_v54, %v8475_v46  ;;  %vm2522_vm8 = vmand %vm2476_vm12, %vm2499_vm1  ;;  %v6533_v54 = vld.sshfl [vmem:[#allocation1] sm:$0xff pattern:$0x75316420]  ;;  %v9184_v46 = vrot.slane %v6369_v31, 7  ;;  %vm6541_vm1 = vcmp.eq.s32.totalorder %v1808_v3, 1  ;;  %v6554_v3 = vsel %vm1550_vm9, 1, %v8773_v48 }
 0x3a3   :  { %v1528_v36 = vsub.s32 %v6452_v61, %v1495_v45  ;;  %vm9183_vm3 = vmmov %vm9174_vm4  ;;  %v2840_v25 = vsel %vm2522_vm8, 1, %v8773_v48  ;;  %2375 = vst [vmem:[#allocation1 + $0x11] ss:$2 sm:$0xff] %v9097_v19  ;;  %v9189_v45 = vrot.slane %v9038_v56, 7  ;;  %vm6582_vm8 = vcmp.eq.s32.totalorder %v1436_v18, 1 }
 0x3a4   :  { %v2235_v30 = vsel %vm9183_vm3, %v9182_v11, %v9181_v41  ;;  %vm9185_vm0 = vmmov %vm9183_vm3  ;;  %2872 = vperm.xlu2 %3532, %v2840_v25   ;;  %v2421_v11 = vrot.slane %v6520_v51, 7  ;;  %2372 = vst [vmem:[#allocation1] ss:$2 sm:$0xff] %v8988_v22  ;;  %v9205_v18 = vrot.slane %v5803_v55, 7  ;;  %v9216_v31 = vrot.slane %v6050_v53, 1 }
 0x3a5   :  { %v2418_v35 = vsel %vm9185_vm0, %v9184_v46, %v2417_v63  ;;  %vm2270_vm14 = vcmp.ne.s32.totalorder %v2235_v30, 0  ;;  %vm1551_vm10 = vcmp.eq.s32.totalorder %v1528_v36, 1  ;;  %vm9188_vm11 = vmand %vm6377_vm6, %vm6365_vm2  ;;  %vm9195_vm6 = vcmp.lt.s32.totalorder %v8918_v15, 60  ;;  %2875 = vperm.xlu1 %3531, %v2841_v13   ;;  %2373 = vst [vmem:[#allocation1 + $0x1] ss:$2 sm:$0xff] %v9085_v32 }
 0x3a6   :  { %vm2456_vm7 = vcmp.ne.s32.totalorder %v2418_v35, 0  ;;  %v6557_v46 = vsel %vm1551_vm10, 1, %v8773_v48  ;;  %vm9191_vm12 = vmmov %vm9185_vm0  ;;  %v1604_v35 = vrot.slane %v6554_v3, 7 }
 0x3a7   :  { %vm2479_vm4 = vmand %vm9188_vm11, %vm2456_vm7  ;;  %v1393_v36 = vsel %vm9191_vm12, %v9190_v8, %v9189_v45  ;;  %v1606_v25 = vrot.slane %v6557_v46, 7  ;;  %v9199_v45 = vrot.slane %v9058_v9, 7  ;;  %v9200_v8 = vrot.slane %v9129_v38, 7  ;;  %v9204_v9 = vld [vmem:[#allocation72_spill] sm:$0xff] }
 0x3a8   :  { %vm9194_vm2 = vmmov %vm9185_vm0  ;;  %v1432_v4 = vsub.s32 %v9038_v56, %v1393_v36  ;;  %v9206_v36 = vrot.slane %v5788_v24, 7 }
 0x3a9   :  { %v1599_v41 = vsel %vm9194_vm2, %v9193_v17, %v9192_v28  ;;  %vm2525_vm5 = vmand %vm2479_vm4, %vm9195_vm6  ;;  %v1765_v28 = vsel %vm9185_vm0, %v9200_v8, %v9199_v45  ;;  %vm2505_vm2 = vcmp.lt.s32.totalorder %v9175_v50, 60  ;;  %v9215_v45 = vrot.slane %v6449_v5, 1  ;;  %v9218_v8 = vld [vmem:[#allocation153_spill] sm:$0xff]  ;;  %v9228_v50 = vld [vmem:[#allocation70_spill] sm:$0xff] }
 0x3aa   :  { %vm9196_vm15 = vmmov %vm9185_vm0  ;;  %v2843_v57 = vsel %vm2525_vm5, 1, %v8773_v48  ;;  %vm1638_vm3 = vcmp.ne.s32.totalorder %v1599_v41, 0  ;;  %vm1455_vm10 = vcmp.eq.s32.totalorder %v1432_v4, 1  ;;  %v1804_v38 = vsub.s32 %v9204_v9, %v1765_v28  ;;  %v6621_v4 = vld.sshfl [vmem:[#allocation1 + $0x30] sm:$0xff pattern:$0x75316420] }
 0x3ab   :  { %v2424_v6 = vsel %vm9196_vm15, %v2421_v11, %v2423_v43  ;;  %2881 = vperm.xlu0 %3533, %v2843_v57   ;;  %vm9201_vm7 = vmmov %vm9185_vm0  ;;  %v9211_v41 = vrot.slane %v6346_v7, 7  ;;  %v1396_v57 = vrot.slane %v6050_v53, 7  ;;  %2378 = vst [vmem:[#allocation1 + $0x30] ss:$2 sm:$0xff] %v9154_v47  ;;  %v1768_v28 = vrot.slane %v9218_v8, 7 }
 0x3ac   :  { %v1607_v56 = vsel %vm9201_vm7, %v1604_v35, %v1606_v25  ;;  %vm6600_vm9 = vmor %vm6541_vm1, %vm2270_vm14  ;;  %vm2459_vm12 = vcmp.ne.s32.totalorder %v2424_v6, 0  ;;  %vm6625_vm5 = vcmp.eq.s32.totalorder %v1804_v38, 1  ;;  %2379 = vst [vmem:[#allocation1 + $0x31] ss:$2 sm:$0xff] %v8963_v23  ;;  %v9220_v47 = vrot.slane %v9039_v44, 7 }
 0x3ad   :  { %vm9207_vm11 = vmmov %vm9185_vm0  ;;  %vm1642_vm4 = vcmp.ne.s32.totalorder %v1607_v56, 0  ;;  %v9219_v56 = vld [vmem:[#allocation76_spill] sm:$0xff]  ;;  %v9226_v44 = vrot.slane %v5983_v40, 7  ;;  %v6679_v24 = vld.sshfl [vmem:[#allocation1] sm:$0xff pattern:$0x75316420] }
 0x3ae   :  { %v2227_v17 = vsel %vm9207_vm11, %v9206_v36, %v9205_v18  ;;  %vm6612_vm6 = vmor %vm1455_vm10, %vm1638_vm3  ;;  %vm9217_vm3 = vcmask 1046528   ;;  %v2230_v38 = vrot.slane %v9219_v56, 7  ;;  %v2419_v18 = vrot.slane %v6533_v54, 7  ;;  %2384 = vst [vmem:[#allocation1] ss:$2 sm:$0xff] %v9050_v62 }
 0x3af   :  { %vm9212_vm1 = vmmov %vm9185_vm0  ;;  %vm2266_vm15 = vcmp.ne.s32.totalorder %v2227_v17, 0  ;;  %v1491_v7 = vsel %vm9217_vm3, %v9216_v31, %v9215_v45  ;;  %vm2501_vm10 = vcmp.lt.s32.totalorder %v9204_v9, 60  ;;  %v9222_v36 = vrot.slane %v6449_v5, 7  ;;  %v6663_v31 = vld.sshfl [vmem:[#allocation1 + $0x20] sm:$0xff pattern:$0x75316420] }
 0x3b0   :  { %v2416_v55 = vsel %vm9212_vm1, %v9211_v41, %v9210_v39  ;;  %vm1665_vm14 = vmor %vm6582_vm8, %vm1642_vm4  ;;  %v1526_v15 = vsub.s32 %v6050_v53, %v1491_v7  ;;  %v6651_v41 = vld.sshfl [vmem:[#allocation1 + $0x10] sm:$0xff pattern:$0x75316420]  ;;  %v9224_v54 = vrot.slane %v9059_v16, 7  ;;  %vm2503_vm3 = vcmp.lt.s32.totalorder %v9228_v50, 60 }
 0x3b1   :  { %vm2316_vm0 = vmand %vm1665_vm14, %vm6600_vm9  ;;  %vm2455_vm7 = vcmp.ne.s32.totalorder %v2416_v55, 0  ;;  %2386 = vst [vmem:[#allocation1 + $0x10] ss:$2 sm:$0xff] %v9057_v58 }
 0x3b2   :  { %vm2482_vm8 = vmand %vm2316_vm0, %vm2459_vm12  ;;  %2387 = vst [vmem:[#allocation1 + $0x11] ss:$2 sm:$0xff] %v9060_v21  ;;  %v9232_v21 = vrot.slane %v9167_v33, 7  ;;  %v9239_v33 = vrot.slane %v5876_v34, 7 }
 0x3b3   :  { %vm9221_vm11 = vmmov %vm9212_vm1  ;;  %2385 = vst [vmem:[#allocation1 + $0x1] ss:$2 sm:$0xff] %v9055_v14  ;;  %v6721_v14 = vadd.s32 96, %v8919_v60 }
 0x3b4   :  { %v1397_v13 = vsel %vm9221_vm11, %v9220_v47, %v1396_v57  ;;  %vm9223_vm9 = vmmov %vm9212_vm1  ;;  %vm1549_vm1 = vcmp.eq.s32.totalorder %v1526_v15, 1  ;;  %v9234_v15 = vld [vmem:[#allocation107_spill] sm:$0xff]  ;;  %2388 = vst [vmem:[#allocation1 + $0x20] ss:$2 sm:$0xff] %v9117_v42  ;;  %v9246_v42 = vld [vmem:[#allocation5_spill] sm:$0xff] }
 0x3b5   :  { %v1399_v39 = vsel %vm9223_vm9, %v1396_v57, %v9222_v36  ;;  %vm2528_vm4 = vmand %vm2482_vm8, %vm2505_vm2  ;;  %v1434_v23 = vsub.s32 %v6050_v53, %v1397_v13  ;;  %v1572_v53 = vsel %vm1549_vm1, 1, %v8773_v48  ;;  %2389 = vst [vmem:[#allocation1 + $0x21] ss:$2 sm:$0xff] %v9125_v12  ;;  %v1774_v56 = vrot.slane %v9246_v42, 7 }
 0x3b6   :  { %vm9225_vm12 = vmmov %vm9223_vm9  ;;  %v2846_v57 = vsel %vm2528_vm4, 1, %v8773_v48  ;;  %v1602_v40 = vrot.slane %v1572_v53, 7  ;;  %v1435_v17 = vsub.s32 %v6449_v5, %v1399_v39  ;;  %vm2504_vm4 = vcmp.lt.s32.totalorder %v9234_v15, 60  ;;  %v9235_v5 = vld [vmem:[#allocation78_spill] sm:$0xff] }
 0x3b7   :  { %v1769_v6 = vsel %vm9225_vm12, %v9224_v54, %v1768_v28  ;;  %vm9227_vm14 = vmmov %vm9223_vm9  ;;  %2890 = vperm.xlu0 %3533, %v2846_v57   ;;  %v9236_v0 = vrot.slane %v9235_v5, 7  ;;  %v2425_v13 = vrot.slane %v6621_v4, 7  ;;  %v9250_v12 = vrot.slane %v6452_v61, 7  ;;  %v9266_v5 = vld [vmem:[#allocation163_spill] sm:$0xff]  ;;  %v9306_v4 = vld [vmem:[#allocation25_spill] sm:$0xff] }
 0x3b8   :  { %v2231_v45 = vsel %vm9227_vm14, %v9226_v44, %v2230_v38  ;;  %vm2289_vm2 = vmor %vm6625_vm5, %vm2266_vm15  ;;  %v1806_v16 = vsub.s32 %v9228_v50, %v1769_v6  ;;  %vm6682_vm15 = vcmp.eq.s32.totalorder %v1434_v23, 1  ;;  %v6742_v36 = vadd.s32 104, %v8919_v60  ;;  %v6757_v44 = vld.sshfl [vmem:[#allocation1 + $0x30] sm:$0xff pattern:$0x75316420]  ;;  %v9260_v50 = vld [vmem:[#allocation130_spill] sm:$0xff] }
 0x3b9   :  { %vm2312_vm0 = vmand %vm6612_vm6, %vm2289_vm2  ;;  %vm2268_vm8 = vcmp.ne.s32.totalorder %v2231_v45, 0  ;;  %v9252_v23 = vrot.slane %v9168_v49, 7  ;;  %v9254_v61 = vrot.slane %v5906_v26, 7  ;;  %v9258_v49 = vrot.slane %v6457_v10, 1  ;;  %2390 = vst [vmem:[#allocation1 + $0x30] ss:$2 sm:$0xff] %v8985_v37 }
 0x3ba   :  { %vm9229_vm11 = vmmov %vm9223_vm9  ;;  %vm1829_vm9 = vcmp.eq.s32.totalorder %v1806_v16, 1  ;;  %v1406_v7 = vrot.slane %v6742_v36, 7  ;;  %2391 = vst [vmem:[#allocation1 + $0x31] ss:$2 sm:$0xff] %v8988_v22  ;;  %v9282_v37 = vld [vmem:[#allocation124_spill] sm:$0xff] }
 0x3bb   :  { %v2420_v58 = vsel %vm9229_vm11, %v2417_v63, %v2419_v18  ;;  %vm2478_vm5 = vmand %vm2312_vm0, %vm2455_vm7 }
 0x3bc   :  { %vm9233_vm6 = vmmov %vm9229_vm11  ;;  %vm2457_vm0 = vcmp.ne.s32.totalorder %v2420_v58, 0  ;;  %vm6710_vm11 = vcmp.eq.s32.totalorder %v1435_v17, 1  ;;  %v1404_v17 = vrot.slane %v6721_v14, 7 }
 0x3bd   :  { %v1771_v30 = vsel %vm9233_vm6, %v1768_v28, %v9232_v21  ;;  %vm2524_vm1 = vmand %vm2478_vm5, %vm2501_vm10  ;;  %v1498_v21 = vrot.slane %v6742_v36, 1 }
 0x3be   :  { %vm9237_vm12 = vmmov %vm9233_vm6  ;;  %v1807_v8 = vsub.s32 %v9234_v15, %v1771_v30  ;;  %v2842_v62 = vsel %vm2524_vm1, 1, %v8773_v48  ;;  %v1500_v30 = vrot.slane %v6787_v27, 1 }
 0x3bf   :  { %v1603_v63 = vsel %vm9237_vm12, %v9236_v0, %v1602_v40  ;;  %vm9238_vm7 = vmmov %vm9233_vm6  ;;  %2878 = vperm.xlu2 %3532, %v2842_v62   ;;  %v1776_v0 = vrot.slane %v9266_v5, 7 }
 0x3c0   :  { %v1605_v55 = vsel %vm9238_vm7, %v1602_v40, %v1604_v35  ;;  %vm9240_vm14 = vmmov %vm9233_vm6  ;;  %vm1640_vm2 = vcmp.ne.s32.totalorder %v1603_v63, 0  ;;  %v1402_v35 = vrot.slane %v6457_v10, 7  ;;  %vm6731_vm12 = vcmp.eq.s32.totalorder %v1807_v8, 1  ;;  %v9267_v63 = vld [vmem:[#allocation120_spill] sm:$0xff] }
 0x3c1   :  { %v2233_v28 = vsel %vm9240_vm14, %v2230_v38, %v9239_v33  ;;  %vm6706_vm10 = vmor %vm1829_vm9, %vm2268_vm8  ;;  %vm1641_vm6 = vcmp.ne.s32.totalorder %v1605_v55, 0  ;;  %v9247_v38 = vld [vmem:[#allocation21_spill] sm:$0xff]  ;;  %v1778_v55 = vrot.slane %v9267_v63, 7  ;;  %v6868_v40 = vadd.s32 120, %v8919_v60 }
 0x3c2   :  { %vm1663_vm5 = vmor %vm6682_vm15, %vm1640_vm2  ;;  %vm2269_vm9 = vcmp.ne.s32.totalorder %v2233_v28, 0  ;;  %v2236_v47 = vrot.slane %v9247_v38, 7  ;;  %v9269_v28 = vld [vmem:[#allocation4_spill] sm:$0xff]  ;;  %v9283_v63 = vld [vmem:[#allocation57_spill] sm:$0xff] }
 0x3c3   :  { %vm9245_vm1 = vmmov %vm9238_vm7  ;;  %v2238_v62 = vrot.slane %v9269_v28, 7  ;;  %v9308_v28 = vld [vmem:[#allocation65_spill] sm:$0xff] }
 0x3c4   :  { %v2422_v34 = vsel %vm9245_vm1, %v2419_v18, %v2421_v11  ;;  %vm2314_vm8 = vmand %vm1663_vm5, %vm6706_vm10  ;;  %v1496_v18 = vrot.slane %v6721_v14, 1  ;;  %vm9259_vm5 = vcmask 1046528  }
 0x3c5   :  { %vm2480_vm15 = vmand %vm2314_vm8, %vm2457_vm0  ;;  %vm2458_vm2 = vcmp.ne.s32.totalorder %v2422_v34, 0 }
 0x3c6   :  { %vm9251_vm7 = vmmov %vm9245_vm1  ;;  %v1497_v53 = vsel %vm9259_vm5, %v9258_v49, %v1496_v18 }
 0x3c7   :  { %v1403_v11 = vsel %vm9251_vm7, %v9250_v12, %v1402_v35  ;;  %vm2526_vm14 = vmand %vm2480_vm15, %vm2503_vm3  ;;  %v1529_v58 = vsub.s32 %v6457_v10, %v1497_v53  ;;  %vm2506_vm15 = vcmp.lt.s32.totalorder %v9260_v50, 60 }
 0x3c8   :  { %v1437_v39 = vsub.s32 %v6457_v10, %v1403_v11  ;;  %vm9253_vm10 = vmmov %vm9245_vm1  ;;  %v2844_v45 = vsel %vm2526_vm14, 1, %v8773_v48 }
 0x3c9   :  { %v1775_v54 = vsel %vm9253_vm10, %v9252_v23, %v1774_v56  ;;  %vm9255_vm0 = vmmov %vm9245_vm1  ;;  %2884 = vperm.xlu1 %3531, %v2844_v45  }
 0x3ca   :  { %v2237_v6 = vsel %vm9255_vm0, %v9254_v61, %v2236_v47  ;;  %vm6763_vm3 = vmor %vm6710_vm11, %vm1641_vm6  ;;  %v1809_v16 = vsub.s32 %v9260_v50, %v1775_v54  ;;  %vm6780_vm6 = vcmp.eq.s32.totalorder %v1437_v39, 1  ;;  %v1407_v22 = vsel %vm9255_vm0, %v1404_v17, %v1406_v7  ;;  %v6843_v61 = vpop.permute.xlu1 %1095 }
 0x3cb   :  { %vm9261_vm1 = vmmov %vm9255_vm0  ;;  %vm2271_vm8 = vcmp.ne.s32.totalorder %v2237_v6, 0  ;;  %v1439_v15 = vsub.s32 %v6742_v36, %v1407_v22  ;;  %v2427_v54 = vrot.slane %v6679_v24, 7  ;;  %v2242_v22 = vrot.slane %v9283_v63, 7 }
 0x3cc   :  { %v2426_v26 = vsel %vm9261_vm1, %v2423_v43, %v2425_v13  ;;  %vm2292_vm11 = vmor %vm6731_vm12, %vm2269_vm9  ;;  %v6789_v43 = vld.sshfl [vmem:[#allocation1] sm:$0xff pattern:$0x75316420]  ;;  %vm6793_vm14 = vcmp.eq.s32.totalorder %v1809_v16, 1  ;;  %vm1552_vm12 = vcmp.eq.s32.totalorder %v1529_v58, 1  ;;  %v2429_v16 = vrot.slane %v6651_v41, 7 }
 0x3cd   :  { %vm2315_vm7 = vmand %vm6763_vm3, %vm2292_vm11  ;;  %2396 = vst [vmem:[#allocation1] ss:$2 sm:$0xff] %v9085_v32  ;;  %v6809_v8 = vsel %vm1552_vm12, 1, %v8773_v48  ;;  %vm2460_vm11 = vcmp.ne.s32.totalorder %v2426_v26, 0  ;;  %v1408_v58 = vrot.slane %v6787_v27, 7  ;;  %v2431_v26 = vrot.slane %v6663_v31, 7 }
 0x3ce   :  { %vm2481_vm9 = vmand %vm2315_vm7, %vm2458_vm2  ;;  %2397 = vst [vmem:[#allocation1 + $0x1] ss:$2 sm:$0xff] %v9096_v29  ;;  %v1608_v32 = vrot.slane %v6809_v8, 7  ;;  %v9272_v29 = vld [vmem:[#allocation27_spill] sm:$0xff]  ;;  %v9307_v24 = vand.u32 2147483647, %v9306_v4 }
 0x3cf   :  { %vm2527_vm10 = vmand %vm2481_vm9, %vm2504_vm4  ;;  %v2240_v11 = vrot.slane %v9272_v29, 7  ;;  %v7101_v31 = vadd.s32 144, %v8919_v60 }
 0x3d0   :  { %vm9268_vm2 = vmmov %vm9259_vm5  ;;  %v2845_v9 = vsel %vm2527_vm10, 1, %v8773_v48 }
 0x3d1   :  { %v1499_v33 = vsel %vm9268_vm2, %v1496_v18, %v1498_v21  ;;  %vm9270_vm4 = vmmov %vm9268_vm2  ;;  %2887 = vperm.xlu2 %3532, %v2845_v9   ;;  %v6883_v9 = vld.sshfl [vmem:[#allocation1 + $0x10] sm:$0xff pattern:$0x75316420] }
 0x3d2   :  { %v1501_v3 = vsel %vm9270_vm4, %v1498_v21, %v1500_v30  ;;  %v1530_v34 = vsub.s32 %v6721_v14, %v1499_v33  ;;  %vm9271_vm3 = vmmov %vm9255_vm0  ;;  %v1780_v21 = vrot.slane %v9282_v37, 7  ;;  %2398 = vst [vmem:[#allocation1 + $0x10] ss:$2 sm:$0xff] %v9097_v19  ;;  %v9290_v19 = vld [vmem:[#allocation112_spill] sm:$0xff] }
 0x3d3   :  { %v1531_v51 = vsub.s32 %v6742_v36, %v1501_v3  ;;  %v1779_v12 = vsel %vm9271_vm3, %v1776_v0, %v1778_v55  ;;  %vm9273_vm5 = vmmov %vm9255_vm0  ;;  %v9276_v36 = vld [vmem:[#allocation110_spill] sm:$0xff]  ;;  %2399 = vst [vmem:[#allocation1 + $0x11] ss:$2 sm:$0xff] %v9108_v20 }
 0x3d4   :  { %v1609_v18 = vsel %vm9273_vm5, %v1606_v25, %v1608_v32  ;;  %vm6837_vm1 = vmor %vm6793_vm14, %vm2271_vm8  ;;  %v1811_v23 = vsub.s32 %v9276_v36, %v1779_v12  ;;  %vm1553_vm9 = vcmp.eq.s32.totalorder %v1530_v34, 1  ;;  %vm6850_vm14 = vcmp.eq.s32.totalorder %v1439_v15, 1 }
 0x3d5   :  { %vm1643_vm7 = vcmp.ne.s32.totalorder %v1609_v18, 0  ;;  %vm1554_vm12 = vcmp.eq.s32.totalorder %v1531_v51, 1  ;;  %vm9277_vm10 = vmmov %vm9255_vm0  ;;  %v1576_v6 = vsel %vm1553_vm9, 1, %v8773_v48  ;;  %v1502_v51 = vrot.slane %v6868_v40, 1 }
 0x3d6   :  { %v2241_v46 = vsel %vm9277_vm10, %v2238_v62, %v2240_v11  ;;  %vm1666_vm8 = vmor %vm6780_vm6, %vm1643_vm7  ;;  %v6856_v45 = vsel %vm1554_vm12, 1, %v8773_v48  ;;  %vm6858_vm0 = vcmp.eq.s32.totalorder %v1811_v23, 1  ;;  %v1610_v49 = vrot.slane %v1576_v6, 7  ;;  %v6955_v6 = vld.sshfl [vmem:[#allocation1 + $0x30] sm:$0xff pattern:$0x75316420] }
 0x3d7   :  { %vm2317_vm2 = vmand %vm1666_vm8, %vm6837_vm1  ;;  %v1612_v53 = vrot.slane %v6856_v45, 7  ;;  %vm2273_vm6 = vcmp.ne.s32.totalorder %v2241_v46, 0  ;;  %v9300_v46 = vld [vmem:[#allocation108_spill] sm:$0xff]  ;;  %3008 = vst [vmem:[#allocation1 + $0x30] ss:$2 sm:$0xff] %v9307_v24 }
 0x3d8   :  { %vm2483_vm4 = vmand %vm2317_vm2, %vm2460_vm11  ;;  %vm2508_vm11 = vcmp.lt.s32.totalorder %v9276_v36, 60  ;;  %3010 = vst [vmem:[#allocation1 + $0x31] ss:$2 sm:$0xff] %v9308_v28 }
 0x3d9   :  { %vm2529_vm3 = vmand %vm2483_vm4, %vm2506_vm15  ;;  %v1613_v33 = vsel %vm9273_vm5, %v1610_v49, %v1612_v53 }
 0x3da   :  { %vm9284_vm1 = vmmov %vm9273_vm5  ;;  %v2847_v15 = vsel %vm2529_vm3, 1, %v8773_v48  ;;  %vm1645_vm7 = vcmp.ne.s32.totalorder %v1613_v33, 0  ;;  %v9312_v33 = vld [vmem:[#allocation38_spill] sm:$0xff] }
 0x3db   :  { %v2430_v41 = vsel %vm9284_vm1, %v2427_v54, %v2429_v16  ;;  %vm6889_vm15 = vmor %vm6858_vm0, %vm2273_vm6  ;;  %2893 = vperm.xlu1 %3531, %v2847_v15  }
 0x3dc   :  { %vm2462_vm9 = vcmp.ne.s32.totalorder %v2430_v41, 0  ;;  %vm9287_vm12 = vmmov %vm9284_vm1  ;;  %v2246_v41 = vrot.slane %v9312_v33, 7 }
 0x3dd   :  { %v1409_v3 = vsel %vm9287_vm12, %v1406_v7, %v1408_v58  ;;  %vm1668_vm10 = vmor %vm6850_vm14, %vm1645_vm7  ;;  %vm2509_vm12 = vcmp.lt.s32.totalorder %v9290_v19, 60 }
 0x3de   :  { %v1440_v34 = vsub.s32 %v6787_v27, %v1409_v3  ;;  %vm9288_vm8 = vmmov %vm9284_vm1 }
 0x3df   :  { %v1781_v12 = vsel %vm9288_vm8, %v1778_v55, %v1780_v21  ;;  %vm9289_vm0 = vmmov %vm9284_vm1  ;;  %vm9295_vm1 = vcmask 1046528  }
 0x3e0   :  { %v2243_v29 = vsel %vm9289_vm0, %v2240_v11, %v2242_v22  ;;  %vm2319_vm2 = vmand %vm1668_vm10, %vm6889_vm15  ;;  %v1812_v7 = vsub.s32 %v9290_v19, %v1781_v12  ;;  %v6921_v11 = vpop.permute.xlu1 %1101  ;;  %vm6924_vm5 = vcmp.eq.s32.totalorder %v1440_v34, 1  ;;  %v1503_v39 = vsel %vm9295_vm1, %v1500_v30, %v1502_v51  ;;  %v6951_v30 = vld.sshfl [vmem:[#allocation1 + $0x20] sm:$0xff pattern:$0x75316420] }
 0x3e1   :  { %vm2274_vm14 = vcmp.ne.s32.totalorder %v2243_v29, 0  ;;  %vm9291_vm6 = vmmov %vm9289_vm0  ;;  %vm2507_vm1 = vcmp.lt.s32.totalorder %v9300_v46, 60  ;;  %2400 = vst [vmem:[#allocation1 + $0x20] ss:$2 sm:$0xff] %v9151_v2  ;;  %v6987_v2 = vadd.s32 128, %v8919_v60 }
 0x3e2   :  { %v6914_v18 = vsel %vm9291_vm6, %v2429_v16, %v2431_v26  ;;  %vm9292_vm4 = vmmov %vm9289_vm0 }
 0x3e3   :  { %v1405_v55 = vsel %vm9292_vm4, %v1402_v35, %v1404_v17  ;;  %vm2485_vm3 = vmand %vm2319_vm2, %vm2462_vm9  ;;  %vm2463_vm7 = vcmp.ne.s32.totalorder %v6914_v18, 0  ;;  %v1532_v35 = vsub.s32 %v6787_v27, %v1503_v39  ;;  %vm6938_vm9 = vcmp.eq.s32.totalorder %v1812_v7, 1  ;;  %v9319_v17 = vld [vmem:[#allocation7_spill] sm:$0xff] }
 0x3e4   :  { %v1438_v10 = vsub.s32 %v6721_v14, %v1405_v55  ;;  %vm2531_vm15 = vmand %vm2485_vm3, %vm2508_vm11  ;;  %v2239_v42 = vsel %vm9292_vm4, %v2236_v47, %v2238_v62  ;;  %v9309_v62 = vld [vmem:[#allocation64_spill] sm:$0xff]  ;;  %v1412_v50 = vrot.slane %v6987_v2, 7  ;;  %v1504_v3 = vrot.slane %v6987_v2, 1 }
 0x3e5   :  { %vm9298_vm10 = vmmov %vm9289_vm0  ;;  %v2849_v36 = vsel %vm2531_vm15, 1, %v8773_v48  ;;  %vm1555_vm2 = vcmp.eq.s32.totalorder %v1532_v35, 1  ;;  %v9318_v35 = vld [vmem:[#allocation15_spill] sm:$0xff] }
 0x3e6   :  { %v1611_v23 = vsel %vm9298_vm10, %v1608_v32, %v1610_v49  ;;  %vm9299_vm8 = vmmov %vm9289_vm0  ;;  %vm1461_vm11 = vcmp.eq.s32.totalorder %v1438_v10, 1  ;;  %2899 = vperm.xlu0 %3533, %v2849_v36   ;;  %v6974_v5 = vsel %vm1555_vm2, 1, %v8773_v48  ;;  %v1782_v32 = vrot.slane %v9309_v62, 7  ;;  %v9311_v49 = vld [vmem:[#allocation77_spill] sm:$0xff]  ;;  %v9321_v36 = vld [vmem:[#allocation111_spill] sm:$0xff] }
 0x3e7   :  { %v1777_v14 = vsel %vm9299_vm8, %v1774_v56, %v1776_v0  ;;  %vm1644_vm0 = vcmp.ne.s32.totalorder %v1611_v23, 0  ;;  %vm9303_vm3 = vmmov %vm9292_vm4  ;;  %vm2272_vm8 = vcmp.ne.s32.totalorder %v2239_v42, 0  ;;  %v1614_v47 = vrot.slane %v6974_v5, 7 }
 0x3e8   :  { %v1810_v25 = vsub.s32 %v9300_v46, %v1777_v14  ;;  %vm6957_vm6 = vmor %vm1461_vm11, %vm1644_vm0  ;;  %v2428_v56 = vsel %vm9303_vm3, %v2425_v13, %v2427_v54  ;;  %v6990_v13 = vadd.s32 136, %v8919_v60  ;;  %v1410_v0 = vrot.slane %v6868_v40, 7  ;;  %v9310_v54 = vld [vmem:[#allocation173_spill] sm:$0xff]  ;;  %v7006_v12 = vpop.permute.xlu1 %1107 }
 0x3e9   :  { %vm6979_vm15 = vmor %vm6938_vm9, %vm2274_vm14  ;;  %vm2461_vm11 = vcmp.ne.s32.totalorder %v2428_v56, 0  ;;  %v1784_v57 = vrot.slane %v9310_v54, 7  ;;  %v2244_v16 = vrot.slane %v9311_v49, 7  ;;  %v2435_v42 = vrot.slane %v6789_v43, 7 }
 0x3ea   :  { %vm1833_vm10 = vcmp.eq.s32.totalorder %v1810_v25, 1  ;;  %vm9313_vm9 = vmmov %vm9303_vm3  ;;  %v1506_v34 = vrot.slane %v6990_v13, 1 }
 0x3eb   :  { %vm2295_vm0 = vmor %vm1833_vm10, %vm2272_vm8  ;;  %v1615_v15 = vsel %vm9313_vm9, %v1612_v53, %v1614_v47  ;;  %v1785_v29 = vsel %vm9303_vm3, %v1782_v32, %v1784_v57  ;;  %v2433_v53 = vrot.slane %v6757_v44, 7  ;;  %v9320_v44 = vsub.f32 %v9318_v35, %v9319_v17 }
 0x3ec   :  { %vm2318_vm14 = vmand %vm6957_vm6, %vm2295_vm0  ;;  %vm1646_vm6 = vcmp.ne.s32.totalorder %v1615_v15, 0  ;;  %v1814_v46 = vsub.s32 %v9321_v36, %v1785_v29  ;;  %v9339_v15 = vld [vmem:[#allocation160_spill] sm:$0xff]  ;;  %v1508_v17 = vrot.slane %v7101_v31, 1 }
 0x3ed   :  { %vm2484_vm2 = vmand %vm2318_vm14, %vm2461_vm11  ;;  %v7032_v23 = vand.u32 2147483647, %v9320_v44 }
 0x3ee   :  { %vm2530_vm4 = vmand %vm2484_vm2, %vm2507_vm1  ;;  %vm9316_vm1 = vcmask 1046528  }
 0x3ef   :  { %vm9314_vm10 = vmmov %vm9303_vm3  ;;  %v2848_v7 = vsel %vm2530_vm4, 1, %v8773_v48  ;;  %v1505_v39 = vsel %vm9316_vm1, %v1502_v51, %v1504_v3  ;;  %v9322_v51 = vld [vmem:[#allocation145_spill] sm:$0xff]  ;;  %vm7049_vm4 = vcmp.eq.s32.totalorder %v1814_v46, 1 }
 0x3f0   :  { %v2247_v45 = vsel %vm9314_vm10, %v2244_v16, %v2246_v41  ;;  %vm1669_vm8 = vmor %vm6924_vm5, %vm1646_vm6  ;;  %2896 = vperm.xlu2 %3532, %v2848_v7   ;;  %v1533_v20 = vsub.s32 %v6868_v40, %v1505_v39  ;;  %v2654_v25 = vrot.slane %v9322_v51, 5  ;;  %v7072_v62 = vpop.permute.xlu1 %1113  ;;  %v9345_v7 = vld [vmem:[#allocation136_spill] sm:$0xff]  ;;  %v2437_v39 = vrot.slane %v6883_v9, 7 }
 0x3f1   :  { %vm9315_vm11 = vmmov %vm9303_vm3 }
 0x3f2   :  { %v1413_v55 = vsel %vm9315_vm11, %v1410_v0, %v1412_v50  ;;  %vm9317_vm0 = vmmov %vm9316_vm1  ;;  %vm1556_vm2 = vcmp.eq.s32.totalorder %v1533_v20, 1  ;;  %v7130_v20 = vadd.s32 160, %v8919_v60 }
 0x3f3   :  { %v1507_v10 = vsel %vm9317_vm0, %v1504_v3, %v1506_v34  ;;  %vm2320_vm5 = vmand %vm1669_vm8, %vm6979_vm15  ;;  %v1442_v8 = vsub.s32 %v6987_v2, %v1413_v55  ;;  %v1579_v38 = vsel %vm1556_vm2, 1, %v8773_v48  ;;  %v9340_v3 = vand.u32 2147483647, %v9339_v15  ;;  %v9363_v15 = vld [vmem:[#allocation14_spill] sm:$0xff] }
 0x3f4   :  { %v1534_v14 = vsub.s32 %v6987_v2, %v1507_v10  ;;  %vm2486_vm14 = vmand %vm2320_vm5, %vm2463_vm7  ;;  %v2248_v55 = vrot.slane %v9345_v7, 7  ;;  %v7115_v10 = vadd.s32 152, %v8919_v60  ;;  %v9347_v2 = vld [vmem:[#allocation113_spill] sm:$0xff]  ;;  %v1512_v24 = vrot.slane %v7130_v20, 1  ;;  %v9387_v7 = vld [vmem:[#allocation162_spill] sm:$0xff] }
 0x3f5   :  { %vm9323_vm9 = vmmov %vm9303_vm3  ;;  %vm2276_vm3 = vcmp.ne.s32.totalorder %v2247_v45, 0  ;;  %vm7062_vm10 = vcmp.eq.s32.totalorder %v1442_v8, 1  ;;  %v9342_v45 = vld [vmem:[#allocation61_spill] sm:$0xff] }
 0x3f6   :  { %v1411_v56 = vsel %vm9323_vm9, %v1408_v58, %v1410_v0  ;;  %vm2532_vm15 = vmand %vm2486_vm14, %vm2509_vm12  ;;  %vm1557_vm6 = vcmp.eq.s32.totalorder %v1534_v14, 1  ;;  %v1616_v58 = vrot.slane %v1579_v38, 7  ;;  %vm2511_vm12 = vcmp.lt.s32.totalorder %v9321_v36, 60  ;;  %v7132_v14 = vld.sshfl [vmem:[#allocation1 + $0x20] sm:$0xff pattern:$0x75316420] }
 0x3f7   :  { %v2850_v18 = vsel %vm2532_vm15, 1, %v8773_v48  ;;  %v7056_v43 = vsel %vm1557_vm6, 1, %v8773_v48  ;;  %vm9326_vm7 = vmmov %vm9323_vm9  ;;  %v1441_v4 = vsub.s32 %v6868_v40, %v1411_v56  ;;  %v7149_v56 = vld.sshfl [vmem:[#allocation1] sm:$0xff pattern:$0x75316420]  ;;  %v9361_v40 = vld [vmem:[#allocation179_spill] sm:$0xff] }
 0x3f8   :  { %v2436_v27 = vsel %vm9326_vm7, %v2433_v53, %v2435_v42  ;;  %2902 = vperm.xlu1 %3531, %v2850_v18   ;;  %v1618_v19 = vrot.slane %v7056_v43, 7  ;;  %vm9329_vm11 = vmmov %vm9326_vm7  ;;  %v2441_v38 = vrot.slane %v6955_v6, 7 }
 0x3f9   :  { %vm2465_vm8 = vcmp.ne.s32.totalorder %v2436_v27, 0  ;;  %v1783_v0 = vsel %vm9329_vm11, %v1780_v21, %v1782_v32  ;;  %vm9330_vm1 = vmmov %vm9326_vm7  ;;  %v9335_v21 = vld [vmem:[#allocation134_spill] sm:$0xff]  ;;  %vm7091_vm2 = vcmp.eq.s32.totalorder %v1441_v4, 1  ;;  %v1510_v4 = vrot.slane %v7115_v10, 1 }
 0x3fa   :  { %v2245_v28 = vsel %vm9330_vm1, %v2242_v22, %v2244_v16  ;;  %vm9331_vm0 = vmmov %vm9330_vm1  ;;  %v1813_v32 = vsub.s32 %v9335_v21, %v1783_v0  ;;  %v7089_v22 = vld.sshfl [vmem:[#allocation1 + $0x10] sm:$0xff pattern:$0x75316420]  ;;  %v9358_v27 = vld [vmem:[#allocation170_spill] sm:$0xff] }
 0x3fb   :  { %v1619_v49 = vsel %vm9331_vm0, %v1616_v58, %v1618_v19  ;;  %vm7080_vm5 = vmor %vm7049_vm4, %vm2276_vm3  ;;  %vm2510_vm4 = vcmp.lt.s32.totalorder %v9335_v21, 60  ;;  %3000 = vst [vmem:[#allocation1 + $0x10] ss:$2 sm:$0xff] %v9340_v3  ;;  %vm2275_vm7 = vcmp.ne.s32.totalorder %v2245_v28, 0  ;;  %v9359_v0 = vld [vmem:[#allocation172_spill] sm:$0xff]  ;;  %v2252_v3 = vrot.slane %v9363_v15, 7 }
 0x3fc   :  { %vm9334_vm14 = vmmov %vm9331_vm0  ;;  %vm1648_vm15 = vcmp.ne.s32.totalorder %v1619_v49, 0  ;;  %3002 = vst [vmem:[#allocation1 + $0x11] ss:$2 sm:$0xff] %v9342_v45  ;;  %vm7108_vm1 = vcmp.eq.s32.totalorder %v1813_v32, 1  ;;  %v1788_v28 = vrot.slane %v9359_v0, 7  ;;  %v9360_v49 = vld [vmem:[#allocation45_spill] sm:$0xff]  ;;  %v7187_v45 = vpop.permute.xlu1 %1119 }
 0x3fd   :  { %v1617_v37 = vsel %vm9334_vm14, %v1614_v47, %v1616_v58  ;;  %vm9336_vm9 = vmmov %vm9331_vm0  ;;  %v9341_v47 = vld [vmem:[#allocation127_spill] sm:$0xff]  ;;  %2996 = vst [vmem:[#allocation1] ss:$2 sm:$0xff] %v9358_v27  ;;  %v1418_v58 = vrot.slane %v7115_v10, 7  ;;  %v9362_v32 = vld [vmem:[#allocation54_spill] sm:$0xff]  ;;  %v2439_v27 = vrot.slane %v6951_v30, 7 }
 0x3fe   :  { %v2434_v63 = vsel %vm9336_vm9, %v2431_v26, %v2433_v53  ;;  %vm1647_vm6 = vcmp.ne.s32.totalorder %v1617_v37, 0  ;;  %vm1671_vm3 = vmor %vm7062_vm10, %vm1648_vm15  ;;  %v1414_v26 = vrot.slane %v6990_v13, 7  ;;  %v1786_v29 = vrot.slane %v9341_v47, 7  ;;  %2998 = vst [vmem:[#allocation1 + $0x1] ss:$2 sm:$0xff] %v9360_v49  ;;  %v9399_v0 = vld [vmem:[#allocation139_spill] sm:$0xff] }
 0x3ff   :  { %vm2322_vm11 = vmand %vm1671_vm3, %vm7080_vm5  ;;  %vm2464_vm14 = vcmp.ne.s32.totalorder %v2434_v63, 0  ;;  %vm9354_vm3 = vcmask 1046528   ;;  %v1790_v37 = vrot.slane %v9361_v40, 7  ;;  %v2250_v16 = vrot.slane %v9362_v32, 7  ;;  %v9436_v40 = vld [vmem:[#allocation123_spill] sm:$0xff] }
 0x400   :  { %vm2488_vm10 = vmand %vm2322_vm11, %vm2465_vm8  ;;  %v1415_v35 = vsel %vm9331_vm0, %v1412_v50, %v1414_v26 }
 0x401   :  { %vm9346_vm5 = vmmov %vm9331_vm0  ;;  %v1443_v33 = vsub.s32 %v6990_v13, %v1415_v35 }
 0x402   :  { %v1787_v44 = vsel %vm9346_vm5, %v1784_v57, %v1786_v29  ;;  %vm2534_vm8 = vmand %vm2488_vm10, %vm2511_vm12  ;;  %v9350_v57 = vld [vmem:[#allocation168_spill] sm:$0xff] }
 0x403   :  { %v1815_v46 = vsub.s32 %v9347_v2, %v1787_v44  ;;  %vm9348_vm9 = vmmov %vm9331_vm0  ;;  %v9351_v8 = vand.u32 2147483647, %v9350_v57  ;;  %v2852_v36 = vsel %vm2534_vm8, 1, %v8773_v48  ;;  %v7260_v47 = vld.sshfl [vmem:[#allocation1 + $0x10] sm:$0xff pattern:$0x75316420] }
 0x404   :  { %v2249_v50 = vsel %vm9348_vm9, %v2246_v41, %v2248_v55  ;;  %vm9349_vm15 = vmmov %vm9331_vm0  ;;  %v1509_v41 = vsel %vm9354_vm3, %v1506_v34, %v1508_v17  ;;  %2908 = vperm.xlu0 %3533, %v2852_v36   ;;  %vm2512_vm0 = vcmp.lt.s32.totalorder %v9347_v2, 60  ;;  %v1416_v34 = vrot.slane %v7101_v31, 7  ;;  %v9407_v2 = vld [vmem:[#allocation180_spill] sm:$0xff] }
 0x405   :  { %v7145_v54 = vsel %vm9349_vm15, %v2435_v42, %v2437_v39  ;;  %3004 = vst [vmem:[#allocation1 + $0x20] ss:$2 sm:$0xff] %v9351_v8  ;;  %vm7155_vm12 = vmor %vm7091_vm2, %vm1647_vm6  ;;  %vm2277_vm11 = vcmp.ne.s32.totalorder %v2249_v50, 0  ;;  %v9355_v42 = vld [vmem:[#allocation129_spill] sm:$0xff]  ;;  %v1535_v18 = vsub.s32 %v6990_v13, %v1509_v41  ;;  %vm7168_vm2 = vcmp.eq.s32.totalorder %v1815_v46, 1 }
 0x406   :  { %3006 = vst [vmem:[#allocation1 + $0x21] ss:$2 sm:$0xff] %v9355_v42  ;;  %vm2298_vm10 = vmor %vm7108_vm1, %vm2275_vm7  ;;  %vm2466_vm6 = vcmp.ne.s32.totalorder %v7145_v54, 0  ;;  %v1419_v35 = vsel %vm9348_vm9, %v1416_v34, %v1418_v58  ;;  %v9388_v54 = vand.u32 2147483647, %v9387_v7  ;;  %v9395_v42 = vld [vmem:[#allocation126_spill] sm:$0xff] }
 0x407   :  { %vm2321_vm5 = vmand %vm7155_vm12, %vm2298_vm10  ;;  %vm1558_vm1 = vcmp.eq.s32.totalorder %v1535_v18, 1  ;;  %v1445_v8 = vsub.s32 %v7115_v10, %v1419_v35  ;;  %v9404_v7 = vld [vmem:[#allocation23_spill] sm:$0xff] }
 0x408   :  { %vm2487_vm7 = vmand %vm2321_vm5, %vm2464_vm14  ;;  %v1581_v53 = vsel %vm1558_vm1, 1, %v8773_v48  ;;  %3017 = vst [vmem:[#allocation1 + $0x10] ss:$2 sm:$0xff] %v9388_v54  ;;  %v2769_v54 = vsub.f32 %v9404_v7, %v6509_v1 }
 0x409   :  { %vm2533_vm8 = vmand %vm2487_vm7, %vm2510_vm4  ;;  %v1620_v57 = vrot.slane %v1581_v53, 7  ;;  %vm1466_vm4 = vcmp.eq.s32.totalorder %v1443_v33, 1  ;;  %v9371_v33 = vld [vmem:[#allocation135_spill] sm:$0xff] }
 0x40a   :  { %vm9364_vm15 = vmmov %vm9354_vm3  ;;  %v2851_v46 = vsel %vm2533_vm8, 1, %v8773_v48  ;;  %vm7221_vm8 = vcmp.eq.s32.totalorder %v1445_v8, 1  ;;  %v1197_v8 = vadd.s32 176, %v8919_v60  ;;  %v7431_v15 = vand.u32 2147483647, %v2769_v54 }
 0x40b   :  { %v1511_v63 = vsel %vm9364_vm15, %v1508_v17, %v1510_v4  ;;  %vm9365_vm14 = vmmov %vm9354_vm3  ;;  %2905 = vperm.xlu2 %3532, %v2851_v46  }
 0x40c   :  { %v1513_v44 = vsel %vm9365_vm14, %v1510_v4, %v1512_v24  ;;  %v1536_v21 = vsub.s32 %v7101_v31, %v1511_v63  ;;  %vm9366_vm12 = vmmov %vm9348_vm9 }
 0x40d   :  { %v1537_v36 = vsub.s32 %v7115_v10, %v1513_v44  ;;  %v1791_v5 = vsel %vm9366_vm12, %v1788_v28, %v1790_v37  ;;  %vm9367_vm3 = vmmov %vm9348_vm9  ;;  %v9380_v44 = vld [vmem:[#allocation115_spill] sm:$0xff]  ;;  %v7382_v10 = vpop.permute.xlu2 %1133 }
 0x40e   :  { %v2253_v17 = vsel %vm9367_vm3, %v2250_v16, %v2252_v3  ;;  %vm9368_vm10 = vmmov %vm9367_vm3  ;;  %vm1559_vm7 = vcmp.eq.s32.totalorder %v1536_v21, 1  ;;  %v1817_v18 = vsub.s32 %v9371_v33, %v1791_v5  ;;  %v1199_v21 = vrot.slane %v8919_v60, 4 }
 0x40f   :  { %v1621_v41 = vsel %vm9368_vm10, %v1618_v19, %v1620_v57  ;;  %vm7215_vm5 = vmor %vm7168_vm2, %vm2277_vm11  ;;  %vm1560_vm9 = vcmp.eq.s32.totalorder %v1537_v36, 1  ;;  %v1582_v43 = vsel %vm1559_vm7, 1, %v8773_v48  ;;  %vm2279_vm11 = vcmp.ne.s32.totalorder %v2253_v17, 0  ;;  %v9392_v36 = vld [vmem:[#allocation48_spill] sm:$0xff]  ;;  %v9393_v17 = vld [vmem:[#allocation167_spill] sm:$0xff] }
 0x410   :  { %vm1649_vm1 = vcmp.ne.s32.totalorder %v1621_v41, 0  ;;  %v7227_v19 = vsel %vm1560_vm9, 1, %v8773_v48  ;;  %v1622_v50 = vrot.slane %v1582_v43, 7  ;;  %vm7233_vm14 = vcmp.eq.s32.totalorder %v1817_v18, 1  ;;  %vm9376_vm12 = vmmov %vm9367_vm3  ;;  %v9397_v43 = vld [vmem:[#allocation122_spill] sm:$0xff] }
 0x411   :  { %vm1672_vm15 = vmor %vm1466_vm4, %vm1649_vm1  ;;  %v1624_v30 = vrot.slane %v7227_v19, 7  ;;  %v1417_v49 = vsel %vm9376_vm12, %v1414_v26, %v1416_v34  ;;  %v1794_v5 = vrot.slane %v9392_v36, 7  ;;  %v9394_v41 = vand.u32 2147483647, %v9393_v17  ;;  %v9446_v19 = vld [vmem:[#allocation148_spill] sm:$0xff] }
 0x412   :  { %vm2323_vm2 = vmand %vm1672_vm15, %vm7215_vm5  ;;  %v1444_v35 = vsub.s32 %v7101_v31, %v1417_v49  ;;  %v1796_v18 = vrot.slane %v9395_v42, 7  ;;  %v2258_v49 = vrot.slane %v9399_v0, 7  ;;  %v7339_v17 = vld.sshfl [vmem:[#allocation1 + $0x20] sm:$0xff pattern:$0x75316420] }
 0x413   :  { %vm9377_vm4 = vmmov %vm9367_vm3  ;;  %v9410_v42 = vld [vmem:[#allocation154_spill] sm:$0xff] }
 0x414   :  { %v1789_v32 = vsel %vm9377_vm4, %v1786_v29, %v1788_v28  ;;  %vm2489_vm3 = vmand %vm2323_vm2, %vm2466_vm6  ;;  %vm2514_vm6 = vcmp.lt.s32.totalorder %v9371_v33, 60  ;;  %vm7270_vm12 = vcmp.eq.s32.totalorder %v1444_v35, 1  ;;  %v7323_v29 = vld.sshfl [vmem:[#allocation1 + $0x30] sm:$0xff pattern:$0x75316420] }
 0x415   :  { %vm9378_vm10 = vmmov %vm9377_vm4  ;;  %v1816_v46 = vsub.s32 %v9380_v44, %v1789_v32  ;;  %v2445_v32 = vrot.slane %v7089_v22, 7  ;;  %3022 = vst [vmem:[#allocation1 + $0x31] ss:$2 sm:$0xff] %v7032_v23 }
 0x416   :  { %v2442_v53 = vsel %vm9378_vm10, %v2439_v27, %v2441_v38  ;;  %vm9379_vm5 = vmmov %vm9377_vm4 }
 0x417   :  { %v1623_v63 = vsel %vm9379_vm5, %v1620_v57, %v1622_v50  ;;  %vm2535_vm7 = vmand %vm2489_vm3, %vm2512_vm0  ;;  %vm2468_vm9 = vcmp.ne.s32.totalorder %v2442_v53, 0  ;;  %vm7280_vm10 = vcmp.eq.s32.totalorder %v1816_v46, 1  ;;  %v7290_v57 = vld.sshfl [vmem:[#allocation1] sm:$0xff pattern:$0x75316420] }
 0x418   :  { %vm9381_vm1 = vmmov %vm9377_vm4  ;;  %v2853_v31 = vsel %vm2535_vm7, 1, %v8773_v48  ;;  %vm1650_vm4 = vcmp.ne.s32.totalorder %v1623_v63, 0  ;;  %3015 = vst [vmem:[#allocation1] ss:$2 sm:$0xff] %v9394_v41  ;;  %v9400_v53 = vld [vmem:[#allocation26_spill] sm:$0xff] }
 0x419   :  { %v1625_v13 = vsel %vm9381_vm1, %v1622_v50, %v1624_v30  ;;  %vm9382_vm15 = vmmov %vm9381_vm1  ;;  %2911 = vperm.xlu1 %3531, %v2853_v31   ;;  %3016 = vst [vmem:[#allocation1 + $0x1] ss:$2 sm:$0xff] %v9397_v43  ;;  %v1424_v50 = vrot.slane %v1197_v8, 7  ;;  %v2447_v31 = vrot.slane %v7132_v14, 7  ;;  %v7349_v43 = vrot.slane %v2654_v25, 4 }
 0x41a   :  { %v2251_v26 = vsel %vm9382_vm15, %v2248_v55, %v2250_v16  ;;  %vm1651_vm2 = vcmp.ne.s32.totalorder %v1625_v13, 0  ;;  %vm7266_vm0 = vmor %vm7233_vm14, %vm2279_vm11  ;;  %v7276_v55 = vpop.permute.xlu1 %1125  ;;  %v7288_v16 = vadd.s32 168, %v8919_v60  ;;  %vm9398_vm15 = vcmask 1047556   ;;  %3018 = vst [vmem:[#allocation1 + $0x11] ss:$2 sm:$0xff] %v9400_v53  ;;  %v9411_v53 = vld [vmem:[#allocation16_spill] sm:$0xff] }
 0x41b   :  { %vm1674_vm3 = vmor %vm7221_vm8, %vm1651_vm2  ;;  %vm2278_vm11 = vcmp.ne.s32.totalorder %v2251_v26, 0  ;;  %v1200_v60 = vsel %vm9398_vm15, %v1199_v21, %v1197_v8  ;;  %v9408_v21 = vand.u32 2147483647, %v9407_v2  ;;  %v2557_v26 = vrot.slane %v9322_v51, 4  ;;  %v9419_v2 = vld [vmem:[#allocation17_spill] sm:$0xff] }
 0x41c   :  { %vm9391_vm14 = vmmov %vm9381_vm1  ;;  %v1422_v9 = vrot.slane %v7288_v16, 7  ;;  %v1516_v33 = vrot.slane %v1200_v60, 1 }
 0x41d   :  { %v2440_v28 = vsel %vm9391_vm14, %v2437_v39, %v2439_v27  ;;  %vm2325_vm5 = vmand %vm1674_vm3, %vm7266_vm0  ;;  %v1514_v39 = vrot.slane %v7288_v16, 1  ;;  %v9396_v27 = vld [vmem:[#allocation28_spill] sm:$0xff]  ;;  %vm2513_vm0 = vcmp.lt.s32.totalorder %v9380_v44, 60  ;;  %3021 = vst [vmem:[#allocation1 + $0x30] ss:$2 sm:$0xff] %v9408_v21 }
 0x41e   :  { %vm2467_vm7 = vcmp.ne.s32.totalorder %v2440_v28, 0  ;;  %vm2491_vm8 = vmand %vm2325_vm5, %vm2468_vm9  ;;  %v2256_v4 = vrot.slane %v9396_v27, 7  ;;  %v1540_v41 = vsub.s32 %v1197_v8, %v1516_v33  ;;  %v9415_v8 = vld [vmem:[#allocation18_spill] sm:$0xff]  ;;  %v9420_v21 = vand.u32 2147483647, %v9419_v2 }
 0x41f   :  { %vm2537_vm1 = vmand %vm2491_vm8, %vm2514_vm6  ;;  %3020 = vst [vmem:[#allocation1 + $0x21] ss:$2 sm:$0xff] %v9415_v8 }
 0x420   :  { %v2855_v35 = vsel %vm2537_vm1, 1, %v8773_v48  ;;  %vm7315_vm9 = vmor %vm7270_vm12, %vm1650_vm4  ;;  %vm1563_vm5 = vcmp.eq.s32.totalorder %v1540_v41, 1  ;;  %v9423_v41 = vld [vmem:[#allocation10_spill] sm:$0xff] }
 0x421   :  { %vm9403_vm6 = vmmov %vm9391_vm14  ;;  %2917 = vperm.xlu0 %3533, %v2855_v35   ;;  %v9412_v35 = vand.u32 2147483647, %v9411_v53  ;;  %v1586_v46 = vsel %vm1563_vm5, 1, %v8773_v48  ;;  %v9424_v53 = vld [vmem:[#allocation47_spill] sm:$0xff] }
 0x422   :  { %v1797_v13 = vsel %vm9403_vm6, %v1794_v5, %v1796_v18  ;;  %vm2301_vm2 = vmor %vm7280_vm10, %vm2278_vm11  ;;  %vm9409_vm10 = vcmask 1046528  }
 0x423   :  { %vm9405_vm12 = vmmov %vm9403_vm6  ;;  %v1517_v34 = vsel %vm9409_vm10, %v1514_v39, %v1516_v33  ;;  %v1820_v18 = vsub.s32 %v9410_v42, %v1797_v13  ;;  %3019 = vst [vmem:[#allocation1 + $0x20] ss:$2 sm:$0xff] %v9412_v35  ;;  %v7370_v33 = vld.sshfl [vmem:[#allocation1] sm:$0xff pattern:$0x75316420]  ;;  %v7372_v13 = vpop.permute.xlu1 %1131  ;;  %v2254_v35 = vrot.slane %v9424_v53, 7 }
 0x424   :  { %v1425_v63 = vsel %vm9405_vm12, %v1422_v9, %v1424_v50  ;;  %vm9406_vm4 = vmmov %vm9403_vm6  ;;  %v1539_v0 = vsub.s32 %v7288_v16, %v1517_v34  ;;  %3027 = vst [vmem:[#allocation1] ss:$2 sm:$0xff] %v9420_v21  ;;  %v9435_v21 = vld [vmem:[#allocation20_spill] sm:$0xff] }
 0x425   :  { %v2259_v14 = vsel %vm9406_vm4, %v2256_v4, %v2258_v49  ;;  %vm2324_vm3 = vmand %vm7315_vm9, %vm2301_vm2  ;;  %v1448_v50 = vsub.s32 %v1200_v60, %v1425_v63  ;;  %v1420_v49 = vrot.slane %v7130_v20, 7  ;;  %v1630_v63 = vrot.slane %v1586_v46, 7  ;;  %v9454_v46 = vld [vmem:[#allocation106_spill] sm:$0xff]  ;;  %v7543_v1 = vld.sshfl [vmem:[#allocation1 + $0x30] sm:$0xff pattern:$0x75316420] }
 0x426   :  { %vm2490_vm11 = vmand %vm2324_vm3, %vm2467_vm7  ;;  %vm2282_vm8 = vcmp.ne.s32.totalorder %v2259_v14, 0  ;;  %vm1562_vm15 = vcmp.eq.s32.totalorder %v1539_v0, 1  ;;  %vm7375_vm6 = vcmp.eq.s32.totalorder %v1820_v18, 1  ;;  %v1792_v0 = vrot.slane %v9423_v41, 7  ;;  %v9425_v18 = vld [vmem:[#allocation49_spill] sm:$0xff] }
 0x427   :  { %vm2536_vm14 = vmand %vm2490_vm11, %vm2513_vm0  ;;  %vm7384_vm2 = vcmp.eq.s32.totalorder %v1448_v50, 1  ;;  %3028 = vst [vmem:[#allocation1 + $0x1] ss:$2 sm:$0xff] %v9425_v18  ;;  %v2653_v41 = vrot.slane %v9436_v40, 4  ;;  %v7466_v18 = vpop.permute.xlu0 %1135 }
 0x428   :  { %vm9413_vm1 = vmmov %vm9406_vm4  ;;  %v2854_v60 = vsel %vm2536_vm14, 1, %v8773_v48  ;;  %3034 = vst [vmem:[#allocation1 + $0x31] ss:$2 sm:$0xff] %v7431_v15 }
 0x429   :  { %v2448_v23 = vsel %vm9413_vm1, %v2445_v32, %v2447_v31  ;;  %vm9414_vm7 = vmmov %vm9409_vm10  ;;  %2914 = vperm.xlu2 %3532, %v2854_v60   ;;  %v1585_v31 = vsel %vm1562_vm15, 1, %v8773_v48  ;;  %v7393_v60 = vld.sshfl [vmem:[#allocation1 + $0x10] sm:$0xff pattern:$0x75316420] }
 0x42a   :  { %v1515_v28 = vsel %vm9414_vm7, %v1512_v24, %v1514_v39  ;;  %vm9416_vm9 = vmmov %vm9413_vm1  ;;  %v1628_v34 = vrot.slane %v1585_v31, 7  ;;  %vm2471_vm0 = vcmp.ne.s32.totalorder %v2448_v23, 0  ;;  %3030 = vst [vmem:[#allocation1 + $0x11] ss:$2 sm:$0xff] %v9435_v21  ;;  %v3072_v23 = vrot.slane %v7260_v47, 7 }
 0x42b   :  { %v1421_v44 = vsel %vm9416_vm9, %v1418_v58, %v1420_v49  ;;  %v1538_v39 = vsub.s32 %v7130_v20, %v1515_v28  ;;  %v2443_v28 = vrot.slane %v7149_v56, 7  ;;  %vm9426_vm4 = vmmov %vm9413_vm1 }
 0x42c   :  { %v1446_v8 = vsub.s32 %v7130_v20, %v1421_v44  ;;  %v1631_v50 = vsel %vm9426_vm4, %v1628_v34, %v1630_v63  ;;  %vm7399_vm3 = vmor %vm7375_vm6, %vm2282_vm8  ;;  %v9431_v44 = vld [vmem:[#allocation177_spill] sm:$0xff]  ;;  %v9433_v63 = vld [vmem:[#allocation114_spill] sm:$0xff] }
 0x42d   :  { %vm1561_vm12 = vcmp.eq.s32.totalorder %v1538_v39, 1  ;;  %vm9429_vm10 = vmmov %vm9413_vm1  ;;  %v9432_v39 = vand.u32 2147483647, %v9431_v44  ;;  %vm1654_vm14 = vcmp.ne.s32.totalorder %v1631_v50, 0  ;;  %v3074_v44 = vrot.slane %v7339_v17, 7 }
 0x42e   :  { %v1584_v31 = vsel %vm1561_vm12, 1, %v8773_v48  ;;  %v1793_v20 = vsel %vm9429_vm10, %v1790_v37, %v1792_v0  ;;  %vm9430_vm11 = vmmov %vm9413_vm1  ;;  %v7418_v37 = vrot.slane %v2557_v26, 5  ;;  %vm7435_vm9 = vcmp.eq.s32.totalorder %v1446_v8, 1  ;;  %v9442_v26 = vld [vmem:[#allocation53_spill] sm:$0xff] }
 0x42f   :  { %v1423_v56 = vsel %vm9430_vm11, %v1420_v49, %v1422_v9  ;;  %3029 = vst [vmem:[#allocation1 + $0x10] ss:$2 sm:$0xff] %v9432_v39  ;;  %v1626_v14 = vrot.slane %v1584_v31, 7  ;;  %v1818_v24 = vsub.s32 %v9433_v63, %v1793_v20  ;;  %vm9434_vm5 = vmmov %vm9413_vm1  ;;  %vm2517_vm1 = vcmp.lt.s32.totalorder %v9410_v42, 60 }
 0x430   :  { %v2255_v2 = vsel %vm9434_vm5, %v2252_v3, %v2254_v35  ;;  %vm1677_vm8 = vmor %vm7384_vm2, %vm1654_vm14  ;;  %v7426_v49 = vld.sshfl [vmem:[#allocation1 + $0x20] sm:$0xff pattern:$0x75316420]  ;;  %v9443_v58 = vand.u32 2147483647, %v9442_v26  ;;  %v1447_v7 = vsub.s32 %v7288_v16, %v1423_v56  ;;  %v2658_v6 = vsel %vm9178_vm13, %v7349_v43, %v7418_v37  ;;  %v2864_v43 = vpop.permute.xlu2 %2863 }
 0x431   :  { %vm9437_vm7 = vmmov %vm9426_vm4  ;;  %vm7448_vm10 = vcmp.eq.s32.totalorder %v1818_v24, 1  ;;  %3032 = vst [vmem:[#allocation1 + $0x21] ss:$2 sm:$0xff] %v9446_v19  ;;  %v7463_v53 = vld.sshfl [vmem:[#allocation1] sm:$0xff pattern:$0x75316420] }
 0x432   :  { %v1795_v9 = vsel %vm9437_vm7, %v1792_v0, %v1794_v5  ;;  %vm2328_vm15 = vmand %vm1677_vm8, %vm7399_vm3  ;;  %3031 = vst [vmem:[#allocation1 + $0x20] ss:$2 sm:$0xff] %v9443_v58  ;;  %vm2280_vm3 = vcmp.ne.s32.totalorder %v2255_v2, 0  ;;  %v2861_v0 = vpop.permute.xlu1 %2860  ;;  %v2659_v16 = vrot.slane %v7418_v37, 4  ;;  %v2561_v31 = vrot.slane %v9454_v46, 4  ;;  %v9455_v56 = vld [vmem:[#allocation178_spill] sm:$0xff] }
 0x433   :  { %vm9440_vm6 = vmmov %vm9426_vm4  ;;  %vm2515_vm7 = vcmp.lt.s32.totalorder %v9433_v63, 60  ;;  %v3071_v20 = vrot.slane %v7290_v57, 7  ;;  %3040 = vst [vmem:[#allocation1 + $0x1] ss:$2 sm:$0xff] %v9455_v56  ;;  %v9463_v2 = vld [vmem:[#allocation118_spill] sm:$0xff]  ;;  %v2655_v37 = vsel %vm9178_vm13, %v2653_v41, %v2654_v25  ;;  %v9471_v41 = vld [vmem:[#allocation157_spill] sm:$0xff] }
 0x434   :  { %v1627_v36 = vsel %vm9440_vm6, %v1624_v30, %v1626_v14  ;;  %vm9441_vm2 = vmmov %vm9426_vm4  ;;  %v9448_v30 = vld [vmem:[#allocation116_spill] sm:$0xff]  ;;  %vm7490_vm6 = vcmp.eq.s32.totalorder %v1447_v7, 1  ;;  %v9464_v21 = vand.u32 2147483647, %v9463_v2  ;;  %v2560_v58 = vrot.slane %v9471_v41, 4 }
 0x435   :  { %v2444_v5 = vsel %vm9441_vm2, %v2441_v38, %v2443_v28  ;;  %vm2494_vm12 = vmand %vm2328_vm15, %vm2471_vm0  ;;  %vm1652_vm4 = vcmp.ne.s32.totalorder %v1627_v36, 0  ;;  %v1819_v54 = vsub.s32 %v9448_v30, %v1795_v9  ;;  %vm2929_vm15 = vcmp.eq.s32.totalorder %v2864_v43, 1  ;;  %v9465_v9 = vld [vmem:[#allocation29_spill] sm:$0xff]  ;;  %v9468_v36 = vld [vmem:[#allocation11_spill] sm:$0xff]  ;;  %v2867_v43 = vpop.permute.xlu0 %2866 }
 0x436   :  { %vm2540_vm11 = vmand %vm2494_vm12, %vm2517_vm1  ;;  %vm2469_vm5 = vcmp.ne.s32.totalorder %v2444_v5, 0  ;;  %v7504_v39 = vld.sshfl [vmem:[#allocation1 + $0x10] sm:$0xff pattern:$0x75316420]  ;;  %v2776_v3 = vsub.f32 %v9465_v9, %v2658_v6  ;;  %v2681_v7 = vrot.slane %v2561_v31, 5 }
 0x437   :  { %vm9447_vm14 = vmmov %vm9441_vm2  ;;  %v2858_v8 = vsel %vm2540_vm11, 1, %v8773_v48  ;;  %3041 = vst [vmem:[#allocation1 + $0x10] ss:$2 sm:$0xff] %v9464_v21  ;;  %v9469_v5 = vld [vmem:[#allocation128_spill] sm:$0xff]  ;;  %v3076_v21 = vrot.slane %v7323_v29, 7  ;;  %v9484_v29 = vld [vmem:[#allocation39_spill] sm:$0xff] }
 0x438   :  { %v1629_v38 = vsel %vm9447_vm14, %v1626_v14, %v1628_v34  ;;  %vm7472_vm0 = vmor %vm7435_vm9, %vm1652_vm4  ;;  %v9452_v34 = vld [vmem:[#allocation169_spill] sm:$0xff]  ;;  %2926 = vperm.xlu0 %3533, %v2858_v8   ;;  %vm2928_vm4 = vcmp.eq.s32.totalorder %v2861_v0, 1  ;;  %3042 = vst [vmem:[#allocation1 + $0x11] ss:$2 sm:$0xff] %v9468_v36  ;;  %v9470_v26 = vrot.slane %v9469_v5, 5  ;;  %v9474_v0 = vld [vmem:[#allocation132_spill] sm:$0xff] }
 0x439   :  { %vm9451_vm8 = vmmov %vm9441_vm2  ;;  %v9453_v50 = vand.u32 2147483647, %v9452_v34  ;;  %vm1653_vm2 = vcmp.ne.s32.totalorder %v1629_v38, 0  ;;  %v9462_v14 = vld [vmem:[#allocation13_spill] sm:$0xff]  ;;  %v3139_v24 = vsel %vm2928_vm4, %v3071_v20, 0.0  ;;  %v9475_v8 = vld [vmem:[#allocation51_spill] sm:$0xff] }
 0x43a   :  { %v2257_v47 = vsel %vm9451_vm8, %v2254_v35, %v2256_v4  ;;  %vm2303_vm1 = vmor %vm7448_vm10, %vm2280_vm3  ;;  %vm7498_vm3 = vcmp.eq.s32.totalorder %v1819_v54, 1  ;;  %v2652_v22 = vsel %vm9178_vm13, %v9462_v14, %v9436_v40  ;;  %v2661_v51 = vsel %vm9178_vm13, %v2659_v16, %v9470_v26  ;;  %v9476_v34 = vld [vmem:[#allocation41_spill] sm:$0xff]  ;;  %v2873_v14 = vpop.permute.xlu2 %2872 }
 0x43b   :  { %3039 = vst [vmem:[#allocation1] ss:$2 sm:$0xff] %v9453_v50  ;;  %vm2326_vm9 = vmand %vm7472_vm0, %vm2303_vm1  ;;  %vm2281_vm11 = vcmp.ne.s32.totalorder %v2257_v47, 0  ;;  %v3208_v6 = vrot.slane %v3139_v24, 1  ;;  %v9473_v54 = vand.u32 2147483647, %v6359_v52 }
 0x43c   :  { %vm9458_vm12 = vmmov %vm9451_vm8  ;;  %v2559_v16 = vrot.slane %v9474_v0, 4  ;;  %v2823_v42 = vand.u32 2147483647, %v9475_v8  ;;  %v2672_v47 = vrot.slane %v9471_v41, 5  ;;  %v9477_v50 = vld [vmem:[#allocation35_spill] sm:$0xff]  ;;  %v2683_v24 = vrot.slane %v2681_v7, 4 }
 0x43d   :  { %v2446_v4 = vsel %vm9458_vm12, %v2443_v28, %v2445_v32  ;;  %vm2492_vm10 = vmand %vm2326_vm9, %vm2469_vm5  ;;  %v2678_v32 = vrot.slane %v9454_v46, 5  ;;  %3033 = vst [vmem:[#allocation1 + $0x30] ss:$2 sm:$0xff] %v9473_v54  ;;  %v2779_v31 = vsub.f32 %v9477_v50, %v9476_v34  ;;  %v9480_v52 = vld [vmem:[#allocation19_spill] sm:$0xff]  ;;  %v2821_v2 = vand.u32 2147483647, %v2776_v3 }
 0x43e   :  { %vm9461_vm14 = vmmov %vm9451_vm8  ;;  %vm2470_vm8 = vcmp.ne.s32.totalorder %v2446_v4, 0  ;;  %v2775_v35 = vsub.f32 %v9480_v52, %v2655_v37  ;;  %vm9481_vm4 = vcmask 1046528   ;;  %v3078_v37 = vrot.slane %v7370_v33, 7 }
 0x43f   :  { %v3073_v57 = vsel %vm9461_vm14, %v3071_v20, %v3072_v23  ;;  %vm2538_vm0 = vmand %vm2492_vm10, %vm2515_vm7  ;;  %v2680_v25 = vrot.slane %v2678_v32, 4  ;;  %vm2516_vm7 = vcmp.lt.s32.totalorder %v9448_v30, 60  ;;  %v9478_v20 = vld [vmem:[#allocation30_spill] sm:$0xff]  ;;  %v2674_v30 = vrot.slane %v2672_v47, 4 }
 0x440   :  { %v7514_v28 = vsel %vm2929_vm15, %v3073_v57, 0.0  ;;  %v2856_v40 = vsel %vm2538_vm0, 1, %v8773_v48  ;;  %vm7527_vm5 = vmor %vm7490_vm6, %vm1653_vm2  ;;  %v2774_v56 = vsub.f32 %v9478_v20, %v2652_v22  ;;  %v2675_v57 = vrot.slane %v2560_v58, 5 }
 0x441   :  { %2920 = vperm.xlu1 %3531, %v2856_v40   ;;  %vm2304_vm1 = vmor %vm7498_vm3, %vm2281_vm11  ;;  %v3209_v19 = vrot.slane %v7514_v28, 1  ;;  %v2682_v15 = vsel %vm9178_vm13, %v2680_v25, %v2681_v7  ;;  %v2824_v9 = vand.u32 2147483647, %v2779_v31  ;;  %v2820_v36 = vand.u32 2147483647, %v2775_v35 }
 0x442   :  { %vm2327_vm15 = vmand %vm7527_vm5, %vm2304_vm1  ;;  %v2819_v40 = vand.u32 2147483647, %v2774_v56  ;;  %v2677_v5 = vrot.slane %v2675_v57, 4  ;;  %v7577_v3 = vld.sshfl [vmem:[#allocation1] sm:$0xff pattern:$0x75316420]  ;;  %v2784_v7 = vsub.f32 %v9484_v29, %v2682_v15  ;;  %v2676_v34 = vsel %vm9178_vm13, %v2674_v30, %v2675_v57  ;;  %v2879_v17 = vpop.permute.xlu2 %2878 }
 0x443   :  { %vm9472_vm9 = vmmov %vm9458_vm12  ;;  %vm2930_vm12 = vcmp.eq.s32.totalorder %v2867_v43, 1  ;;  %v3210_v22 = vsel %vm9481_vm4, %v3208_v6, %v3209_v19  ;;  %v2669_v26 = vrot.slane %v2559_v16, 5  ;;  %v9485_v6 = vld [vmem:[#allocation166_spill] sm:$0xff]  ;;  %vm9488_vm10 = vcmask 1047556   ;;  %3051 = vst [vmem:[#allocation1] ss:$2 sm:$0xff] %v2823_v42 }
 0x444   :  { %v3075_v38 = vsel %vm9472_vm9, %v3072_v23, %v3074_v44  ;;  %vm2493_vm6 = vmand %vm2327_vm15, %vm2470_vm8  ;;  %v9479_v23 = vld [vmem:[#allocation32_spill] sm:$0xff]  ;;  %vm2932_vm3 = vcmp.eq.s32.totalorder %v2873_v14, 1  ;;  %v7598_v31 = vld.sshfl [vmem:[#allocation1 + $0x20] sm:$0xff pattern:$0x75316420]  ;;  %v9491_v20 = vrot.slane %v9474_v0, 5  ;;  %v2679_v42 = vsel %vm9178_vm13, %v2677_v5, %v2678_v32  ;;  %v2870_v0 = vpop.permute.xlu1 %2869 }
 0x445   :  { %v2777_v27 = vsub.f32 %v9479_v23, %v2661_v51  ;;  %vm2539_vm2 = vmand %vm2493_vm6, %vm2516_vm7  ;;  %v7566_v28 = vsel %vm2930_vm12, %v3075_v38, 0.0  ;;  %v9482_v51 = vld [vmem:[#allocation131_spill] sm:$0xff]  ;;  %v9486_v38 = vld [vmem:[#allocation117_spill] sm:$0xff]  ;;  %3052 = vst [vmem:[#allocation1 + $0x1] ss:$2 sm:$0xff] %v2824_v9  ;;  %v2671_v46 = vrot.slane %v2669_v26, 4 }
 0x446   :  { %v2857_v4 = vsel %vm2539_vm2, 1, %v8773_v48  ;;  %v3211_v48 = vrot.slane %v7566_v28, 1  ;;  %v9483_v25 = vrot.slane %v9482_v51, 5  ;;  %v9487_v54 = vrot.slane %v9486_v38, 4  ;;  %vm9489_vm11 = vmmov %vm9472_vm9  ;;  %v9492_v23 = vld [vmem:[#allocation43_spill] sm:$0xff]  ;;  %v9494_v57 = vld [vmem:[#allocation34_spill] sm:$0xff] }
 0x447   :  { %2923 = vperm.xlu2 %3532, %v2857_v4   ;;  %v2822_v63 = vand.u32 2147483647, %v2777_v27  ;;  %v7590_v43 = vld.sshfl [vmem:[#allocation1 + $0x30] sm:$0xff pattern:$0x75316420]  ;;  %v3079_v16 = vsel %vm9489_vm11, %v3076_v21, %v3078_v37  ;;  %vm9490_vm14 = vmmov %vm9481_vm4  ;;  %v2668_v56 = vrot.slane %v9491_v20, 4  ;;  %v2782_v4 = vsub.f32 %v9494_v57, %v2676_v34 }
 0x448   :  { %v2685_v58 = vsel %vm9178_vm13, %v2683_v24, %v9483_v25  ;;  %v7588_v8 = vsel %vm9488_vm10, %v9487_v54, %v9485_v6  ;;  %v3212_v50 = vsel %vm9490_vm14, %v3209_v19, %v3211_v48  ;;  %3045 = vst [vmem:[#allocation1 + $0x30] ss:$2 sm:$0xff] %v2821_v2  ;;  %vm9493_vm0 = vmmov %vm9472_vm9  ;;  %v2829_v19 = vand.u32 2147483647, %v2784_v7  ;;  %v9495_v24 = vld [vmem:[#allocation40_spill] sm:$0xff]  ;;  %v9496_v30 = vld [vmem:[#allocation133_spill] sm:$0xff] }
 0x449   :  { %3253 = vrot.lane.b32.xlu1 %v3210_v22, %s3538_s0  ;;  %3046 = vst [vmem:[#allocation1 + $0x31] ss:$2 sm:$0xff] %v2822_v63  ;;  %v2785_v27 = vsub.f32 %v9492_v23, %v2685_v58  ;;  %v3077_v52 = vsel %vm9493_vm0, %v3074_v44, %v3076_v21  ;;  %v2696_v35 = vrot.slane %v7588_v8, 5  ;;  %v7612_v14 = vsel %vm2932_vm3, %v3079_v16, 0.0  ;;  %vm9497_vm8 = vmmov %vm9493_vm0  ;;  %v9501_v34 = vld [vmem:[#allocation33_spill] sm:$0xff] }
 0x44a   :  { %3043 = vst [vmem:[#allocation1 + $0x20] ss:$2 sm:$0xff] %v2819_v40  ;;  %v3080_v28 = vrot.slane %v7393_v60, 7  ;;  %v3082_v32 = vrot.slane %v7426_v49, 7  ;;  %vm2931_vm5 = vcmp.eq.s32.totalorder %v2870_v0, 1  ;;  %v3523_v44 = vrot.slane %v7588_v8, 9  ;;  %vm9498_vm7 = vmmov %vm9481_vm4  ;;  %v2888_v0 = vpop.permute.xlu2 %2887 }
 0x44b   :  { %3044 = vst [vmem:[#allocation1 + $0x21] ss:$2 sm:$0xff] %v2820_v36  ;;  %v2698_v15 = vrot.slane %v2696_v35, 4  ;;  %v2783_v2 = vsub.f32 %v9495_v24, %v2679_v42  ;;  %v3142_v22 = vsel %vm2931_vm5, %v3077_v52, 0.0  ;;  %v2563_v21 = vrot.slane %v9496_v30, 4  ;;  %vm9499_vm15 = vmmov %vm9481_vm4  ;;  %v9503_v23 = vld [vmem:[#allocation37_spill] sm:$0xff]  ;;  %v2882_v52 = vpop.permute.xlu0 %2881 }
 0x44c   :  { %v2830_v9 = vand.u32 2147483647, %v2785_v27  ;;  %v3215_v40 = vrot.slane %v7612_v14, 1  ;;  %v3213_v63 = vrot.slane %v3142_v22, 1  ;;  %v2670_v60 = vsel %vm9178_vm13, %v2668_v56, %v2669_v26  ;;  %vm9500_vm9 = vmmov %vm9493_vm0  ;;  %v9504_v42 = vld [vmem:[#allocation36_spill] sm:$0xff] }
 0x44d   :  { %v2690_v49 = vrot.slane %v9496_v30, 5  ;;  %v2827_v36 = vand.u32 2147483647, %v2782_v4  ;;  %v3084_v5 = vrot.slane %v7543_v1, 7  ;;  %v3083_v25 = vsel %vm9497_vm8, %v3080_v28, %v3082_v32  ;;  %vm9502_vm6 = vmmov %vm9493_vm0 }
 0x44e   :  { %vm2934_vm1 = vcmp.eq.s32.totalorder %v2879_v17, 1  ;;  %v3214_v58 = vsel %vm9498_vm7, %v3211_v48, %v3213_v63  ;;  %v3216_v29 = vsel %vm9499_vm15, %v3213_v63, %v3215_v40  ;;  %v2673_v6 = vsel %vm9178_vm13, %v2671_v46, %v2672_v47  ;;  %vm9505_vm10 = vmmov %vm9481_vm4  ;;  %v7670_v63 = vld.sshfl [vmem:[#allocation1 + $0x10] sm:$0xff pattern:$0x75316420] }
 0x44f   :  { %3255 = vrot.lane.b32.xlu2 %v3212_v50, %s3538_s0  ;;  %v2700_v26 = vsel %vm9178_vm13, %v2698_v15, %v3523_v44  ;;  %v2828_v38 = vand.u32 2147483647, %v2783_v2  ;;  %3257 = vrot.lane.b32.xlu0 %v3214_v58, %s3538_s0  ;;  %v2693_v54 = vrot.slane %v2563_v21, 5  ;;  %v3081_v48 = vsel %vm9500_vm9, %v3078_v37, %v3080_v28  ;;  %v2876_v50 = vpop.permute.xlu1 %2875  ;;  %vm9506_vm11 = vmmov %vm9493_vm0 }
 0x450   :  { %v7630_v7 = vld.sshfl [vmem:[#allocation1 + $0x30] sm:$0xff pattern:$0x75316420]  ;;  %v2780_v41 = vsub.f32 %v9501_v34, %v2670_v60  ;;  %v3145_v16 = vsel %vm2934_vm1, %v3083_v25, 0.0  ;;  %v3085_v47 = vsel %vm9502_vm6, %v3082_v32, %v3084_v5  ;;  %v2692_v56 = vrot.slane %v2690_v49, 4  ;;  %vm9507_vm14 = vmmov %vm9481_vm4 }
 0x451   :  { %3259 = vrot.lane.b32.xlu1 %v3216_v29, %s3538_s0  ;;  %3057 = vst [vmem:[#allocation1 + $0x30] ss:$2 sm:$0xff] %v2829_v19  ;;  %v2781_v27 = vsub.f32 %v9503_v23, %v2673_v6  ;;  %v2790_v33 = vsub.f32 %v9504_v42, %v2700_v26  ;;  %vm2933_vm2 = vcmp.eq.s32.totalorder %v2876_v50, 1  ;;  %v3088_v37 = vrot.slane %v7504_v39, 7  ;;  %v9509_v26 = vld [vmem:[#allocation50_spill] sm:$0xff]  ;;  %vm9511_vm8 = vmmov %vm9481_vm4 }
 0x452   :  { %3058 = vst [vmem:[#allocation1 + $0x31] ss:$2 sm:$0xff] %v2830_v9  ;;  %v7647_v20 = vld.sshfl [vmem:[#allocation1 + $0x20] sm:$0xff pattern:$0x75316420]  ;;  %v3086_v19 = vrot.slane %v7463_v53, 7  ;;  %v2694_v24 = vsel %vm9178_vm13, %v2692_v56, %v2693_v54  ;;  %vm9512_vm1 = vmmov %vm9493_vm0 }
 0x453   :  { %3055 = vst [vmem:[#allocation1 + $0x20] ss:$2 sm:$0xff] %v2827_v36  ;;  %vm2935_vm12 = vcmp.eq.s32.totalorder %v2882_v52, 1  ;;  %v3144_v57 = vsel %vm2933_vm2, %v3081_v48, 0.0  ;;  %v2695_v4 = vrot.slane %v2693_v54, 4  ;;  %v3219_v14 = vrot.slane %v3145_v16, 1  ;;  %v2891_v29 = vpop.permute.xlu0 %2890  ;;  %vm9515_vm15 = vmmov %vm9481_vm4 }
 0x454   :  { %3056 = vst [vmem:[#allocation1 + $0x21] ss:$2 sm:$0xff] %v2828_v38  ;;  %v3146_v46 = vsel %vm2935_vm12, %v3085_v47, 0.0  ;;  %v3217_v28 = vrot.slane %v3144_v57, 1  ;;  %v2562_v32 = vrot.slane %v9482_v51, 4  ;;  %v3090_v15 = vrot.slane %v7598_v31, 7  ;;  %vm9517_vm6 = vmmov %vm9493_vm0 }
 0x455   :  { %v2825_v17 = vand.u32 2147483647, %v2780_v41  ;;  %v3221_v44 = vrot.slane %v3146_v46, 1  ;;  %v2826_v39 = vand.u32 2147483647, %v2781_v27  ;;  %vm2937_vm3 = vcmp.eq.s32.totalorder %v2888_v0, 1  ;;  %v2897_v0 = vpop.permute.xlu2 %2896  ;;  %vm9518_vm2 = vmmov %vm9493_vm0 }
 0x456   :  { %v3220_v53 = vsel %vm9481_vm4, %v3217_v28, %v3219_v14  ;;  %v3218_v2 = vsel %vm9505_vm10, %v3215_v40, %v3217_v28  ;;  %v2835_v22 = vand.u32 2147483647, %v2790_v33  ;;  %v3089_v21 = vsel %vm9506_vm11, %v3086_v19, %v3088_v37  ;;  %v9508_v36 = vld [vmem:[#allocation44_spill] sm:$0xff]  ;;  %v9513_v33 = vld [vmem:[#allocation42_spill] sm:$0xff]  ;;  %vm9520_vm10 = vmmov %vm9511_vm8 }
 0x457   :  { %3263 = vrot.lane.b32.xlu0 %v3220_v53, %s3538_s0  ;;  %3261 = vrot.lane.b32.xlu2 %v3218_v2, %s3538_s0  ;;  %v3222_v9 = vsel %vm9507_vm14, %v3219_v14, %v3221_v44  ;;  %v2697_v31 = vsel %vm9178_vm13, %v2695_v4, %v2696_v35  ;;  %v2687_v40 = vrot.slane %v2562_v32, 5  ;;  %v3091_v60 = vsel %vm9493_vm0, %v3088_v37, %v3090_v15  ;;  %v2885_v42 = vpop.permute.xlu1 %2884  ;;  %v9514_v37 = vld [vmem:[#allocation46_spill] sm:$0xff] }
 0x458   :  { %3053 = vst [vmem:[#allocation1 + $0x10] ss:$2 sm:$0xff] %v2825_v17  ;;  %v2788_v25 = vsub.f32 %v9508_v36, %v2694_v24  ;;  %v3148_v58 = vsel %vm2937_vm3, %v3089_v21, 0.0  ;;  %v2789_v8 = vsub.f32 %v9509_v26, %v2697_v31  ;;  %vm2938_vm5 = vcmp.eq.s32.totalorder %v2891_v29, 1  ;;  %vm9521_vm3 = vmmov %vm9511_vm8 }
 0x459   :  { %3265 = vrot.lane.b32.xlu1 %v3222_v9, %s3538_s0  ;;  %3054 = vst [vmem:[#allocation1 + $0x11] ss:$2 sm:$0xff] %v2826_v39  ;;  %v9510_v35 = vrot.slane %v9482_v51, 5  ;;  %v3149_v54 = vsel %vm2938_vm5, %v3091_v60, 0.0  ;;  %v2689_v48 = vrot.slane %v2687_v40, 4  ;;  %v3225_v34 = vrot.slane %v3148_v58, 1  ;;  %vm9522_vm14 = vmmov %vm9521_vm3 }
 0x45a   :  { %v3227_v41 = vrot.slane %v3149_v54, 1  ;;  %v2833_v16 = vand.u32 2147483647, %v2788_v25  ;;  %v2834_v47 = vand.u32 2147483647, %v2789_v8  ;;  %v3087_v51 = vsel %vm9512_vm1, %v3084_v5, %v3086_v19 }
 0x45b   :  { %v7674_v6 = vld.sshfl [vmem:[#allocation1 + $0x20] sm:$0xff pattern:$0x75316420]  ;;  %v2686_v38 = vrot.slane %v9510_v35, 4  ;;  %v2691_v23 = vsel %vm9178_vm13, %v2689_v48, %v2690_v49  ;;  %vm2936_vm7 = vcmp.eq.s32.totalorder %v2885_v42, 1  ;;  %v3092_v5 = vrot.slane %v7590_v43, 7  ;;  %v2900_v2 = vpop.permute.xlu0 %2899 }
 0x45c   :  { %3067 = vst [vmem:[#allocation1 + $0x20] ss:$2 sm:$0xff] %v2835_v22  ;;  %v3228_v50 = vsel %vm9511_vm8, %v3225_v34, %v3227_v41  ;;  %v2787_v57 = vsub.f32 %v9514_v37, %v2691_v23  ;;  %v3147_v4 = vsel %vm2936_vm7, %v3087_v51, 0.0  ;;  %v3094_v19 = vrot.slane %v7577_v3, 7  ;;  %vm9523_vm8 = vmmov %vm9493_vm0 }
 0x45d   :  { %v2688_v56 = vsel %vm9178_vm13, %v2686_v38, %v2687_v40  ;;  %v3223_v14 = vrot.slane %v3147_v4, 1  ;;  %vm9516_vm13 = vmmov %vm9481_vm4  ;;  %v3059_v46 = vld.sshfl [vmem:[#allocation1] sm:$0xff pattern:$0x75316420]  ;;  %vm2940_vm9 = vcmp.eq.s32.totalorder %v2897_v0, 1  ;;  %v3093_v32 = vsel %vm9518_vm2, %v3090_v15, %v3092_v5 }
 0x45e   :  { %v2786_v52 = vsub.f32 %v9513_v33, %v2688_v56  ;;  %v2832_v1 = vand.u32 2147483647, %v2787_v57  ;;  %v3095_v28 = vsel %vm9517_vm6, %v3092_v5, %v3094_v19  ;;  %v3096_v24 = vrot.slane %v7670_v63, 7  ;;  %vm9519_vm4 = vmmov %vm9493_vm0  ;;  %v3062_v51 = vld.sshfl [vmem:[#allocation1 + $0x30] sm:$0xff pattern:$0x75316420] }
 0x45f   :  { %v3226_v59 = vsel %vm9515_vm15, %v3223_v14, %v3225_v34  ;;  %v3224_v49 = vsel %vm9516_vm13, %v3221_v44, %v3223_v14  ;;  %v3151_v17 = vsel %vm2940_vm9, %v3095_v28, 0.0  ;;  %v2894_v44 = vpop.permute.xlu1 %2893  ;;  %vm2941_vm11 = vcmp.eq.s32.totalorder %v2900_v2, 1  ;;  %vm9524_vm7 = vmmov %vm9521_vm3 }
 0x460   :  { %v7690_v27 = vld.sshfl [vmem:[#allocation1 + $0x10] sm:$0xff pattern:$0x75316420]  ;;  %v2831_v30 = vand.u32 2147483647, %v2786_v52  ;;  %3269 = vrot.lane.b32.xlu0 %v3226_v59, %s3538_s0  ;;  %3267 = vrot.lane.b32.xlu2 %v3224_v49, %s3538_s0  ;;  %vm2939_vm12 = vcmp.eq.s32.totalorder %v2894_v44, 1  ;;  %v3097_v53 = vsel %vm9519_vm4, %v3094_v19, %v3096_v24  ;;  %vm9525_vm15 = vmmov %vm9521_vm3 }
 0x461   :  { %3271 = vrot.lane.b32.xlu1 %v3228_v50, %s3538_s0  ;;  %3065 = vst [vmem:[#allocation1 + $0x10] ss:$2 sm:$0xff] %v2833_v16  ;;  %v3150_v43 = vsel %vm2939_vm12, %v3093_v32, 0.0  ;;  %v3231_v3 = vrot.slane %v3151_v17, 1  ;;  %v3152_v15 = vsel %vm2941_vm11, %v3097_v53, 0.0  ;;  %v3098_v31 = vrot.slane %v7647_v20, 7  ;;  %vm9526_vm13 = vmmov %vm9493_vm0 }
 0x462   :  { %3066 = vst [vmem:[#allocation1 + $0x11] ss:$2 sm:$0xff] %v2834_v47  ;;  %v3229_v39 = vrot.slane %v3150_v43, 1  ;;  %v3233_v9 = vrot.slane %v3152_v15, 1  ;;  %v3100_v63 = vrot.slane %v7630_v7, 7  ;;  %v3102_v38 = vrot.slane %v3059_v46, 7  ;;  %vm9527_vm6 = vmmov %vm9521_vm3 }
 0x463   :  { %3063 = vst [vmem:[#allocation1] ss:$2 sm:$0xff] %v2831_v30  ;;  %v3099_v25 = vsel %vm9523_vm8, %v3096_v24, %v3098_v31  ;;  %v3104_v47 = vrot.slane %v7690_v27, 7  ;;  %v3106_v50 = vrot.slane %v7674_v6, 7  ;;  %vm9528_vm2 = vmmov %vm9493_vm0  ;;  %v3108_v37 = vrot.slane %v3062_v51, 7 }
 0x464   :  { %3064 = vst [vmem:[#allocation1 + $0x1] ss:$2 sm:$0xff] %v2832_v1  ;;  %v3232_v22 = vsel %vm9520_vm10, %v3229_v39, %v3231_v3  ;;  %v3230_v21 = vsel %vm9521_vm3, %v3227_v41, %v3229_v39  ;;  %v3234_v60 = vsel %vm9522_vm14, %v3231_v3, %v3233_v9  ;;  %v3101_v36 = vsel %vm9493_vm0, %v3098_v31, %v3100_v63  ;;  %vm9529_vm4 = vmmov %vm9493_vm0  ;;  %v3070_v46 = vld.sshfl [vmem:[#allocation1 + $0x20] sm:$0xff pattern:$0x75316420] }
 0x465   :  { %v2906_v40 = vpop.permute.xlu2 %2905  ;;  %v3103_v54 = vsel %vm9526_vm13, %v3100_v63, %v3102_v38  ;;  %v3107_v23 = vsel %vm9528_vm2, %v3104_v47, %v3106_v50  ;;  %v3105_v42 = vsel %vm9529_vm4, %v3102_v38, %v3104_v47  ;;  %vm9530_vm3 = vmmov %vm9493_vm0  ;;  %v3114_v44 = vrot.slane %v3070_v46, 7  ;;  %v9538_v63 = vld [vmem:[#allocation84_spill] sm:$0xff] }
 0x466   :  { %vm2943_vm5 = vcmp.eq.s32.totalorder %v2906_v40, 1  ;;  %v3109_v27 = vsel %vm9530_vm3, %v3106_v50, %v3108_v37  ;;  %vm9531_vm11 = vmmov %vm9527_vm6  ;;  %v9548_v50 = vld [vmem:[#allocation83_spill] sm:$0xff] }
 0x467   :  { %v3154_v58 = vsel %vm2943_vm5, %v3101_v36, 0.0  ;;  %vm9532_vm14 = vmmov %vm9527_vm6 }
 0x468   :  { %3275 = vrot.lane.b32.xlu0 %v3232_v22, %s3538_s0  ;;  %3273 = vrot.lane.b32.xlu2 %v3230_v21, %s3538_s0  ;;  %v3237_v8 = vrot.slane %v3154_v58, 1  ;;  %vm9533_vm5 = vmmov %vm9527_vm6 }
 0x469   :  { %3277 = vrot.lane.b32.xlu1 %v3234_v60, %s3538_s0  ;;  %v3069_v19 = vld.sshfl [vmem:[#allocation1 + $0x10] sm:$0xff pattern:$0x75316420]  ;;  %vm9534_vm8 = vmmov %vm9528_vm2  ;;  %v9539_v60 = vld [vmem:[#allocation101_spill] sm:$0xff] }
 0x46a   :  { %v2903_v29 = vpop.permute.xlu1 %2902  ;;  %v3112_v32 = vrot.slane %v3069_v19, 7  ;;  %vm9536_vm13 = vmmov %vm9528_vm2 }
 0x46b   :  { %vm2942_vm1 = vcmp.eq.s32.totalorder %v2903_v29, 1  ;;  %v3068_v5 = vld.sshfl [vmem:[#allocation1] sm:$0xff pattern:$0x75316420] }
 0x46c   :  { %v3153_v26 = vsel %vm2942_vm1, %v3099_v25, 0.0  ;;  %v3110_v28 = vrot.slane %v3068_v5, 7  ;;  %v9541_v25 = vld [vmem:[#allocation137_spill] sm:$0xff]  ;;  %v9555_v5 = vld [vmem:[#allocation144_spill] sm:$0xff] }
 0x46d   :  { %v3235_v35 = vrot.slane %v3153_v26, 1 }
 0x46e   :  { %v3113_v24 = vsel %vm9534_vm8, %v3110_v28, %v3112_v32  ;;  %v3111_v21 = vsel %vm9536_vm13, %v3108_v37, %v3110_v28  ;;  %vm657_vm8 = vcmp.ne.s32.totalorder %v9548_v50, 0 }
 0x46f   :  { %v3238_v20 = vsel %vm9524_vm7, %v3235_v35, %v3237_v8  ;;  %v3236_v7 = vsel %vm9525_vm15, %v3233_v9, %v3235_v35  ;;  %vm9535_vm7 = vmmov %vm9528_vm2  ;;  %vm656_vm2 = vcmp.ne.s32.totalorder %v9538_v63, 0  ;;  %v9562_v63 = vld [vmem:[#allocation149_spill] sm:$0xff] }
 0x470   :  { %3281 = vrot.lane.b32.xlu0 %v3238_v20, %s3538_s0  ;;  %3279 = vrot.lane.b32.xlu2 %v3236_v7, %s3538_s0  ;;  %v3115_v43 = vsel %vm9535_vm7, %v3112_v32, %v3114_v44  ;;  %v9545_v20 = vld [vmem:[#allocation138_spill] sm:$0xff]  ;;  %v9556_v32 = vld [vmem:[#allocation93_spill] sm:$0xff] }
 0x476   :  { %v2909_v48 = vpop.permute.xlu0 %2908 }
 0x477   :  { %vm2944_vm9 = vcmp.eq.s32.totalorder %v2909_v48, 1 }
 0x478   :  { %v3155_v34 = vsel %vm2944_vm9, %v3103_v54, 0.0  ;;  %vm9537_vm9 = vmmov %vm9533_vm5  ;;  %v9546_v54 = vld [vmem:[#allocation87_spill] sm:$0xff] }
 0x479   :  { %v3239_v41 = vrot.slane %v3155_v34, 1 }
 0x47b   :  { %v3240_v16 = vsel %vm9527_vm6, %v3237_v8, %v3239_v41  ;;  %v9543_v8 = vld [vmem:[#allocation86_spill] sm:$0xff] }
 0x47c   :  { %3283 = vrot.lane.b32.xlu1 %v3240_v16, %s3538_s0  ;;  %vm655_vm3 = vcmp.ne.s32.totalorder %v9543_v8, 0  ;;  %v9564_v8 = vld [vmem:[#allocation96_spill] sm:$0xff] }
 0x483   :  { %v2915_v56 = vpop.permute.xlu2 %2914 }
 0x484   :  { %vm2946_vm12 = vcmp.eq.s32.totalorder %v2915_v56, 1  ;;  %v9549_v56 = vld [vmem:[#allocation89_spill] sm:$0xff] }
 0x485   :  { %v3157_v33 = vsel %vm2946_vm12, %v3107_v23, 0.0  ;;  %vm9540_vm12 = vnez %v9539_v60  ;;  %v9550_v23 = vld [vmem:[#allocation90_spill] sm:$0xff] }
 0x486   :  { %v3243_v4 = vrot.slane %v3157_v33, 1  ;;  %vm679_vm4 = vmand %vm9540_vm12, %vm656_vm2 }
 0x487   :  { %v1161_v58 = vsel %vm679_vm4, %v9541_v25, 0.0  ;;  %vm680_vm7 = vmand %vm9540_vm12, %vm657_vm8 }
 0x488   :  { %v1162_v51 = vsel %vm680_vm7, %v6843_v61, 0.0  ;;  %v9554_v61 = vld [vmem:[#allocation91_spill] sm:$0xff] }
 0x489   :  { %vm661_vm2 = vcmp.ne.s32.totalorder %v9554_v61, 0 }
 0x48b   :  { %v2912_v52 = vpop.permute.xlu1 %2911 }
 0x48c   :  { %vm2945_vm10 = vcmp.eq.s32.totalorder %v2912_v52, 1 }
 0x48d   :  { %v3156_v57 = vsel %vm2945_vm10, %v3105_v42, 0.0  ;;  %vm9542_vm10 = vmmov %vm9533_vm5  ;;  %v9551_v42 = vld [vmem:[#allocation141_spill] sm:$0xff] }
 0x48e   :  { %v3241_v14 = vrot.slane %v3156_v57, 1  ;;  %v9552_v57 = vld [vmem:[#allocation143_spill] sm:$0xff] }
 0x490   :  { %v3244_v6 = vsel %vm9531_vm11, %v3241_v14, %v3243_v4  ;;  %v3242_v59 = vsel %vm9532_vm14, %v3239_v41, %v3241_v14  ;;  %vm9544_vm11 = vmmov %vm9533_vm5  ;;  %v9547_v41 = vld [vmem:[#allocation140_spill] sm:$0xff] }
 0x491   :  { %3287 = vrot.lane.b32.xlu0 %v3244_v6, %s3538_s0  ;;  %3285 = vrot.lane.b32.xlu2 %v3242_v59, %s3538_s0  ;;  %vm678_vm14 = vmand %vm9540_vm12, %vm655_vm3  ;;  %v9553_v59 = vld [vmem:[#allocation85_spill] sm:$0xff]  ;;  %vm665_vm3 = vcmp.ne.s32.totalorder %v9556_v32, 0 }
 0x492   :  { %v1160_v7 = vsel %vm678_vm14, %v9545_v20, 0.0 }
 0x493   :  { %v2918_v30 = vpop.permute.xlu0 %2917 }
 0x494   :  { %vm2947_vm0 = vcmp.eq.s32.totalorder %v2918_v30, 1 }
 0x495   :  { %v3158_v49 = vsel %vm2947_vm0, %v3109_v27, 0.0  ;;  %vm659_vm0 = vcmp.ne.s32.totalorder %v9546_v54, 0  ;;  %v9566_v54 = vld [vmem:[#allocation99_spill] sm:$0xff] }
 0x496   :  { %v3245_v1 = vrot.slane %v3158_v49, 1 }
 0x498   :  { %v3246_v0 = vsel %vm9533_vm5, %v3243_v4, %v3245_v1  ;;  %vm682_vm5 = vmand %vm9540_vm12, %vm659_vm0 }
 0x499   :  { %3289 = vrot.lane.b32.xlu1 %v3246_v0, %s3538_s0  ;;  %v1164_v16 = vsel %vm682_vm5, %v9547_v41, 0.0 }
 0x4a1   :  { %v2924_v17 = vpop.permute.xlu2 %2923 }
 0x4a2   :  { %vm2949_vm1 = vcmp.eq.s32.totalorder %v2924_v17, 1  ;;  %v9557_v17 = vld [vmem:[#allocation146_spill] sm:$0xff] }
 0x4a3   :  { %v3160_v3 = vsel %vm2949_vm1, %v3113_v24, 0.0  ;;  %vm658_vm1 = vcmp.ne.s32.totalorder %v9549_v56, 0 }
 0x4a4   :  { %v3249_v2 = vrot.slane %v3160_v3, 1  ;;  %vm681_vm13 = vmand %vm9540_vm12, %vm658_vm1  ;;  %v9559_v3 = vld [vmem:[#allocation147_spill] sm:$0xff] }
 0x4a5   :  { %v1163_v33 = vsel %vm681_vm13, %v9551_v42, 0.0  ;;  %v9571_v42 = vld [vmem:[#allocation152_spill] sm:$0xff] }
 0x4a9   :  { %v3256_v31 = vpop.permute.xlu2 %3255 }
 0x4aa   :  { %v2927_v39 = vpop.permute.xlu0 %2926  ;;  %v3323_v26 = vadd.f32 %v3256_v31, %v1161_v58  ;;  %v9561_v31 = vld [vmem:[#allocation97_spill] sm:$0xff]  ;;  %v9563_v58 = vld [vmem:[#allocation92_spill] sm:$0xff] }
 0x4ab   :  { %vm2950_vm15 = vcmp.eq.s32.totalorder %v2927_v39, 1  ;;  %vm668_vm1 = vcmp.ne.s32.totalorder %v9561_v31, 0 }
 0x4ac   :  { %v3161_v53 = vsel %vm2950_vm15, %v3115_v43, 0.0  ;;  %vm662_vm15 = vcmp.ne.s32.totalorder %v9550_v23, 0  ;;  %v9558_v43 = vld [vmem:[#allocation94_spill] sm:$0xff]  ;;  %vm691_vm7 = vmand %vm9540_vm12, %vm668_vm1 }
 0x4ad   :  { %v3251_v22 = vrot.slane %v3161_v53, 1  ;;  %vm664_vm14 = vcmp.ne.s32.totalorder %v9558_v43, 0 }
 0x4ae   :  { %vm687_vm0 = vmand %vm9540_vm12, %vm664_vm14  ;;  %vm12_vm14 = vcmask 523264  }
 0x4af   :  { %3297 = vrot.lane.b32.xlu2 %v3251_v22, %s3538_s0  ;;  %v3252_v9 = vsel %vm9537_vm9, %v3249_v2, %v3251_v22  ;;  %vm685_vm9 = vmand %vm9540_vm12, %vm662_vm15  ;;  %v1169_v39 = vsel %vm687_vm0, %v9559_v3, 0.0  ;;  %v9560_v22 = vld [vmem:[#allocation88_spill] sm:$0xff]  ;;  %vm666_vm15 = vcmp.ne.s32.totalorder %v9563_v58, 0 }
 0x4b0   :  { %3295 = vrot.lane.b32.xlu1 %v3252_v9, %s3538_s0  ;;  %v1167_v4 = vsel %vm685_vm9, %v9552_v57, 0.0  ;;  %vm663_vm5 = vcmp.ne.s32.totalorder %v9560_v22, 0  ;;  %vm689_vm13 = vmand %vm9540_vm12, %vm666_vm15  ;;  %vm667_vm9 = vcmp.ne.s32.totalorder %v9564_v8, 0  ;;  %v3540_v57 = vmov 0.0  }
 0x4b1   :  { %v3262_v48 = vpop.permute.xlu2 %3261  ;;  %vm686_vm8 = vmand %vm9540_vm12, %vm663_vm5  ;;  %15 = vst.msk [vmem:[%s8134_s1 + $0x10] sm:$0xff] %vm12_vm14, %v3540_v57 }
 0x4b2   :  { %v3326_v47 = vadd.f32 %v3262_v48, %v1164_v16  ;;  %v9568_v48 = vld [vmem:[#allocation102_spill] sm:$0xff]  ;;  %13 = vst.msk [vmem:[%s8134_s1] sm:$0xff] %vm12_vm14, %v3540_v57 }
 0x4b3   :  { %v2921_v15 = vpop.permute.xlu1 %2920  ;;  %14 = vst.msk [vmem:[%s8134_s1 + $0x8] sm:$0xff] %vm12_vm14, %v3540_v57 }
 0x4b4   :  { %vm2948_vm6 = vcmp.eq.s32.totalorder %v2921_v15, 1  ;;  %16 = vst.msk [vmem:[%s8134_s1 + $0x18] sm:$0xff] %vm12_vm14, %v3540_v57 }
 0x4b5   :  { %v3159_v40 = vsel %vm2948_vm6, %v3111_v21, 0.0  ;;  %vm660_vm6 = vcmp.ne.s32.totalorder %v9553_v59, 0  ;;  %v1168_v21 = vsel %vm686_vm8, %v7006_v12, 0.0  ;;  %v1171_v12 = vsel %vm689_vm13, %v7072_v62, 0.0  ;;  %v9567_v62 = vld [vmem:[#allocation95_spill] sm:$0xff]  ;;  %17 = vst.msk [vmem:[%s8134_s1 + $0x20] sm:$0xff] %vm12_vm14, %v3540_v57 }
 0x4b6   :  { %v3247_v36 = vrot.slane %v3159_v40, 1  ;;  %vm683_vm4 = vmand %vm9540_vm12, %vm660_vm6  ;;  %v1173_v40 = vsel %vm691_vm7, %v9562_v63, 0.0  ;;  %18 = vst.msk [vmem:[%s8134_s1 + $0x28] sm:$0xff] %vm12_vm14, %v3540_v57 }
 0x4b7   :  { %v1165_v49 = vsel %vm683_vm4, %v6921_v11, 0.0  ;;  %vm690_vm6 = vmand %vm9540_vm12, %vm667_vm9  ;;  %19 = vst.msk [vmem:[%s8134_s1 + $0x30] sm:$0xff] %vm12_vm14, %v3540_v57 }
 0x4b8   :  { %v3250_v29 = vsel %vm9542_vm10, %v3247_v36, %v3249_v2  ;;  %v3248_v35 = vsel %vm9544_vm11, %v3245_v1, %v3247_v36  ;;  %3370 = vrot.lane.b32.xlu1 %v3323_v26, %s3539_s6  ;;  %vm684_vm10 = vmand %vm9540_vm12, %vm661_vm2  ;;  %vm671_vm2 = vcmp.ne.s32.totalorder %v9566_v54, 0  ;;  %20 = vst.msk [vmem:[%s8134_s1 + $0x38] sm:$0xff] %vm12_vm14, %v3540_v57 }
 0x4b9   :  { %3293 = vrot.lane.b32.xlu0 %v3250_v29, %s3538_s0  ;;  %3291 = vrot.lane.b32.xlu2 %v3248_v35, %s3538_s0  ;;  %v1166_v19 = vsel %vm684_vm10, %v9555_v5, 0.0  ;;  %vm688_vm11 = vmand %vm9540_vm12, %vm665_vm3  ;;  %v9565_v35 = vld [vmem:[#allocation150_spill] sm:$0xff]  ;;  %vm669_vm10 = vcmp.ne.s32.totalorder %v9567_v62, 0  ;;  %21 = vst.msk [vmem:[%s8134_s1 + $0x40] sm:$0xff] %vm12_vm14, %v3540_v57  ;;  %v9580_v5 = vld [vmem:[#allocation159_spill] sm:$0xff] }
 0x4ba   :  { %v3268_v14 = vpop.permute.xlu2 %3267  ;;  %v1170_v11 = vsel %vm688_vm11, %v9557_v17, 0.0  ;;  %vm694_vm4 = vmand %vm9540_vm12, %vm671_vm2  ;;  %22 = vst.msk [vmem:[%s8134_s1 + $0x48] sm:$0xff] %vm12_vm14, %v3540_v57 }
 0x4bb   :  { %v3254_v38 = vpop.permute.xlu1 %3253  ;;  %v3329_v6 = vadd.f32 %v3268_v14, %v1167_v4  ;;  %vm692_vm3 = vmand %vm9540_vm12, %vm669_vm10  ;;  %23 = vst.msk [vmem:[%s8134_s1 + $0x50] sm:$0xff] %vm12_vm14, %v3540_v57 }
 0x4bc   :  { %v3322_v34 = vadd.f32 %v3254_v38, %v1160_v7  ;;  %v1172_v38 = vsel %vm690_vm6, %v9565_v35, 0.0  ;;  %24 = vst.msk [vmem:[%s8134_s1 + $0x58] sm:$0xff] %vm12_vm14, %v3540_v57 }
 0x4bd   :  { %25 = vst.msk [vmem:[%s8134_s1 + $0x60] sm:$0xff] %vm12_vm14, %v3540_v57 }
 0x4be   :  { %26 = vst.msk [vmem:[%s8134_s1 + $0x68] sm:$0xff] %vm12_vm14, %v3540_v57  ;;  %v3168_v62 = vld [vmem:[%s8134_s1 + $0x30] sm:$0xff] }
 0x4bf   :  { %27 = vst.msk [vmem:[%s8134_s1 + $0x70] sm:$0xff] %vm12_vm14, %v3540_v57  ;;  %v3169_v35 = vld [vmem:[%s8134_s1 + $0x38] sm:$0xff] }
 0x4c0   :  { %3376 = vrot.lane.b32.xlu1 %v3326_v47, %s3539_s6  ;;  %v1174_v47 = vsel %vm692_vm3, %v7187_v45, 0.0  ;;  %v9573_v45 = vld [vmem:[#allocation98_spill] sm:$0xff]  ;;  %28 = vst.msk [vmem:[%s8134_s1 + $0x78] sm:$0xff] %vm12_vm14, %v3540_v57 }
 0x4c1   :  { %3368 = vrot.lane.b32.xlu0 %v3322_v34, %s3539_s6  ;;  %v3258_v52 = vpop.permute.xlu0 %3257  ;;  %v1176_v34 = vsel %vm694_vm4, %v9568_v48, 0.0  ;;  %vm672_vm0 = vcmp.ne.s32.totalorder %v9573_v45, 0  ;;  %29 = vst.msk [vmem:[%s8134_s1 + $0x80] sm:$0xff] %vm12_vm14, %v3540_v57 }
 0x4c2   :  { %v3324_v27 = vadd.f32 %v3258_v52, %v1162_v51  ;;  %v3274_v44 = vpop.permute.xlu2 %3273  ;;  %v9569_v51 = vld [vmem:[#allocation103_spill] sm:$0xff]  ;;  %vm695_vm5 = vmand %vm9540_vm12, %vm672_vm0  ;;  %30 = vst.msk [vmem:[%s8134_s1 + $0x88] sm:$0xff] %vm12_vm14, %v3540_v57 }
 0x4c3   :  { %v3260_v37 = vpop.permute.xlu1 %3259  ;;  %v3332_v24 = vadd.f32 %v3274_v44, %v1170_v11  ;;  %vm9570_vm11 = vnez %v9569_v51  ;;  %v1177_v4 = vsel %vm695_vm5, %v7276_v55, 0.0  ;;  %31 = vst.msk [vmem:[%s8134_s1 + $0x90] sm:$0xff] %vm12_vm14, %v3540_v57  ;;  %v9583_v11 = vld [vmem:[#allocation105_spill] sm:$0xff]  ;;  %v3171_v51 = vld [vmem:[%s8134_s1 + $0x48] sm:$0xff] }
 0x4c4   :  { %v3325_v30 = vadd.f32 %v3260_v37, %v1163_v33  ;;  %3372 = vrot.lane.b32.xlu2 %v3324_v27, %s3539_s6  ;;  %v9572_v33 = vsel %vm9570_vm11, %v9571_v42, 0.0  ;;  %32 = vst.msk [vmem:[%s8134_s1 + $0x98] sm:$0xff] %vm12_vm14, %v3540_v57  ;;  %vm676_vm13 = vcmp.ne.s32.totalorder %v9583_v11, 0 }
 0x4c5   :  { %33 = vst.msk [vmem:[%s8134_s1 + $0xa0] sm:$0xff] %vm12_vm14, %v3540_v57  ;;  %vm699_vm9 = vmand %vm9540_vm12, %vm676_vm13 }
 0x4c6   :  { %34 = vst.msk [vmem:[%s8134_s1 + $0xa8] sm:$0xff] %vm12_vm14, %v3540_v57 }
 0x4c8   :  { %3382 = vrot.lane.b32.xlu1 %v3329_v6, %s3539_s6  ;;  %v9576_v6 = vld [vmem:[#allocation156_spill] sm:$0xff] }
 0x4c9   :  { %3374 = vrot.lane.b32.xlu0 %v3325_v30, %s3539_s6  ;;  %v3264_v1 = vpop.permute.xlu0 %3263  ;;  %v9574_v30 = vld [vmem:[#allocation155_spill] sm:$0xff] }
 0x4ca   :  { %v3327_v0 = vadd.f32 %v3264_v1, %v1165_v49  ;;  %v3280_v36 = vpop.permute.xlu2 %3279  ;;  %vm9575_vm8 = vnez %v9574_v30  ;;  %v9578_v1 = vld [vmem:[#allocation158_spill] sm:$0xff] }
 0x4cb   :  { %v3266_v46 = vpop.permute.xlu1 %3265  ;;  %v3335_v25 = vadd.f32 %v3280_v36, %v1173_v40  ;;  %v9577_v59 = vsel %vm9575_vm8, %v9576_v6, 0.0  ;;  %vm9579_vm1 = vnez %v9578_v1  ;;  %v3166_v40 = vld [vmem:[%s8134_s1 + $0x20] sm:$0xff] }
 0x4cc   :  { %v3328_v28 = vadd.f32 %v3266_v46, %v1166_v19  ;;  %3378 = vrot.lane.b32.xlu2 %v3327_v0, %s3539_s6  ;;  %v9581_v19 = vsel %vm9579_vm1, %v9580_v5, 0.0  ;;  %v9582_v46 = vld [vmem:[#allocation104_spill] sm:$0xff] }
 0x4cd   :  { %vm677_vm7 = vcmp.ne.s32.totalorder %v9582_v46, 0 }
 0x4ce   :  { %vm700_vm15 = vmand %vm9540_vm12, %vm677_vm7 }
 0x4d0   :  { %3388 = vrot.lane.b32.xlu1 %v3332_v24, %s3539_s6  ;;  %v1181_v24 = vsel %vm699_vm9, %v7382_v10, 0.0 }
 0x4d1   :  { %3380 = vrot.lane.b32.xlu0 %v3328_v28, %s3539_s6  ;;  %v1182_v28 = vsel %vm700_vm15, %v7466_v18, 0.0  ;;  %v3164_v18 = vld [vmem:[%s8134_s1 + $0x10] sm:$0xff] }
 0x4d2   :  { %v3270_v15 = vpop.permute.xlu0 %3269 }
 0x4d3   :  { %v3272_v53 = vpop.permute.xlu1 %3271  ;;  %v3330_v9 = vadd.f32 %v3270_v15, %v1168_v21  ;;  %v3163_v15 = vld [vmem:[%s8134_s1 + $0x8] sm:$0xff] }
 0x4d4   :  { %v3331_v2 = vadd.f32 %v3272_v53, %v1169_v39  ;;  %v9584_v39 = vld [vmem:[#allocation100_spill] sm:$0xff]  ;;  %v3167_v53 = vld [vmem:[%s8134_s1 + $0x28] sm:$0xff] }
 0x4d5   :  { %3384 = vrot.lane.b32.xlu2 %v3330_v9, %s3539_s6  ;;  %vm675_vm6 = vcmp.ne.s32.totalorder %v9584_v39, 0 }
 0x4d6   :  { %vm698_vm2 = vmand %vm9540_vm12, %vm675_vm6  ;;  %vm35_vm12 = vcmask 519168  }
 0x4d7   :  { %v1180_v10 = vsel %vm698_vm2, %v7372_v13, 0.0  ;;  %v3162_v13 = vld [vmem:[%s8134_s1] sm:$0xff]  ;;  %36 = vst.msk [vmem:[%s8134_s1 + $0xb0] sm:$0xf] %vm35_vm12, %v3540_v57 }
 0x4d8   :  { %3394 = vrot.lane.b32.xlu1 %v3335_v25, %s3539_s6  ;;  %v3182_v57 = vld [vmem:[%s8134_s1 + $0xa0] sm:$0xff] }
 0x4d9   :  { %3386 = vrot.lane.b32.xlu0 %v3331_v2, %s3539_s6 }
 0x4da   :  { %v3276_v29 = vpop.permute.xlu0 %3275 }
 0x4db   :  { %v3333_v26 = vadd.f32 %v3276_v29, %v1171_v12  ;;  %v3278_v20 = vpop.permute.xlu1 %3277  ;;  %v3165_v12 = vld [vmem:[%s8134_s1 + $0x18] sm:$0xff]  ;;  %v3170_v29 = vld [vmem:[%s8134_s1 + $0x40] sm:$0xff] }
 0x4dc   :  { %v3334_v7 = vadd.f32 %v3278_v20, %v1172_v38 }
 0x4dd   :  { %3390 = vrot.lane.b32.xlu2 %v3333_v26, %s3539_s6 }
 0x4de   :  { %v3184_v39 = vld [vmem:[%s8134_s1 + $0xb0] sm:$0xf] }
 0x4e1   :  { %3392 = vrot.lane.b32.xlu0 %v3334_v7, %s3539_s6 }
 0x4e2   :  { %v3282_v50 = vpop.permute.xlu0 %3281 }
 0x4e3   :  { %v3336_v56 = vadd.f32 %v3282_v50, %v1174_v47 }
 0x4e5   :  { %3396 = vrot.lane.b32.xlu2 %v3336_v56, %s3539_s6 }
 0x4eb   :  { %v3286_v41 = vpop.permute.xlu2 %3285 }
 0x4ec   :  { %v3338_v16 = vadd.f32 %v3286_v41, %v1176_v34  ;;  %v3173_v41 = vld [vmem:[%s8134_s1 + $0x58] sm:$0xff] }
 0x4ee   :  { %3400 = vrot.lane.b32.xlu1 %v3338_v16, %s3539_s6  ;;  %v3284_v23 = vpop.permute.xlu1 %3283  ;;  %v3172_v16 = vld [vmem:[%s8134_s1 + $0x50] sm:$0xff] }
 0x4ef   :  { %v3337_v52 = vadd.f32 %v3284_v23, %v9572_v33 }
 0x4f1   :  { %3398 = vrot.lane.b32.xlu0 %v3337_v52, %s3539_s6  ;;  %v3176_v52 = vld [vmem:[%s8134_s1 + $0x70] sm:$0xff] }
 0x503   :  { %v3288_v14 = vpop.permute.xlu0 %3287 }
 0x504   :  { %v3339_v27 = vadd.f32 %v3288_v14, %v1177_v4 }
 0x506   :  { %3402 = vrot.lane.b32.xlu2 %v3339_v27, %s3539_s6 }
 0x509   :  { %v3298_v37 = vpop.permute.xlu2 %3297 }
 0x50a   :  { %v3344_v32 = vadd.f32 %v3298_v37, %v1182_v28  ;;  %v3175_v37 = vld [vmem:[%s8134_s1 + $0x68] sm:$0xff] }
 0x50b   :  { %v3290_v49 = vpop.permute.xlu1 %3289 }
 0x50c   :  { %v3340_v0 = vadd.f32 %v3290_v49, %v9581_v19 }
 0x50e   :  { %3404 = vrot.lane.b32.xlu0 %v3340_v0, %s3539_s6  ;;  %v3177_v0 = vld [vmem:[%s8134_s1 + $0x78] sm:$0xff] }
 0x513   :  { %v3292_v55 = vpop.permute.xlu2 %3291 }
 0x514   :  { %v3341_v61 = vadd.f32 %v3292_v55, %v9577_v59  ;;  %v3174_v55 = vld [vmem:[%s8134_s1 + $0x60] sm:$0xff]  ;;  %v3179_v59 = vld [vmem:[%s8134_s1 + $0x88] sm:$0xff] }
 0x516   :  { %3406 = vrot.lane.b32.xlu1 %v3341_v61, %s3539_s6  ;;  %v3178_v61 = vld [vmem:[%s8134_s1 + $0x80] sm:$0xff] }
 0x51e   :  { %3412 = vrot.lane.b32.xlu1 %v3344_v32, %s3539_s6  ;;  %v3373_v17 = vpop.permute.xlu2 %3372 }
 0x51f   :  { %v3439_v44 = vadd.f32 %v3373_v17, %v3164_v18  ;;  %v3181_v18 = vld [vmem:[%s8134_s1 + $0x98] sm:$0xff] }
 0x521   :  { %3463 = vst.msk [vmem:[%s8134_s1 + $0x10] sm:$0xff] %vm12_vm14, %v3439_v44  ;;  %v3180_v44 = vld [vmem:[%s8134_s1 + $0x90] sm:$0xff] }
 0x522   :  { %v3296_v43 = vpop.permute.xlu1 %3295 }
 0x523   :  { %v3343_v3 = vadd.f32 %v3296_v43, %v1181_v24 }
 0x525   :  { %3410 = vrot.lane.b32.xlu0 %v3343_v3, %s3539_s6 }
 0x526   :  { %v3379_v22 = vpop.permute.xlu2 %3378 }
 0x527   :  { %v3442_v9 = vadd.f32 %v3379_v22, %v3167_v53 }
 0x529   :  { %3466 = vst.msk [vmem:[%s8134_s1 + $0x28] sm:$0xff] %vm12_vm14, %v3442_v9 }
 0x52a   :  { %v3371_v31 = vpop.permute.xlu1 %3370 }
 0x52b   :  { %v3294_v2 = vpop.permute.xlu0 %3293  ;;  %v3438_v60 = vadd.f32 %v3371_v31, %v3163_v15 }
 0x52c   :  { %v3342_v21 = vadd.f32 %v3294_v2, %v1180_v10  ;;  %v3183_v2 = vld [vmem:[%s8134_s1 + $0xa8] sm:$0xff] }
 0x52d   :  { %3462 = vst.msk [vmem:[%s8134_s1 + $0x8] sm:$0xff] %vm12_vm14, %v3438_v60 }
 0x52e   :  { %3408 = vrot.lane.b32.xlu2 %v3342_v21, %s3539_s6 }
 0x52f   :  { %v3385_v8 = vpop.permute.xlu2 %3384 }
 0x530   :  { %v3445_v20 = vadd.f32 %v3385_v8, %v3170_v29 }
 0x532   :  { %v3377_v25 = vpop.permute.xlu1 %3376  ;;  %3469 = vst.msk [vmem:[%s8134_s1 + $0x40] sm:$0xff] %vm12_vm14, %v3445_v20 }
 0x533   :  { %v3369_v63 = vpop.permute.xlu0 %3368  ;;  %v3441_v58 = vadd.f32 %v3377_v25, %v3166_v40 }
 0x534   :  { %v3437_v36 = vadd.f32 %v3369_v63, %v3162_v13 }
 0x535   :  { %3465 = vst.msk [vmem:[%s8134_s1 + $0x20] sm:$0xff] %vm12_vm14, %v3441_v58 }
 0x536   :  { %3461 = vst.msk [vmem:[%s8134_s1] sm:$0xff] %vm12_vm14, %v3437_v36 }
 0x537   :  { %v3391_v47 = vpop.permute.xlu2 %3390 }
 0x538   :  { %v3448_v56 = vadd.f32 %v3391_v47, %v3173_v41 }
 0x53a   :  { %v3383_v7 = vpop.permute.xlu1 %3382  ;;  %3472 = vst.msk [vmem:[%s8134_s1 + $0x58] sm:$0xff] %vm12_vm14, %v3448_v56 }
 0x53b   :  { %v3375_v26 = vpop.permute.xlu0 %3374  ;;  %v3444_v54 = vadd.f32 %v3383_v7, %v3169_v35 }
 0x53c   :  { %v3440_v38 = vadd.f32 %v3375_v26, %v3165_v12 }
 0x53d   :  { %3468 = vst.msk [vmem:[%s8134_s1 + $0x38] sm:$0xff] %vm12_vm14, %v3444_v54 }
 0x53e   :  { %3464 = vst.msk [vmem:[%s8134_s1 + $0x18] sm:$0xff] %vm12_vm14, %v3440_v38 }
 0x53f   :  { %v3397_v45 = vpop.permute.xlu2 %3396 }
 0x540   :  { %v3451_v14 = vadd.f32 %v3397_v45, %v3176_v52 }
 0x542   :  { %v3389_v50 = vpop.permute.xlu1 %3388  ;;  %3475 = vst.msk [vmem:[%s8134_s1 + $0x70] sm:$0xff] %vm12_vm14, %v3451_v14 }
 0x543   :  { %v3381_v48 = vpop.permute.xlu0 %3380  ;;  %v3447_v23 = vadd.f32 %v3389_v50, %v3172_v16 }
 0x544   :  { %v3443_v34 = vadd.f32 %v3381_v48, %v3168_v62 }
 0x545   :  { %3471 = vst.msk [vmem:[%s8134_s1 + $0x50] sm:$0xff] %vm12_vm14, %v3447_v23 }
 0x546   :  { %3467 = vst.msk [vmem:[%s8134_s1 + $0x30] sm:$0xff] %vm12_vm14, %v3443_v34 }
 0x54a   :  { %v3395_v4 = vpop.permute.xlu1 %3394 }
 0x54b   :  { %v3387_v42 = vpop.permute.xlu0 %3386  ;;  %v3450_v27 = vadd.f32 %v3395_v4, %v3175_v37 }
 0x54c   :  { %v3446_v33 = vadd.f32 %v3387_v42, %v3171_v51 }
 0x54d   :  { %3474 = vst.msk [vmem:[%s8134_s1 + $0x68] sm:$0xff] %vm12_vm14, %v3450_v27 }
 0x54e   :  { %3470 = vst.msk [vmem:[%s8134_s1 + $0x48] sm:$0xff] %vm12_vm14, %v3446_v33 }
 0x553   :  { %v3393_v30 = vpop.permute.xlu0 %3392 }
 0x554   :  { %v3449_v6 = vadd.f32 %v3393_v30, %v3174_v55 }
 0x556   :  { %3473 = vst.msk [vmem:[%s8134_s1 + $0x60] sm:$0xff] %vm12_vm14, %v3449_v6 }
 0x560   :  { %v3403_v49 = vpop.permute.xlu2 %3402  ;;  %v3401_v1 = vpop.permute.xlu1 %3400 }
 0x561   :  { %v3454_v5 = vadd.f32 %v3403_v49, %v3179_v59  ;;  %v3453_v19 = vadd.f32 %v3401_v1, %v3178_v61 }
 0x563   :  { %3478 = vst.msk [vmem:[%s8134_s1 + $0x88] sm:$0xff] %vm12_vm14, %v3454_v5  ;;  %v3399_v46 = vpop.permute.xlu0 %3398 }
 0x564   :  { %3477 = vst.msk [vmem:[%s8134_s1 + $0x80] sm:$0xff] %vm12_vm14, %v3453_v19  ;;  %v3452_v28 = vadd.f32 %v3399_v46, %v3177_v0 }
 0x566   :  { %3476 = vst.msk [vmem:[%s8134_s1 + $0x78] sm:$0xff] %vm12_vm14, %v3452_v28 }
 0x580   :  { %v3405_v43 = vpop.permute.xlu0 %3404 }
 0x581   :  { %v3455_v3 = vadd.f32 %v3405_v43, %v3180_v44 }
 0x583   :  { %3479 = vst.msk [vmem:[%s8134_s1 + $0x90] sm:$0xff] %vm12_vm14, %v3455_v3 }
 0x588   :  { %v3409_v32 = vpop.permute.xlu2 %3408  ;;  %v3407_v11 = vpop.permute.xlu1 %3406 }
 0x589   :  { %v3457_v17 = vadd.f32 %v3409_v32, %v3182_v57  ;;  %v3456_v24 = vadd.f32 %v3407_v11, %v3181_v18 }
 0x58b   :  { %3481 = vst.msk [vmem:[%s8134_s1 + $0xa0] sm:$0xff] %vm12_vm14, %v3457_v17 }
 0x58c   :  { %3480 = vst.msk [vmem:[%s8134_s1 + $0x98] sm:$0xff] %vm12_vm14, %v3456_v24 }
 0x590   :  { %v3413_v53 = vpop.permute.xlu1 %3412 }
 0x591   :  { %v3459_v10 = vadd.f32 %v3413_v53, %v3184_v39 }
 0x593   :  { %3484 = vst.msk [vmem:[%s8134_s1 + $0xb0] sm:$0xf] %vm35_vm12, %v3459_v10 }
 0x597   :  { %v3411_v22 = vpop.permute.xlu0 %3410 }
 0x598   :  { %v3458_v21 = vadd.f32 %v3411_v22, %v3183_v2 }
 0x59a   :  { %3482 = vst.msk [vmem:[%s8134_s1 + $0xa8] sm:$0xff] %vm12_vm14, %v3458_v21 }

</bundles_post_ra>
